<compile_context>
chip_gen: v7x
topology: tpu7x:2x2x1
jax: 0.10.0
libtpu: 0.0.40
codegen_flags: <defaults>
</compile_context>

<pallas_src>
import jax
import jax.numpy as jnp
from jax import lax
from jax.experimental import pallas as pl
from jax.experimental.pallas import tpu as pltpu

_EPS = 1e-5


# -----------------------------------------------------------------------------
# In-kernel conv + BN(folded) + ReLU + 2x2 max pool, row-Toeplitz formulation
# -----------------------------------------------------------------------------
def _conv_bn_relu_pool(pad_ref, t_ref, b_ref, TN, H, W, Cout):
    """pad_ref: (TN, H+2, W*Cin) VMEM (rows 0 / H+1 are a zero halo).
    t_ref:   (3, W*Cin, W*Cout) row-Toeplitz conv weights (BN scale folded);
             output columns ordered [even w_out | odd w_out].
    b_ref:   (1, W*Cout) folded per-channel bias tiled over w.
    returns  (TN*(H//2), (W//2)*Cout) pooled activation, rows=(n,h'), lanes=(w',c).
    """
    K = t_ref.shape[1]
    acc = jnp.zeros((TN * H, W * Cout), jnp.float32)
    for kh in range(3):
        # Sublane row-window slice only — lanes stay put.
        lhs = pad_ref[:, kh:kh + H, :].reshape(TN * H, K)
        acc = acc + jnp.dot(lhs, t_ref[kh], preferred_element_type=jnp.float32)
    acc = jnp.maximum(acc + b_ref[...], 0.0)

    # 2x2 max pool, stride 2.
    half = (W // 2) * Cout
    pooled_w = jnp.maximum(acc[:, :half], acc[:, half:])      # W-pool: lane halves
    pooled = pooled_w.reshape(TN * (H // 2), 2 * half)         # H row pairs -> lanes
    return jnp.maximum(pooled[:, :half], pooled[:, half:])     # H-pool


def _make_kernel(TN, H, W, C0, C1, C2):
    H1, W1 = H // 2, W // 2
    H2, W2 = H1 // 2, W1 // 2

    def kernel(x_ref, t1_ref, b1_ref, t2_ref, b2_ref,
               fc1w_ref, fc1b_ref, fc2w_ref, fc2b_ref,
               o_ref, pad1_ref, pad2_ref):
        f32 = jnp.float32

        # ---- layer 1: halo-only zeroing + full-lane interior store --------
        pad1_ref[:, 0:1, :] = jnp.zeros((TN, 1, W * C0), f32)
        pad1_ref[:, H + 1:H + 2, :] = jnp.zeros((TN, 1, W * C0), f32)
        pad1_ref[:, 1:H + 1, :] = x_ref[...]
        p1 = _conv_bn_relu_pool(pad1_ref, t1_ref, b1_ref, TN, H, W, C1)

        # ---- layer 2: pooled rows written straight into pad2's interior ---
        pad2_ref[:, 0:1, :] = jnp.zeros((TN, 1, W1 * C1), f32)
        pad2_ref[:, H1 + 1:H1 + 2, :] = jnp.zeros((TN, 1, W1 * C1), f32)
        pad2_ref[:, 1:H1 + 1, :] = p1.reshape(TN, H1, W1 * C1)
        p2 = _conv_bn_relu_pool(pad2_ref, t2_ref, b2_ref, TN, H1, W1, C2)

        # ---- fc1 + ReLU (fc1 rows pre-permuted to (h2, w2, c) order) -------
        flat = p2.reshape(TN, H2 * W2 * C2)
        h = jnp.dot(flat, fc1w_ref[...], preferred_element_type=jnp.float32)
        h = jnp.maximum(h + fc1b_ref[...], 0.0)

        # ---- fc2 + sigmoid: VPU multiply + lane reduction ------------------
        o = jnp.sum(h * fc2w_ref[...], axis=-1, keepdims=True) + fc2b_ref[...]
        o_ref[...] = jax.nn.sigmoid(o)

    return kernel


# -----------------------------------------------------------------------------
# Wrapper: one-time parameter folding + the batched pallas_call
# -----------------------------------------------------------------------------
def _build_row_toeplitz(w_hwio, W):
    """(3,3,Cin,Cout) conv weights -> (3, W*Cin, W*Cout) row-Toeplitz matrices.

    Rows ordered (w_in, cin); columns ordered ([even w_out | odd w_out], cout)
    so the W-direction 2x2 pool is a half/half lane max.  W-direction zero
    padding contributes nothing, so no halo rows are needed.
    """
    _, _, cin, cout = w_hwio.shape
    zblk = jnp.zeros((cin, cout), w_hwio.dtype)
    wout_order = list(range(0, W, 2)) + list(range(1, W, 2))
    mats = []
    for kh in range(3):
        rows = []
        for w_in in range(W):
            blocks = []
            for w_out in wout_order:
                kw = w_in - w_out + 1
                blocks.append(w_hwio[kh, kw] if 0 <= kw <= 2 else zblk)
            rows.append(jnp.concatenate(blocks, axis=1))
        mats.append(jnp.concatenate(rows, axis=0))
    return jnp.stack(mats)


def _fold_layer(w_oihw, conv_b, gamma, beta, mean, var, W):
    """Fold eval-mode BN (+ conv bias) into a Toeplitz weight + bias row."""
    scale = gamma / jnp.sqrt(var + _EPS)
    w_hwio = jnp.transpose(w_oihw, (2, 3, 1, 0)) * scale          # scale over Cout
    bias = beta + (conv_b - mean) * scale
    cout = w_oihw.shape[0]
    return (_build_row_toeplitz(w_hwio, W),
            jnp.tile(bias, (W,)).reshape(1, W * cout))


def relation_network_forward(x_nchw, p):
    N, C0, H, W = x_nchw.shape
    assert H % 4 == 0 and W % 4 == 0, "two 2x2 pools require H, W % 4 == 0"
    C1 = p["conv1_w"].shape[0]
    C2 = p["conv2_w"].shape[0]
    H1, W1 = H // 2, W // 2
    H2, W2 = H1 // 2, W1 // 2
    hidden = p["fc1_w"].shape[0]
    assert p["fc1_w"].shape[1] == C2 * H2 * W2

    t1, b1 = _fold_layer(p["conv1_w"], p["conv1_b"], p["bn1_gamma"],
                         p["bn1_beta"], p["bn1_mean"], p["bn1_var"], W)
    t2, b2 = _fold_layer(p["conv2_w"], p["conv2_b"], p["bn2_gamma"],
                         p["bn2_beta"], p["bn2_mean"], p["bn2_var"], W1)

    # Fold the PyTorch NCHW .view(N,-1) flatten (c,h,w order) into fc1's rows
    # so the kernel can feed fc1 directly from its (h2, w2, c) activation.
    fc1 = p["fc1_w"].T.reshape(C2, H2, W2, hidden)
    fc1 = jnp.transpose(fc1, (1, 2, 0, 3)).reshape(H2 * W2 * C2, hidden)
    fc1_b = p["fc1_b"].reshape(1, hidden)
    fc2 = p["fc2_w"].reshape(1, hidden)
    fc2_b = p["fc2_b"].reshape(1, 1)

    # ---- batch tiling -------------------------------------------------------
    if N >= 16:
        TN = 16            # M=128 rows per conv1 matmul; fits v7x's 64 MiB VMEM
    elif N >= 8:
        TN = 8
    else:
        TN = N
    n_pad = ((N + TN - 1) // TN) * TN

    # NCHW -> rows=(n,h), lanes=(w,c); zero-pad the batch to a multiple of TN.
    x = jnp.transpose(x_nchw, (0, 2, 3, 1)).astype(jnp.float32)
    x = x.reshape(N, H, W * C0)
    if n_pad != N:
        x = jnp.concatenate(
            [x, jnp.zeros((n_pad - N, H, W * C0), jnp.float32)], axis=0)

    kernel = _make_kernel(TN, H, W, C0, C1, C2)

    def resident(ndim):
        return lambda i: (0,) * ndim           # weights stay VMEM-resident

    out = pl.pallas_call(
        kernel,
        out_shape=jax.ShapeDtypeStruct((n_pad, 1), jnp.float32),
        grid=(n_pad // TN,),
        in_specs=[
            pl.BlockSpec((TN, H, W * C0), lambda i: (i, 0, 0)),
            pl.BlockSpec(t1.shape, resident(3)),
            pl.BlockSpec(b1.shape, resident(2)),
            pl.BlockSpec(t2.shape, resident(3)),
            pl.BlockSpec(b2.shape, resident(2)),
            pl.BlockSpec(fc1.shape, resident(2)),
            pl.BlockSpec(fc1_b.shape, resident(2)),
            pl.BlockSpec(fc2.shape, resident(2)),
            pl.BlockSpec(fc2_b.shape, resident(2)),
        ],
        out_specs=pl.BlockSpec((TN, 1), lambda i: (i, 0)),
        scratch_shapes=[
            pltpu.VMEM((TN, H + 2, W * C0), jnp.float32),      # layer-1 H-padded rows
            pltpu.VMEM((TN, H1 + 2, W1 * C1), jnp.float32),    # layer-2 H-padded rows
        ],
        compiler_params=pltpu.CompilerParams(
            dimension_semantics=("parallel",),        # v7x: shard tiles on 2 TCs
            vmem_limit_bytes=40 * 1024 * 1024,        # > v5e's 16 MiB default scoped
        ),
    )(x, t1, b1, t2, b2, fc1, fc1_b, fc2, fc2_b)
    return out[:N]


# -----------------------------------------------------------------------------
# Pure-JAX reference (correctness check only)
# -----------------------------------------------------------------------------
def _reference_forward(x_nchw, p):
    def layer(x, w, cb, gamma, beta, mean, var):
        y = lax.conv_general_dilated(x, w, (1, 1), ((1, 1), (1, 1)),
                                     dimension_numbers=("NCHW", "OIHW", "NCHW"))
        y = y + cb[None, :, None, None]
        y = (y - mean[None, :, None, None]) / jnp.sqrt(var[None, :, None, None] + _EPS)
        y = y * gamma[None, :, None, None] + beta[None, :, None, None]
        y = jnp.maximum(y, 0.0)
        return lax.reduce_window(y, -jnp.inf, lax.max,
                                 (1, 1, 2, 2), (1, 1, 2, 2), "VALID")

    y = layer(x_nchw, p["conv1_w"], p["conv1_b"], p["bn1_gamma"], p["bn1_beta"],
              p["bn1_mean"], p["bn1_var"])
    y = layer(y, p["conv2_w"], p["conv2_b"], p["bn2_gamma"], p["bn2_beta"],
              p["bn2_mean"], p["bn2_var"])
    y = y.reshape(y.shape[0], -1)
    h = jnp.maximum(y @ p["fc1_w"].T + p["fc1_b"], 0.0)
    return jax.nn.sigmoid(h @ p["fc2_w"].T + p["fc2_b"])


# -----------------------------------------------------------------------------
# Deterministic parameter construction + run
# -----------------------------------------------------------------------------
def _make_params(key, input_size, hidden_size):
    ks = jax.random.split(key, 14)
    f32 = jnp.float32
    return {
        # layer1: Conv2d(128, 64, 3, padding=1) + BatchNorm2d(64)
        "conv1_w": 0.05 * jax.random.normal(ks[0], (64, 128, 3, 3), f32),
        "conv1_b": 0.05 * jax.random.normal(ks[1], (64,), f32),
        "bn1_gamma": 1.0 + 0.1 * jax.random.normal(ks[2], (64,), f32),
        "bn1_beta": 0.1 * jax.random.normal(ks[3], (64,), f32),
        "bn1_mean": 0.1 * jax.random.normal(ks[4], (64,), f32),
        "bn1_var": jax.random.uniform(ks[5], (64,), f32, 0.5, 1.5),
        # layer2: Conv2d(64, 64, 3, padding=1) + BatchNorm2d(64)
        "conv2_w": 0.05 * jax.random.normal(ks[6], (64, 64, 3, 3), f32),
        "conv2_b": 0.05 * jax.random.normal(ks[7], (64,), f32),
        "bn2_gamma": 1.0 + 0.1 * jax.random.normal(ks[8], (64,), f32),
        "bn2_beta": 0.1 * jax.random.normal(ks[9], (64,), f32),
        "bn2_mean": 0.1 * jax.random.normal(ks[10], (64,), f32),
        "bn2_var": jax.random.uniform(ks[11], (64,), f32, 0.5, 1.5),
        # fc1: Linear(input_size, hidden_size), fc2: Linear(hidden_size, 1)
        "fc1_w": 0.05 * jax.random.normal(ks[12], (hidden_size, input_size), f32),
        "fc1_b": jnp.zeros((hidden_size,), f32),
        "fc2_w": 0.05 * jax.random.normal(ks[13], (1, hidden_size), f32),
        "fc2_b": jnp.zeros((1,), f32),
    }


if __name__ == "__main__":
    key = jax.random.PRNGKey(0)
    k_x, k_p = jax.random.split(key)

    # Small shapes consistent with the module: x is (N, 128, H, W).
    N, C, H, W = 2, 128, 8, 8
    # After two (conv + pool/2) layers: (N, 64, 2, 2) -> input_size = 256.
    input_size, hidden_size = 64 * (H // 4) * (W // 4), 8

    x = jax.random.normal(k_x, (N, C, H, W), jnp.float32)
    params = _make_params(k_p, input_size, hidden_size)

    fwd = jax.jit(relation_network_forward)
    out = jax.block_until_ready(fwd(x, params))
    assert out.shape == (N, 1), out.shape

    ref = jax.block_until_ready(_reference_forward(x, params))
    assert jnp.allclose(out, ref, atol=1e-4, rtol=1e-4), (out, ref)

    print("KERNEL_OK")
</pallas_src>

<mosaic_0001>
module attributes {stable_mosaic.version = 11 : i64} {
  func.func @kernel(%arg0: i32, %arg1: memref<2x8x1024xf32, #tpu.memory_space<vmem>>, %arg2: memref<3x1024x512xf32, #tpu.memory_space<vmem>>, %arg3: memref<1x512xf32, #tpu.memory_space<vmem>>, %arg4: memref<3x256x256xf32, #tpu.memory_space<vmem>>, %arg5: memref<1x256xf32, #tpu.memory_space<vmem>>, %arg6: memref<256x8xf32, #tpu.memory_space<vmem>>, %arg7: memref<1x8xf32, #tpu.memory_space<vmem>>, %arg8: memref<1x8xf32, #tpu.memory_space<vmem>>, %arg9: memref<1x1xf32, #tpu.memory_space<vmem>>, %arg10: memref<2x1xf32, #tpu.memory_space<vmem>>, %arg11: memref<2x10x1024xf32, #tpu.memory_space<vmem>>, %arg12: memref<2x6x256xf32, #tpu.memory_space<vmem>>) attributes {dimension_semantics = [#tpu.dimension_semantics<parallel>], iteration_bounds = array<i64: 1>, scalar_prefetch = 0 : i64, scratch_operands = 2 : i64, tpu.core_type = #tpu.core_type<tc>, window_params = [{transform_indices = @transform_0, window_bounds = array<i64: 2, 8, 1024>}, {pipeline_mode = #tpu.pipeline_mode<synchronous>, transform_indices = @transform_1, window_bounds = array<i64: 3, 1024, 512>}, {pipeline_mode = #tpu.pipeline_mode<synchronous>, transform_indices = @transform_2, window_bounds = array<i64: 1, 512>}, {pipeline_mode = #tpu.pipeline_mode<synchronous>, transform_indices = @transform_3, window_bounds = array<i64: 3, 256, 256>}, {pipeline_mode = #tpu.pipeline_mode<synchronous>, transform_indices = @transform_4, window_bounds = array<i64: 1, 256>}, {pipeline_mode = #tpu.pipeline_mode<synchronous>, transform_indices = @transform_5, window_bounds = array<i64: 256, 8>}, {pipeline_mode = #tpu.pipeline_mode<synchronous>, transform_indices = @transform_6, window_bounds = array<i64: 1, 8>}, {pipeline_mode = #tpu.pipeline_mode<synchronous>, transform_indices = @transform_7, window_bounds = array<i64: 1, 8>}, {pipeline_mode = #tpu.pipeline_mode<synchronous>, transform_indices = @transform_8, window_bounds = array<i64: 1, 1>}, {transform_indices = @transform_9, window_bounds = array<i64: 2, 1>}]} {
    %cst = arith.constant 0.000000e+00 : f32
    %0 = vector.broadcast %cst : f32 to vector<2x1x1024xf32>
    %c0 = arith.constant 0 : index
    %c0_0 = arith.constant 0 : index
    %c0_1 = arith.constant 0 : index
    %1 = vector.load %arg11[%c0, %c0_0, %c0_1] : memref<2x10x1024xf32, #tpu.memory_space<vmem>>, vector<2x1x1024xf32>
    tpu.vector_store %arg11[%c0, %c0_0, %c0_1], %0 {strides = array<i32>} : memref<2x10x1024xf32, #tpu.memory_space<vmem>>, vector<2x1x1024xf32>,
    %cst_2 = arith.constant 0.000000e+00 : f32
    %2 = vector.broadcast %cst_2 : f32 to vector<2x1x1024xf32>
    %c0_3 = arith.constant 0 : index
    %c9 = arith.constant 9 : index
    %c0_4 = arith.constant 0 : index
    %3 = vector.load %arg11[%c0_3, %c9, %c0_4] : memref<2x10x1024xf32, #tpu.memory_space<vmem>>, vector<2x1x1024xf32>
    tpu.vector_store %arg11[%c0_3, %c9, %c0_4], %2 {strides = array<i32>} : memref<2x10x1024xf32, #tpu.memory_space<vmem>>, vector<2x1x1024xf32>,
    %c0_5 = arith.constant 0 : index
    %c0_6 = arith.constant 0 : index
    %c0_7 = arith.constant 0 : index
    %4 = vector.load %arg1[%c0_5, %c0_6, %c0_7] : memref<2x8x1024xf32, #tpu.memory_space<vmem>>, vector<2x8x1024xf32>
    %c0_8 = arith.constant 0 : index
    %c1 = arith.constant 1 : index
    %c0_9 = arith.constant 0 : index
    %5 = vector.load %arg11[%c0_8, %c1, %c0_9] : memref<2x10x1024xf32, #tpu.memory_space<vmem>>, vector<2x8x1024xf32>
    tpu.vector_store %arg11[%c0_8, %c1, %c0_9], %4 {strides = array<i32>} : memref<2x10x1024xf32, #tpu.memory_space<vmem>>, vector<2x8x1024xf32>,
    %cst_10 = arith.constant 0.000000e+00 : f32
    %6 = vector.broadcast %cst_10 : f32 to vector<16x512xf32>
    %c0_11 = arith.constant 0 : index
    %c0_12 = arith.constant 0 : index
    %c0_13 = arith.constant 0 : index
    %7 = vector.load %arg11[%c0_11, %c0_12, %c0_13] : memref<2x10x1024xf32, #tpu.memory_space<vmem>>, vector<2x8x1024xf32>
    %8 = vector.shape_cast %7 : vector<2x8x1024xf32> to vector<16x1024xf32>
    %c0_14 = arith.constant 0 : index
    %c0_15 = arith.constant 0 : index
    %c0_16 = arith.constant 0 : index
    %9 = vector.load %arg2[%c0_14, %c0_15, %c0_16] : memref<3x1024x512xf32, #tpu.memory_space<vmem>>, vector<1x1024x512xf32>
    %10 = vector.shape_cast %9 : vector<1x1024x512xf32> to vector<1024x512xf32>
    %cst_17 = arith.constant dense<0.000000e+00> : vector<16x512xf32>
    %11 = tpu.matmul %8, %10, %cst_17 {dimension_numbers = #tpu.dot_dimension_numbers<[1], [0], [0], [1], [0, 0, 1, 1], [], []>} : vector<16x1024xf32>, vector<1024x512xf32>, vector<16x512xf32> -> vector<16x512xf32>
    %12 = arith.addf %6, %11 : vector<16x512xf32>
    %c0_18 = arith.constant 0 : index
    %c1_19 = arith.constant 1 : index
    %c0_20 = arith.constant 0 : index
    %13 = vector.load %arg11[%c0_18, %c1_19, %c0_20] : memref<2x10x1024xf32, #tpu.memory_space<vmem>>, vector<2x8x1024xf32>
    %14 = vector.shape_cast %13 : vector<2x8x1024xf32> to vector<16x1024xf32>
    %c1_21 = arith.constant 1 : index
    %c0_22 = arith.constant 0 : index
    %c0_23 = arith.constant 0 : index
    %15 = vector.load %arg2[%c1_21, %c0_22, %c0_23] : memref<3x1024x512xf32, #tpu.memory_space<vmem>>, vector<1x1024x512xf32>
    %16 = vector.shape_cast %15 : vector<1x1024x512xf32> to vector<1024x512xf32>
    %cst_24 = arith.constant dense<0.000000e+00> : vector<16x512xf32>
    %17 = tpu.matmul %14, %16, %cst_24 {dimension_numbers = #tpu.dot_dimension_numbers<[1], [0], [0], [1], [0, 0, 1, 1], [], []>} : vector<16x1024xf32>, vector<1024x512xf32>, vector<16x512xf32> -> vector<16x512xf32>
    %18 = arith.addf %12, %17 : vector<16x512xf32>
    %c0_25 = arith.constant 0 : index
    %c2 = arith.constant 2 : index
    %c0_26 = arith.constant 0 : index
    %19 = vector.load %arg11[%c0_25, %c2, %c0_26] : memref<2x10x1024xf32, #tpu.memory_space<vmem>>, vector<2x8x1024xf32>
    %20 = vector.shape_cast %19 : vector<2x8x1024xf32> to vector<16x1024xf32>
    %c2_27 = arith.constant 2 : index
    %c0_28 = arith.constant 0 : index
    %c0_29 = arith.constant 0 : index
    %21 = vector.load %arg2[%c2_27, %c0_28, %c0_29] : memref<3x1024x512xf32, #tpu.memory_space<vmem>>, vector<1x1024x512xf32>
    %22 = vector.shape_cast %21 : vector<1x1024x512xf32> to vector<1024x512xf32>
    %cst_30 = arith.constant dense<0.000000e+00> : vector<16x512xf32>
    %23 = tpu.matmul %20, %22, %cst_30 {dimension_numbers = #tpu.dot_dimension_numbers<[1], [0], [0], [1], [0, 0, 1, 1], [], []>} : vector<16x1024xf32>, vector<1024x512xf32>, vector<16x512xf32> -> vector<16x512xf32>
    %24 = arith.addf %18, %23 : vector<16x512xf32>
    %c0_31 = arith.constant 0 : index
    %c0_32 = arith.constant 0 : index
    %25 = vector.load %arg3[%c0_31, %c0_32] : memref<1x512xf32, #tpu.memory_space<vmem>>, vector<1x512xf32>
    %26 = vector.broadcast %25 : vector<1x512xf32> to vector<16x512xf32>
    %27 = arith.addf %24, %26 : vector<16x512xf32>
    %cst_33 = arith.constant 0.000000e+00 : f32
    %28 = vector.broadcast %cst_33 : f32 to vector<16x512xf32>
    %29 = arith.maximumf %27, %28 : vector<16x512xf32>
    %30 = vector.extract_strided_slice %29 {offsets = [0, 0], sizes = [16, 256], strides = [1, 1]} : vector<16x512xf32> to vector<16x256xf32>
    %31 = vector.extract_strided_slice %29 {offsets = [0, 256], sizes = [16, 256], strides = [1, 1]} : vector<16x512xf32> to vector<16x256xf32>
    %32 = arith.maximumf %30, %31 : vector<16x256xf32>
    %33 = vector.shape_cast %32 : vector<16x256xf32> to vector<8x512xf32>
    %34 = vector.extract_strided_slice %33 {offsets = [0, 0], sizes = [8, 256], strides = [1, 1]} : vector<8x512xf32> to vector<8x256xf32>
    %35 = vector.extract_strided_slice %33 {offsets = [0, 256], sizes = [8, 256], strides = [1, 1]} : vector<8x512xf32> to vector<8x256xf32>
    %36 = arith.maximumf %34, %35 : vector<8x256xf32>
    %cst_34 = arith.constant 0.000000e+00 : f32
    %37 = vector.broadcast %cst_34 : f32 to vector<2x1x256xf32>
    %c0_35 = arith.constant 0 : index
    %c0_36 = arith.constant 0 : index
    %c0_37 = arith.constant 0 : index
    %38 = vector.load %arg12[%c0_35, %c0_36, %c0_37] : memref<2x6x256xf32, #tpu.memory_space<vmem>>, vector<2x1x256xf32>
    tpu.vector_store %arg12[%c0_35, %c0_36, %c0_37], %37 {strides = array<i32>} : memref<2x6x256xf32, #tpu.memory_space<vmem>>, vector<2x1x256xf32>,
    %cst_38 = arith.constant 0.000000e+00 : f32
    %39 = vector.broadcast %cst_38 : f32 to vector<2x1x256xf32>
    %c0_39 = arith.constant 0 : index
    %c5 = arith.constant 5 : index
    %c0_40 = arith.constant 0 : index
    %40 = vector.load %arg12[%c0_39, %c5, %c0_40] : memref<2x6x256xf32, #tpu.memory_space<vmem>>, vector<2x1x256xf32>
    tpu.vector_store %arg12[%c0_39, %c5, %c0_40], %39 {strides = array<i32>} : memref<2x6x256xf32, #tpu.memory_space<vmem>>, vector<2x1x256xf32>,
    %41 = vector.shape_cast %36 : vector<8x256xf32> to vector<2x4x256xf32>
    %c0_41 = arith.constant 0 : index
    %c1_42 = arith.constant 1 : index
    %c0_43 = arith.constant 0 : index
    %42 = vector.load %arg12[%c0_41, %c1_42, %c0_43] : memref<2x6x256xf32, #tpu.memory_space<vmem>>, vector<2x4x256xf32>
    tpu.vector_store %arg12[%c0_41, %c1_42, %c0_43], %41 {strides = array<i32>} : memref<2x6x256xf32, #tpu.memory_space<vmem>>, vector<2x4x256xf32>,
    %cst_44 = arith.constant 0.000000e+00 : f32
    %43 = vector.broadcast %cst_44 : f32 to vector<8x256xf32>
    %c0_45 = arith.constant 0 : index
    %c0_46 = arith.constant 0 : index
    %c0_47 = arith.constant 0 : index
    %44 = vector.load %arg12[%c0_45, %c0_46, %c0_47] : memref<2x6x256xf32, #tpu.memory_space<vmem>>, vector<2x4x256xf32>
    %45 = vector.shape_cast %44 : vector<2x4x256xf32> to vector<8x256xf32>
    %c0_48 = arith.constant 0 : index
    %c0_49 = arith.constant 0 : index
    %c0_50 = arith.constant 0 : index
    %46 = vector.load %arg4[%c0_48, %c0_49, %c0_50] : memref<3x256x256xf32, #tpu.memory_space<vmem>>, vector<1x256x256xf32>
    %47 = vector.shape_cast %46 : vector<1x256x256xf32> to vector<256x256xf32>
    %cst_51 = arith.constant dense<0.000000e+00> : vector<8x256xf32>
    %48 = tpu.matmul %45, %47, %cst_51 {dimension_numbers = #tpu.dot_dimension_numbers<[1], [0], [0], [1], [0, 0, 1, 1], [], []>} : vector<8x256xf32>, vector<256x256xf32>, vector<8x256xf32> -> vector<8x256xf32>
    %49 = arith.addf %43, %48 : vector<8x256xf32>
    %c0_52 = arith.constant 0 : index
    %c1_53 = arith.constant 1 : index
    %c0_54 = arith.constant 0 : index
    %50 = vector.load %arg12[%c0_52, %c1_53, %c0_54] : memref<2x6x256xf32, #tpu.memory_space<vmem>>, vector<2x4x256xf32>
    %51 = vector.shape_cast %50 : vector<2x4x256xf32> to vector<8x256xf32>
    %c1_55 = arith.constant 1 : index
    %c0_56 = arith.constant 0 : index
    %c0_57 = arith.constant 0 : index
    %52 = vector.load %arg4[%c1_55, %c0_56, %c0_57] : memref<3x256x256xf32, #tpu.memory_space<vmem>>, vector<1x256x256xf32>
    %53 = vector.shape_cast %52 : vector<1x256x256xf32> to vector<256x256xf32>
    %cst_58 = arith.constant dense<0.000000e+00> : vector<8x256xf32>
    %54 = tpu.matmul %51, %53, %cst_58 {dimension_numbers = #tpu.dot_dimension_numbers<[1], [0], [0], [1], [0, 0, 1, 1], [], []>} : vector<8x256xf32>, vector<256x256xf32>, vector<8x256xf32> -> vector<8x256xf32>
    %55 = arith.addf %49, %54 : vector<8x256xf32>
    %c0_59 = arith.constant 0 : index
    %c2_60 = arith.constant 2 : index
    %c0_61 = arith.constant 0 : index
    %56 = vector.load %arg12[%c0_59, %c2_60, %c0_61] : memref<2x6x256xf32, #tpu.memory_space<vmem>>, vector<2x4x256xf32>
    %57 = vector.shape_cast %56 : vector<2x4x256xf32> to vector<8x256xf32>
    %c2_62 = arith.constant 2 : index
    %c0_63 = arith.constant 0 : index
    %c0_64 = arith.constant 0 : index
    %58 = vector.load %arg4[%c2_62, %c0_63, %c0_64] : memref<3x256x256xf32, #tpu.memory_space<vmem>>, vector<1x256x256xf32>
    %59 = vector.shape_cast %58 : vector<1x256x256xf32> to vector<256x256xf32>
    %cst_65 = arith.constant dense<0.000000e+00> : vector<8x256xf32>
    %60 = tpu.matmul %57, %59, %cst_65 {dimension_numbers = #tpu.dot_dimension_numbers<[1], [0], [0], [1], [0, 0, 1, 1], [], []>} : vector<8x256xf32>, vector<256x256xf32>, vector<8x256xf32> -> vector<8x256xf32>
    %61 = arith.addf %55, %60 : vector<8x256xf32>
    %c0_66 = arith.constant 0 : index
    %c0_67 = arith.constant 0 : index
    %62 = vector.load %arg5[%c0_66, %c0_67] : memref<1x256xf32, #tpu.memory_space<vmem>>, vector<1x256xf32>
    %63 = vector.broadcast %62 : vector<1x256xf32> to vector<8x256xf32>
    %64 = arith.addf %61, %63 : vector<8x256xf32>
    %cst_68 = arith.constant 0.000000e+00 : f32
    %65 = vector.broadcast %cst_68 : f32 to vector<8x256xf32>
    %66 = arith.maximumf %64, %65 : vector<8x256xf32>
    %67 = vector.extract_strided_slice %66 {offsets = [0, 0], sizes = [8, 128], strides = [1, 1]} : vector<8x256xf32> to vector<8x128xf32>
    %68 = vector.extract_strided_slice %66 {offsets = [0, 128], sizes = [8, 128], strides = [1, 1]} : vector<8x256xf32> to vector<8x128xf32>
    %69 = arith.maximumf %67, %68 : vector<8x128xf32>
    %70 = vector.shape_cast %69 : vector<8x128xf32> to vector<4x256xf32>
    %71 = vector.extract_strided_slice %70 {offsets = [0, 0], sizes = [4, 128], strides = [1, 1]} : vector<4x256xf32> to vector<4x128xf32>
    %72 = vector.extract_strided_slice %70 {offsets = [0, 128], sizes = [4, 128], strides = [1, 1]} : vector<4x256xf32> to vector<4x128xf32>
    %73 = arith.maximumf %71, %72 : vector<4x128xf32>
    %74 = vector.shape_cast %73 : vector<4x128xf32> to vector<2x256xf32>
    %c0_69 = arith.constant 0 : index
    %c0_70 = arith.constant 0 : index
    %75 = vector.load %arg6[%c0_69, %c0_70] : memref<256x8xf32, #tpu.memory_space<vmem>>, vector<256x8xf32>
    %cst_71 = arith.constant dense<0.000000e+00> : vector<2x8xf32>
    %76 = tpu.matmul %74, %75, %cst_71 {dimension_numbers = #tpu.dot_dimension_numbers<[1], [0], [0], [1], [0, 0, 1, 1], [], []>} : vector<2x256xf32>, vector<256x8xf32>, vector<2x8xf32> -> vector<2x8xf32>
    %c0_72 = arith.constant 0 : index
    %c0_73 = arith.constant 0 : index
    %77 = vector.load %arg7[%c0_72, %c0_73] : memref<1x8xf32, #tpu.memory_space<vmem>>, vector<1x8xf32>
    %78 = vector.broadcast %77 : vector<1x8xf32> to vector<2x8xf32>
    %79 = arith.addf %76, %78 : vector<2x8xf32>
    %cst_74 = arith.constant 0.000000e+00 : f32
    %80 = vector.broadcast %cst_74 : f32 to vector<2x8xf32>
    %81 = arith.maximumf %79, %80 : vector<2x8xf32>
    %c0_75 = arith.constant 0 : index
    %c0_76 = arith.constant 0 : index
    %82 = vector.load %arg8[%c0_75, %c0_76] : memref<1x8xf32, #tpu.memory_space<vmem>>, vector<1x8xf32>
    %83 = vector.broadcast %82 : vector<1x8xf32> to vector<2x8xf32>
    %84 = arith.mulf %81, %83 : vector<2x8xf32>
    %cst_77 = arith.constant dense<0.000000e+00> : vector<2xf32>
    %85 = vector.multi_reduction <add>, %84, %cst_77 [1] : vector<2x8xf32> to vector<2xf32>
    %86 = vector.shape_cast %85 : vector<2xf32> to vector<2x1xf32>
    %c0_78 = arith.constant 0 : index
    %c0_79 = arith.constant 0 : index
    %87 = vector.load %arg9[%c0_78, %c0_79] : memref<1x1xf32, #tpu.memory_space<vmem>>, vector<1x1xf32>
    %88 = vector.broadcast %87 : vector<1x1xf32> to vector<2x1xf32>
    %89 = arith.addf %86, %88 : vector<2x1xf32>
    %90 = arith.negf %89 : vector<2x1xf32>
    %91 = math.exp %90 : vector<2x1xf32>
    %cst_80 = arith.constant 1.000000e+00 : f32
    %92 = vector.broadcast %cst_80 : f32 to vector<2x1xf32>
    %93 = arith.addf %92, %91 : vector<2x1xf32>
    %94 = arith.divf %92, %93 : vector<2x1xf32>
    %c0_81 = arith.constant 0 : index
    %c0_82 = arith.constant 0 : index
    %95 = vector.load %arg10[%c0_81, %c0_82] : memref<2x1xf32, #tpu.memory_space<vmem>>, vector<2x1xf32>
    tpu.vector_store %arg10[%c0_81, %c0_82], %94 {strides = array<i32>} : memref<2x1xf32, #tpu.memory_space<vmem>>, vector<2x1xf32>,
    return
  }
  func.func @transform_0(%arg0: i32) -> (i32, i32, i32) {
    %c0_i32 = arith.constant 0 : i32
    %c0_i32_0 = arith.constant 0 : i32
    %c0_i32_1 = arith.constant 0 : i32
    return %arg0, %c0_i32, %c0_i32_0 : i32, i32, i32
  }
  func.func @transform_1(%arg0: i32) -> (i32, i32, i32) {
    %c0_i32 = arith.constant 0 : i32
    %c0_i32_0 = arith.constant 0 : i32
    %c0_i32_1 = arith.constant 0 : i32
    %c0_i32_2 = arith.constant 0 : i32
    return %c0_i32, %c0_i32_0, %c0_i32_1 : i32, i32, i32
  }
  func.func @transform_2(%arg0: i32) -> (i32, i32) {
    %c0_i32 = arith.constant 0 : i32
    %c0_i32_0 = arith.constant 0 : i32
    %c0_i32_1 = arith.constant 0 : i32
    return %c0_i32, %c0_i32_0 : i32, i32
  }
  func.func @transform_3(%arg0: i32) -> (i32, i32, i32) {
    %c0_i32 = arith.constant 0 : i32
    %c0_i32_0 = arith.constant 0 : i32
    %c0_i32_1 = arith.constant 0 : i32
    %c0_i32_2 = arith.constant 0 : i32
    return %c0_i32, %c0_i32_0, %c0_i32_1 : i32, i32, i32
  }
  func.func @transform_4(%arg0: i32) -> (i32, i32) {
    %c0_i32 = arith.constant 0 : i32
    %c0_i32_0 = arith.constant 0 : i32
    %c0_i32_1 = arith.constant 0 : i32
    return %c0_i32, %c0_i32_0 : i32, i32
  }
  func.func @transform_5(%arg0: i32) -> (i32, i32) {
    %c0_i32 = arith.constant 0 : i32
    %c0_i32_0 = arith.constant 0 : i32
    %c0_i32_1 = arith.constant 0 : i32
    return %c0_i32, %c0_i32_0 : i32, i32
  }
  func.func @transform_6(%arg0: i32) -> (i32, i32) {
    %c0_i32 = arith.constant 0 : i32
    %c0_i32_0 = arith.constant 0 : i32
    %c0_i32_1 = arith.constant 0 : i32
    return %c0_i32, %c0_i32_0 : i32, i32
  }
  func.func @transform_7(%arg0: i32) -> (i32, i32) {
    %c0_i32 = arith.constant 0 : i32
    %c0_i32_0 = arith.constant 0 : i32
    %c0_i32_1 = arith.constant 0 : i32
    return %c0_i32, %c0_i32_0 : i32, i32
  }
  func.func @transform_8(%arg0: i32) -> (i32, i32) {
    %c0_i32 = arith.constant 0 : i32
    %c0_i32_0 = arith.constant 0 : i32
    %c0_i32_1 = arith.constant 0 : i32
    return %c0_i32, %c0_i32_0 : i32, i32
  }
  func.func @transform_9(%arg0: i32) -> (i32, i32) {
    %c0_i32 = arith.constant 0 : i32
    %c0_i32_0 = arith.constant 0 : i32
    return %arg0, %c0_i32 : i32, i32
  }
}

</mosaic_0001>

<bundles_post_ra>
// kernel: tile.13
= control target key start
LH: loop header
LB: loop body
LE: loop exit
PB: predicated region body
PF: predicated region fallthrough
CT: control target
= control target key end

     0   :  { %s22_s0 = inlined_call_operand.vmem [shape: f32[64], index: 0, kind: input, shape index: {}]   ;;  %s23_s1 = inlined_call_operand.vmem [shape: f32[8,64], index: 1, kind: output, shape index: {}]  }
   0x1   :  { %v4_v0 = vld [vmem:[%s22_s0] ss:$0 sm:$0xff] }
   0x2   :  { %5 = vst [vmem:[%s23_s1] sm:$0xff] %v4_v0 }

// kernel: tile.14
= control target key start
LH: loop header
LB: loop body
LE: loop exit
PB: predicated region body
PF: predicated region fallthrough
CT: control target
= control target key end

     0   :  { %vm3_vm0 = vcmask 523264   ;;  %s41_s8 = smov 64   ;;  %vm9_vm1 = vcmask 1048064   ;;  %s70_s0 = inlined_call_operand.vmem [shape: f32[8,64], index: 0, kind: input, shape index: {}]   ;;  %s71_s1 = inlined_call_operand.vmem [shape: f32[1,512], index: 1, kind: output, shape index: {}]  }
   0x1   :  { %v36_v0 = vld [vmem:[%s70_s0 + $0x1] ss:$2 sm:$0xf]   ;;  %v2_v1 = vld [vmem:[%s70_s0] ss:$2 sm:$0xf]  }
   0x2   :  { %7 = vrot.lane.b32.xlu0 %v36_v0, %s41_s8  ;;  %4 = vst.msk [vmem:[#allocation0] ss:$8 sm:$0xf] %vm3_vm0, %v2_v1  }
  0x74   :  { %v8_v2 = vpop.permute.xlu0 %7  }
  0x75   :  { %10 = vst.msk [vmem:[#allocation0] ss:$8 sm:$0xf] %vm9_vm1, %v8_v2  }
  0x7c   :  { %v14_v3 = vld [vmem:[#allocation0] sm:$0x1]  ;;  %v18_v4 = vld [vmem:[#allocation0 + $0x8] sm:$0x1]  ;;  %v23_v5 = vld [vmem:[#allocation0 + $0x10] sm:$0x1] }
  0x7d   :  { %16 = vst [vmem:[%s71_s1] sm:$0x1] %v14_v3  ;;  %37 = vst [vmem:[%s71_s1 + $0x1] sm:$0x1] %v18_v4  ;;  %v29_v6 = vld [vmem:[#allocation0 + $0x18] sm:$0x1] }
  0x7e   :  { %38 = vst [vmem:[%s71_s1 + $0x2] sm:$0x1] %v23_v5  ;;  %39 = vst [vmem:[%s71_s1 + $0x3] sm:$0x1] %v29_v6 }

// kernel: tile.18
= control target key start
LH: loop header
LB: loop body
LE: loop exit
PB: predicated region body
PF: predicated region fallthrough
CT: control target
= control target key end

     0   :  { %s22_s0 = inlined_call_operand.vmem [shape: f32[64], index: 0, kind: input, shape index: {}]   ;;  %s23_s1 = inlined_call_operand.vmem [shape: f32[4,64], index: 1, kind: output, shape index: {}]  }
   0x1   :  { %v4_v0 = vld [vmem:[%s22_s0] ss:$0 sm:$0xff] }
   0x2   :  { %5 = vst [vmem:[%s23_s1] sm:$0xf] %v4_v0 }

// kernel: tile.19
= control target key start
LH: loop header
LB: loop body
LE: loop exit
PB: predicated region body
PF: predicated region fallthrough
CT: control target
= control target key end

     0   :  { %s6_s8 = smov 3  ;;  %vm8_vm0 = vcmask 523264   ;;  %s30_s9 = smov 64   ;;  %vm15_vm1 = vcmask 1048064   ;;  %s50_s0 = inlined_call_operand.vmem [shape: f32[4,64], index: 0, kind: input, shape index: {}]   ;;  %s51_s1 = inlined_call_operand.vmem [shape: f32[1,256], index: 1, kind: output, shape index: {}]  }
   0x1   :  { %v4_v0 = vld [vmem:[%s50_s0] sm:$0xf]  ;;  %s11_s0 = smov 3 }
   0x2   :  { %5 = vst [vmem:[#allocation1] sm:$0xf] %v4_v0 }
   0x9   :  { %v12_v1 = vld [vmem:[#allocation1 + $0x1] ss:$2 sm:%s11_s0]   ;;  %v7_v2 = vld [vmem:[#allocation1] ss:$2 sm:%s6_s8]  }
   0xa   :  { %13 = vrot.lane.b32.xlu0 %v12_v1, %s30_s9  ;;  %9 = vst.msk [vmem:[#allocation0] ss:$8 sm:$0x3] %vm8_vm0, %v7_v2  }
  0x7c   :  { %v14_v3 = vpop.permute.xlu0 %13  }
  0x7d   :  { %16 = vst.msk [vmem:[#allocation0] ss:$8 sm:$0x3] %vm15_vm1, %v14_v3  }
  0x84   :  { %v20_v4 = vld [vmem:[#allocation0] sm:$0x1]  ;;  %v24_v5 = vld [vmem:[#allocation0 + $0x8] sm:$0x1] }
  0x85   :  { %22 = vst [vmem:[%s51_s1] sm:$0x1] %v20_v4  ;;  %28 = vst [vmem:[%s51_s1 + $0x1] sm:$0x1] %v24_v5 }

// kernel: relation_network_forward.1
= control target key start
LH: loop header
LB: loop body
LE: loop exit
PB: predicated region body
PF: predicated region fallthrough
CT: control target
= control target key end

     0   :  { %vm733_vm0 = vcmask 1046528   ;;  %vm2607_vm1 = vcmask 1045504   ;;  %vm4042_vm3 = vcmask 1042432   ;;  %vm4043_vm4 = vcmask 1046532   ;;  %s13334_s1 = inlined_call_operand.vmem [shape: f32[3,1024,512], index: 1, kind: input, shape index: {}]   ;;  %s13335_s0 = inlined_call_operand.vmem [shape: f32[2,8,1024], index: 0, kind: input, shape index: {}]   ;;  %s13336_s3 = inlined_call_operand.vmem [shape: f32[3,256,256], index: 3, kind: input, shape index: {}]   ;;  %s13337_s2 = inlined_call_operand.vmem [shape: f32[1,512], index: 2, kind: input, shape index: {}]   ;;  %s13338_s5 = inlined_call_operand.vmem [shape: f32[256,8], index: 5, kind: input, shape index: {}]   ;;  %s13339_s4 = inlined_call_operand.vmem [shape: f32[1,256], index: 4, kind: input, shape index: {}]   ;;  %s13340_s8 = inlined_call_operand.<no memory space> [shape: f32[1,1], index: 8, kind: input, shape index: {}]   ;;  %s13341_s6 = inlined_call_operand.vmem [shape: f32[1,8], index: 6, kind: input, shape index: {}]   ;;  %s13342_s7 = inlined_call_operand.vmem [shape: f32[1,8], index: 7, kind: input, shape index: {}]   ;;  %s13343_s9 = inlined_call_operand.vmem [shape: f32[2,1], index: 9, kind: output, shape index: {}]  }
   0x1   :  { %v4614_v0 = vld [vmem:[%s13334_s1 + $0x1008] sm:$0xff]  ;;  %v4613_v5 = vld [vmem:[%s13334_s1 + $0x1000] sm:$0xff]  ;;  %vm4044_vm5 = vmor %vm4042_vm3, %vm4043_vm4  ;;  %vm4280_vm6 = vcmask 1041408   ;;  %vm4281_vm7 = vcmask 1045508   ;;  %vm4589_vm9 = vcmask 58368   ;;  %vm4607_vm10 = vcmask 1024  }
   0x2   :  { %v4618_v1 = vld [vmem:[%s13334_s1 + $0x1028] sm:$0xff]  ;;  %v4617_v6 = vld [vmem:[%s13334_s1 + $0x1020] sm:$0xff]  ;;  %vm4282_vm8 = vmor %vm4280_vm6, %vm4281_vm7 }
   0x3   :  { %v4742_v2 = vld [vmem:[%s13334_s1 + $0x1408] sm:$0xff]  ;;  %v5810_v3 = vpack.c.bf16 %v4618_v1, %v4614_v0  ;;  %v5812_v8 = vpack.c.bf16 %v4617_v6, %v4613_v5  ;;  %v4741_v9 = vld [vmem:[%s13334_s1 + $0x1400] sm:$0xff] }
   0x4   :  { %v4746_v4 = vld [vmem:[%s13334_s1 + $0x1428] sm:$0xff]  ;;  %v4745_v10 = vld [vmem:[%s13334_s1 + $0x1420] sm:$0xff] }
   0x5   :  { %v5874_v7 = vpack.c.bf16 %v4746_v4, %v4742_v2  ;;  %v4622_v11 = vld [vmem:[%s13334_s1 + $0x1048] sm:$0xff]  ;;  %5811 = vmatprep.subr.bf16.mxu1 %v5810_v3  ;;  %v5876_v12 = vpack.c.bf16 %v4745_v10, %v4741_v9  ;;  %v4621_v18 = vld [vmem:[%s13334_s1 + $0x1040] sm:$0xff] }
   0x6   :  { %v4626_v13 = vld [vmem:[%s13334_s1 + $0x1068] sm:$0xff]  ;;  %5813 = vmatpush1.bf16.msra.mxu1 %v5812_v8  ;;  %v4625_v19 = vld [vmem:[%s13334_s1 + $0x1060] sm:$0xff] }
   0x7   :  { %v4750_v14 = vld [vmem:[%s13334_s1 + $0x1448] sm:$0xff]  ;;  %5875 = vmatprep.subr.bf16.mxu0 %v5874_v7  ;;  %v5814_v16 = vpack.c.bf16 %v4626_v13, %v4622_v11  ;;  %v4749_v20 = vld [vmem:[%s13334_s1 + $0x1440] sm:$0xff]  ;;  %v5816_v21 = vpack.c.bf16 %v4625_v19, %v4621_v18 }
   0x8   :  { %v4754_v15 = vld [vmem:[%s13334_s1 + $0x1468] sm:$0xff]  ;;  %5877 = vmatpush1.bf16.msra.mxu0 %v5876_v12  ;;  %v4753_v22 = vld [vmem:[%s13334_s1 + $0x1460] sm:$0xff] }
   0x9   :  { %v5878_v17 = vpack.c.bf16 %v4754_v15, %v4750_v14  ;;  %v4630_v23 = vld [vmem:[%s13334_s1 + $0x1088] sm:$0xff]  ;;  %5815 = vmatprep.subr.bf16.mxu1 %v5814_v16  ;;  %v5880_v25 = vpack.c.bf16 %v4753_v22, %v4749_v20  ;;  %v4629_v29 = vld [vmem:[%s13334_s1 + $0x1080] sm:$0xff] }
   0xa   :  { %v4634_v24 = vld [vmem:[%s13334_s1 + $0x10a8] sm:$0xff]  ;;  %v4633_v31 = vld [vmem:[%s13334_s1 + $0x10a0] sm:$0xff]  ;;  %5817 = vmatpush1.bf16.msra.mxu1 %v5816_v21 }
   0xb   :  { %5879 = vmatprep.subr.bf16.mxu0 %v5878_v17  ;;  %v5818_v26 = vpack.c.bf16 %v4634_v24, %v4630_v23  ;;  %v4758_v27 = vld [vmem:[%s13334_s1 + $0x1488] sm:$0xff]  ;;  %v4757_v32 = vld [vmem:[%s13334_s1 + $0x1480] sm:$0xff]  ;;  %v5820_v34 = vpack.c.bf16 %v4633_v31, %v4629_v29 }
   0xc   :  { %v4762_v28 = vld [vmem:[%s13334_s1 + $0x14a8] sm:$0xff]  ;;  %v4761_v33 = vld [vmem:[%s13334_s1 + $0x14a0] sm:$0xff]  ;;  %5881 = vmatpush1.bf16.msra.mxu0 %v5880_v25 }
   0xd   :  { %v5882_v30 = vpack.c.bf16 %v4762_v28, %v4758_v27  ;;  %v4638_v35 = vld [vmem:[%s13334_s1 + $0x10c8] sm:$0xff]  ;;  %5819 = vmatprep.subr.bf16.mxu1 %v5818_v26  ;;  %v5884_v38 = vpack.c.bf16 %v4761_v33, %v4757_v32  ;;  %v4637_v41 = vld [vmem:[%s13334_s1 + $0x10c0] sm:$0xff] }
   0xe   :  { %v4642_v36 = vld [vmem:[%s13334_s1 + $0x10e8] sm:$0xff]  ;;  %v4641_v42 = vld [vmem:[%s13334_s1 + $0x10e0] sm:$0xff]  ;;  %5821 = vmatpush1.bf16.msra.mxu1 %v5820_v34 }
   0xf   :  { %v4766_v37 = vld [vmem:[%s13334_s1 + $0x14c8] sm:$0xff]  ;;  %v5822_v39 = vpack.c.bf16 %v4642_v36, %v4638_v35  ;;  %5883 = vmatprep.subr.bf16.mxu0 %v5882_v30  ;;  %v4765_v44 = vld [vmem:[%s13334_s1 + $0x14c0] sm:$0xff]  ;;  %v5824_v50 = vpack.c.bf16 %v4641_v42, %v4637_v41 }
  0x10   :  { %v4770_v40 = vld [vmem:[%s13334_s1 + $0x14e8] sm:$0xff]  ;;  %v4769_v45 = vld [vmem:[%s13334_s1 + $0x14e0] sm:$0xff]  ;;  %5885 = vmatpush1.bf16.msra.mxu0 %v5884_v38 }
  0x11   :  { %v5886_v43 = vpack.c.bf16 %v4770_v40, %v4766_v37  ;;  %v4646_v46 = vld [vmem:[%s13334_s1 + $0x1108] sm:$0xff]  ;;  %5823 = vmatprep.subr.bf16.mxu1 %v5822_v39  ;;  %v5888_v51 = vpack.c.bf16 %v4769_v45, %v4765_v44  ;;  %v4645_v53 = vld [vmem:[%s13334_s1 + $0x1100] sm:$0xff] }
  0x12   :  { %v4650_v47 = vld [vmem:[%s13334_s1 + $0x1128] sm:$0xff]  ;;  %v4649_v54 = vld [vmem:[%s13334_s1 + $0x1120] sm:$0xff]  ;;  %5825 = vmatpush1.bf16.msra.mxu1 %v5824_v50 }
  0x13   :  { %v4774_v48 = vld [vmem:[%s13334_s1 + $0x1508] sm:$0xff]  ;;  %v5826_v52 = vpack.c.bf16 %v4650_v47, %v4646_v46  ;;  %v4773_v55 = vld [vmem:[%s13334_s1 + $0x1500] sm:$0xff]  ;;  %5887 = vmatprep.subr.bf16.mxu0 %v5886_v43  ;;  %v5828_v62 = vpack.c.bf16 %v4649_v54, %v4645_v53 }
  0x14   :  { %v4778_v49 = vld [vmem:[%s13334_s1 + $0x1528] sm:$0xff]  ;;  %v4777_v57 = vld [vmem:[%s13334_s1 + $0x1520] sm:$0xff]  ;;  %5889 = vmatpush1.bf16.msra.mxu0 %v5888_v51 }
  0x15   :  { %v5890_v56 = vpack.c.bf16 %v4778_v49, %v4774_v48  ;;  %v4654_v58 = vld [vmem:[%s13334_s1 + $0x1148] sm:$0xff]  ;;  %5827 = vmatprep.subr.bf16.mxu1 %v5826_v52  ;;  %v5892_v63 = vpack.c.bf16 %v4777_v57, %v4773_v55  ;;  %v4653_v1 = vld [vmem:[%s13334_s1 + $0x1140] sm:$0xff] }
  0x16   :  { %v4658_v59 = vld [vmem:[%s13334_s1 + $0x1168] sm:$0xff]  ;;  %v4657_v2 = vld [vmem:[%s13334_s1 + $0x1160] sm:$0xff]  ;;  %5829 = vmatpush1.bf16.msra.mxu1 %v5828_v62 }
  0x17   :  { %v4782_v60 = vld [vmem:[%s13334_s1 + $0x1548] sm:$0xff]  ;;  %v5830_v0 = vpack.c.bf16 %v4658_v59, %v4654_v58  ;;  %v4781_v3 = vld [vmem:[%s13334_s1 + $0x1540] sm:$0xff]  ;;  %5891 = vmatprep.subr.bf16.mxu0 %v5890_v56  ;;  %v5832_v10 = vpack.c.bf16 %v4657_v2, %v4653_v1 }
  0x18   :  { %v4786_v61 = vld [vmem:[%s13334_s1 + $0x1568] sm:$0xff]  ;;  %v4785_v5 = vld [vmem:[%s13334_s1 + $0x1560] sm:$0xff]  ;;  %5893 = vmatpush1.bf16.msra.mxu0 %v5892_v63 }
  0x19   :  { %v5894_v4 = vpack.c.bf16 %v4786_v61, %v4782_v60  ;;  %v4662_v6 = vld [vmem:[%s13334_s1 + $0x1188] sm:$0xff]  ;;  %5831 = vmatprep.subr.bf16.mxu1 %v5830_v0  ;;  %v5896_v11 = vpack.c.bf16 %v4785_v5, %v4781_v3  ;;  %v4661_v13 = vld [vmem:[%s13334_s1 + $0x1180] sm:$0xff] }
  0x1a   :  { %v4666_v7 = vld [vmem:[%s13334_s1 + $0x11a8] sm:$0xff]  ;;  %v4665_v14 = vld [vmem:[%s13334_s1 + $0x11a0] sm:$0xff]  ;;  %5833 = vmatpush1.bf16.msra.mxu1 %v5832_v10 }
  0x1b   :  { %v4790_v8 = vld [vmem:[%s13334_s1 + $0x1588] sm:$0xff]  ;;  %v5834_v12 = vpack.c.bf16 %v4666_v7, %v4662_v6  ;;  %v4789_v15 = vld [vmem:[%s13334_s1 + $0x1580] sm:$0xff]  ;;  %5895 = vmatprep.subr.bf16.mxu0 %v5894_v4  ;;  %v5836_v22 = vpack.c.bf16 %v4665_v14, %v4661_v13 }
  0x1c   :  { %v4794_v9 = vld [vmem:[%s13334_s1 + $0x15a8] sm:$0xff]  ;;  %v4793_v17 = vld [vmem:[%s13334_s1 + $0x15a0] sm:$0xff]  ;;  %5897 = vmatpush1.bf16.msra.mxu0 %v5896_v11 }
  0x1d   :  { %v5898_v16 = vpack.c.bf16 %v4794_v9, %v4790_v8  ;;  %v4670_v18 = vld [vmem:[%s13334_s1 + $0x11c8] sm:$0xff]  ;;  %5835 = vmatprep.subr.bf16.mxu1 %v5834_v12  ;;  %v5900_v23 = vpack.c.bf16 %v4793_v17, %v4789_v15  ;;  %v4669_v25 = vld [vmem:[%s13334_s1 + $0x11c0] sm:$0xff] }
  0x1e   :  { %v4674_v19 = vld [vmem:[%s13334_s1 + $0x11e8] sm:$0xff]  ;;  %v4673_v26 = vld [vmem:[%s13334_s1 + $0x11e0] sm:$0xff]  ;;  %5837 = vmatpush1.bf16.msra.mxu1 %v5836_v22 }
  0x1f   :  { %v4798_v20 = vld [vmem:[%s13334_s1 + $0x15c8] sm:$0xff]  ;;  %v5838_v24 = vpack.c.bf16 %v4674_v19, %v4670_v18  ;;  %v4797_v27 = vld [vmem:[%s13334_s1 + $0x15c0] sm:$0xff]  ;;  %5899 = vmatprep.subr.bf16.mxu0 %v5898_v16  ;;  %v5840_v34 = vpack.c.bf16 %v4673_v26, %v4669_v25 }
  0x20   :  { %v4802_v21 = vld [vmem:[%s13334_s1 + $0x15e8] sm:$0xff]  ;;  %v4801_v29 = vld [vmem:[%s13334_s1 + $0x15e0] sm:$0xff]  ;;  %5901 = vmatpush1.bf16.msra.mxu0 %v5900_v23 }
  0x21   :  { %v5902_v28 = vpack.c.bf16 %v4802_v21, %v4798_v20  ;;  %v4678_v30 = vld [vmem:[%s13334_s1 + $0x1208] sm:$0xff]  ;;  %5839 = vmatprep.subr.bf16.mxu1 %v5838_v24  ;;  %v5904_v35 = vpack.c.bf16 %v4801_v29, %v4797_v27  ;;  %v4677_v37 = vld [vmem:[%s13334_s1 + $0x1200] sm:$0xff]  ;;  %v48_v21 = vld [vmem:[%s13335_s0 + $0x18] sm:$0xff] }
  0x22   :  { %v4682_v31 = vld [vmem:[%s13334_s1 + $0x1228] sm:$0xff]  ;;  %v4681_v38 = vld [vmem:[%s13334_s1 + $0x1220] sm:$0xff]  ;;  %5841 = vmatpush1.bf16.msra.mxu1 %v5840_v34  ;;  %v80_v25 = vrot.slane %v48_v21, 7 }
  0x23   :  { %v4806_v32 = vld [vmem:[%s13334_s1 + $0x1608] sm:$0xff]  ;;  %v5842_v36 = vpack.c.bf16 %v4682_v31, %v4678_v30  ;;  %v4805_v39 = vld [vmem:[%s13334_s1 + $0x1600] sm:$0xff]  ;;  %5903 = vmatprep.subr.bf16.mxu0 %v5902_v28  ;;  %v5844_v46 = vpack.c.bf16 %v4681_v38, %v4677_v37  ;;  %v47_v30 = vld [vmem:[%s13335_s0 + $0x10] sm:$0xff] }
  0x24   :  { %v4810_v33 = vld [vmem:[%s13334_s1 + $0x1628] sm:$0xff]  ;;  %v4809_v41 = vld [vmem:[%s13334_s1 + $0x1620] sm:$0xff]  ;;  %5905 = vmatpush1.bf16.msra.mxu0 %v5904_v35  ;;  %112 = vst [vmem:[#allocation2 + $0x18] sm:$0xfe] %v80_v25  ;;  %120 = vst [vmem:[#allocation2 + $0x58] sm:$0x1] %v80_v25 }
  0x25   :  { %v5906_v40 = vpack.c.bf16 %v4810_v33, %v4806_v32  ;;  %v4686_v42 = vld [vmem:[%s13334_s1 + $0x1248] sm:$0xff]  ;;  %5843 = vmatprep.subr.bf16.mxu1 %v5842_v36  ;;  %v5908_v47 = vpack.c.bf16 %v4809_v41, %v4805_v39  ;;  %v4685_v49 = vld [vmem:[%s13334_s1 + $0x1240] sm:$0xff]  ;;  %v79_v35 = vrot.slane %v47_v30, 7 }
  0x26   :  { %v4690_v43 = vld [vmem:[%s13334_s1 + $0x1268] sm:$0xff]  ;;  %v4689_v50 = vld [vmem:[%s13334_s1 + $0x1260] sm:$0xff]  ;;  %5845 = vmatpush1.bf16.msra.mxu1 %v5844_v46 }
  0x27   :  { %v4814_v44 = vld [vmem:[%s13334_s1 + $0x1648] sm:$0xff]  ;;  %v5846_v48 = vpack.c.bf16 %v4690_v43, %v4686_v42  ;;  %v4813_v51 = vld [vmem:[%s13334_s1 + $0x1640] sm:$0xff]  ;;  %5907 = vmatprep.subr.bf16.mxu0 %v5906_v40  ;;  %v5848_v58 = vpack.c.bf16 %v4689_v50, %v4685_v49  ;;  %111 = vst [vmem:[#allocation2 + $0x10] sm:$0xfe] %v79_v35  ;;  %119 = vst [vmem:[#allocation2 + $0x50] sm:$0x1] %v79_v35 }
  0x28   :  { %v4818_v45 = vld [vmem:[%s13334_s1 + $0x1668] sm:$0xff]  ;;  %v4817_v53 = vld [vmem:[%s13334_s1 + $0x1660] sm:$0xff]  ;;  %5909 = vmatpush1.bf16.msra.mxu0 %v5908_v47 }
  0x29   :  { %v5910_v52 = vpack.c.bf16 %v4818_v45, %v4814_v44  ;;  %v4694_v54 = vld [vmem:[%s13334_s1 + $0x1288] sm:$0xff]  ;;  %5847 = vmatprep.subr.bf16.mxu1 %v5846_v48  ;;  %v5912_v59 = vpack.c.bf16 %v4817_v53, %v4813_v51  ;;  %v4693_v61 = vld [vmem:[%s13334_s1 + $0x1280] sm:$0xff] }
  0x2a   :  { %v4698_v55 = vld [vmem:[%s13334_s1 + $0x12a8] sm:$0xff]  ;;  %v4697_v62 = vld [vmem:[%s13334_s1 + $0x12a0] sm:$0xff]  ;;  %5849 = vmatpush1.bf16.msra.mxu1 %v5848_v58 }
  0x2b   :  { %v4822_v56 = vld [vmem:[%s13334_s1 + $0x1688] sm:$0xff]  ;;  %v5850_v60 = vpack.c.bf16 %v4698_v55, %v4694_v54  ;;  %v4821_v63 = vld [vmem:[%s13334_s1 + $0x1680] sm:$0xff]  ;;  %5911 = vmatprep.subr.bf16.mxu0 %v5910_v52  ;;  %v5852_v6 = vpack.c.bf16 %v4697_v62, %v4693_v61 }
  0x2c   :  { %v4826_v57 = vld [vmem:[%s13334_s1 + $0x16a8] sm:$0xff]  ;;  %v4825_v1 = vld [vmem:[%s13334_s1 + $0x16a0] sm:$0xff]  ;;  %5913 = vmatpush1.bf16.msra.mxu0 %v5912_v59 }
  0x2d   :  { %v5914_v0 = vpack.c.bf16 %v4826_v57, %v4822_v56  ;;  %v4702_v2 = vld [vmem:[%s13334_s1 + $0x12c8] sm:$0xff]  ;;  %v4701_v7 = vld [vmem:[%s13334_s1 + $0x12c0] sm:$0xff]  ;;  %5851 = vmatprep.subr.bf16.mxu1 %v5850_v60  ;;  %v5916_v9 = vpack.c.bf16 %v4825_v1, %v4821_v63  ;;  %v680_v1 = vld [vmem:[#allocation2 + $0x58] sm:$0x1] }
  0x2e   :  { %v4706_v3 = vld [vmem:[%s13334_s1 + $0x12e8] sm:$0xff]  ;;  %v4705_v8 = vld [vmem:[%s13334_s1 + $0x12e0] sm:$0xff]  ;;  %5853 = vmatpush1.bf16.msra.mxu1 %v5852_v6  ;;  %v679_v21 = vld [vmem:[#allocation2 + $0x50] sm:$0x1] }
  0x2f   :  { %v4830_v4 = vld [vmem:[%s13334_s1 + $0x16c8] sm:$0xff]  ;;  %v5854_v10 = vpack.c.bf16 %v4706_v3, %v4702_v2  ;;  %v4829_v11 = vld [vmem:[%s13334_s1 + $0x16c0] sm:$0xff]  ;;  %5915 = vmatprep.subr.bf16.mxu0 %v5914_v0  ;;  %v5856_v22 = vpack.c.bf16 %v4705_v8, %v4701_v7  ;;  %v672_v0 = vld [vmem:[#allocation2 + $0x18] sm:$0xfe]  ;;  %v744_v7 = vrot.slane %v680_v1, 1  ;;  %v741_v30 = vrot.slane %v679_v21, 1 }
  0x30   :  { %v4834_v5 = vld [vmem:[%s13334_s1 + $0x16e8] sm:$0xff]  ;;  %v4833_v12 = vld [vmem:[%s13334_s1 + $0x16e0] sm:$0xff]  ;;  %5917 = vmatpush1.bf16.msra.mxu0 %v5916_v9  ;;  %v743_v6 = vrot.slane %v672_v0, 1  ;;  %v4651_v21 = vld [vmem:[%s13334_s1 + $0x1130] sm:$0xff] }
  0x31   :  { %v4710_v13 = vld [vmem:[%s13334_s1 + $0x1308] sm:$0xff]  ;;  %v5918_v14 = vpack.c.bf16 %v4834_v5, %v4830_v4  ;;  %v45_v20 = vld [vmem:[%s13335_s0] sm:$0xff]  ;;  %5855 = vmatprep.subr.bf16.mxu1 %v5854_v10  ;;  %v5920_v26 = vpack.c.bf16 %v4833_v12, %v4829_v11 }
  0x32   :  { %v4714_v15 = vld [vmem:[%s13334_s1 + $0x1328] sm:$0xff]  ;;  %v4709_v23 = vld [vmem:[%s13334_s1 + $0x1300] sm:$0xff]  ;;  %v77_v24 = vrot.slane %v45_v20, 7  ;;  %5857 = vmatpush1.bf16.msra.mxu1 %v5856_v22  ;;  %v671_v20 = vld [vmem:[#allocation2 + $0x10] sm:$0xfe] }
  0x33   :  { %v4838_v16 = vld [vmem:[%s13334_s1 + $0x1708] sm:$0xff]  ;;  %v5858_v27 = vpack.c.bf16 %v4714_v15, %v4710_v13  ;;  %v4713_v28 = vld [vmem:[%s13334_s1 + $0x1320] sm:$0xff]  ;;  %5919 = vmatprep.subr.bf16.mxu0 %v5918_v14 }
  0x34   :  { %v46_v17 = vld [vmem:[%s13335_s0 + $0x8] sm:$0xff]  ;;  %v4837_v29 = vld [vmem:[%s13334_s1 + $0x1700] sm:$0xff]  ;;  %109 = vst [vmem:[#allocation2] sm:$0xfe] %v77_v24  ;;  %117 = vst [vmem:[#allocation2 + $0x40] sm:$0x1] %v77_v24  ;;  %v5860_v38 = vpack.c.bf16 %v4713_v28, %v4709_v23  ;;  %5921 = vmatpush1.bf16.msra.mxu0 %v5920_v26 }
  0x35   :  { %v4842_v18 = vld [vmem:[%s13334_s1 + $0x1728] sm:$0xff]  ;;  %v78_v19 = vrot.slane %v46_v17, 7  ;;  %v4841_v32 = vld [vmem:[%s13334_s1 + $0x1720] sm:$0xff]  ;;  %5859 = vmatprep.subr.bf16.mxu1 %v5858_v27  ;;  %v4616_v17 = vld [vmem:[%s13334_s1 + $0x1018] sm:$0xff] }
  0x36   :  { %v5922_v31 = vpack.c.bf16 %v4842_v18, %v4838_v16  ;;  %v4718_v33 = vld [vmem:[%s13334_s1 + $0x1348] sm:$0xff]  ;;  %v5924_v39 = vpack.c.bf16 %v4841_v32, %v4837_v29  ;;  %v4717_v41 = vld [vmem:[%s13334_s1 + $0x1340] sm:$0xff]  ;;  %5861 = vmatpush1.bf16.msra.mxu1 %v5860_v38  ;;  %v8153_v16 = vsel %vm733_vm0, %v743_v6, %v744_v7  ;;  %v740_v29 = vrot.slane %v671_v20, 1  ;;  %v4615_v32 = vld [vmem:[%s13334_s1 + $0x1010] sm:$0xff] }
  0x37   :  { %110 = vst [vmem:[#allocation2 + $0x8] sm:$0xfe] %v78_v19  ;;  %118 = vst [vmem:[#allocation2 + $0x48] sm:$0x1] %v78_v19  ;;  %v4722_v34 = vld [vmem:[%s13334_s1 + $0x1368] sm:$0xff]  ;;  %v4721_v42 = vld [vmem:[%s13334_s1 + $0x1360] sm:$0xff]  ;;  %1452 = vmatprep.mubr.f32.mxu0 %v8153_v16 }
  0x38   :  { %v4846_v36 = vld [vmem:[%s13334_s1 + $0x1748] sm:$0xff]  ;;  %v5862_v40 = vpack.c.bf16 %v4722_v34, %v4718_v33  ;;  %v4845_v43 = vld [vmem:[%s13334_s1 + $0x1740] sm:$0xff]  ;;  %5923 = vmatprep.subr.bf16.mxu0 %v5922_v31  ;;  %v5864_v51 = vpack.c.bf16 %v4721_v42, %v4717_v41  ;;  %v4620_v19 = vld [vmem:[%s13334_s1 + $0x1038] sm:$0xff]  ;;  %v8196_v42 = vsel %vm733_vm0, %v740_v29, %v741_v30 }
  0x39   :  { %v4850_v37 = vld [vmem:[%s13334_s1 + $0x1768] sm:$0xff]  ;;  %v4849_v45 = vld [vmem:[%s13334_s1 + $0x1760] sm:$0xff]  ;;  %5925 = vmatpush1.bf16.msra.mxu0 %v5924_v39  ;;  %v6066_v28 = vpack.c.bf16 %v4620_v19, %v4616_v17  ;;  %v4619_v33 = vld [vmem:[%s13334_s1 + $0x1030] sm:$0xff] }
  0x3a   :  { %v5926_v44 = vpack.c.bf16 %v4850_v37, %v4846_v36  ;;  %v4726_v46 = vld [vmem:[%s13334_s1 + $0x1388] sm:$0xff]  ;;  %v4725_v50 = vld [vmem:[%s13334_s1 + $0x1380] sm:$0xff]  ;;  %5863 = vmatprep.subr.bf16.mxu1 %v5862_v40  ;;  %v5928_v55 = vpack.c.bf16 %v4849_v45, %v4845_v43  ;;  %v4624_v36 = vld [vmem:[%s13334_s1 + $0x1058] sm:$0xff]  ;;  %v6068_v41 = vpack.c.bf16 %v4619_v33, %v4615_v32 }
  0x3b   :  { %v4730_v47 = vld [vmem:[%s13334_s1 + $0x13a8] sm:$0xff]  ;;  %v4729_v52 = vld [vmem:[%s13334_s1 + $0x13a0] sm:$0xff]  ;;  %5865 = vmatpush1.bf16.msra.mxu1 %v5864_v51  ;;  %v4628_v37 = vld [vmem:[%s13334_s1 + $0x1078] sm:$0xff] }
  0x3c   :  { %v4854_v48 = vld [vmem:[%s13334_s1 + $0x1788] sm:$0xff]  ;;  %v5866_v56 = vpack.c.bf16 %v4730_v47, %v4726_v46  ;;  %v4853_v57 = vld [vmem:[%s13334_s1 + $0x1780] sm:$0xff]  ;;  %5927 = vmatprep.subr.bf16.mxu0 %v5926_v44  ;;  %v5868_v8 = vpack.c.bf16 %v4729_v52, %v4725_v50  ;;  %v6070_v44 = vpack.c.bf16 %v4628_v37, %v4624_v36  ;;  %v4623_v46 = vld [vmem:[%s13334_s1 + $0x1050] sm:$0xff] }
  0x3d   :  { %v4858_v49 = vld [vmem:[%s13334_s1 + $0x17a8] sm:$0xff]  ;;  %v4857_v58 = vld [vmem:[%s13334_s1 + $0x17a0] sm:$0xff]  ;;  %5929 = vmatpush1.bf16.msra.mxu0 %v5928_v55  ;;  %v4627_v47 = vld [vmem:[%s13334_s1 + $0x1070] sm:$0xff] }
  0x3e   :  { %v670_v53 = vld [vmem:[#allocation2 + $0x8] sm:$0xfe]  ;;  %v678_v54 = vld [vmem:[#allocation2 + $0x48] sm:$0x1]  ;;  %v5930_v62 = vpack.c.bf16 %v4858_v49, %v4854_v48  ;;  %v4733_v4 = vld [vmem:[%s13334_s1 + $0x13c0] sm:$0xff]  ;;  %5867 = vmatprep.subr.bf16.mxu1 %v5866_v56  ;;  %v5932_v12 = vpack.c.bf16 %v4857_v58, %v4853_v57 }
  0x3f   :  { %v4734_v59 = vld [vmem:[%s13334_s1 + $0x13c8] sm:$0xff]  ;;  %v737_v60 = vrot.slane %v670_v53, 1  ;;  %v738_v61 = vrot.slane %v678_v54, 1  ;;  %v4737_v9 = vld [vmem:[%s13334_s1 + $0x13e0] sm:$0xff]  ;;  %5869 = vmatpush1.bf16.msra.mxu1 %v5868_v8  ;;  %v4632_v50 = vld [vmem:[%s13334_s1 + $0x1098] sm:$0xff]  ;;  %v6072_v54 = vpack.c.bf16 %v4627_v47, %v4623_v46 }
  0x40   :  { %v4738_v63 = vld [vmem:[%s13334_s1 + $0x13e8] sm:$0xff]  ;;  %v4861_v10 = vld [vmem:[%s13334_s1 + $0x17c0] sm:$0xff]  ;;  %5931 = vmatprep.subr.bf16.mxu0 %v5930_v62  ;;  %v5872_v24 = vpack.c.bf16 %v4737_v9, %v4733_v4  ;;  %v4636_v51 = vld [vmem:[%s13334_s1 + $0x10b8] sm:$0xff] }
  0x41   :  { %v4862_v2 = vld [vmem:[%s13334_s1 + $0x17c8] sm:$0xff]  ;;  %v8140_v5 = vsel %vm733_vm0, %v737_v60, %v738_v61  ;;  %v4865_v11 = vld [vmem:[%s13334_s1 + $0x17e0] sm:$0xff]  ;;  %v5870_v13 = vpack.c.bf16 %v4738_v63, %v4734_v59  ;;  %5933 = vmatpush1.bf16.msra.mxu0 %v5932_v12  ;;  %v6074_v56 = vpack.c.bf16 %v4636_v51, %v4632_v50  ;;  %v4631_v58 = vld [vmem:[%s13334_s1 + $0x1090] sm:$0xff] }
  0x42   :  { %v4866_v3 = vld [vmem:[%s13334_s1 + $0x17e8] sm:$0xff]  ;;  %1375 = vmatprep.mubr.f32.mxu1 %v8140_v5  ;;  %v669_v14 = vld [vmem:[#allocation2] sm:$0xfe]  ;;  %v677_v15 = vld [vmem:[#allocation2 + $0x40] sm:$0x1]  ;;  %v5936_v27 = vpack.c.bf16 %v4865_v11, %v4861_v10 }
  0x43   :  { %v5934_v18 = vpack.c.bf16 %v4866_v3, %v4862_v2  ;;  %v4870_v22 = vld [vmem:[%s13334_s1 + $0x1808] sm:$0xff]  ;;  %v734_v25 = vrot.slane %v669_v14, 1  ;;  %v735_v26 = vrot.slane %v677_v15, 1  ;;  %5871 = vmatprep.subr.bf16.mxu1 %v5870_v13  ;;  %v4869_v31 = vld [vmem:[%s13334_s1 + $0x1800] sm:$0xff]  ;;  %v4635_v59 = vld [vmem:[%s13334_s1 + $0x10b0] sm:$0xff] }
  0x44   :  { %v4874_v23 = vld [vmem:[%s13334_s1 + $0x1828] sm:$0xff]  ;;  %v4873_v35 = vld [vmem:[%s13334_s1 + $0x1820] sm:$0xff]  ;;  %5873 = vmatpush1.bf16.msra.mxu1 %v5872_v24  ;;  %v4640_v62 = vld [vmem:[%s13334_s1 + $0x10d8] sm:$0xff]  ;;  %v6076_v2 = vpack.c.bf16 %v4635_v59, %v4631_v58 }
  0x45   :  { %5935 = vmatprep.subr.bf16.mxu0 %v5934_v18  ;;  %v5938_v34 = vpack.c.bf16 %v4874_v23, %v4870_v22  ;;  %v4878_v38 = vld [vmem:[%s13334_s1 + $0x1848] sm:$0xff]  ;;  %v8193_v40 = vsel %vm733_vm0, %v734_v25, %v735_v26  ;;  %6067 = vmatprep.subr.bf16.mxu1 %v6066_v28  ;;  %v5940_v43 = vpack.c.bf16 %v4873_v35, %v4869_v31  ;;  %v4877_v45 = vld [vmem:[%s13334_s1 + $0x1840] sm:$0xff]  ;;  %v4644_v63 = vld [vmem:[%s13334_s1 + $0x10f8] sm:$0xff] }
  0x46   :  { %v4882_v39 = vld [vmem:[%s13334_s1 + $0x1868] sm:$0xff]  ;;  %5937 = vmatpush1.bf16.msra.mxu0 %v5936_v27  ;;  %v4881_v49 = vld [vmem:[%s13334_s1 + $0x1860] sm:$0xff]  ;;  %v6078_v4 = vpack.c.bf16 %v4644_v63, %v4640_v62  ;;  %v4639_v7 = vld [vmem:[%s13334_s1 + $0x10d0] sm:$0xff] }
  0x47   :  { %5939 = vmatprep.subr.bf16.mxu0 %v5938_v34  ;;  %v5942_v48 = vpack.c.bf16 %v4882_v39, %v4878_v38  ;;  %1376 = vmatmul.mubr.f32.vlgmr.msra.gmra.mrb[0].mxu1 %v8193_v40  ;;  %v4886_v52 = vld [vmem:[%s13334_s1 + $0x1888] sm:$0xff]  ;;  %v5944_v55 = vpack.c.bf16 %v4881_v49, %v4877_v45  ;;  %v4885_v57 = vld [vmem:[%s13334_s1 + $0x1880] sm:$0xff]  ;;  %v4643_v8 = vld [vmem:[%s13334_s1 + $0x10f0] sm:$0xff] }
  0x48   :  { %v4890_v53 = vld [vmem:[%s13334_s1 + $0x18a8] sm:$0xff]  ;;  %6069 = vmatpush1.bf16.msra.mxu1 %v6068_v41  ;;  %v4889_v61 = vld [vmem:[%s13334_s1 + $0x18a0] sm:$0xff]  ;;  %v4648_v11 = vld [vmem:[%s13334_s1 + $0x1118] sm:$0xff]  ;;  %v6080_v15 = vpack.c.bf16 %v4643_v8, %v4639_v7 }
  0x49   :  { %1453 = vmatmul.mubr.f32.vlgmr.msra.gmra.mrb[0].mxu0 %v8196_v42  ;;  %6071 = vmatprep.subr.bf16.mxu1 %v6070_v44  ;;  %v5946_v60 = vpack.c.bf16 %v4890_v53, %v4886_v52  ;;  %v4894_v0 = vld [vmem:[%s13334_s1 + $0x18c8] sm:$0xff]  ;;  %v5948_v3 = vpack.c.bf16 %v4889_v61, %v4885_v57  ;;  %v4893_v6 = vld [vmem:[%s13334_s1 + $0x18c0] sm:$0xff]  ;;  %v4652_v12 = vld [vmem:[%s13334_s1 + $0x1138] sm:$0xff] }
  0x4a   :  { %5941 = vmatpush1.bf16.msra.mxu0 %v5940_v43  ;;  %v4898_v1 = vld [vmem:[%s13334_s1 + $0x18e8] sm:$0xff]  ;;  %v4897_v10 = vld [vmem:[%s13334_s1 + $0x18e0] sm:$0xff]  ;;  %v6082_v18 = vpack.c.bf16 %v4652_v12, %v4648_v11  ;;  %v4647_v20 = vld [vmem:[%s13334_s1 + $0x1110] sm:$0xff] }
  0x4b   :  { %5943 = vmatprep.subr.bf16.mxu0 %v5942_v48  ;;  %v5950_v9 = vpack.c.bf16 %v4898_v1, %v4894_v0  ;;  %v4902_v13 = vld [vmem:[%s13334_s1 + $0x1908] sm:$0xff]  ;;  %v5952_v17 = vpack.c.bf16 %v4897_v10, %v4893_v6  ;;  %v4901_v19 = vld [vmem:[%s13334_s1 + $0x1900] sm:$0xff]  ;;  %v4656_v24 = vld [vmem:[%s13334_s1 + $0x1158] sm:$0xff]  ;;  %v6084_v28 = vpack.c.bf16 %v4651_v21, %v4647_v20 }
  0x4c   :  { %6073 = vmatpush1.bf16.msra.mxu1 %v6072_v54  ;;  %v4906_v14 = vld [vmem:[%s13334_s1 + $0x1928] sm:$0xff]  ;;  %v4905_v23 = vld [vmem:[%s13334_s1 + $0x1920] sm:$0xff]  ;;  %v4660_v25 = vld [vmem:[%s13334_s1 + $0x1178] sm:$0xff] }
  0x4d   :  { %6075 = vmatprep.subr.bf16.mxu1 %v6074_v56  ;;  %v5954_v22 = vpack.c.bf16 %v4906_v14, %v4902_v13  ;;  %v4910_v26 = vld [vmem:[%s13334_s1 + $0x1948] sm:$0xff]  ;;  %v5956_v29 = vpack.c.bf16 %v4905_v23, %v4901_v19  ;;  %v6086_v30 = vpack.c.bf16 %v4660_v25, %v4656_v24  ;;  %v4909_v31 = vld [vmem:[%s13334_s1 + $0x1940] sm:$0xff]  ;;  %v4655_v32 = vld [vmem:[%s13334_s1 + $0x1150] sm:$0xff] }
  0x4e   :  { %5945 = vmatpush1.bf16.msra.mxu0 %v5944_v55  ;;  %v4914_v27 = vld [vmem:[%s13334_s1 + $0x1968] sm:$0xff]  ;;  %v4659_v33 = vld [vmem:[%s13334_s1 + $0x1170] sm:$0xff]  ;;  %v4913_v35 = vld [vmem:[%s13334_s1 + $0x1960] sm:$0xff] }
  0x4f   :  { %5947 = vmatprep.subr.bf16.mxu0 %v5946_v60  ;;  %v5958_v34 = vpack.c.bf16 %v4914_v27, %v4910_v26  ;;  %v4664_v36 = vld [vmem:[%s13334_s1 + $0x1198] sm:$0xff]  ;;  %v4918_v38 = vld [vmem:[%s13334_s1 + $0x1988] sm:$0xff]  ;;  %v6088_v41 = vpack.c.bf16 %v4659_v33, %v4655_v32  ;;  %v5960_v43 = vpack.c.bf16 %v4913_v35, %v4909_v31  ;;  %v4917_v45 = vld [vmem:[%s13334_s1 + $0x1980] sm:$0xff] }
  0x50   :  { %6077 = vmatpush1.bf16.msra.mxu1 %v6076_v2  ;;  %v4668_v37 = vld [vmem:[%s13334_s1 + $0x11b8] sm:$0xff]  ;;  %v4922_v39 = vld [vmem:[%s13334_s1 + $0x19a8] sm:$0xff]  ;;  %v4663_v46 = vld [vmem:[%s13334_s1 + $0x1190] sm:$0xff] }
  0x51   :  { %6079 = vmatprep.subr.bf16.mxu1 %v6078_v4  ;;  %v6090_v44 = vpack.c.bf16 %v4668_v37, %v4664_v36  ;;  %v4667_v47 = vld [vmem:[%s13334_s1 + $0x11b0] sm:$0xff]  ;;  %v5962_v48 = vpack.c.bf16 %v4922_v39, %v4918_v38  ;;  %v4921_v49 = vld [vmem:[%s13334_s1 + $0x19a0] sm:$0xff]  ;;  %v4672_v50 = vld [vmem:[%s13334_s1 + $0x11d8] sm:$0xff] }
  0x52   :  { %5949 = vmatpush1.bf16.msra.mxu0 %v5948_v3  ;;  %v4676_v51 = vld [vmem:[%s13334_s1 + $0x11f8] sm:$0xff]  ;;  %v4926_v52 = vld [vmem:[%s13334_s1 + $0x19c8] sm:$0xff]  ;;  %v6092_v55 = vpack.c.bf16 %v4667_v47, %v4663_v46  ;;  %v4925_v56 = vld [vmem:[%s13334_s1 + $0x19c0] sm:$0xff]  ;;  %v5964_v60 = vpack.c.bf16 %v4921_v49, %v4917_v45 }
  0x53   :  { %5951 = vmatprep.subr.bf16.mxu0 %v5950_v9  ;;  %v4930_v53 = vld [vmem:[%s13334_s1 + $0x19e8] sm:$0xff]  ;;  %v53_v58 = vld [vmem:[%s13335_s0 + $0x40] sm:$0xff]  ;;  %v56_v59 = vld [vmem:[%s13335_s0 + $0x58] sm:$0xff]  ;;  %v6094_v61 = vpack.c.bf16 %v4676_v51, %v4672_v50 }
  0x54   :  { %6081 = vmatpush1.bf16.msra.mxu1 %v6080_v15  ;;  %v54_v54 = vld [vmem:[%s13335_s0 + $0x48] sm:$0xff]  ;;  %v4929_v62 = vld [vmem:[%s13334_s1 + $0x19e0] sm:$0xff]  ;;  %v4671_v63 = vld [vmem:[%s13334_s1 + $0x11d0] sm:$0xff]  ;;  %v85_v1 = vrot.slane %v53_v58, 7  ;;  %v88_v2 = vrot.slane %v56_v59, 7  ;;  %v5966_v3 = vpack.c.bf16 %v4930_v53, %v4926_v52 }
  0x55   :  { %6083 = vmatprep.subr.bf16.mxu1 %v6082_v18  ;;  %v86_v57 = vrot.slane %v54_v54, 7  ;;  %v4675_v0 = vld [vmem:[%s13334_s1 + $0x11f0] sm:$0xff]  ;;  %v4680_v4 = vld [vmem:[%s13334_s1 + $0x1218] sm:$0xff]  ;;  %v4934_v8 = vld [vmem:[%s13334_s1 + $0x1a08] sm:$0xff] }
  0x56   :  { %5953 = vmatpush1.bf16.msra.mxu0 %v5952_v17  ;;  %v4684_v6 = vld [vmem:[%s13334_s1 + $0x1238] sm:$0xff]  ;;  %v55_v7 = vld [vmem:[%s13335_s0 + $0x50] sm:$0xff]  ;;  %v4938_v9 = vld [vmem:[%s13334_s1 + $0x1a28] sm:$0xff]  ;;  %125 = vst [vmem:[#allocation2 + $0x80] sm:$0xfe] %v85_v1  ;;  %v6096_v12 = vpack.c.bf16 %v4675_v0, %v4671_v63  ;;  %v5968_v17 = vpack.c.bf16 %v4929_v62, %v4925_v56 }
  0x57   :  { %5955 = vmatprep.subr.bf16.mxu0 %v5954_v22  ;;  %126 = vst [vmem:[#allocation2 + $0x88] sm:$0xfe] %v86_v57  ;;  %134 = vst [vmem:[#allocation2 + $0xc8] sm:$0x1] %v86_v57  ;;  %v87_v10 = vrot.slane %v55_v7, 7  ;;  %v50_v11 = vld [vmem:[%s13335_s0 + $0x28] sm:$0xff]  ;;  %v6098_v18 = vpack.c.bf16 %v4684_v6, %v4680_v4  ;;  %v5970_v22 = vpack.c.bf16 %v4938_v9, %v4934_v8 }
  0x58   :  { %6085 = vmatpush1.bf16.msra.mxu1 %v6084_v28  ;;  %133 = vst [vmem:[#allocation2 + $0xc0] sm:$0x1] %v85_v1  ;;  %128 = vst [vmem:[#allocation2 + $0x98] sm:$0xfe] %v88_v2  ;;  %v4933_v13 = vld [vmem:[%s13334_s1 + $0x1a00] sm:$0xff]  ;;  %v82_v15 = vrot.slane %v50_v11, 7 }
  0x59   :  { %6087 = vmatprep.subr.bf16.mxu1 %v6086_v30  ;;  %136 = vst [vmem:[#allocation2 + $0xd8] sm:$0x1] %v88_v2  ;;  %v4937_v14 = vld [vmem:[%s13334_s1 + $0x1a20] sm:$0xff]  ;;  %v4679_v19 = vld [vmem:[%s13334_s1 + $0x1210] sm:$0xff]  ;;  %127 = vst [vmem:[#allocation2 + $0x90] sm:$0xfe] %v87_v10 }
  0x5a   :  { %5957 = vmatpush1.bf16.msra.mxu0 %v5956_v29  ;;  %v4683_v20 = vld [vmem:[%s13334_s1 + $0x1230] sm:$0xff]  ;;  %135 = vst [vmem:[#allocation2 + $0xd0] sm:$0x1] %v87_v10  ;;  %v49_v21 = vld [vmem:[%s13335_s0 + $0x20] sm:$0xff]  ;;  %v4942_v23 = vld [vmem:[%s13334_s1 + $0x1a48] sm:$0xff] }
  0x5b   :  { %5959 = vmatprep.subr.bf16.mxu0 %v5958_v34  ;;  %v4688_v24 = vld [vmem:[%s13334_s1 + $0x1258] sm:$0xff]  ;;  %114 = vst [vmem:[#allocation2 + $0x28] sm:$0xfe] %v82_v15  ;;  %122 = vst [vmem:[#allocation2 + $0x68] sm:$0x1] %v82_v15  ;;  %v81_v26 = vrot.slane %v49_v21, 7  ;;  %v6100_v30 = vpack.c.bf16 %v4683_v20, %v4679_v19  ;;  %v5972_v34 = vpack.c.bf16 %v4937_v14, %v4933_v13 }
  0x5c   :  { %6089 = vmatpush1.bf16.msra.mxu1 %v6088_v41  ;;  %v4692_v25 = vld [vmem:[%s13334_s1 + $0x1278] sm:$0xff]  ;;  %v4946_v27 = vld [vmem:[%s13334_s1 + $0x1a68] sm:$0xff]  ;;  %v8413_v28 = vld [vmem:[%s13334_s1 + $0x1a40] sm:$0xff] }
  0x5d   :  { %6091 = vmatprep.subr.bf16.mxu1 %v6090_v44  ;;  %v8418_v29 = vld [vmem:[%s13334_s1 + $0x1a60] sm:$0xff]  ;;  %v4687_v31 = vld [vmem:[%s13334_s1 + $0x1250] sm:$0xff]  ;;  %v4696_v33 = vld [vmem:[%s13334_s1 + $0x1298] sm:$0xff]  ;;  %113 = vst [vmem:[#allocation2 + $0x20] sm:$0xfe] %v81_v26  ;;  %v6102_v35 = vpack.c.bf16 %v4692_v25, %v4688_v24 }
  0x5e   :  { %5961 = vmatpush1.bf16.msra.mxu0 %v5960_v43  ;;  %v4691_v32 = vld [vmem:[%s13334_s1 + $0x1270] sm:$0xff]  ;;  %121 = vst [vmem:[#allocation2 + $0x60] sm:$0x1] %v81_v26  ;;  %v4950_v36 = vld [vmem:[%s13334_s1 + $0x1a88] sm:$0xff]  ;;  %v4700_v38 = vld [vmem:[%s13334_s1 + $0x12b8] sm:$0xff]  ;;  %v5974_v43 = vpack.c.bf16 %v4946_v27, %v4942_v23 }
  0x5f   :  { %5963 = vmatprep.subr.bf16.mxu0 %v5962_v48  ;;  %v4954_v37 = vld [vmem:[%s13334_s1 + $0x1aa8] sm:$0xff]  ;;  %v685_v46 = vld [vmem:[#allocation2 + $0x80] sm:$0xfe]  ;;  %v693_v47 = vld [vmem:[#allocation2 + $0xc0] sm:$0x1]  ;;  %v5976_v48 = vpack.c.bf16 %v8418_v29, %v8413_v28  ;;  %v6106_v62 = vpack.c.bf16 %v4700_v38, %v4696_v33 }
  0x60   :  { %6093 = vmatpush1.bf16.msra.mxu1 %v6092_v55  ;;  %v686_v39 = vld [vmem:[#allocation2 + $0x88] sm:$0xfe]  ;;  %v694_v41 = vld [vmem:[#allocation2 + $0xc8] sm:$0x1]  ;;  %v4695_v49 = vld [vmem:[%s13334_s1 + $0x1290] sm:$0xff]  ;;  %v758_v51 = vrot.slane %v685_v46, 1  ;;  %v6104_v55 = vpack.c.bf16 %v4691_v32, %v4687_v31  ;;  %v5978_v4 = vpack.c.bf16 %v4954_v37, %v4950_v36 }
  0x61   :  { %6095 = vmatprep.subr.bf16.mxu1 %v6094_v61  ;;  %v761_v44 = vrot.slane %v686_v39, 1  ;;  %v762_v45 = vrot.slane %v694_v41, 1  ;;  %v4699_v50 = vld [vmem:[%s13334_s1 + $0x12b0] sm:$0xff]  ;;  %v759_v52 = vrot.slane %v693_v47, 1  ;;  %v688_v53 = vld [vmem:[#allocation2 + $0x98] sm:$0xfe] }
  0x62   :  { %5965 = vmatpush1.bf16.msra.mxu0 %v5964_v60  ;;  %v696_v54 = vld [vmem:[#allocation2 + $0xd8] sm:$0x1]  ;;  %v4949_v56 = vld [vmem:[%s13334_s1 + $0x1a80] sm:$0xff]  ;;  %v767_v58 = vrot.slane %v688_v53, 1  ;;  %v687_v60 = vld [vmem:[#allocation2 + $0x90] sm:$0xfe]  ;;  %v6108_v15 = vpack.c.bf16 %v4699_v50, %v4695_v49 }
  0x63   :  { %5967 = vmatprep.subr.bf16.mxu0 %v5966_v3  ;;  %v8450_v57 = vsel %vm733_vm0, %v761_v44, %v762_v45  ;;  %v768_v59 = vrot.slane %v696_v54, 1  ;;  %v695_v61 = vld [vmem:[#allocation2 + $0xd0] sm:$0x1]  ;;  %v8453_v63 = vsel %vm733_vm0, %v758_v51, %v759_v52  ;;  %v764_v0 = vrot.slane %v687_v60, 1  ;;  %v674_v2 = vld [vmem:[#allocation2 + $0x28] sm:$0xfe] }
  0x64   :  { %6097 = vmatpush1.bf16.msra.mxu1 %v6096_v12  ;;  %v765_v1 = vrot.slane %v695_v61, 1  ;;  %v682_v3 = vld [vmem:[#allocation2 + $0x68] sm:$0x1]  ;;  %v4953_v6 = vld [vmem:[%s13334_s1 + $0x1aa0] sm:$0xff]  ;;  %v4704_v7 = vld [vmem:[%s13334_s1 + $0x12d8] sm:$0xff]  ;;  %1381 = vmatprep.mubr.f32.mxu1 %v8450_v57  ;;  %v749_v10 = vrot.slane %v674_v2, 1 }
  0x65   :  { %6099 = vmatprep.subr.bf16.mxu1 %v6098_v18  ;;  %v4708_v8 = vld [vmem:[%s13334_s1 + $0x12f8] sm:$0xff]  ;;  %v8466_v9 = vsel %vm733_vm0, %v767_v58, %v768_v59  ;;  %v750_v11 = vrot.slane %v682_v3, 1  ;;  %v4958_v12 = vld [vmem:[%s13334_s1 + $0x1ac8] sm:$0xff]  ;;  %1382 = vmatmul.mubr.f32.gmra.mrb[2].mxu1 %v8453_v63  ;;  %v5980_v18 = vpack.c.bf16 %v4953_v6, %v4949_v56  ;;  %v4957_v20 = vld [vmem:[%s13334_s1 + $0x1ac0] sm:$0xff] }
  0x66   :  { %5969 = vmatpush1.bf16.msra.mxu0 %v5968_v17  ;;  %v4962_v13 = vld [vmem:[%s13334_s1 + $0x1ae8] sm:$0xff]  ;;  %1458 = vmatprep.mubr.f32.mxu0 %v8466_v9  ;;  %v8477_v14 = vsel %vm733_vm0, %v764_v0, %v765_v1  ;;  %v6110_v19 = vpack.c.bf16 %v4708_v8, %v4704_v7  ;;  %v4703_v21 = vld [vmem:[%s13334_s1 + $0x12d0] sm:$0xff]  ;;  %v4961_v24 = vld [vmem:[%s13334_s1 + $0x1ae0] sm:$0xff] }
  0x67   :  { %5971 = vmatprep.subr.bf16.mxu0 %v5970_v22  ;;  %1459 = vmatmul.mubr.f32.gmra.mrb[2].mxu0 %v8477_v14  ;;  %v8481_v17 = vsel %vm733_vm0, %v749_v10, %v750_v11  ;;  %v4707_v22 = vld [vmem:[%s13334_s1 + $0x12f0] sm:$0xff]  ;;  %v5982_v23 = vpack.c.bf16 %v4962_v13, %v4958_v12  ;;  %v4712_v25 = vld [vmem:[%s13334_s1 + $0x1318] sm:$0xff]  ;;  %v4966_v27 = vld [vmem:[%s13334_s1 + $0x1b08] sm:$0xff] }
  0x68   :  { %6101 = vmatpush1.bf16.msra.mxu1 %v6100_v30  ;;  %v4716_v26 = vld [vmem:[%s13334_s1 + $0x1338] sm:$0xff]  ;;  %1529 = vmatprep.mubr.f32.mxu0 %v8481_v17  ;;  %v4970_v28 = vld [vmem:[%s13334_s1 + $0x1b28] sm:$0xff]  ;;  %v6112_v29 = vpack.c.bf16 %v4707_v22, %v4703_v21  ;;  %v5984_v30 = vpack.c.bf16 %v4961_v24, %v4957_v20  ;;  %v4965_v32 = vld [vmem:[%s13334_s1 + $0x1b00] sm:$0xff]  ;;  %v7699_v24 = vmov 0.0  }
  0x69   :  { %6103 = vmatprep.subr.bf16.mxu1 %v6102_v35  ;;  %1683 = vmatprep.mubr.f32.mxu1 %v8140_v5  ;;  %v6114_v31 = vpack.c.bf16 %v4716_v26, %v4712_v25  ;;  %v4711_v33 = vld [vmem:[%s13334_s1 + $0x1310] sm:$0xff]  ;;  %v5986_v5 = vpack.c.bf16 %v4970_v28, %v4966_v27  ;;  %v4969_v35 = vld [vmem:[%s13334_s1 + $0x1b20] sm:$0xff]  ;;  %v4720_v36 = vld [vmem:[%s13334_s1 + $0x1358] sm:$0xff]  ;;  %34 = vst [vmem:[#allocation2] ss:$8 sm:$0xf] %v7699_v24 }
  0x6a   :  { %5973 = vmatpush1.bf16.msra.mxu0 %v5972_v34  ;;  %v4715_v34 = vld [vmem:[%s13334_s1 + $0x1330] sm:$0xff]  ;;  %v4724_v37 = vld [vmem:[%s13334_s1 + $0x1378] sm:$0xff]  ;;  %v4974_v38 = vld [vmem:[%s13334_s1 + $0x1b48] sm:$0xff]  ;;  %35 = vst [vmem:[#allocation2] ss:$8 sm:$0xf0] %v7699_v24 }
  0x6b   :  { %5975 = vmatprep.subr.bf16.mxu0 %v5974_v43  ;;  %v4978_v39 = vld [vmem:[%s13334_s1 + $0x1b68] sm:$0xff]  ;;  %v6116_v41 = vpack.c.bf16 %v4715_v34, %v4711_v33  ;;  %v5988_v43 = vpack.c.bf16 %v4969_v35, %v4965_v32  ;;  %v6118_v44 = vpack.c.bf16 %v4724_v37, %v4720_v36  ;;  %v4973_v45 = vld [vmem:[%s13334_s1 + $0x1b40] sm:$0xff]  ;;  %v4719_v46 = vld [vmem:[%s13334_s1 + $0x1350] sm:$0xff]  ;;  %37 = vst [vmem:[#allocation2 + $0x80] ss:$8 sm:$0xf] %v7699_v24 }
  0x6c   :  { %6105 = vmatpush1.bf16.msra.mxu1 %v6104_v55  ;;  %v4723_v47 = vld [vmem:[%s13334_s1 + $0x1370] sm:$0xff]  ;;  %v4977_v49 = vld [vmem:[%s13334_s1 + $0x1b60] sm:$0xff]  ;;  %v4728_v50 = vld [vmem:[%s13334_s1 + $0x1398] sm:$0xff]  ;;  %38 = vst [vmem:[#allocation2 + $0x80] ss:$8 sm:$0xf0] %v7699_v24 }
  0x6d   :  { %6107 = vmatprep.subr.bf16.mxu1 %v6106_v62  ;;  %v4732_v51 = vld [vmem:[%s13334_s1 + $0x13b8] sm:$0xff]  ;;  %v4982_v52 = vld [vmem:[%s13334_s1 + $0x1b88] sm:$0xff]  ;;  %v6120_v54 = vpack.c.bf16 %v4723_v47, %v4719_v46  ;;  %v5992_v55 = vpack.c.bf16 %v4977_v49, %v4973_v45  ;;  %v4981_v58 = vld [vmem:[%s13334_s1 + $0x1b80] sm:$0xff]  ;;  %40 = vst [vmem:[#allocation2 + $0x41] ss:$8 sm:$0xf] %v7699_v24 }
  0x6e   :  { %5977 = vmatpush1.bf16.msra.mxu0 %v5976_v48  ;;  %v5990_v48 = vpack.c.bf16 %v4978_v39, %v4974_v38  ;;  %v4986_v53 = vld [vmem:[%s13334_s1 + $0x1ba8] sm:$0xff]  ;;  %v6122_v56 = vpack.c.bf16 %v4732_v51, %v4728_v50  ;;  %v4727_v59 = vld [vmem:[%s13334_s1 + $0x1390] sm:$0xff]  ;;  %v4985_v62 = vld [vmem:[%s13334_s1 + $0x1ba0] sm:$0xff]  ;;  %41 = vst [vmem:[#allocation2 + $0x41] ss:$8 sm:$0xf0] %v7699_v24 }
  0x6f   :  { %5979 = vmatprep.subr.bf16.mxu0 %v5978_v4  ;;  %v4731_v60 = vld [vmem:[%s13334_s1 + $0x13b0] sm:$0xff]  ;;  %v5994_v61 = vpack.c.bf16 %v4986_v53, %v4982_v52  ;;  %v4736_v0 = vld [vmem:[%s13334_s1 + $0x13d8] sm:$0xff]  ;;  %v4990_v2 = vld [vmem:[%s13334_s1 + $0x1bc8] sm:$0xff]  ;;  %v5996_v8 = vpack.c.bf16 %v4985_v62, %v4981_v58  ;;  %43 = vst [vmem:[#allocation2 + $0xc1] ss:$8 sm:$0xf] %v7699_v24 }
  0x70   :  { %6109 = vmatpush1.bf16.msra.mxu1 %v6108_v15  ;;  %v4740_v1 = vld [vmem:[%s13334_s1 + $0x13f8] sm:$0xff]  ;;  %v4994_v3 = vld [vmem:[%s13334_s1 + $0x1be8] sm:$0xff]  ;;  %v6124_v4 = vpack.c.bf16 %v4731_v60, %v4727_v59  ;;  %v4989_v6 = vld [vmem:[%s13334_s1 + $0x1bc0] sm:$0xff]  ;;  %44 = vst [vmem:[#allocation2 + $0xc1] ss:$8 sm:$0xf0] %v7699_v24 }
  0x71   :  { %6111 = vmatprep.subr.bf16.mxu1 %v6110_v19  ;;  %v4993_v7 = vld [vmem:[%s13334_s1 + $0x1be0] sm:$0xff]  ;;  %v6126_v10 = vpack.c.bf16 %v4740_v1, %v4736_v0  ;;  %v4735_v11 = vld [vmem:[%s13334_s1 + $0x13d0] sm:$0xff]  ;;  %v4744_v13 = vld [vmem:[%s13334_s1 + $0x1418] sm:$0xff]  ;;  %v5998_v15 = vpack.c.bf16 %v4994_v3, %v4990_v2 }
  0x72   :  { %5981 = vmatpush1.bf16.msra.mxu0 %v5980_v18  ;;  %v4739_v12 = vld [vmem:[%s13334_s1 + $0x13f0] sm:$0xff]  ;;  %v4748_v18 = vld [vmem:[%s13334_s1 + $0x1438] sm:$0xff]  ;;  %v673_v19 = vld [vmem:[#allocation2 + $0x20] sm:$0xfe]  ;;  %v6000_v25 = vpack.c.bf16 %v4993_v7, %v4989_v6 }
  0x73   :  { %5983 = vmatprep.subr.bf16.mxu0 %v5982_v23  ;;  %v681_v20 = vld [vmem:[#allocation2 + $0x60] sm:$0x1]  ;;  %v4998_v21 = vld [vmem:[%s13334_s1 + $0x1c08] sm:$0xff]  ;;  %v6128_v23 = vpack.c.bf16 %v4739_v12, %v4735_v11  ;;  %v6130_v26 = vpack.c.bf16 %v4748_v18, %v4744_v13  ;;  %v746_v27 = vrot.slane %v673_v19, 1  ;;  %v4752_v34 = vld [vmem:[%s13334_s1 + $0x1458] sm:$0xff] }
  0x74   :  { %6113 = vmatpush1.bf16.msra.mxu1 %v6112_v29  ;;  %v5002_v22 = vld [vmem:[%s13334_s1 + $0x1c28] sm:$0xff]  ;;  %v747_v28 = vrot.slane %v681_v20, 1  ;;  %v4997_v29 = vld [vmem:[%s13334_s1 + $0x1c00] sm:$0xff]  ;;  %v4755_v45 = vld [vmem:[%s13334_s1 + $0x1470] sm:$0xff] }
  0x75   :  { %6115 = vmatprep.subr.bf16.mxu1 %v6114_v31  ;;  %v4747_v31 = vld [vmem:[%s13334_s1 + $0x1430] sm:$0xff]  ;;  %v6002_v32 = vpack.c.bf16 %v5002_v22, %v4998_v21  ;;  %v5001_v33 = vld [vmem:[%s13334_s1 + $0x1c20] sm:$0xff]  ;;  %v5006_v35 = vld [vmem:[%s13334_s1 + $0x1c48] sm:$0xff] }
  0x76   :  { %5985 = vmatpush1.bf16.msra.mxu0 %v5984_v30  ;;  %v4743_v30 = vld [vmem:[%s13334_s1 + $0x1410] sm:$0xff]  ;;  %v5010_v36 = vld [vmem:[%s13334_s1 + $0x1c68] sm:$0xff]  ;;  %v8638_v38 = vsel %vm733_vm0, %v746_v27, %v747_v28  ;;  %v6004_v39 = vpack.c.bf16 %v5001_v33, %v4997_v29  ;;  %v5009_v47 = vld [vmem:[%s13334_s1 + $0x1c60] sm:$0xff] }
  0x77   :  { %5987 = vmatprep.subr.bf16.mxu0 %v5986_v5  ;;  %v4756_v5 = vld [vmem:[%s13334_s1 + $0x1478] sm:$0xff]  ;;  %v6132_v37 = vpack.c.bf16 %v4747_v31, %v4743_v30  ;;  %v6006_v46 = vpack.c.bf16 %v5010_v36, %v5006_v35  ;;  %v5014_v50 = vld [vmem:[%s13334_s1 + $0x1c88] sm:$0xff]  ;;  %v5017_v59 = vld [vmem:[%s13334_s1 + $0x1ca0] sm:$0xff] }
  0x78   :  { %6117 = vmatpush1.bf16.msra.mxu1 %v6116_v41  ;;  %v6134_v41 = vpack.c.bf16 %v4756_v5, %v4752_v34  ;;  %v4764_v49 = vld [vmem:[%s13334_s1 + $0x14b8] sm:$0xff]  ;;  %v5018_v51 = vld [vmem:[%s13334_s1 + $0x1ca8] sm:$0xff]  ;;  %v5021_v2 = vld [vmem:[%s13334_s1 + $0x1cc0] sm:$0xff] }
  0x79   :  { %6119 = vmatprep.subr.bf16.mxu1 %v6118_v44  ;;  %v4751_v44 = vld [vmem:[%s13334_s1 + $0x1450] sm:$0xff]  ;;  %v6010_v58 = vpack.c.bf16 %v5018_v51, %v5014_v50  ;;  %v4768_v60 = vld [vmem:[%s13334_s1 + $0x14d8] sm:$0xff]  ;;  %v5022_v62 = vld [vmem:[%s13334_s1 + $0x1cc8] sm:$0xff] }
  0x7a   :  { %5989 = vmatpush1.bf16.msra.mxu0 %v5988_v43  ;;  %v5005_v43 = vld [vmem:[%s13334_s1 + $0x1c40] sm:$0xff]  ;;  %v6136_v52 = vpack.c.bf16 %v4755_v45, %v4751_v44  ;;  %v5026_v0 = vld [vmem:[%s13334_s1 + $0x1ce8] sm:$0xff]  ;;  %v52_v27 = vld [vmem:[%s13335_s0 + $0x38] sm:$0xff] }
  0x7b   :  { %5991 = vmatprep.subr.bf16.mxu0 %v5990_v48  ;;  %v4760_v48 = vld [vmem:[%s13334_s1 + $0x1498] sm:$0xff]  ;;  %v6008_v53 = vpack.c.bf16 %v5009_v47, %v5005_v43  ;;  %v58_v6 = vld [vmem:[%s13335_s0 + $0x68] sm:$0xff]  ;;  %v6014_v7 = vpack.c.bf16 %v5026_v0, %v5022_v62  ;;  %v5029_v19 = vld [vmem:[%s13334_s1 + $0x1d00] sm:$0xff]  ;;  %v84_v31 = vrot.slane %v52_v27, 7 }
  0x7c   :  { %6121 = vmatpush1.bf16.msra.mxu1 %v6120_v54  ;;  %v6138_v54 = vpack.c.bf16 %v4764_v49, %v4760_v48  ;;  %v90_v11 = vrot.slane %v58_v6, 7  ;;  %v5030_v12 = vld [vmem:[%s13334_s1 + $0x1d08] sm:$0xff]  ;;  %v5033_v20 = vld [vmem:[%s13334_s1 + $0x1d20] sm:$0xff]  ;;  %v4784_v29 = vld [vmem:[%s13334_s1 + $0x1558] sm:$0xff] }
  0x7d   :  { %6123 = vmatprep.subr.bf16.mxu1 %v6122_v56  ;;  %v4763_v56 = vld [vmem:[%s13334_s1 + $0x14b0] sm:$0xff]  ;;  %v5034_v13 = vld [vmem:[%s13334_s1 + $0x1d28] sm:$0xff]  ;;  %v4788_v30 = vld [vmem:[%s13334_s1 + $0x1578] sm:$0xff]  ;;  %116 = vst [vmem:[#allocation2 + $0x38] sm:$0xfe] %v84_v31 }
  0x7e   :  { %5993 = vmatpush1.bf16.msra.mxu0 %v5992_v55  ;;  %v4759_v55 = vld [vmem:[%s13334_s1 + $0x1490] sm:$0xff]  ;;  %130 = vst [vmem:[#allocation2 + $0xa8] sm:$0xfe] %v90_v11  ;;  %138 = vst [vmem:[#allocation2 + $0xe8] sm:$0x1] %v90_v11  ;;  %v6018_v28 = vpack.c.bf16 %v5034_v13, %v5030_v12  ;;  %v5038_v33 = vld [vmem:[%s13334_s1 + $0x1d48] sm:$0xff] }
  0x7f   :  { %5995 = vmatprep.subr.bf16.mxu0 %v5994_v61  ;;  %v4772_v61 = vld [vmem:[%s13334_s1 + $0x14f8] sm:$0xff]  ;;  %v6140_v1 = vpack.c.bf16 %v4763_v56, %v4759_v55  ;;  %v5042_v34 = vld [vmem:[%s13334_s1 + $0x1d68] sm:$0xff]  ;;  %v5037_v36 = vld [vmem:[%s13334_s1 + $0x1d40] sm:$0xff]  ;;  %124 = vst [vmem:[#allocation2 + $0x78] sm:$0x1] %v84_v31 }
  0x80   :  { %6125 = vmatpush1.bf16.msra.mxu1 %v6124_v4  ;;  %v6142_v3 = vpack.c.bf16 %v4772_v61, %v4768_v60  ;;  %v4767_v4 = vld [vmem:[%s13334_s1 + $0x14d0] sm:$0xff]  ;;  %v6022_v45 = vpack.c.bf16 %v5042_v34, %v5038_v33  ;;  %v4792_v47 = vld [vmem:[%s13334_s1 + $0x1598] sm:$0xff]  ;;  %v5050_v49 = vld [vmem:[%s13334_s1 + $0x1da8] sm:$0xff] }
  0x81   :  { %6127 = vmatprep.subr.bf16.mxu1 %v6126_v10  ;;  %v4780_v10 = vld [vmem:[%s13334_s1 + $0x1538] sm:$0xff]  ;;  %v4783_v43 = vld [vmem:[%s13334_s1 + $0x1550] sm:$0xff]  ;;  %v5058_v6 = vld [vmem:[%s13334_s1 + $0x1de8] sm:$0xff] }
  0x82   :  { %5997 = vmatpush1.bf16.msra.mxu0 %v5996_v8  ;;  %v4776_v8 = vld [vmem:[%s13334_s1 + $0x1518] sm:$0xff]  ;;  %v4787_v44 = vld [vmem:[%s13334_s1 + $0x1570] sm:$0xff]  ;;  %v5062_v27 = vld [vmem:[%s13334_s1 + $0x1e08] sm:$0xff] }
  0x83   :  { %5999 = vmatprep.subr.bf16.mxu0 %v5998_v15  ;;  %v57_v15 = vld [vmem:[%s13335_s0 + $0x60] sm:$0xff]  ;;  %v4796_v48 = vld [vmem:[%s13334_s1 + $0x15b8] sm:$0xff]  ;;  %v4795_v60 = vld [vmem:[%s13334_s1 + $0x15b0] sm:$0xff] }
  0x84   :  { %6129 = vmatpush1.bf16.msra.mxu1 %v6128_v23  ;;  %v89_v21 = vrot.slane %v57_v15, 7  ;;  %v6146_v23 = vpack.c.bf16 %v4780_v10, %v4776_v8  ;;  %v4807_v33 = vld [vmem:[%s13334_s1 + $0x1610] sm:$0xff] }
  0x85   :  { %6131 = vmatprep.subr.bf16.mxu1 %v6130_v26  ;;  %v4779_v26 = vld [vmem:[%s13334_s1 + $0x1530] sm:$0xff]  ;;  %v690_v50 = vld [vmem:[#allocation2 + $0xa8] sm:$0xfe]  ;;  %v698_v51 = vld [vmem:[#allocation2 + $0xe8] sm:$0x1] }
  0x86   :  { %6001 = vmatpush1.bf16.msra.mxu0 %v6000_v25  ;;  %v4775_v25 = vld [vmem:[%s13334_s1 + $0x1510] sm:$0xff]  ;;  %129 = vst [vmem:[#allocation2 + $0xa0] sm:$0xfe] %v89_v21  ;;  %137 = vst [vmem:[#allocation2 + $0xe0] sm:$0x1] %v89_v21  ;;  %v773_v55 = vrot.slane %v690_v50, 1 }
  0x87   :  { %6003 = vmatprep.subr.bf16.mxu0 %v6002_v32  ;;  %1684 = vmatmul.mubr.f32.vlgmr.msra.gmra.mrb[4].mxu1 %v8193_v40  ;;  %v5013_v40 = vld [vmem:[%s13334_s1 + $0x1c80] sm:$0xff]  ;;  %v51_v32 = vld [vmem:[%s13335_s0 + $0x30] sm:$0xff]  ;;  %v6148_v35 = vpack.c.bf16 %v4779_v26, %v4775_v25  ;;  %v774_v56 = vrot.slane %v698_v51, 1  ;;  %v4812_v25 = vld [vmem:[%s13334_s1 + $0x1638] sm:$0xff] }
  0x88   :  { %6133 = vmatpush1.bf16.msra.mxu1 %v6132_v37  ;;  %1689 = vmatprep.mubr.f32.mxu1 %v8450_v57  ;;  %v6012_v57 = vpack.c.bf16 %v5017_v59, %v5013_v40  ;;  %v83_v5 = vrot.slane %v51_v32, 7  ;;  %v6020_v37 = vpack.c.bf16 %v5033_v20, %v5029_v19  ;;  %v4791_v40 = vld [vmem:[%s13334_s1 + $0x1590] sm:$0xff]  ;;  %v6154_v59 = vpack.c.bf16 %v4796_v48, %v4792_v47  ;;  %v5061_v32 = vld [vmem:[%s13334_s1 + $0x1e00] sm:$0xff]  ;;  %v4824_v51 = vld [vmem:[%s13334_s1 + $0x1698] sm:$0xff] }
  0x89   :  { %1530 = vmatmul.mubr.f32.vlgmr.msra.gmra.mrb[0].mxu0 %v8638_v38  ;;  %6135 = vmatprep.subr.bf16.mxu1 %v6134_v41  ;;  %v5041_v41 = vld [vmem:[%s13334_s1 + $0x1d60] sm:$0xff]  ;;  %v6156_v8 = vpack.c.bf16 %v4795_v60, %v4791_v40  ;;  %v4799_v19 = vld [vmem:[%s13334_s1 + $0x15d0] sm:$0xff] }
  0x8a   :  { %6005 = vmatpush1.bf16.msra.mxu0 %v6004_v39  ;;  %v6150_v39 = vpack.c.bf16 %v4788_v30, %v4784_v29  ;;  %115 = vst [vmem:[#allocation2 + $0x30] sm:$0xfe] %v83_v5  ;;  %123 = vst [vmem:[#allocation2 + $0x70] sm:$0x1] %v83_v5  ;;  %v4803_v20 = vld [vmem:[%s13334_s1 + $0x15f0] sm:$0xff]  ;;  %v5073_v50 = vld [vmem:[%s13334_s1 + $0x1e60] sm:$0xff] }
  0x8b   :  { %6007 = vmatprep.subr.bf16.mxu0 %v6006_v46  ;;  %1690 = vmatmul.mubr.f32.gmra.mrb[6].mxu1 %v8453_v63  ;;  %v4771_v63 = vld [vmem:[%s13334_s1 + $0x14f0] sm:$0xff]  ;;  %v5046_v46 = vld [vmem:[%s13334_s1 + $0x1d88] sm:$0xff]  ;;  %v6160_v29 = vpack.c.bf16 %v4803_v20, %v4799_v19 }
  0x8c   :  { %6137 = vmatpush1.bf16.msra.mxu1 %v6136_v52  ;;  %1760 = vmatprep.mubr.f32.mxu1 %v8153_v16  ;;  %v5025_v16 = vld [vmem:[%s13334_s1 + $0x1ce0] sm:$0xff]  ;;  %v6144_v18 = vpack.c.bf16 %v4771_v63, %v4767_v4  ;;  %v6152_v52 = vpack.c.bf16 %v4787_v44, %v4783_v43  ;;  %v6026_v0 = vpack.c.bf16 %v5050_v49, %v5046_v46  ;;  %v4811_v34 = vld [vmem:[%s13334_s1 + $0x1630] sm:$0xff]  ;;  %v5098_v19 = vld [vmem:[%s13334_s1 + $0x1f28] sm:$0xff] }
  0x8d   :  { %6139 = vmatprep.subr.bf16.mxu1 %v6138_v54  ;;  %v6016_v22 = vpack.c.bf16 %v5025_v16, %v5021_v2  ;;  %v5049_v54 = vld [vmem:[%s13334_s1 + $0x1da0] sm:$0xff]  ;;  %v4800_v2 = vld [vmem:[%s13334_s1 + $0x15d8] sm:$0xff]  ;;  %v6164_v43 = vpack.c.bf16 %v4811_v34, %v4807_v33  ;;  %v4815_v47 = vld [vmem:[%s13334_s1 + $0x1650] sm:$0xff] }
  0x8e   :  { %6009 = vmatpush1.bf16.msra.mxu0 %v6008_v53  ;;  %v5045_v53 = vld [vmem:[%s13334_s1 + $0x1d80] sm:$0xff]  ;;  %v684_v16 = vld [vmem:[#allocation2 + $0x78] sm:$0x1]  ;;  %v4819_v48 = vld [vmem:[%s13334_s1 + $0x1670] sm:$0xff] }
  0x8f   :  { %6011 = vmatprep.subr.bf16.mxu0 %v6010_v58  ;;  %v6024_v58 = vpack.c.bf16 %v5041_v41, %v5037_v36  ;;  %v689_v61 = vld [vmem:[#allocation2 + $0xa0] sm:$0xfe]  ;;  %v697_v62 = vld [vmem:[#allocation2 + $0xe0] sm:$0x1]  ;;  %v756_v12 = vrot.slane %v684_v16, 1  ;;  %v6028_v13 = vpack.c.bf16 %v5049_v54, %v5045_v53  ;;  %v4816_v36 = vld [vmem:[%s13334_s1 + $0x1658] sm:$0xff]  ;;  %v6168_v40 = vpack.c.bf16 %v4819_v48, %v4815_v47 }
  0x90   :  { %6141 = vmatpush1.bf16.msra.mxu1 %v6140_v1  ;;  %v5054_v1 = vld [vmem:[%s13334_s1 + $0x1dc8] sm:$0xff]  ;;  %v770_v4 = vrot.slane %v689_v61, 1  ;;  %v771_v63 = vrot.slane %v697_v62, 1  ;;  %v5069_v46 = vld [vmem:[%s13334_s1 + $0x1e40] sm:$0xff]  ;;  %v4827_v60 = vld [vmem:[%s13334_s1 + $0x16b0] sm:$0xff] }
  0x91   :  { %6143 = vmatprep.subr.bf16.mxu1 %v6142_v3  ;;  %v8799_v3 = vsel %vm733_vm0, %v773_v55, %v774_v56  ;;  %v6030_v21 = vpack.c.bf16 %v5058_v6, %v5054_v1  ;;  %v5074_v41 = vld [vmem:[%s13334_s1 + $0x1e68] sm:$0xff]  ;;  %v6040_v55 = vpack.c.bf16 %v5073_v50, %v5069_v46  ;;  %v5081_v62 = vld [vmem:[%s13334_s1 + $0x1ea0] sm:$0xff]  ;;  %v4836_v1 = vld [vmem:[%s13334_s1 + $0x16f8] sm:$0xff] }
  0x92   :  { %6013 = vmatpush1.bf16.msra.mxu0 %v6012_v57  ;;  %v4804_v57 = vld [vmem:[%s13334_s1 + $0x15f8] sm:$0xff]  ;;  %1535 = vmatprep.mubr.f32.mxu0 %v8799_v3  ;;  %v8806_v10 = vsel %vm733_vm0, %v770_v4, %v771_v63  ;;  %v5078_v53 = vld [vmem:[%s13334_s1 + $0x1e88] sm:$0xff]  ;;  %v4831_v16 = vld [vmem:[%s13334_s1 + $0x16d0] sm:$0xff] }
  0x93   :  { %6015 = vmatprep.subr.bf16.mxu0 %v6014_v7  ;;  %v676_v7 = vld [vmem:[#allocation2 + $0x38] sm:$0xfe]  ;;  %v6158_v15 = vpack.c.bf16 %v4804_v57, %v4800_v2  ;;  %1536 = vmatmul.mubr.f32.gmra.mrb[2].mxu0 %v8806_v10  ;;  %v5082_v54 = vld [vmem:[%s13334_s1 + $0x1ea8] sm:$0xff] }
  0x94   :  { %6145 = vmatpush1.bf16.msra.mxu1 %v6144_v18  ;;  %v755_v11 = vrot.slane %v676_v7, 1  ;;  %v5053_v18 = vld [vmem:[%s13334_s1 + $0x1dc0] sm:$0xff]  ;;  %v6042_v61 = vpack.c.bf16 %v5082_v54, %v5078_v53  ;;  %v5086_v2 = vld [vmem:[%s13334_s1 + $0x1ec8] sm:$0xff]  ;;  %v4859_v53 = vld [vmem:[%s13334_s1 + $0x17b0] sm:$0xff] }
  0x95   :  { %6147 = vmatprep.subr.bf16.mxu1 %v6146_v23  ;;  %v4808_v23 = vld [vmem:[%s13334_s1 + $0x1618] sm:$0xff]  ;;  %v5090_v57 = vld [vmem:[%s13334_s1 + $0x1ee8] sm:$0xff]  ;;  %v5085_v7 = vld [vmem:[%s13334_s1 + $0x1ec0] sm:$0xff] }
  0x96   :  { %6017 = vmatpush1.bf16.msra.mxu0 %v6016_v22  ;;  %v5057_v22 = vld [vmem:[%s13334_s1 + $0x1de0] sm:$0xff]  ;;  %v8828_v26 = vsel %vm733_vm0, %v755_v11, %v756_v12  ;;  %v6162_v31 = vpack.c.bf16 %v4812_v25, %v4808_v23  ;;  %v6046_v11 = vpack.c.bf16 %v5090_v57, %v5086_v2  ;;  %v4839_v25 = vld [vmem:[%s13334_s1 + $0x1710] sm:$0xff]  ;;  %v5106_v33 = vld [vmem:[%s13334_s1 + $0x1f68] sm:$0xff] }
  0x97   :  { %6019 = vmatprep.subr.bf16.mxu0 %v6018_v28  ;;  %v5066_v28 = vld [vmem:[%s13334_s1 + $0x1e28] sm:$0xff]  ;;  %1606 = vmatprep.mubr.f32.mxu0 %v8828_v26  ;;  %v6032_v30 = vpack.c.bf16 %v5057_v22, %v5053_v18  ;;  %v5089_v12 = vld [vmem:[%s13334_s1 + $0x1ee0] sm:$0xff] }
  0x98   :  { %6149 = vmatpush1.bf16.msra.mxu1 %v6148_v35  ;;  %v6034_v5 = vpack.c.bf16 %v5066_v28, %v5062_v27  ;;  %v5065_v35 = vld [vmem:[%s13334_s1 + $0x1e20] sm:$0xff]  ;;  %v5094_v18 = vld [vmem:[%s13334_s1 + $0x1f08] sm:$0xff]  ;;  %v4843_v27 = vld [vmem:[%s13334_s1 + $0x1730] sm:$0xff] }
  0x99   :  { %6151 = vmatprep.subr.bf16.mxu1 %v6150_v39  ;;  %v5070_v39 = vld [vmem:[%s13334_s1 + $0x1e48] sm:$0xff]  ;;  %v6036_v44 = vpack.c.bf16 %v5065_v35, %v5061_v32  ;;  %v5093_v23 = vld [vmem:[%s13334_s1 + $0x1f00] sm:$0xff]  ;;  %v6050_v28 = vpack.c.bf16 %v5098_v19, %v5094_v18  ;;  %v6180_v34 = vpack.c.bf16 %v4843_v27, %v4839_v25  ;;  %v4871_v25 = vld [vmem:[%s13334_s1 + $0x1810] sm:$0xff] }
  0x9a   :  { %6021 = vmatpush1.bf16.msra.mxu0 %v6020_v37  ;;  %v4820_v37 = vld [vmem:[%s13334_s1 + $0x1678] sm:$0xff]  ;;  %v6038_v49 = vpack.c.bf16 %v5074_v41, %v5070_v39  ;;  %v5102_v32 = vld [vmem:[%s13334_s1 + $0x1f48] sm:$0xff]  ;;  %v4851_v39 = vld [vmem:[%s13334_s1 + $0x1770] sm:$0xff] }
  0x9b   :  { %6023 = vmatprep.subr.bf16.mxu0 %v6022_v45  ;;  %v6166_v45 = vpack.c.bf16 %v4820_v37, %v4816_v36  ;;  %v5101_v36 = vld [vmem:[%s13334_s1 + $0x1f40] sm:$0xff]  ;;  %v4847_v37 = vld [vmem:[%s13334_s1 + $0x1750] sm:$0xff]  ;;  %v6054_v41 = vpack.c.bf16 %v5106_v33, %v5102_v32  ;;  %v5110_v46 = vld [vmem:[%s13334_s1 + $0x1f88] sm:$0xff] }
  0x9c   :  { %6153 = vmatpush1.bf16.msra.mxu1 %v6152_v52  ;;  %v4828_v52 = vld [vmem:[%s13334_s1 + $0x16b8] sm:$0xff]  ;;  %v5114_v47 = vld [vmem:[%s13334_s1 + $0x1fa8] sm:$0xff]  ;;  %v6184_v48 = vpack.c.bf16 %v4851_v39, %v4847_v37  ;;  %v4875_v27 = vld [vmem:[%s13334_s1 + $0x1830] sm:$0xff] }
  0x9d   :  { %6155 = vmatprep.subr.bf16.mxu1 %v6154_v59  ;;  %v6170_v56 = vpack.c.bf16 %v4828_v52, %v4824_v51  ;;  %v4823_v59 = vld [vmem:[%s13334_s1 + $0x1690] sm:$0xff]  ;;  %v5109_v51 = vld [vmem:[%s13334_s1 + $0x1f80] sm:$0xff]  ;;  %v6058_v54 = vpack.c.bf16 %v5114_v47, %v5110_v46  ;;  %v4884_v32 = vld [vmem:[%s13334_s1 + $0x1878] sm:$0xff] }
  0x9e   :  { %6025 = vmatpush1.bf16.msra.mxu0 %v6024_v58  ;;  %v5077_v58 = vld [vmem:[%s13334_s1 + $0x1e80] sm:$0xff]  ;;  %v6172_v4 = vpack.c.bf16 %v4827_v60, %v4823_v59  ;;  %v4855_v52 = vld [vmem:[%s13334_s1 + $0x1790] sm:$0xff]  ;;  %v5122_v59 = vld [vmem:[%s13334_s1 + $0x1fe8] sm:$0xff] }
  0x9f   :  { %6027 = vmatprep.subr.bf16.mxu0 %v6026_v0  ;;  %v4832_v0 = vld [vmem:[%s13334_s1 + $0x16d8] sm:$0xff]  ;;  %v6044_v63 = vpack.c.bf16 %v5081_v62, %v5077_v58  ;;  %v5118_v58 = vld [vmem:[%s13334_s1 + $0x1fc8] sm:$0xff]  ;;  %v6188_v60 = vpack.c.bf16 %v4859_v53, %v4855_v52  ;;  %v5121_v62 = vld [vmem:[%s13334_s1 + $0x1fe0] sm:$0xff] }
  0xa0   :  { %6157 = vmatpush1.bf16.msra.mxu1 %v6156_v8  ;;  %v6174_v6 = vpack.c.bf16 %v4836_v1, %v4832_v0  ;;  %v4835_v8 = vld [vmem:[%s13334_s1 + $0x16f0] sm:$0xff]  ;;  %v60_v1 = vld [vmem:[%s13335_s0 + $0x78] sm:$0xff]  ;;  %v166_v33 = vld [vmem:[%s13334_s1 + $0x48] sm:$0xff] }
  0xa1   :  { %6159 = vmatprep.subr.bf16.mxu1 %v6158_v15  ;;  %v4844_v15 = vld [vmem:[%s13334_s1 + $0x1738] sm:$0xff]  ;;  %v6176_v20 = vpack.c.bf16 %v4835_v8, %v4831_v16  ;;  %v4863_v0 = vld [vmem:[%s13334_s1 + $0x17d0] sm:$0xff]  ;;  %v6062_v16 = vpack.c.bf16 %v5122_v59, %v5118_v58 }
  0xa2   :  { %6029 = vmatpush1.bf16.msra.mxu0 %v6028_v13  ;;  %v4840_v13 = vld [vmem:[%s13334_s1 + $0x1718] sm:$0xff]  ;;  %v675_v8 = vld [vmem:[#allocation2 + $0x30] sm:$0xfe] }
  0xa3   :  { %6031 = vmatprep.subr.bf16.mxu0 %v6030_v21  ;;  %v6048_v21 = vpack.c.bf16 %v5089_v12, %v5085_v7  ;;  %v6178_v22 = vpack.c.bf16 %v4844_v15, %v4840_v13  ;;  %v92_v7 = vrot.slane %v60_v1, 7  ;;  %v59_v12 = vld [vmem:[%s13335_s0 + $0x70] sm:$0xff]  ;;  %v158_v13 = vld [vmem:[%s13334_s1 + $0x8] sm:$0xff]  ;;  %v4892_v47 = vld [vmem:[%s13334_s1 + $0x18b8] sm:$0xff] }
  0xa4   :  { %6161 = vmatpush1.bf16.msra.mxu1 %v6160_v29  ;;  %v5097_v29 = vld [vmem:[%s13334_s1 + $0x1f20] sm:$0xff]  ;;  %v162_v15 = vld [vmem:[%s13334_s1 + $0x28] sm:$0xff]  ;;  %v91_v18 = vrot.slane %v59_v12, 7  ;;  %v4887_v58 = vld [vmem:[%s13334_s1 + $0x1890] sm:$0xff] }
  0xa5   :  { %6163 = vmatprep.subr.bf16.mxu1 %v6162_v31  ;;  %v4852_v31 = vld [vmem:[%s13334_s1 + $0x1778] sm:$0xff]  ;;  %132 = vst [vmem:[#allocation2 + $0xb8] sm:$0xfe] %v92_v7  ;;  %140 = vst [vmem:[#allocation2 + $0xf8] sm:$0x1] %v92_v7  ;;  %v4891_v59 = vld [vmem:[%s13334_s1 + $0x18b0] sm:$0xff] }
  0xa6   :  { %6033 = vmatpush1.bf16.msra.mxu0 %v6032_v30  ;;  %v4848_v30 = vld [vmem:[%s13334_s1 + $0x1758] sm:$0xff]  ;;  %131 = vst [vmem:[#allocation2 + $0xb0] sm:$0xfe] %v91_v18  ;;  %139 = vst [vmem:[#allocation2 + $0xf0] sm:$0x1] %v91_v18 }
  0xa7   :  { %6035 = vmatprep.subr.bf16.mxu0 %v6034_v5  ;;  %v6052_v5 = vpack.c.bf16 %v5097_v29, %v5093_v23  ;;  %v6182_v35 = vpack.c.bf16 %v4852_v31, %v4848_v30  ;;  %v6322_v29 = vpack.c.bf16 %v162_v15, %v158_v13  ;;  %v161_v30 = vld [vmem:[%s13334_s1 + $0x20] sm:$0xff]  ;;  %v4880_v31 = vld [vmem:[%s13334_s1 + $0x1858] sm:$0xff]  ;;  %v4895_v13 = vld [vmem:[%s13334_s1 + $0x18d0] sm:$0xff] }
  0xa8   :  { %6165 = vmatpush1.bf16.msra.mxu1 %v6164_v43  ;;  %v5105_v43 = vld [vmem:[%s13334_s1 + $0x1f60] sm:$0xff] }
  0xa9   :  { %6167 = vmatprep.subr.bf16.mxu1 %v6166_v45  ;;  %v4860_v45 = vld [vmem:[%s13334_s1 + $0x17b8] sm:$0xff]  ;;  %v181_v15 = vld [vmem:[%s13334_s1 + $0xc0] sm:$0xff] }
  0xaa   :  { %6037 = vmatpush1.bf16.msra.mxu0 %v6036_v44  ;;  %v4856_v44 = vld [vmem:[%s13334_s1 + $0x1798] sm:$0xff] }
  0xab   :  { %6039 = vmatprep.subr.bf16.mxu0 %v6038_v49  ;;  %v6056_v49 = vpack.c.bf16 %v5105_v43, %v5101_v36  ;;  %v6186_v50 = vpack.c.bf16 %v4860_v45, %v4856_v44  ;;  %v4883_v36 = vld [vmem:[%s13334_s1 + $0x1870] sm:$0xff]  ;;  %v165_v43 = vld [vmem:[%s13334_s1 + $0x40] sm:$0xff]  ;;  %v4888_v45 = vld [vmem:[%s13334_s1 + $0x1898] sm:$0xff] }
  0xac   :  { %6169 = vmatpush1.bf16.msra.mxu1 %v6168_v40  ;;  %v5113_v40 = vld [vmem:[%s13334_s1 + $0x1fa0] sm:$0xff] }
  0xad   :  { %6171 = vmatprep.subr.bf16.mxu1 %v6170_v56  ;;  %v4868_v56 = vld [vmem:[%s13334_s1 + $0x17f8] sm:$0xff]  ;;  %v6060_v2 = vpack.c.bf16 %v5113_v40, %v5109_v51  ;;  %v169_v44 = vld [vmem:[%s13334_s1 + $0x60] sm:$0xff]  ;;  %v178_v51 = vld [vmem:[%s13334_s1 + $0xa8] sm:$0xff] }
  0xae   :  { %6041 = vmatpush1.bf16.msra.mxu0 %v6040_v55  ;;  %v4864_v55 = vld [vmem:[%s13334_s1 + $0x17d8] sm:$0xff]  ;;  %v6328_v40 = vpack.c.bf16 %v169_v44, %v165_v43  ;;  %v4915_v43 = vld [vmem:[%s13334_s1 + $0x1970] sm:$0xff]  ;;  %v197_v44 = vld [vmem:[%s13334_s1 + $0x140] sm:$0xff] }
  0xaf   :  { %6043 = vmatprep.subr.bf16.mxu0 %v6042_v61  ;;  %v5117_v61 = vld [vmem:[%s13334_s1 + $0x1fc0] sm:$0xff]  ;;  %v6190_v57 = vpack.c.bf16 %v4868_v56, %v4864_v55  ;;  %v691_v55 = vld [vmem:[#allocation2 + $0xb0] sm:$0xfe]  ;;  %v699_v56 = vld [vmem:[#allocation2 + $0xf0] sm:$0x1] }
  0xb0   :  { %6173 = vmatpush1.bf16.msra.mxu1 %v6172_v4  ;;  %v4867_v4 = vld [vmem:[%s13334_s1 + $0x17f0] sm:$0xff] }
  0xb1   :  { %6175 = vmatprep.subr.bf16.mxu1 %v6174_v6  ;;  %v4876_v6 = vld [vmem:[%s13334_s1 + $0x1838] sm:$0xff]  ;;  %v6192_v19 = vpack.c.bf16 %v4867_v4, %v4863_v0  ;;  %v777_v0 = vrot.slane %v699_v56, 1 }
  0xb2   :  { %6045 = vmatpush1.bf16.msra.mxu0 %v6044_v63  ;;  %v4872_v63 = vld [vmem:[%s13334_s1 + $0x1818] sm:$0xff] }
  0xb3   :  { %6047 = vmatprep.subr.bf16.mxu0 %v6046_v11  ;;  %v683_v11 = vld [vmem:[#allocation2 + $0x70] sm:$0x1]  ;;  %v4900_v4 = vld [vmem:[%s13334_s1 + $0x18f8] sm:$0xff] }
  0xb4   :  { %6177 = vmatpush1.bf16.msra.mxu1 %v6176_v20  ;;  %v6064_v20 = vpack.c.bf16 %v5121_v62, %v5117_v61  ;;  %v753_v23 = vrot.slane %v683_v11, 1  ;;  %v776_v62 = vrot.slane %v691_v55, 1  ;;  %v205_v55 = vld [vmem:[%s13334_s1 + $0x180] sm:$0xff] }
  0xb5   :  { %6179 = vmatprep.subr.bf16.mxu1 %v6178_v22  ;;  %v752_v22 = vrot.slane %v675_v8, 1  ;;  %v142_v8 = vld [vmem:[#allocation2 + $0x8] sm:$0xff] }
  0xb6   :  { %6049 = vmatpush1.bf16.msra.mxu0 %v6048_v21  ;;  %v6194_v21 = vpack.c.bf16 %v4876_v6, %v4872_v63  ;;  %v182_v63 = vld [vmem:[%s13334_s1 + $0xc8] sm:$0xff]  ;;  %v9118_v7 = vsel %vm733_vm0, %v776_v62, %v777_v0 }
  0xb7   :  { %6051 = vmatprep.subr.bf16.mxu0 %v6050_v28  ;;  %v157_v28 = vld [vmem:[%s13334_s1] sm:$0xff]  ;;  %v9066_v37 = vsel %vm733_vm0, %v752_v22, %v753_v23  ;;  %v186_v6 = vld [vmem:[%s13334_s1 + $0xe8] sm:$0xff] }
  0xb8   :  { %6181 = vmatpush1.bf16.msra.mxu1 %v6180_v34  ;;  %v170_v34 = vld [vmem:[%s13334_s1 + $0x68] sm:$0xff]  ;;  %v6324_v39 = vpack.c.bf16 %v161_v30, %v157_v28  ;;  %v6334_v18 = vpack.c.bf16 %v186_v6, %v182_v63  ;;  %v189_v30 = vld [vmem:[%s13334_s1 + $0x100] sm:$0xff] }
  0xb9   :  { %6183 = vmatprep.subr.bf16.mxu1 %v6182_v35  ;;  %v4879_v35 = vld [vmem:[%s13334_s1 + $0x1850] sm:$0xff]  ;;  %v6326_v46 = vpack.c.bf16 %v170_v34, %v166_v33  ;;  %v190_v22 = vld [vmem:[%s13334_s1 + $0x108] sm:$0xff]  ;;  %v4916_v33 = vld [vmem:[%s13334_s1 + $0x1978] sm:$0xff] }
  0xba   :  { %6053 = vmatpush1.bf16.msra.mxu0 %v6052_v5  ;;  %v6196_v5 = vpack.c.bf16 %v4875_v27, %v4871_v25  ;;  %v194_v23 = vld [vmem:[%s13334_s1 + $0x128] sm:$0xff]  ;;  %v213_v63 = vld [vmem:[%s13334_s1 + $0x1c0] sm:$0xff] }
  0xbb   :  { %6055 = vmatprep.subr.bf16.mxu0 %v6054_v41  ;;  %v6198_v41 = vpack.c.bf16 %v4884_v32, %v4880_v31  ;;  %v193_v31 = vld [vmem:[%s13334_s1 + $0x120] sm:$0xff]  ;;  %v4912_v32 = vld [vmem:[%s13334_s1 + $0x1958] sm:$0xff]  ;;  %v198_v34 = vld [vmem:[%s13334_s1 + $0x148] sm:$0xff] }
  0xbc   :  { %6185 = vmatpush1.bf16.msra.mxu1 %v6184_v48  ;;  %v692_v48 = vld [vmem:[#allocation2 + $0xb8] sm:$0xfe]  ;;  %v218_v62 = vld [vmem:[%s13334_s1 + $0x1e8] sm:$0xff] }
  0xbd   :  { %6187 = vmatprep.subr.bf16.mxu1 %v6186_v50  ;;  %v174_v50 = vld [vmem:[%s13334_s1 + $0x88] sm:$0xff]  ;;  %v779_v52 = vrot.slane %v692_v48, 1  ;;  %v4924_v48 = vld [vmem:[%s13334_s1 + $0x19b8] sm:$0xff] }
  0xbe   :  { %6057 = vmatpush1.bf16.msra.mxu0 %v6056_v49  ;;  %v700_v49 = vld [vmem:[#allocation2 + $0xf8] sm:$0x1]  ;;  %v6330_v1 = vpack.c.bf16 %v178_v51, %v174_v50  ;;  %v210_v50 = vld [vmem:[%s13334_s1 + $0x1a8] sm:$0xff] }
  0xbf   :  { %6059 = vmatprep.subr.bf16.mxu0 %v6058_v54  ;;  %v780_v53 = vrot.slane %v700_v49, 1  ;;  %v6200_v54 = vpack.c.bf16 %v4883_v36, %v4879_v35  ;;  %v6340_v36 = vpack.c.bf16 %v193_v31, %v189_v30  ;;  %v206_v49 = vld [vmem:[%s13334_s1 + $0x188] sm:$0xff]  ;;  %v4943_v31 = vld [vmem:[%s13334_s1 + $0x1a50] sm:$0xff] }
  0xc0   :  { %6189 = vmatpush1.bf16.msra.mxu1 %v6188_v60  ;;  %v173_v60 = vld [vmem:[%s13334_s1 + $0x80] sm:$0xff]  ;;  %v6346_v56 = vpack.c.bf16 %v210_v50, %v206_v49 }
  0xc1   :  { %6191 = vmatprep.subr.bf16.mxu1 %v6190_v57  ;;  %v9098_v61 = vsel %vm733_vm0, %v779_v52, %v780_v53  ;;  %v4896_v57 = vld [vmem:[%s13334_s1 + $0x18d8] sm:$0xff]  ;;  %v241_v50 = vld [vmem:[%s13334_s1 + $0x2a0] sm:$0xff] }
  0xc2   :  { %6061 = vmatpush1.bf16.msra.mxu0 %v6060_v2  ;;  %v177_v2 = vld [vmem:[%s13334_s1 + $0xa0] sm:$0xff]  ;;  %v6206_v12 = vpack.c.bf16 %v4900_v4, %v4896_v57  ;;  %v4927_v57 = vld [vmem:[%s13334_s1 + $0x19d0] sm:$0xff] }
  0xc3   :  { %6063 = vmatprep.subr.bf16.mxu0 %v6062_v16  ;;  %v6204_v16 = vpack.c.bf16 %v4891_v59, %v4887_v58  ;;  %v6332_v11 = vpack.c.bf16 %v177_v2, %v173_v60  ;;  %v4928_v58 = vld [vmem:[%s13334_s1 + $0x19d8] sm:$0xff]  ;;  %v214_v60 = vld [vmem:[%s13334_s1 + $0x1c8] sm:$0xff]  ;;  %v4931_v4 = vld [vmem:[%s13334_s1 + $0x19f0] sm:$0xff] }
  0xc4   :  { %6193 = vmatpush1.bf16.msra.mxu1 %v6192_v19  ;;  %v185_v19 = vld [vmem:[%s13334_s1 + $0xe0] sm:$0xff]  ;;  %v4932_v59 = vld [vmem:[%s13334_s1 + $0x19f8] sm:$0xff]  ;;  %v6350_v6 = vpack.c.bf16 %v218_v62, %v214_v60 }
  0xc5   :  { %6195 = vmatprep.subr.bf16.mxu1 %v6194_v21  ;;  %v4908_v21 = vld [vmem:[%s13334_s1 + $0x1938] sm:$0xff]  ;;  %v6336_v27 = vpack.c.bf16 %v185_v19, %v181_v15  ;;  %v6222_v2 = vpack.c.bf16 %v4932_v59, %v4928_v58  ;;  %v4935_v19 = vld [vmem:[%s13334_s1 + $0x1a10] sm:$0xff]  ;;  %v245_v59 = vld [vmem:[%s13334_s1 + $0x2c0] sm:$0xff] }
  0xc6   :  { %6065 = vmatpush1.bf16.msra.mxu0 %v6064_v20  ;;  %v4904_v20 = vld [vmem:[%s13334_s1 + $0x1918] sm:$0xff]  ;;  %v4963_v58 = vld [vmem:[%s13334_s1 + $0x1af0] sm:$0xff]  ;;  %v249_v62 = vld [vmem:[%s13334_s1 + $0x2e0] sm:$0xff] }
  0xc7   :  { %6323 = vmatprep.subr.bf16.mxu0 %v6322_v29  ;;  %1761 = vmatmul.mubr.f32.vlgmr.msra.gmra.mrb[4].mxu1 %v8196_v42  ;;  %v6202_v42 = vpack.c.bf16 %v4892_v47, %v4888_v45  ;;  %v6210_v28 = vpack.c.bf16 %v4908_v21, %v4904_v20  ;;  %v4907_v29 = vld [vmem:[%s13334_s1 + $0x1930] sm:$0xff]  ;;  %v4920_v47 = vld [vmem:[%s13334_s1 + $0x1998] sm:$0xff]  ;;  %v221_v21 = vld [vmem:[%s13334_s1 + $0x200] sm:$0xff] }
  0xc8   :  { %6197 = vmatpush1.bf16.msra.mxu1 %v6196_v5  ;;  %1766 = vmatprep.mubr.f32.mxu1 %v8466_v9  ;;  %v4899_v9 = vld [vmem:[%s13334_s1 + $0x18f0] sm:$0xff]  ;;  %v202_v5 = vld [vmem:[%s13334_s1 + $0x168] sm:$0xff]  ;;  %v6218_v53 = vpack.c.bf16 %v4924_v48, %v4920_v47  ;;  %v237_v48 = vld [vmem:[%s13334_s1 + $0x280] sm:$0xff] }
  0xc9   :  { %1607 = vmatmul.mubr.f32.vlgmr.msra.gmra.mrb[0].mxu0 %v9066_v37  ;;  %6199 = vmatprep.subr.bf16.mxu1 %v6198_v41  ;;  %v6208_v25 = vpack.c.bf16 %v4899_v9, %v4895_v13  ;;  %v4911_v41 = vld [vmem:[%s13334_s1 + $0x1950] sm:$0xff]  ;;  %v6342_v45 = vpack.c.bf16 %v202_v5, %v198_v34  ;;  %v226_v13 = vld [vmem:[%s13334_s1 + $0x228] sm:$0xff]  ;;  %v6224_v9 = vpack.c.bf16 %v4931_v4, %v4927_v57  ;;  %v233_v5 = vld [vmem:[%s13334_s1 + $0x260] sm:$0xff] }
  0xca   :  { %6325 = vmatpush1.bf16.msra.mxu0 %v6324_v39  ;;  %1612 = vmatprep.mubr.f32.mxu0 %v9098_v61  ;;  %v6214_v39 = vpack.c.bf16 %v4916_v33, %v4912_v32  ;;  %v6216_v51 = vpack.c.bf16 %v4915_v43, %v4911_v41  ;;  %v4939_v20 = vld [vmem:[%s13334_s1 + $0x1a30] sm:$0xff]  ;;  %v229_v33 = vld [vmem:[%s13334_s1 + $0x240] sm:$0xff]  ;;  %v242_v41 = vld [vmem:[%s13334_s1 + $0x2a8] sm:$0xff] }
  0xcb   :  { %6327 = vmatprep.subr.bf16.mxu0 %v6326_v46  ;;  %1767 = vmatmul.mubr.f32.gmra.mrb[6].mxu1 %v8477_v14  ;;  %v4903_v14 = vld [vmem:[%s13334_s1 + $0x1910] sm:$0xff]  ;;  %v201_v46 = vld [vmem:[%s13334_s1 + $0x160] sm:$0xff]  ;;  %v258_v57 = vld [vmem:[%s13334_s1 + $0x328] sm:$0xff] }
  0xcc   :  { %6201 = vmatpush1.bf16.msra.mxu1 %v6200_v54  ;;  %1837 = vmatprep.mubr.f32.mxu1 %v8481_v17  ;;  %v6338_v17 = vpack.c.bf16 %v194_v23, %v190_v22  ;;  %v6212_v35 = vpack.c.bf16 %v4907_v29, %v4903_v14  ;;  %v6344_v52 = vpack.c.bf16 %v201_v46, %v197_v44  ;;  %v4919_v54 = vld [vmem:[%s13334_s1 + $0x1990] sm:$0xff]  ;;  %v225_v23 = vld [vmem:[%s13334_s1 + $0x220] sm:$0xff]  ;;  %v234_v14 = vld [vmem:[%s13334_s1 + $0x268] sm:$0xff] }
  0xcd   :  { %1613 = vmatmul.mubr.f32.gmra.mrb[2].mxu0 %v9118_v7  ;;  %6203 = vmatprep.subr.bf16.mxu1 %v6202_v42  ;;  %v209_v42 = vld [vmem:[%s13334_s1 + $0x1a0] sm:$0xff]  ;;  %v6228_v29 = vpack.c.bf16 %v4939_v20, %v4935_v19  ;;  %v6356_v30 = vpack.c.bf16 %v225_v23, %v221_v21  ;;  %v4947_v32 = vld [vmem:[%s13334_s1 + $0x1a70] sm:$0xff]  ;;  %v6360_v44 = vpack.c.bf16 %v233_v5, %v229_v33  ;;  %v266_v19 = vld [vmem:[%s13334_s1 + $0x368] sm:$0xff] }
  0xce   :  { %6329 = vmatpush1.bf16.msra.mxu0 %v6328_v40  ;;  %1991 = vmatprep.mubr.f32.mxu0 %v142_v8  ;;  %v4923_v40 = vld [vmem:[%s13334_s1 + $0x19b0] sm:$0xff]  ;;  %v4936_v8 = vld [vmem:[%s13334_s1 + $0x1a18] sm:$0xff]  ;;  %v6232_v43 = vpack.c.bf16 %v4947_v32, %v4943_v31  ;;  %v274_v31 = vld [vmem:[%s13334_s1 + $0x3a8] sm:$0xff] }
  0xcf   :  { %6331 = vmatprep.subr.bf16.mxu0 %v6330_v1  ;;  %v6220_v0 = vpack.c.bf16 %v4923_v40, %v4919_v54  ;;  %v6348_v1 = vpack.c.bf16 %v209_v42, %v205_v55  ;;  %v4951_v46 = vld [vmem:[%s13334_s1 + $0x1a90] sm:$0xff]  ;;  %v250_v54 = vld [vmem:[%s13334_s1 + $0x2e8] sm:$0xff]  ;;  %v6364_v55 = vpack.c.bf16 %v241_v50, %v237_v48 }
  0xd0   :  { %6205 = vmatpush1.bf16.msra.mxu1 %v6204_v16  ;;  %v217_v16 = vld [vmem:[%s13334_s1 + $0x1e0] sm:$0xff]  ;;  %v4955_v47 = vld [vmem:[%s13334_s1 + $0x1ab0] sm:$0xff] }
  0xd1   :  { %6207 = vmatprep.subr.bf16.mxu1 %v6206_v12  ;;  %v222_v12 = vld [vmem:[%s13334_s1 + $0x208] sm:$0xff]  ;;  %v6352_v15 = vpack.c.bf16 %v217_v16, %v213_v63  ;;  %v6236_v40 = vpack.c.bf16 %v4955_v47, %v4951_v46  ;;  %v4959_v42 = vld [vmem:[%s13334_s1 + $0x1ad0] sm:$0xff]  ;;  %v6368_v63 = vpack.c.bf16 %v249_v62, %v245_v59 }
  0xd2   :  { %6333 = vmatpush1.bf16.msra.mxu0 %v6332_v11  ;;  %v4940_v11 = vld [vmem:[%s13334_s1 + $0x1a38] sm:$0xff]  ;;  %v6354_v22 = vpack.c.bf16 %v226_v13, %v222_v12  ;;  %v6240_v4 = vpack.c.bf16 %v4963_v58, %v4959_v42  ;;  %v4967_v16 = vld [vmem:[%s13334_s1 + $0x1b10] sm:$0xff]  ;;  %v257_v13 = vld [vmem:[%s13334_s1 + $0x320] sm:$0xff] }
  0xd3   :  { %6335 = vmatprep.subr.bf16.mxu0 %v6334_v18  ;;  %v6226_v18 = vpack.c.bf16 %v4940_v11, %v4936_v8  ;;  %v4971_v8 = vld [vmem:[%s13334_s1 + $0x1b30] sm:$0xff]  ;;  %v253_v11 = vld [vmem:[%s13334_s1 + $0x300] sm:$0xff]  ;;  %v282_v46 = vld [vmem:[%s13334_s1 + $0x3e8] sm:$0xff] }
  0xd4   :  { %6209 = vmatpush1.bf16.msra.mxu1 %v6208_v25  ;;  %v4944_v25 = vld [vmem:[%s13334_s1 + $0x1a58] sm:$0xff]  ;;  %v6244_v20 = vpack.c.bf16 %v4971_v8, %v4967_v16  ;;  %v6372_v21 = vpack.c.bf16 %v257_v13, %v253_v11  ;;  %v4975_v23 = vld [vmem:[%s13334_s1 + $0x1b50] sm:$0xff]  ;;  %v290_v42 = vld [vmem:[%s13334_s1 + $0x428] sm:$0xff] }
  0xd5   :  { %6211 = vmatprep.subr.bf16.mxu1 %v6210_v28  ;;  %v230_v28 = vld [vmem:[%s13334_s1 + $0x248] sm:$0xff]  ;;  %v4983_v5 = vld [vmem:[%s13334_s1 + $0x1b90] sm:$0xff]  ;;  %v141_v11 = vld [vmem:[#allocation2] sm:$0xff] }
  0xd6   :  { %6337 = vmatpush1.bf16.msra.mxu0 %v6336_v27  ;;  %v4948_v27 = vld [vmem:[%s13334_s1 + $0x1a78] sm:$0xff]  ;;  %v6358_v34 = vpack.c.bf16 %v234_v14, %v230_v28  ;;  %v265_v14 = vld [vmem:[%s13334_s1 + $0x360] sm:$0xff]  ;;  %v4991_v50 = vld [vmem:[%s13334_s1 + $0x1bd0] sm:$0xff] }
  0xd7   :  { %6339 = vmatprep.subr.bf16.mxu0 %v6338_v17  ;;  %v6230_v17 = vpack.c.bf16 %v4948_v27, %v4944_v25  ;;  %v4979_v25 = vld [vmem:[%s13334_s1 + $0x1b70] sm:$0xff]  ;;  %v261_v27 = vld [vmem:[%s13334_s1 + $0x340] sm:$0xff]  ;;  %v298_v16 = vld [vmem:[%s13334_s1 + $0x468] sm:$0xff] }
  0xd8   :  { %6213 = vmatpush1.bf16.msra.mxu1 %v6212_v35  ;;  %v4952_v35 = vld [vmem:[%s13334_s1 + $0x1a98] sm:$0xff]  ;;  %v6248_v32 = vpack.c.bf16 %v4979_v25, %v4975_v23  ;;  %v6376_v33 = vpack.c.bf16 %v265_v14, %v261_v27  ;;  %v4999_v62 = vld [vmem:[%s13334_s1 + $0x1c10] sm:$0xff]  ;;  %v302_v23 = vld [vmem:[%s13334_s1 + $0x488] sm:$0xff] }
  0xd9   :  { %6215 = vmatprep.subr.bf16.mxu1 %v6214_v39  ;;  %v238_v39 = vld [vmem:[%s13334_s1 + $0x288] sm:$0xff] }
  0xda   :  { %6341 = vmatpush1.bf16.msra.mxu0 %v6340_v36  ;;  %v4956_v36 = vld [vmem:[%s13334_s1 + $0x1ab8] sm:$0xff]  ;;  %v6362_v49 = vpack.c.bf16 %v242_v41, %v238_v39  ;;  %v273_v41 = vld [vmem:[%s13334_s1 + $0x3a0] sm:$0xff]  ;;  %v306_v25 = vld [vmem:[%s13334_s1 + $0x4a8] sm:$0xff] }
  0xdb   :  { %6343 = vmatprep.subr.bf16.mxu0 %v6342_v45  ;;  %v6234_v45 = vpack.c.bf16 %v4956_v36, %v4952_v35  ;;  %v4987_v35 = vld [vmem:[%s13334_s1 + $0x1bb0] sm:$0xff]  ;;  %v269_v36 = vld [vmem:[%s13334_s1 + $0x380] sm:$0xff]  ;;  %v150_v14 = vld [vmem:[#allocation2 + $0x88] sm:$0xff] }
  0xdc   :  { %6217 = vmatpush1.bf16.msra.mxu1 %v6216_v51  ;;  %v4960_v51 = vld [vmem:[%s13334_s1 + $0x1ad8] sm:$0xff]  ;;  %v6252_v47 = vpack.c.bf16 %v4987_v35, %v4983_v5  ;;  %v6380_v48 = vpack.c.bf16 %v273_v41, %v269_v36  ;;  %v310_v35 = vld [vmem:[%s13334_s1 + $0x4c8] sm:$0xff] }
  0xdd   :  { %6219 = vmatprep.subr.bf16.mxu1 %v6218_v53  ;;  %v246_v53 = vld [vmem:[%s13334_s1 + $0x2c8] sm:$0xff]  ;;  %v5028_v5 = vld [vmem:[%s13334_s1 + $0x1cf8] sm:$0xff] }
  0xde   :  { %6345 = vmatpush1.bf16.msra.mxu0 %v6344_v52  ;;  %v4964_v52 = vld [vmem:[%s13334_s1 + $0x1af8] sm:$0xff]  ;;  %v6366_v60 = vpack.c.bf16 %v250_v54, %v246_v53  ;;  %v281_v54 = vld [vmem:[%s13334_s1 + $0x3e0] sm:$0xff]  ;;  %v314_v36 = vld [vmem:[%s13334_s1 + $0x4e8] sm:$0xff] }
  0xdf   :  { %6347 = vmatprep.subr.bf16.mxu0 %v6346_v56  ;;  %v6238_v56 = vpack.c.bf16 %v4964_v52, %v4960_v51  ;;  %v4995_v51 = vld [vmem:[%s13334_s1 + $0x1bf0] sm:$0xff]  ;;  %v277_v52 = vld [vmem:[%s13334_s1 + $0x3c0] sm:$0xff]  ;;  %v144_v41 = vld [vmem:[#allocation2 + $0x18] sm:$0xff] }
  0xe0   :  { %6221 = vmatpush1.bf16.msra.mxu1 %v6220_v0  ;;  %v4968_v0 = vld [vmem:[%s13334_s1 + $0x1b18] sm:$0xff]  ;;  %v6256_v58 = vpack.c.bf16 %v4995_v51, %v4991_v50  ;;  %v6384_v59 = vpack.c.bf16 %v281_v54, %v277_v52  ;;  %v318_v50 = vld [vmem:[%s13334_s1 + $0x508] sm:$0xff] }
  0xe1   :  { %6223 = vmatprep.subr.bf16.mxu1 %v6222_v2  ;;  %v254_v2 = vld [vmem:[%s13334_s1 + $0x308] sm:$0xff] }
  0xe2   :  { %6349 = vmatpush1.bf16.msra.mxu0 %v6348_v1  ;;  %v4972_v1 = vld [vmem:[%s13334_s1 + $0x1b38] sm:$0xff]  ;;  %v6370_v12 = vpack.c.bf16 %v258_v57, %v254_v2  ;;  %v289_v57 = vld [vmem:[%s13334_s1 + $0x420] sm:$0xff]  ;;  %v322_v51 = vld [vmem:[%s13334_s1 + $0x528] sm:$0xff] }
  0xe3   :  { %6351 = vmatprep.subr.bf16.mxu0 %v6350_v6  ;;  %v6242_v6 = vpack.c.bf16 %v4972_v1, %v4968_v0  ;;  %v5003_v0 = vld [vmem:[%s13334_s1 + $0x1c30] sm:$0xff]  ;;  %v285_v1 = vld [vmem:[%s13334_s1 + $0x400] sm:$0xff] }
  0xe4   :  { %6225 = vmatpush1.bf16.msra.mxu1 %v6224_v9  ;;  %v4976_v9 = vld [vmem:[%s13334_s1 + $0x1b58] sm:$0xff]  ;;  %v6260_v8 = vpack.c.bf16 %v5003_v0, %v4999_v62  ;;  %v330_v62 = vld [vmem:[%s13334_s1 + $0x568] sm:$0xff] }
  0xe5   :  { %6227 = vmatprep.subr.bf16.mxu1 %v6226_v18  ;;  %v262_v18 = vld [vmem:[%s13334_s1 + $0x348] sm:$0xff] }
  0xe6   :  { %6353 = vmatpush1.bf16.msra.mxu0 %v6352_v15  ;;  %v4980_v15 = vld [vmem:[%s13334_s1 + $0x1b78] sm:$0xff]  ;;  %v6374_v28 = vpack.c.bf16 %v266_v19, %v262_v18  ;;  %v293_v18 = vld [vmem:[%s13334_s1 + $0x440] sm:$0xff] }
  0xe7   :  { %6355 = vmatprep.subr.bf16.mxu0 %v6354_v22  ;;  %v6246_v22 = vpack.c.bf16 %v4980_v15, %v4976_v9  ;;  %v5007_v9 = vld [vmem:[%s13334_s1 + $0x1c50] sm:$0xff] }
  0xe8   :  { %6229 = vmatpush1.bf16.msra.mxu1 %v6228_v29  ;;  %v4984_v29 = vld [vmem:[%s13334_s1 + $0x1b98] sm:$0xff]  ;;  %v5011_v15 = vld [vmem:[%s13334_s1 + $0x1c70] sm:$0xff] }
  0xe9   :  { %6231 = vmatprep.subr.bf16.mxu1 %v6230_v17  ;;  %v270_v17 = vld [vmem:[%s13334_s1 + $0x388] sm:$0xff]  ;;  %v6264_v27 = vpack.c.bf16 %v5011_v15, %v5007_v9 }
  0xea   :  { %6357 = vmatpush1.bf16.msra.mxu0 %v6356_v30  ;;  %v4988_v30 = vld [vmem:[%s13334_s1 + $0x1bb8] sm:$0xff]  ;;  %v6378_v39 = vpack.c.bf16 %v274_v31, %v270_v17  ;;  %v301_v17 = vld [vmem:[%s13334_s1 + $0x480] sm:$0xff] }
  0xeb   :  { %6359 = vmatprep.subr.bf16.mxu0 %v6358_v34  ;;  %v6250_v34 = vpack.c.bf16 %v4988_v30, %v4984_v29  ;;  %v5019_v30 = vld [vmem:[%s13334_s1 + $0x1cb0] sm:$0xff]  ;;  %v149_v31 = vld [vmem:[#allocation2 + $0x80] sm:$0xff] }
  0xec   :  { %6233 = vmatpush1.bf16.msra.mxu1 %v6232_v43  ;;  %v4992_v43 = vld [vmem:[%s13334_s1 + $0x1bd8] sm:$0xff] }
  0xed   :  { %6235 = vmatprep.subr.bf16.mxu1 %v6234_v45  ;;  %v278_v45 = vld [vmem:[%s13334_s1 + $0x3c8] sm:$0xff] }
  0xee   :  { %6361 = vmatpush1.bf16.msra.mxu0 %v6360_v44  ;;  %v4996_v44 = vld [vmem:[%s13334_s1 + $0x1bf8] sm:$0xff]  ;;  %v6382_v53 = vpack.c.bf16 %v282_v46, %v278_v45  ;;  %v5027_v45 = vld [vmem:[%s13334_s1 + $0x1cf0] sm:$0xff]  ;;  %v6398_v46 = vpack.c.bf16 %v314_v36, %v310_v35  ;;  %v345_v35 = vld [vmem:[%s13334_s1 + $0x5e0] sm:$0xff] }
  0xef   :  { %6363 = vmatprep.subr.bf16.mxu0 %v6362_v49  ;;  %v6254_v49 = vpack.c.bf16 %v4996_v44, %v4992_v43  ;;  %v5064_v36 = vld [vmem:[%s13334_s1 + $0x1e18] sm:$0xff] }
  0xf0   :  { %6237 = vmatpush1.bf16.msra.mxu1 %v6236_v40  ;;  %v5000_v40 = vld [vmem:[%s13334_s1 + $0x1c18] sm:$0xff] }
  0xf1   :  { %6239 = vmatprep.subr.bf16.mxu1 %v6238_v56  ;;  %v286_v56 = vld [vmem:[%s13334_s1 + $0x408] sm:$0xff] }
  0xf2   :  { %6365 = vmatpush1.bf16.msra.mxu0 %v6364_v55  ;;  %v5004_v55 = vld [vmem:[%s13334_s1 + $0x1c38] sm:$0xff]  ;;  %v6386_v2 = vpack.c.bf16 %v290_v42, %v286_v56  ;;  %v6402_v56 = vpack.c.bf16 %v322_v51, %v318_v50  ;;  %v321_v42 = vld [vmem:[%s13334_s1 + $0x520] sm:$0xff] }
  0xf3   :  { %6367 = vmatprep.subr.bf16.mxu0 %v6366_v60  ;;  %v6258_v60 = vpack.c.bf16 %v5004_v55, %v5000_v40  ;;  %v5031_v40 = vld [vmem:[%s13334_s1 + $0x1d10] sm:$0xff]  ;;  %v317_v55 = vld [vmem:[%s13334_s1 + $0x500] sm:$0xff]  ;;  %v5072_v50 = vld [vmem:[%s13334_s1 + $0x1e58] sm:$0xff] }
  0xf4   :  { %6241 = vmatpush1.bf16.msra.mxu1 %v6240_v4  ;;  %v5008_v4 = vld [vmem:[%s13334_s1 + $0x1c58] sm:$0xff] }
  0xf5   :  { %6243 = vmatprep.subr.bf16.mxu1 %v6242_v6  ;;  %v294_v6 = vld [vmem:[%s13334_s1 + $0x448] sm:$0xff]  ;;  %v5076_v51 = vld [vmem:[%s13334_s1 + $0x1e78] sm:$0xff] }
  0xf6   :  { %6369 = vmatpush1.bf16.msra.mxu0 %v6368_v63  ;;  %v5012_v63 = vld [vmem:[%s13334_s1 + $0x1c78] sm:$0xff]  ;;  %v6390_v19 = vpack.c.bf16 %v298_v16, %v294_v6  ;;  %v329_v16 = vld [vmem:[%s13334_s1 + $0x560] sm:$0xff] }
  0xf7   :  { %6371 = vmatprep.subr.bf16.mxu0 %v6370_v12  ;;  %v6388_v12 = vpack.c.bf16 %v289_v57, %v285_v1  ;;  %v6262_v13 = vpack.c.bf16 %v5012_v63, %v5008_v4  ;;  %v6404_v1 = vpack.c.bf16 %v321_v42, %v317_v55  ;;  %v5039_v57 = vld [vmem:[%s13334_s1 + $0x1d50] sm:$0xff]  ;;  %v325_v63 = vld [vmem:[%s13334_s1 + $0x540] sm:$0xff] }
  0xf8   :  { %6245 = vmatpush1.bf16.msra.mxu1 %v6244_v20  ;;  %v297_v20 = vld [vmem:[%s13334_s1 + $0x460] sm:$0xff]  ;;  %v5043_v4 = vld [vmem:[%s13334_s1 + $0x1d70] sm:$0xff]  ;;  %v6408_v15 = vpack.c.bf16 %v329_v16, %v325_v63 }
  0xf9   :  { %6247 = vmatprep.subr.bf16.mxu1 %v6246_v22  ;;  %v5020_v22 = vld [vmem:[%s13334_s1 + $0x1cb8] sm:$0xff]  ;;  %v6392_v29 = vpack.c.bf16 %v297_v20, %v293_v18  ;;  %v6280_v9 = vpack.c.bf16 %v5043_v4, %v5039_v57  ;;  %v5051_v20 = vld [vmem:[%s13334_s1 + $0x1db0] sm:$0xff]  ;;  %v357_v42 = vld [vmem:[%s13334_s1 + $0x640] sm:$0xff] }
  0xfa   :  { %6373 = vmatpush1.bf16.msra.mxu0 %v6372_v21  ;;  %v5016_v21 = vld [vmem:[%s13334_s1 + $0x1c98] sm:$0xff]  ;;  %v5071_v55 = vld [vmem:[%s13334_s1 + $0x1e50] sm:$0xff]  ;;  %v365_v16 = vld [vmem:[%s13334_s1 + $0x680] sm:$0xff] }
  0xfb   :  { %6375 = vmatprep.subr.bf16.mxu0 %v6374_v28  ;;  %v5015_v28 = vld [vmem:[%s13334_s1 + $0x1c90] sm:$0xff] }
  0xfc   :  { %6249 = vmatpush1.bf16.msra.mxu1 %v6248_v32  ;;  %v6394_v32 = vpack.c.bf16 %v306_v25, %v302_v23  ;;  %v337_v25 = vld [vmem:[%s13334_s1 + $0x5a0] sm:$0xff]  ;;  %v5079_v63 = vld [vmem:[%s13334_s1 + $0x1e90] sm:$0xff] }
  0xfd   :  { %6251 = vmatprep.subr.bf16.mxu1 %v6250_v34  ;;  %v5024_v34 = vld [vmem:[%s13334_s1 + $0x1cd8] sm:$0xff] }
  0xfe   :  { %6377 = vmatpush1.bf16.msra.mxu0 %v6376_v33  ;;  %v305_v33 = vld [vmem:[%s13334_s1 + $0x4a0] sm:$0xff]  ;;  %v6270_v44 = vpack.c.bf16 %v5028_v5, %v5024_v34 }
  0xff   :  { %6379 = vmatprep.subr.bf16.mxu0 %v6378_v39  ;;  %v6268_v39 = vpack.c.bf16 %v5019_v30, %v5015_v28  ;;  %v6396_v43 = vpack.c.bf16 %v305_v33, %v301_v17  ;;  %v5060_v28 = vld [vmem:[%s13334_s1 + $0x1df8] sm:$0xff]  ;;  %v5059_v33 = vld [vmem:[%s13334_s1 + $0x1df0] sm:$0xff]  ;;  %v341_v34 = vld [vmem:[%s13334_s1 + $0x5c0] sm:$0xff] }
 0x100   :  { %6253 = vmatpush1.bf16.msra.mxu1 %v6252_v47  ;;  %v313_v47 = vld [vmem:[%s13334_s1 + $0x4e0] sm:$0xff] }
 0x101   :  { %6255 = vmatprep.subr.bf16.mxu1 %v6254_v49  ;;  %v5036_v49 = vld [vmem:[%s13334_s1 + $0x1d38] sm:$0xff] }
 0x102   :  { %6381 = vmatpush1.bf16.msra.mxu0 %v6380_v48  ;;  %v5032_v48 = vld [vmem:[%s13334_s1 + $0x1d18] sm:$0xff] }
 0x103   :  { %6383 = vmatprep.subr.bf16.mxu0 %v6382_v53  ;;  %v6274_v54 = vpack.c.bf16 %v5036_v49, %v5032_v48  ;;  %v353_v49 = vld [vmem:[%s13334_s1 + $0x620] sm:$0xff] }
 0x104   :  { %6257 = vmatpush1.bf16.msra.mxu1 %v6256_v58  ;;  %v5040_v58 = vld [vmem:[%s13334_s1 + $0x1d58] sm:$0xff] }
 0x105   :  { %6259 = vmatprep.subr.bf16.mxu1 %v6258_v60  ;;  %v326_v60 = vld [vmem:[%s13334_s1 + $0x548] sm:$0xff] }
 0x106   :  { %6385 = vmatpush1.bf16.msra.mxu0 %v6384_v59  ;;  %v5044_v59 = vld [vmem:[%s13334_s1 + $0x1d78] sm:$0xff]  ;;  %v6406_v6 = vpack.c.bf16 %v330_v62, %v326_v60 }
 0x107   :  { %6387 = vmatprep.subr.bf16.mxu0 %v6386_v2  ;;  %1838 = vmatmul.mubr.f32.vlgmr.msra.gmra.mrb[4].mxu1 %v8638_v38  ;;  %v6266_v38 = vpack.c.bf16 %v5020_v22, %v5016_v21  ;;  %v6278_v2 = vpack.c.bf16 %v5044_v59, %v5040_v58  ;;  %v333_v21 = vld [vmem:[%s13334_s1 + $0x580] sm:$0xff]  ;;  %v5080_v60 = vld [vmem:[%s13334_s1 + $0x1e98] sm:$0xff] }
 0x108   :  { %6261 = vmatpush1.bf16.msra.mxu1 %v6260_v8  ;;  %1843 = vmatprep.mubr.f32.mxu1 %v8799_v3  ;;  %v5023_v3 = vld [vmem:[%s13334_s1 + $0x1cd0] sm:$0xff]  ;;  %v5048_v8 = vld [vmem:[%s13334_s1 + $0x1d98] sm:$0xff]  ;;  %v6412_v17 = vpack.c.bf16 %v337_v25, %v333_v21  ;;  %v361_v59 = vld [vmem:[%s13334_s1 + $0x660] sm:$0xff] }
 0x109   :  { %1992 = vmatmul.mubr.f32.vlgmr.msra.gmra.mrb[0].mxu0 %v141_v11  ;;  %6263 = vmatprep.subr.bf16.mxu1 %v6262_v13  ;;  %v6272_v52 = vpack.c.bf16 %v5027_v45, %v5023_v3  ;;  %v5052_v11 = vld [vmem:[%s13334_s1 + $0x1db8] sm:$0xff]  ;;  %v338_v13 = vld [vmem:[%s13334_s1 + $0x5a8] sm:$0xff]  ;;  %v6416_v3 = vpack.c.bf16 %v345_v35, %v341_v34  ;;  %v6424_v57 = vpack.c.bf16 %v361_v59, %v357_v42  ;;  %v5087_v21 = vld [vmem:[%s13334_s1 + $0x1ed0] sm:$0xff] }
 0x10a   :  { %6389 = vmatpush1.bf16.msra.mxu0 %v6388_v12  ;;  %1997 = vmatprep.mubr.f32.mxu0 %v150_v14  ;;  %v334_v12 = vld [vmem:[%s13334_s1 + $0x588] sm:$0xff]  ;;  %v6282_v18 = vpack.c.bf16 %v5052_v11, %v5048_v8  ;;  %v5084_v62 = vld [vmem:[%s13334_s1 + $0x1eb8] sm:$0xff]  ;;  %v369_v11 = vld [vmem:[%s13334_s1 + $0x6a0] sm:$0xff] }
 0x10b   :  { %6391 = vmatprep.subr.bf16.mxu0 %v6390_v19  ;;  %1844 = vmatmul.mubr.f32.gmra.mrb[6].mxu1 %v8806_v10  ;;  %v309_v10 = vld [vmem:[%s13334_s1 + $0x4c0] sm:$0xff]  ;;  %v5047_v19 = vld [vmem:[%s13334_s1 + $0x1d90] sm:$0xff]  ;;  %v6410_v23 = vpack.c.bf16 %v338_v13, %v334_v12  ;;  %v6298_v4 = vpack.c.bf16 %v5084_v62, %v5080_v60  ;;  %v5088_v12 = vld [vmem:[%s13334_s1 + $0x1ed8] sm:$0xff] }
 0x10c   :  { %6265 = vmatpush1.bf16.msra.mxu1 %v6264_v27  ;;  %1914 = vmatprep.mubr.f32.mxu1 %v8828_v26  ;;  %v6400_v53 = vpack.c.bf16 %v313_v47, %v309_v10  ;;  %v5035_v26 = vld [vmem:[%s13334_s1 + $0x1d30] sm:$0xff]  ;;  %v5056_v27 = vld [vmem:[%s13334_s1 + $0x1dd8] sm:$0xff]  ;;  %v6284_v30 = vpack.c.bf16 %v5051_v20, %v5047_v19  ;;  %v349_v47 = vld [vmem:[%s13334_s1 + $0x600] sm:$0xff]  ;;  %v6428_v19 = vpack.c.bf16 %v369_v11, %v365_v16 }
 0x10d   :  { %1998 = vmatmul.mubr.f32.gmra.mrb[2].mxu0 %v149_v31  ;;  %6267 = vmatprep.subr.bf16.mxu1 %v6266_v38  ;;  %v6276_v0 = vpack.c.bf16 %v5035_v26, %v5031_v40  ;;  %v346_v38 = vld [vmem:[%s13334_s1 + $0x5e8] sm:$0xff]  ;;  %v6286_v31 = vpack.c.bf16 %v5060_v28, %v5056_v27  ;;  %v5063_v10 = vld [vmem:[%s13334_s1 + $0x1e10] sm:$0xff]  ;;  %v6420_v40 = vpack.c.bf16 %v353_v49, %v349_v47  ;;  %v5092_v13 = vld [vmem:[%s13334_s1 + $0x1ef8] sm:$0xff] }
 0x10e   :  { %6393 = vmatpush1.bf16.msra.mxu0 %v6392_v29  ;;  %2068 = vmatprep.mubr.f32.mxu0 %v144_v41  ;;  %v342_v29 = vld [vmem:[%s13334_s1 + $0x5c8] sm:$0xff]  ;;  %v6294_v26 = vpack.c.bf16 %v5076_v51, %v5072_v50  ;;  %v6302_v20 = vpack.c.bf16 %v5092_v13, %v5088_v12  ;;  %v373_v25 = vld [vmem:[%s13334_s1 + $0x6c0] sm:$0xff]  ;;  %v5095_v34 = vld [vmem:[%s13334_s1 + $0x1f10] sm:$0xff] }
 0x10f   :  { %6395 = vmatprep.subr.bf16.mxu0 %v6394_v32  ;;  %v5055_v32 = vld [vmem:[%s13334_s1 + $0x1dd0] sm:$0xff]  ;;  %v6414_v5 = vpack.c.bf16 %v346_v38, %v342_v29  ;;  %v350_v41 = vld [vmem:[%s13334_s1 + $0x608] sm:$0xff]  ;;  %v377_v28 = vld [vmem:[%s13334_s1 + $0x6e0] sm:$0xff] }
 0x110   :  { %6269 = vmatpush1.bf16.msra.mxu1 %v6268_v39  ;;  %v5068_v39 = vld [vmem:[%s13334_s1 + $0x1e38] sm:$0xff]  ;;  %v381_v35 = vld [vmem:[%s13334_s1 + $0x700] sm:$0xff]  ;;  %v5103_v47 = vld [vmem:[%s13334_s1 + $0x1f50] sm:$0xff] }
 0x111   :  { %6271 = vmatprep.subr.bf16.mxu1 %v6270_v44  ;;  %v6288_v44 = vpack.c.bf16 %v5059_v33, %v5055_v32  ;;  %v6290_v45 = vpack.c.bf16 %v5068_v39, %v5064_v36  ;;  %v5096_v29 = vld [vmem:[%s13334_s1 + $0x1f18] sm:$0xff]  ;;  %v6432_v32 = vpack.c.bf16 %v377_v28, %v373_v25  ;;  %v385_v39 = vld [vmem:[%s13334_s1 + $0x720] sm:$0xff]  ;;  %v5111_v42 = vld [vmem:[%s13334_s1 + $0x1f90] sm:$0xff] }
 0x112   :  { %6397 = vmatpush1.bf16.msra.mxu0 %v6396_v43  ;;  %v354_v43 = vld [vmem:[%s13334_s1 + $0x628] sm:$0xff]  ;;  %v5100_v38 = vld [vmem:[%s13334_s1 + $0x1f38] sm:$0xff]  ;;  %v389_v49 = vld [vmem:[%s13334_s1 + $0x740] sm:$0xff] }
 0x113   :  { %6399 = vmatprep.subr.bf16.mxu0 %v6398_v46  ;;  %v5067_v46 = vld [vmem:[%s13334_s1 + $0x1e30] sm:$0xff]  ;;  %v6418_v48 = vpack.c.bf16 %v354_v43, %v350_v41  ;;  %v6306_v33 = vpack.c.bf16 %v5100_v38, %v5096_v29  ;;  %v5104_v41 = vld [vmem:[%s13334_s1 + $0x1f58] sm:$0xff]  ;;  %v393_v51 = vld [vmem:[%s13334_s1 + $0x760] sm:$0xff] }
 0x114   :  { %6273 = vmatpush1.bf16.msra.mxu1 %v6272_v52  ;;  %v358_v52 = vld [vmem:[%s13334_s1 + $0x648] sm:$0xff]  ;;  %v5108_v43 = vld [vmem:[%s13334_s1 + $0x1f78] sm:$0xff]  ;;  %v397_v59 = vld [vmem:[%s13334_s1 + $0x780] sm:$0xff] }
 0x115   :  { %6275 = vmatprep.subr.bf16.mxu1 %v6274_v54  ;;  %v6292_v54 = vpack.c.bf16 %v5067_v46, %v5063_v10  ;;  %v6436_v10 = vpack.c.bf16 %v385_v39, %v381_v35  ;;  %v6310_v46 = vpack.c.bf16 %v5108_v43, %v5104_v41  ;;  %v401_v62 = vld [vmem:[%s13334_s1 + $0x7a0] sm:$0xff]  ;;  %v5119_v16 = vld [vmem:[%s13334_s1 + $0x1fd0] sm:$0xff] }
 0x116   :  { %6401 = vmatpush1.bf16.msra.mxu0 %v6400_v53  ;;  %v362_v53 = vld [vmem:[%s13334_s1 + $0x668] sm:$0xff]  ;;  %v405_v11 = vld [vmem:[%s13334_s1 + $0x7c0] sm:$0xff]  ;;  %v159_v29 = vld [vmem:[%s13334_s1 + $0x10] sm:$0xff] }
 0x117   :  { %6403 = vmatprep.subr.bf16.mxu0 %v6402_v56  ;;  %v5075_v56 = vld [vmem:[%s13334_s1 + $0x1e70] sm:$0xff]  ;;  %v6422_v58 = vpack.c.bf16 %v362_v53, %v358_v52  ;;  %v5112_v52 = vld [vmem:[%s13334_s1 + $0x1f98] sm:$0xff]  ;;  %v409_v13 = vld [vmem:[%s13334_s1 + $0x7e0] sm:$0xff] }
 0x118   :  { %6277 = vmatpush1.bf16.msra.mxu1 %v6276_v0  ;;  %v366_v0 = vld [vmem:[%s13334_s1 + $0x688] sm:$0xff]  ;;  %v5116_v53 = vld [vmem:[%s13334_s1 + $0x1fb8] sm:$0xff]  ;;  %v6448_v25 = vpack.c.bf16 %v409_v13, %v405_v11  ;;  %v413_v28 = vld [vmem:[%s13334_s1 + $0x800] sm:$0xff] }
 0x119   :  { %6279 = vmatprep.subr.bf16.mxu1 %v6278_v2  ;;  %v6296_v2 = vpack.c.bf16 %v5075_v56, %v5071_v55  ;;  %v6440_v55 = vpack.c.bf16 %v393_v51, %v389_v49  ;;  %v6314_v56 = vpack.c.bf16 %v5116_v53, %v5112_v52  ;;  %v163_v38 = vld [vmem:[%s13334_s1 + $0x30] sm:$0xff]  ;;  %v421_v41 = vld [vmem:[%s13334_s1 + $0x840] sm:$0xff]  ;;  %v152_v51 = vld [vmem:[#allocation2 + $0x98] sm:$0xff] }
 0x11a   :  { %6405 = vmatpush1.bf16.msra.mxu0 %v6404_v1  ;;  %v9592_v22 = vpop.f32.mrb[0].mxu1  ;;  %v370_v1 = vld [vmem:[%s13334_s1 + $0x6a8] sm:$0xff]  ;;  %v6580_v35 = vpack.c.bf16 %v163_v38, %v159_v29  ;;  %v167_v43 = vld [vmem:[%s13334_s1 + $0x50] sm:$0xff] }
 0x11b   :  { %6407 = vmatprep.subr.bf16.mxu0 %v6406_v6  ;;  %v9603_v14 = vpop.f32.mrb[1].mxu1  ;;  %v5083_v6 = vld [vmem:[%s13334_s1 + $0x1eb0] sm:$0xff]  ;;  %v6426_v8 = vpack.c.bf16 %v370_v1, %v366_v0  ;;  %v5120_v0 = vld [vmem:[%s13334_s1 + $0x1fd8] sm:$0xff]  ;;  %v7683_v11 = vld [vmem:[#allocation2 + $0x8] sm:$0xff] }
 0x11c   :  { %6281 = vmatpush1.bf16.msra.mxu1 %v6280_v9  ;;  %v374_v9 = vld [vmem:[%s13334_s1 + $0x6c8] sm:$0xff]  ;;  %v5124_v1 = vld [vmem:[%s13334_s1 + $0x1ff8] sm:$0xff]  ;;  %v175_v53 = vld [vmem:[%s13334_s1 + $0x90] sm:$0xff] }
 0x11d   :  { %6283 = vmatprep.subr.bf16.mxu1 %v6282_v18  ;;  %v6300_v18 = vpack.c.bf16 %v5083_v6, %v5079_v63  ;;  %v6444_v63 = vpack.c.bf16 %v401_v62, %v397_v59  ;;  %v6318_v6 = vpack.c.bf16 %v5124_v1, %v5120_v0  ;;  %v442_v59 = vld [vmem:[%s13334_s1 + $0x8e8] sm:$0xff] }
 0x11e   :  { %6409 = vmatpush1.bf16.msra.mxu0 %v6408_v15  ;;  %v378_v15 = vld [vmem:[%s13334_s1 + $0x6e8] sm:$0xff] }
 0x11f   :  { %6411 = vmatprep.subr.bf16.mxu0 %v6410_v23  ;;  %v5091_v23 = vld [vmem:[%s13334_s1 + $0x1ef0] sm:$0xff]  ;;  %v6430_v27 = vpack.c.bf16 %v378_v15, %v374_v9  ;;  %v160_v9 = vld [vmem:[%s13334_s1 + $0x18] sm:$0xff]  ;;  %v454_v29 = vld [vmem:[%s13334_s1 + $0x948] sm:$0xff] }
 0x120   :  { %6285 = vmatpush1.bf16.msra.mxu1 %v6284_v30  ;;  %v382_v30 = vld [vmem:[%s13334_s1 + $0x708] sm:$0xff]  ;;  %v164_v15 = vld [vmem:[%s13334_s1 + $0x38] sm:$0xff] }
 0x121   :  { %6287 = vmatprep.subr.bf16.mxu1 %v6286_v31  ;;  %v6304_v31 = vpack.c.bf16 %v5091_v23, %v5087_v21  ;;  %v458_v38 = vld [vmem:[%s13334_s1 + $0x968] sm:$0xff] }
 0x122   :  { %6413 = vmatpush1.bf16.msra.mxu0 %v6412_v17  ;;  %v386_v17 = vld [vmem:[%s13334_s1 + $0x728] sm:$0xff] }
 0x123   :  { %6415 = vmatprep.subr.bf16.mxu0 %v6414_v5  ;;  %v5099_v5 = vld [vmem:[%s13334_s1 + $0x1f30] sm:$0xff]  ;;  %v6434_v36 = vpack.c.bf16 %v386_v17, %v382_v30  ;;  %v417_v17 = vld [vmem:[%s13334_s1 + $0x820] sm:$0xff] }
 0x124   :  { %6289 = vmatpush1.bf16.msra.mxu1 %v6288_v44  ;;  %v390_v44 = vld [vmem:[%s13334_s1 + $0x748] sm:$0xff] }
 0x125   :  { %6291 = vmatprep.subr.bf16.mxu1 %v6290_v45  ;;  %v6308_v45 = vpack.c.bf16 %v5099_v5, %v5095_v34  ;;  %v426_v34 = vld [vmem:[%s13334_s1 + $0x868] sm:$0xff]  ;;  %v143_v5 = vld [vmem:[#allocation2 + $0x10] sm:$0xff] }
 0x126   :  { %6417 = vmatpush1.bf16.msra.mxu0 %v6416_v3  ;;  %v394_v3 = vld [vmem:[%s13334_s1 + $0x768] sm:$0xff] }
 0x127   :  { %6419 = vmatprep.subr.bf16.mxu0 %v6418_v48  ;;  %v5107_v48 = vld [vmem:[%s13334_s1 + $0x1f70] sm:$0xff]  ;;  %v6438_v50 = vpack.c.bf16 %v394_v3, %v390_v44 }
 0x128   :  { %6293 = vmatpush1.bf16.msra.mxu1 %v6292_v54  ;;  %v398_v54 = vld [vmem:[%s13334_s1 + $0x788] sm:$0xff]  ;;  %v171_v44 = vld [vmem:[%s13334_s1 + $0x70] sm:$0xff] }
 0x129   :  { %6295 = vmatprep.subr.bf16.mxu1 %v6294_v26  ;;  %v6312_v26 = vpack.c.bf16 %v5107_v48, %v5103_v47  ;;  %v430_v47 = vld [vmem:[%s13334_s1 + $0x888] sm:$0xff]  ;;  %v6584_v49 = vpack.c.bf16 %v171_v44, %v167_v43 }
 0x12a   :  { %6421 = vmatpush1.bf16.msra.mxu0 %v6420_v40  ;;  %v402_v40 = vld [vmem:[%s13334_s1 + $0x7a8] sm:$0xff] }
 0x12b   :  { %6423 = vmatprep.subr.bf16.mxu0 %v6422_v58  ;;  %v5115_v58 = vld [vmem:[%s13334_s1 + $0x1fb0] sm:$0xff]  ;;  %v6442_v60 = vpack.c.bf16 %v402_v40, %v398_v54  ;;  %v434_v48 = vld [vmem:[%s13334_s1 + $0x8a8] sm:$0xff] }
 0x12c   :  { %6297 = vmatpush1.bf16.msra.mxu1 %v6296_v2  ;;  %v406_v2 = vld [vmem:[%s13334_s1 + $0x7c8] sm:$0xff]  ;;  %v179_v54 = vld [vmem:[%s13334_s1 + $0xb0] sm:$0xff] }
 0x12d   :  { %6299 = vmatprep.subr.bf16.mxu1 %v6298_v4  ;;  %v6316_v4 = vpack.c.bf16 %v5115_v58, %v5111_v42  ;;  %v151_v40 = vld [vmem:[#allocation2 + $0x90] sm:$0xff]  ;;  %v188_v42 = vld [vmem:[%s13334_s1 + $0xf8] sm:$0xff]  ;;  %v438_v58 = vld [vmem:[%s13334_s1 + $0x8c8] sm:$0xff]  ;;  %v6588_v62 = vpack.c.bf16 %v179_v54, %v175_v53 }
 0x12e   :  { %6425 = vmatpush1.bf16.msra.mxu0 %v6424_v57  ;;  %v410_v57 = vld [vmem:[%s13334_s1 + $0x7e8] sm:$0xff] }
 0x12f   :  { %6427 = vmatprep.subr.bf16.mxu0 %v6426_v8  ;;  %v5123_v8 = vld [vmem:[%s13334_s1 + $0x1ff0] sm:$0xff]  ;;  %v6446_v12 = vpack.c.bf16 %v410_v57, %v406_v2  ;;  %v6462_v57 = vpack.c.bf16 %v442_v59, %v438_v58  ;;  %v466_v43 = vld [vmem:[%s13334_s1 + $0x9a8] sm:$0xff]  ;;  %v473_v58 = vld [vmem:[%s13334_s1 + $0x9e0] sm:$0xff] }
 0x130   :  { %6301 = vmatpush1.bf16.msra.mxu1 %v6300_v18  ;;  %v6320_v23 = vpack.c.bf16 %v5123_v8, %v5119_v16  ;;  %v183_v2 = vld [vmem:[%s13334_s1 + $0xd0] sm:$0xff]  ;;  %v446_v16 = vld [vmem:[%s13334_s1 + $0x908] sm:$0xff]  ;;  %v224_v59 = vld [vmem:[%s13334_s1 + $0x218] sm:$0xff] }
 0x131   :  { %6303 = vmatprep.subr.bf16.mxu1 %v6302_v20  ;;  %v418_v20 = vld [vmem:[%s13334_s1 + $0x828] sm:$0xff] }
 0x132   :  { %6429 = vmatpush1.bf16.msra.mxu0 %v6428_v19  ;;  %v414_v19 = vld [vmem:[%s13334_s1 + $0x808] sm:$0xff] }
 0x133   :  { %6431 = vmatprep.subr.bf16.mxu0 %v6430_v27  ;;  %v6578_v27 = vpack.c.bf16 %v164_v15, %v160_v9  ;;  %v6450_v30 = vpack.c.bf16 %v418_v20, %v414_v19  ;;  %v450_v8 = vld [vmem:[%s13334_s1 + $0x928] sm:$0xff]  ;;  %v445_v15 = vld [vmem:[%s13334_s1 + $0x900] sm:$0xff]  ;;  %v191_v19 = vld [vmem:[%s13334_s1 + $0x110] sm:$0xff] }
 0x134   :  { %6305 = vmatpush1.bf16.msra.mxu1 %v6304_v31  ;;  %v168_v31 = vld [vmem:[%s13334_s1 + $0x58] sm:$0xff]  ;;  %v195_v20 = vld [vmem:[%s13334_s1 + $0x130] sm:$0xff] }
 0x135   :  { %6307 = vmatprep.subr.bf16.mxu1 %v6306_v33  ;;  %v422_v33 = vld [vmem:[%s13334_s1 + $0x848] sm:$0xff] }
 0x136   :  { %6433 = vmatpush1.bf16.msra.mxu0 %v6432_v32  ;;  %v172_v32 = vld [vmem:[%s13334_s1 + $0x78] sm:$0xff]  ;;  %v6454_v3 = vpack.c.bf16 %v426_v34, %v422_v33  ;;  %v199_v33 = vld [vmem:[%s13334_s1 + $0x150] sm:$0xff] }
 0x137   :  { %6435 = vmatprep.subr.bf16.mxu0 %v6434_v36  ;;  %v6452_v36 = vpack.c.bf16 %v417_v17, %v413_v28  ;;  %v6582_v39 = vpack.c.bf16 %v172_v32, %v168_v31  ;;  %v204_v28 = vld [vmem:[%s13334_s1 + $0x178] sm:$0xff]  ;;  %v453_v32 = vld [vmem:[%s13334_s1 + $0x940] sm:$0xff]  ;;  %v203_v34 = vld [vmem:[%s13334_s1 + $0x170] sm:$0xff] }
 0x138   :  { %6309 = vmatpush1.bf16.msra.mxu1 %v6308_v45  ;;  %v9821_v18 = vpop.f32.mrb[2].mxu1  ;;  %v425_v45 = vld [vmem:[%s13334_s1 + $0x860] sm:$0xff]  ;;  %v6600_v44 = vpack.c.bf16 %v203_v34, %v199_v33  ;;  %v239_v34 = vld [vmem:[%s13334_s1 + $0x290] sm:$0xff] }
 0x139   :  { %6311 = vmatprep.subr.bf16.mxu1 %v6310_v46  ;;  %v9829_v21 = vpop.f32.mrb[3].mxu1  ;;  %v180_v46 = vld [vmem:[%s13334_s1 + $0xb8] sm:$0xff]  ;;  %v6456_v52 = vpack.c.bf16 %v425_v45, %v421_v41  ;;  %v462_v41 = vld [vmem:[%s13334_s1 + $0x988] sm:$0xff]  ;;  %v493_v33 = vld [vmem:[%s13334_s1 + $0xa80] sm:$0xff] }
 0x13a   :  { %6437 = vmatpush1.bf16.msra.mxu0 %v6436_v10  ;;  %v176_v10 = vld [vmem:[%s13334_s1 + $0x98] sm:$0xff] }
 0x13b   :  { %6439 = vmatprep.subr.bf16.mxu0 %v6438_v50  ;;  %v429_v50 = vld [vmem:[%s13334_s1 + $0x880] sm:$0xff] }
 0x13c   :  { %6313 = vmatpush1.bf16.msra.mxu1 %v6312_v26  ;;  %v6458_v26 = vpack.c.bf16 %v434_v48, %v430_v47  ;;  %v211_v47 = vld [vmem:[%s13334_s1 + $0x1b0] sm:$0xff]  ;;  %v6474_v48 = vpack.c.bf16 %v466_v43, %v462_v41  ;;  %v252_v41 = vld [vmem:[%s13334_s1 + $0x2f8] sm:$0xff]  ;;  %v502_v43 = vld [vmem:[%s13334_s1 + $0xac8] sm:$0xff] }
 0x13d   :  { %6315 = vmatprep.subr.bf16.mxu1 %v6314_v56  ;;  %v184_v56 = vld [vmem:[%s13334_s1 + $0xd8] sm:$0xff] }
 0x13e   :  { %6441 = vmatpush1.bf16.msra.mxu0 %v6440_v55  ;;  %v433_v55 = vld [vmem:[%s13334_s1 + $0x8a0] sm:$0xff]  ;;  %v6590_v1 = vpack.c.bf16 %v188_v42, %v184_v56  ;;  %v219_v56 = vld [vmem:[%s13334_s1 + $0x1f0] sm:$0xff] }
 0x13f   :  { %6443 = vmatprep.subr.bf16.mxu0 %v6442_v60  ;;  %v146_v60 = vld [vmem:[#allocation2 + $0x28] sm:$0xff]  ;;  %v6460_v0 = vpack.c.bf16 %v433_v55, %v429_v50  ;;  %v216_v50 = vld [vmem:[%s13334_s1 + $0x1d8] sm:$0xff]  ;;  %v215_v55 = vld [vmem:[%s13334_s1 + $0x1d0] sm:$0xff] }
 0x140   :  { %6317 = vmatpush1.bf16.msra.mxu1 %v6316_v4  ;;  %v441_v4 = vld [vmem:[%s13334_s1 + $0x8e0] sm:$0xff] }
 0x141   :  { %6319 = vmatprep.subr.bf16.mxu1 %v6318_v6  ;;  %v196_v6 = vld [vmem:[%s13334_s1 + $0x138] sm:$0xff] }
 0x142   :  { %6445 = vmatpush1.bf16.msra.mxu0 %v6444_v63  ;;  %v192_v63 = vld [vmem:[%s13334_s1 + $0x118] sm:$0xff] }
 0x143   :  { %6447 = vmatprep.subr.bf16.mxu0 %v6446_v12  ;;  %v6594_v9 = vpack.c.bf16 %v196_v6, %v192_v63  ;;  %v481_v6 = vld [vmem:[%s13334_s1 + $0xa20] sm:$0xff] }
 0x144   :  { %6321 = vmatpush1.bf16.msra.mxu1 %v6320_v23  ;;  %v6466_v23 = vpack.c.bf16 %v450_v8, %v446_v16  ;;  %v232_v16 = vld [vmem:[%s13334_s1 + $0x258] sm:$0xff] }
 0x145   :  { %6579 = vmatprep.subr.bf16.mxu1 %v6578_v27  ;;  %v200_v27 = vld [vmem:[%s13334_s1 + $0x158] sm:$0xff] }
 0x146   :  { %6449 = vmatpush1.bf16.msra.mxu0 %v6448_v25  ;;  %v449_v25 = vld [vmem:[%s13334_s1 + $0x920] sm:$0xff]  ;;  %v6598_v31 = vpack.c.bf16 %v204_v28, %v200_v27  ;;  %v236_v8 = vld [vmem:[%s13334_s1 + $0x278] sm:$0xff] }
 0x147   :  { %6451 = vmatprep.subr.bf16.mxu0 %v6450_v30  ;;  %1915 = vmatmul.mubr.f32.vlgmr.msra.gmra.mrb[4].mxu1 %v9066_v37  ;;  %v6586_v37 = vpack.c.bf16 %v180_v46, %v176_v10  ;;  %v6596_v30 = vpack.c.bf16 %v195_v20, %v191_v19  ;;  %v6468_v17 = vpack.c.bf16 %v449_v25, %v445_v15  ;;  %v461_v10 = vld [vmem:[%s13334_s1 + $0x980] sm:$0xff]  ;;  %v207_v46 = vld [vmem:[%s13334_s1 + $0x190] sm:$0xff]  ;;  %v240_v28 = vld [vmem:[%s13334_s1 + $0x298] sm:$0xff] }
 0x148   :  { %6581 = vmatpush1.bf16.msra.mxu1 %v6580_v35  ;;  %1920 = vmatprep.mubr.f32.mxu1 %v9098_v61  ;;  %v437_v61 = vld [vmem:[%s13334_s1 + $0x8c0] sm:$0xff]  ;;  %v6604_v53 = vpack.c.bf16 %v211_v47, %v207_v46  ;;  %v6614_v15 = vpack.c.bf16 %v236_v8, %v232_v16  ;;  %v231_v20 = vld [vmem:[%s13334_s1 + $0x250] sm:$0xff]  ;;  %v272_v8 = vld [vmem:[%s13334_s1 + $0x398] sm:$0xff] }
 0x149   :  { %2069 = vmatmul.mubr.f32.vlgmr.msra.gmra.mrb[0].mxu0 %v143_v5  ;;  %6583 = vmatprep.subr.bf16.mxu1 %v6582_v39  ;;  %v6464_v13 = vpack.c.bf16 %v441_v4, %v437_v61  ;;  %v6470_v5 = vpack.c.bf16 %v458_v38, %v454_v29  ;;  %v457_v35 = vld [vmem:[%s13334_s1 + $0x960] sm:$0xff]  ;;  %v212_v39 = vld [vmem:[%s13334_s1 + $0x1b8] sm:$0xff]  ;;  %v227_v4 = vld [vmem:[%s13334_s1 + $0x230] sm:$0xff] }
 0x14a   :  { %6453 = vmatpush1.bf16.msra.mxu0 %v6452_v36  ;;  %2074 = vmatprep.mubr.f32.mxu0 %v152_v51  ;;  %v208_v36 = vld [vmem:[%s13334_s1 + $0x198] sm:$0xff]  ;;  %v485_v19 = vld [vmem:[%s13334_s1 + $0xa40] sm:$0xff]  ;;  %v494_v38 = vld [vmem:[%s13334_s1 + $0xa88] sm:$0xff] }
 0x14b   :  { %6455 = vmatprep.subr.bf16.mxu0 %v6454_v3  ;;  %1921 = vmatmul.mubr.f32.gmra.mrb[6].mxu1 %v9118_v7  ;;  %v187_v7 = vld [vmem:[%s13334_s1 + $0xf0] sm:$0xff]  ;;  %v6472_v3 = vpack.c.bf16 %v457_v35, %v453_v32  ;;  %v6602_v45 = vpack.c.bf16 %v212_v39, %v208_v36  ;;  %v220_v51 = vld [vmem:[%s13334_s1 + $0x1f8] sm:$0xff]  ;;  %v489_v27 = vld [vmem:[%s13334_s1 + $0xa60] sm:$0xff] }
 0x14c   :  { %6585 = vmatpush1.bf16.msra.mxu1 %v6584_v49  ;;  %2299 = vmatprep.mubr.f32.mxu1 %v7683_v11  ;;  %v6592_v12 = vpack.c.bf16 %v187_v7, %v183_v2  ;;  %v465_v49 = vld [vmem:[%s13334_s1 + $0x9a0] sm:$0xff]  ;;  %v486_v11 = vld [vmem:[%s13334_s1 + $0xa48] sm:$0xff]  ;;  %v244_v29 = vld [vmem:[%s13334_s1 + $0x2b8] sm:$0xff] }
 0x14d   :  { %2075 = vmatmul.mubr.f32.gmra.mrb[2].mxu0 %v151_v40  ;;  %6587 = vmatprep.subr.bf16.mxu1 %v6586_v37  ;;  %v474_v37 = vld [vmem:[%s13334_s1 + $0x9e8] sm:$0xff]  ;;  %v6476_v54 = vpack.c.bf16 %v465_v49, %v461_v10  ;;  %v6606_v40 = vpack.c.bf16 %v220_v51, %v216_v50  ;;  %v477_v7 = vld [vmem:[%s13334_s1 + $0xa00] sm:$0xff]  ;;  %v6618_v32 = vpack.c.bf16 %v244_v29, %v240_v28  ;;  %v248_v39 = vld [vmem:[%s13334_s1 + $0x2d8] sm:$0xff] }
 0x14e   :  { %6457 = vmatpush1.bf16.msra.mxu0 %v6456_v52  ;;  %2145 = vmatprep.mubr.f32.mxu0 %v146_v60  ;;  %v470_v52 = vld [vmem:[%s13334_s1 + $0x9c8] sm:$0xff]  ;;  %v228_v60 = vld [vmem:[%s13334_s1 + $0x238] sm:$0xff]  ;;  %v497_v36 = vld [vmem:[%s13334_s1 + $0xaa0] sm:$0xff]  ;;  %v6622_v10 = vpack.c.bf16 %v252_v41, %v248_v39 }
 0x14f   :  { %6459 = vmatprep.subr.bf16.mxu0 %v6458_v26  ;;  %v469_v26 = vld [vmem:[%s13334_s1 + $0x9c0] sm:$0xff]  ;;  %v6478_v42 = vpack.c.bf16 %v474_v37, %v470_v52  ;;  %v6610_v2 = vpack.c.bf16 %v228_v60, %v224_v59  ;;  %v247_v47 = vld [vmem:[%s13334_s1 + $0x2d0] sm:$0xff]  ;;  %v256_v51 = vld [vmem:[%s13334_s1 + $0x318] sm:$0xff] }
 0x150   :  { %6589 = vmatpush1.bf16.msra.mxu1 %v6588_v62  ;;  %v478_v62 = vld [vmem:[%s13334_s1 + $0xa08] sm:$0xff]  ;;  %v6480_v61 = vpack.c.bf16 %v473_v58, %v469_v26  ;;  %v501_v46 = vld [vmem:[%s13334_s1 + $0xac0] sm:$0xff]  ;;  %v260_v52 = vld [vmem:[%s13334_s1 + $0x338] sm:$0xff] }
 0x151   :  { %6591 = vmatprep.subr.bf16.mxu1 %v6590_v1  ;;  %v6608_v1 = vpack.c.bf16 %v219_v56, %v215_v55  ;;  %v505_v50 = vld [vmem:[%s13334_s1 + $0xae0] sm:$0xff]  ;;  %v510_v37 = vld [vmem:[%s13334_s1 + $0xb08] sm:$0xff]  ;;  %v6626_v26 = vpack.c.bf16 %v260_v52, %v256_v51  ;;  %v255_v56 = vld [vmem:[%s13334_s1 + $0x310] sm:$0xff] }
 0x152   :  { %6461 = vmatpush1.bf16.msra.mxu0 %v6460_v0  ;;  %v482_v0 = vld [vmem:[%s13334_s1 + $0xa28] sm:$0xff]  ;;  %v509_v55 = vld [vmem:[%s13334_s1 + $0xb00] sm:$0xff]  ;;  %v264_v60 = vld [vmem:[%s13334_s1 + $0x358] sm:$0xff] }
 0x153   :  { %6463 = vmatprep.subr.bf16.mxu0 %v6462_v57  ;;  %v223_v57 = vld [vmem:[%s13334_s1 + $0x210] sm:$0xff]  ;;  %v6482_v63 = vpack.c.bf16 %v482_v0, %v478_v62  ;;  %v513_v59 = vld [vmem:[%s13334_s1 + $0xb20] sm:$0xff]  ;;  %v268_v62 = vld [vmem:[%s13334_s1 + $0x378] sm:$0xff] }
 0x154   :  { %6593 = vmatpush1.bf16.msra.mxu1 %v6592_v12  ;;  %v490_v12 = vld [vmem:[%s13334_s1 + $0xa68] sm:$0xff]  ;;  %v521_v16 = vld [vmem:[%s13334_s1 + $0xb60] sm:$0xff]  ;;  %v280_v29 = vld [vmem:[%s13334_s1 + $0x3d8] sm:$0xff] }
 0x155   :  { %6595 = vmatprep.subr.bf16.mxu1 %v6594_v9  ;;  %v6484_v9 = vpack.c.bf16 %v481_v6, %v477_v7  ;;  %v6486_v25 = vpack.c.bf16 %v490_v12, %v486_v11  ;;  %v518_v0 = vld [vmem:[%s13334_s1 + $0xb48] sm:$0xff]  ;;  %v6630_v7 = vpack.c.bf16 %v268_v62, %v264_v60  ;;  %v276_v11 = vld [vmem:[%s13334_s1 + $0x3b8] sm:$0xff]  ;;  %v529_v28 = vld [vmem:[%s13334_s1 + $0xba0] sm:$0xff] }
 0x156   :  { %6465 = vmatpush1.bf16.msra.mxu0 %v6464_v13  ;;  %v6612_v13 = vpack.c.bf16 %v227_v4, %v223_v57  ;;  %v517_v57 = vld [vmem:[%s13334_s1 + $0xb40] sm:$0xff]  ;;  %v263_v4 = vld [vmem:[%s13334_s1 + $0x350] sm:$0xff]  ;;  %v526_v12 = vld [vmem:[%s13334_s1 + $0xb88] sm:$0xff] }
 0x157   :  { %6467 = vmatprep.subr.bf16.mxu0 %v6466_v23  ;;  %v235_v23 = vld [vmem:[%s13334_s1 + $0x270] sm:$0xff]  ;;  %v537_v39 = vld [vmem:[%s13334_s1 + $0xbe0] sm:$0xff]  ;;  %v288_v41 = vld [vmem:[%s13334_s1 + $0x418] sm:$0xff] }
 0x158   :  { %6597 = vmatpush1.bf16.msra.mxu1 %v6596_v30  ;;  %v498_v30 = vld [vmem:[%s13334_s1 + $0xaa8] sm:$0xff]  ;;  %v545_v51 = vld [vmem:[%s13334_s1 + $0xc20] sm:$0xff]  ;;  %v296_v52 = vld [vmem:[%s13334_s1 + $0x458] sm:$0xff] }
 0x159   :  { %6599 = vmatprep.subr.bf16.mxu1 %v6598_v31  ;;  %v6488_v31 = vpack.c.bf16 %v489_v27, %v485_v19  ;;  %v6490_v35 = vpack.c.bf16 %v498_v30, %v494_v38  ;;  %v6634_v19 = vpack.c.bf16 %v276_v11, %v272_v8  ;;  %v284_v38 = vld [vmem:[%s13334_s1 + $0x3f8] sm:$0xff]  ;;  %v534_v30 = vld [vmem:[%s13334_s1 + $0xbc8] sm:$0xff]  ;;  %v553_v62 = vld [vmem:[%s13334_s1 + $0xc60] sm:$0xff] }
 0x15a   :  { %6469 = vmatpush1.bf16.msra.mxu0 %v6468_v17  ;;  %v6616_v17 = vpack.c.bf16 %v235_v23, %v231_v20  ;;  %v525_v20 = vld [vmem:[%s13334_s1 + $0xb80] sm:$0xff]  ;;  %v271_v23 = vld [vmem:[%s13334_s1 + $0x390] sm:$0xff] }
 0x15b   :  { %6471 = vmatprep.subr.bf16.mxu0 %v6470_v5  ;;  %v243_v5 = vld [vmem:[%s13334_s1 + $0x2b0] sm:$0xff] }
 0x15c   :  { %6601 = vmatpush1.bf16.msra.mxu1 %v6600_v44  ;;  %v506_v44 = vld [vmem:[%s13334_s1 + $0xae8] sm:$0xff]  ;;  %v303_v8 = vld [vmem:[%s13334_s1 + $0x490] sm:$0xff] }
 0x15d   :  { %6603 = vmatprep.subr.bf16.mxu1 %v6602_v45  ;;  %v6492_v45 = vpack.c.bf16 %v497_v36, %v493_v33  ;;  %v6494_v49 = vpack.c.bf16 %v506_v44, %v502_v43  ;;  %v6638_v33 = vpack.c.bf16 %v284_v38, %v280_v29  ;;  %v292_v43 = vld [vmem:[%s13334_s1 + $0x438] sm:$0xff]  ;;  %v542_v44 = vld [vmem:[%s13334_s1 + $0xc08] sm:$0xff]  ;;  %v307_v11 = vld [vmem:[%s13334_s1 + $0x4b0] sm:$0xff] }
 0x15e   :  { %6473 = vmatpush1.bf16.msra.mxu0 %v6472_v3  ;;  %v6620_v3 = vpack.c.bf16 %v243_v5, %v239_v34  ;;  %v533_v34 = vld [vmem:[%s13334_s1 + $0xbc0] sm:$0xff]  ;;  %v279_v5 = vld [vmem:[%s13334_s1 + $0x3d0] sm:$0xff] }
 0x15f   :  { %6475 = vmatprep.subr.bf16.mxu0 %v6474_v48  ;;  %v251_v48 = vld [vmem:[%s13334_s1 + $0x2f0] sm:$0xff] }
 0x160   :  { %6605 = vmatpush1.bf16.msra.mxu1 %v6604_v53  ;;  %v514_v53 = vld [vmem:[%s13334_s1 + $0xb28] sm:$0xff] }
 0x161   :  { %6607 = vmatprep.subr.bf16.mxu1 %v6606_v40  ;;  %v6496_v40 = vpack.c.bf16 %v505_v50, %v501_v46  ;;  %v6498_v58 = vpack.c.bf16 %v514_v53, %v510_v37  ;;  %v6642_v46 = vpack.c.bf16 %v292_v43, %v288_v41  ;;  %v300_v37 = vld [vmem:[%s13334_s1 + $0x478] sm:$0xff]  ;;  %v550_v53 = vld [vmem:[%s13334_s1 + $0xc48] sm:$0xff] }
 0x162   :  { %6477 = vmatpush1.bf16.msra.mxu0 %v6476_v54  ;;  %v6624_v54 = vpack.c.bf16 %v251_v48, %v247_v47  ;;  %v541_v47 = vld [vmem:[%s13334_s1 + $0xc00] sm:$0xff]  ;;  %v287_v48 = vld [vmem:[%s13334_s1 + $0x410] sm:$0xff]  ;;  %v7687_v41 = vld [vmem:[#allocation2 + $0x18] sm:$0xff] }
 0x163   :  { %6479 = vmatprep.subr.bf16.mxu0 %v6478_v42  ;;  %v259_v42 = vld [vmem:[%s13334_s1 + $0x330] sm:$0xff] }
 0x164   :  { %6609 = vmatpush1.bf16.msra.mxu1 %v6608_v1  ;;  %v522_v1 = vld [vmem:[%s13334_s1 + $0xb68] sm:$0xff] }
 0x165   :  { %6611 = vmatprep.subr.bf16.mxu1 %v6610_v2  ;;  %v6500_v2 = vpack.c.bf16 %v513_v59, %v509_v55  ;;  %v6502_v6 = vpack.c.bf16 %v522_v1, %v518_v0  ;;  %v6516_v55 = vpack.c.bf16 %v545_v51, %v541_v47  ;;  %v299_v59 = vld [vmem:[%s13334_s1 + $0x470] sm:$0xff]  ;;  %v304_v0 = vld [vmem:[%s13334_s1 + $0x498] sm:$0xff]  ;;  %v582_v51 = vld [vmem:[%s13334_s1 + $0xd48] sm:$0xff] }
 0x166   :  { %6481 = vmatpush1.bf16.msra.mxu0 %v6480_v61  ;;  %v6628_v61 = vpack.c.bf16 %v259_v42, %v255_v56  ;;  %v6646_v56 = vpack.c.bf16 %v300_v37, %v296_v52  ;;  %v549_v42 = vld [vmem:[%s13334_s1 + $0xc40] sm:$0xff]  ;;  %v308_v1 = vld [vmem:[%s13334_s1 + $0x4b8] sm:$0xff]  ;;  %v586_v52 = vld [vmem:[%s13334_s1 + $0xd68] sm:$0xff] }
 0x167   :  { %6483 = vmatprep.subr.bf16.mxu0 %v6482_v63  ;;  %v267_v63 = vld [vmem:[%s13334_s1 + $0x370] sm:$0xff] }
 0x168   :  { %6613 = vmatpush1.bf16.msra.mxu1 %v6612_v13  ;;  %v530_v13 = vld [vmem:[%s13334_s1 + $0xba8] sm:$0xff] }
 0x169   :  { %6615 = vmatprep.subr.bf16.mxu1 %v6614_v15  ;;  %v6504_v15 = vpack.c.bf16 %v521_v16, %v517_v57  ;;  %v6506_v27 = vpack.c.bf16 %v530_v13, %v526_v12  ;;  %v154_v57 = vld [vmem:[#allocation2 + $0xa8] sm:$0xff]  ;;  %v6650_v16 = vpack.c.bf16 %v308_v1, %v304_v0  ;;  %v153_v12 = vld [vmem:[#allocation2 + $0xa0] sm:$0xff] }
 0x16a   :  { %6485 = vmatpush1.bf16.msra.mxu0 %v6484_v9  ;;  %v6632_v9 = vpack.c.bf16 %v267_v63, %v263_v4  ;;  %v557_v63 = vld [vmem:[%s13334_s1 + $0xc80] sm:$0xff] }
 0x16b   :  { %6487 = vmatprep.subr.bf16.mxu0 %v6486_v25  ;;  %v275_v25 = vld [vmem:[%s13334_s1 + $0x3b0] sm:$0xff] }
 0x16c   :  { %6617 = vmatpush1.bf16.msra.mxu1 %v6616_v17  ;;  %v538_v17 = vld [vmem:[%s13334_s1 + $0xbe8] sm:$0xff] }
 0x16d   :  { %6619 = vmatprep.subr.bf16.mxu1 %v6618_v32  ;;  %v6508_v32 = vpack.c.bf16 %v529_v28, %v525_v20  ;;  %v6510_v36 = vpack.c.bf16 %v538_v17, %v534_v30  ;;  %v566_v20 = vld [vmem:[%s13334_s1 + $0xcc8] sm:$0xff]  ;;  %v148_v28 = vld [vmem:[#allocation2 + $0x38] sm:$0xff]  ;;  %v565_v30 = vld [vmem:[%s13334_s1 + $0xcc0] sm:$0xff] }
 0x16e   :  { %6489 = vmatpush1.bf16.msra.mxu0 %v6488_v31  ;;  %v6636_v31 = vpack.c.bf16 %v275_v25, %v271_v23  ;;  %v570_v23 = vld [vmem:[%s13334_s1 + $0xce8] sm:$0xff]  ;;  %v311_v17 = vld [vmem:[%s13334_s1 + $0x4d0] sm:$0xff] }
 0x16f   :  { %6491 = vmatprep.subr.bf16.mxu0 %v6490_v35  ;;  %v283_v35 = vld [vmem:[%s13334_s1 + $0x3f0] sm:$0xff]  ;;  %v7685_v25 = vld [vmem:[#allocation2 + $0x88] sm:$0xff] }
 0x170   :  { %6621 = vmatpush1.bf16.msra.mxu1 %v6620_v3  ;;  %v546_v3 = vld [vmem:[%s13334_s1 + $0xc28] sm:$0xff] }
 0x171   :  { %6623 = vmatprep.subr.bf16.mxu1 %v6622_v10  ;;  %v6512_v10 = vpack.c.bf16 %v537_v39, %v533_v34  ;;  %v6514_v50 = vpack.c.bf16 %v546_v3, %v542_v44  ;;  %v320_v34 = vld [vmem:[%s13334_s1 + $0x518] sm:$0xff]  ;;  %v578_v39 = vld [vmem:[%s13334_s1 + $0xd28] sm:$0xff] }
 0x172   :  { %6493 = vmatpush1.bf16.msra.mxu0 %v6492_v45  ;;  %v6640_v45 = vpack.c.bf16 %v283_v35, %v279_v5  ;;  %v324_v5 = vld [vmem:[%s13334_s1 + $0x538] sm:$0xff]  ;;  %v7686_v35 = vld [vmem:[#allocation2 + $0x80] sm:$0xff] }
 0x173   :  { %6495 = vmatprep.subr.bf16.mxu0 %v6494_v49  ;;  %v291_v49 = vld [vmem:[%s13334_s1 + $0x430] sm:$0xff]  ;;  %v6658_v3 = vpack.c.bf16 %v324_v5, %v320_v34 }
 0x174   :  { %6625 = vmatpush1.bf16.msra.mxu1 %v6624_v54  ;;  %v554_v54 = vld [vmem:[%s13334_s1 + $0xc68] sm:$0xff]  ;;  %v355_v34 = vld [vmem:[%s13334_s1 + $0x630] sm:$0xff] }
 0x175   :  { %6627 = vmatprep.subr.bf16.mxu1 %v6626_v26  ;;  %v6644_v26 = vpack.c.bf16 %v291_v49, %v287_v48  ;;  %v6518_v60 = vpack.c.bf16 %v554_v54, %v550_v53  ;;  %v577_v48 = vld [vmem:[%s13334_s1 + $0xd20] sm:$0xff]  ;;  %v328_v49 = vld [vmem:[%s13334_s1 + $0x558] sm:$0xff] }
 0x176   :  { %6497 = vmatpush1.bf16.msra.mxu0 %v6496_v40  ;;  %v145_v40 = vld [vmem:[#allocation2 + $0x20] sm:$0xff] }
 0x177   :  { %6499 = vmatprep.subr.bf16.mxu0 %v6498_v58  ;;  %v295_v58 = vld [vmem:[%s13334_s1 + $0x450] sm:$0xff] }
 0x178   :  { %6629 = vmatpush1.bf16.msra.mxu1 %v6628_v61  ;;  %v7684_v61 = vld [vmem:[#allocation2] sm:$0xff]  ;;  %v6648_v4 = vpack.c.bf16 %v299_v59, %v295_v58  ;;  %v336_v58 = vld [vmem:[%s13334_s1 + $0x598] sm:$0xff] }
 0x179   :  { %6631 = vmatprep.subr.bf16.mxu1 %v6630_v7  ;;  %v562_v7 = vld [vmem:[%s13334_s1 + $0xca8] sm:$0xff]  ;;  %v340_v59 = vld [vmem:[%s13334_s1 + $0x5b8] sm:$0xff] }
 0x17a   :  { %6501 = vmatpush1.bf16.msra.mxu0 %v6500_v2  ;;  %v558_v2 = vld [vmem:[%s13334_s1 + $0xc88] sm:$0xff] }
 0x17b   :  { %6503 = vmatprep.subr.bf16.mxu0 %v6502_v6  ;;  %v6520_v6 = vpack.c.bf16 %v553_v62, %v549_v42  ;;  %v6522_v13 = vpack.c.bf16 %v562_v7, %v558_v2  ;;  %v585_v42 = vld [vmem:[%s13334_s1 + $0xd60] sm:$0xff]  ;;  %v594_v62 = vld [vmem:[%s13334_s1 + $0xda8] sm:$0xff]  ;;  %v335_v7 = vld [vmem:[%s13334_s1 + $0x590] sm:$0xff] }
 0x17c   :  { %6633 = vmatpush1.bf16.msra.mxu1 %v6632_v9  ;;  %v561_v9 = vld [vmem:[%s13334_s1 + $0xca0] sm:$0xff] }
 0x17d   :  { %6635 = vmatprep.subr.bf16.mxu1 %v6634_v19  ;;  %v316_v19 = vld [vmem:[%s13334_s1 + $0x4f8] sm:$0xff]  ;;  %v6524_v29 = vpack.c.bf16 %v561_v9, %v557_v63  ;;  %v589_v2 = vld [vmem:[%s13334_s1 + $0xd80] sm:$0xff] }
 0x17e   :  { %6505 = vmatpush1.bf16.msra.mxu0 %v6504_v15  ;;  %v312_v15 = vld [vmem:[%s13334_s1 + $0x4d8] sm:$0xff]  ;;  %v593_v63 = vld [vmem:[%s13334_s1 + $0xda0] sm:$0xff] }
 0x17f   :  { %6507 = vmatprep.subr.bf16.mxu0 %v6506_v27  ;;  %v6652_v27 = vpack.c.bf16 %v307_v11, %v303_v8  ;;  %v6654_v38 = vpack.c.bf16 %v316_v19, %v312_v15  ;;  %v598_v8 = vld [vmem:[%s13334_s1 + $0xdc8] sm:$0xff]  ;;  %v597_v15 = vld [vmem:[%s13334_s1 + $0xdc0] sm:$0xff]  ;;  %v343_v19 = vld [vmem:[%s13334_s1 + $0x5d0] sm:$0xff] }
 0x180   :  { %6637 = vmatpush1.bf16.msra.mxu1 %v6636_v31  ;;  %v315_v31 = vld [vmem:[%s13334_s1 + $0x4f0] sm:$0xff]  ;;  %v602_v11 = vld [vmem:[%s13334_s1 + $0xde8] sm:$0xff] }
 0x181   :  { %6639 = vmatprep.subr.bf16.mxu1 %v6638_v33  ;;  %v569_v33 = vld [vmem:[%s13334_s1 + $0xce0] sm:$0xff]  ;;  %v6656_v43 = vpack.c.bf16 %v315_v31, %v311_v17 }
 0x182   :  { %6509 = vmatpush1.bf16.msra.mxu0 %v6508_v32  ;;  %v6526_v32 = vpack.c.bf16 %v570_v23, %v566_v20  ;;  %v6528_v44 = vpack.c.bf16 %v569_v33, %v565_v30  ;;  %v347_v20 = vld [vmem:[%s13334_s1 + $0x5f0] sm:$0xff]  ;;  %v6542_v23 = vpack.c.bf16 %v602_v11, %v598_v8  ;;  %v388_v8 = vld [vmem:[%s13334_s1 + $0x738] sm:$0xff]  ;;  %v638_v11 = vld [vmem:[%s13334_s1 + $0xf08] sm:$0xff] }
 0x183   :  { %6511 = vmatprep.subr.bf16.mxu0 %v6510_v36  ;;  %v574_v36 = vld [vmem:[%s13334_s1 + $0xd08] sm:$0xff]  ;;  %v6672_v30 = vpack.c.bf16 %v347_v20, %v343_v19  ;;  %v351_v33 = vld [vmem:[%s13334_s1 + $0x610] sm:$0xff]  ;;  %v637_v19 = vld [vmem:[%s13334_s1 + $0xf00] sm:$0xff] }
 0x184   :  { %6641 = vmatpush1.bf16.msra.mxu1 %v6640_v45  ;;  %v573_v45 = vld [vmem:[%s13334_s1 + $0xd00] sm:$0xff]  ;;  %v6530_v47 = vpack.c.bf16 %v578_v39, %v574_v36  ;;  %v360_v36 = vld [vmem:[%s13334_s1 + $0x658] sm:$0xff]  ;;  %v383_v20 = vld [vmem:[%s13334_s1 + $0x710] sm:$0xff] }
 0x185   :  { %6643 = vmatprep.subr.bf16.mxu1 %v6642_v46  ;;  %v323_v46 = vld [vmem:[%s13334_s1 + $0x530] sm:$0xff]  ;;  %v6532_v53 = vpack.c.bf16 %v577_v48, %v573_v45  ;;  %v364_v39 = vld [vmem:[%s13334_s1 + $0x678] sm:$0xff] }
 0x186   :  { %6513 = vmatpush1.bf16.msra.mxu0 %v6512_v10  ;;  %v319_v10 = vld [vmem:[%s13334_s1 + $0x510] sm:$0xff]  ;;  %v6678_v45 = vpack.c.bf16 %v364_v39, %v360_v36  ;;  %v649_v36 = vld [vmem:[%s13334_s1 + $0xf60] sm:$0xff]  ;;  %v400_v39 = vld [vmem:[%s13334_s1 + $0x798] sm:$0xff] }
 0x187   :  { %6515 = vmatprep.subr.bf16.mxu0 %v6514_v50  ;;  %2300 = vmatmul.mubr.f32.vlgmr.msra.gmra.mrb[4].mxu1 %v7684_v61  ;;  %v332_v50 = vld [vmem:[%s13334_s1 + $0x578] sm:$0xff]  ;;  %v6660_v37 = vpack.c.bf16 %v323_v46, %v319_v10  ;;  %v6666_v61 = vpack.c.bf16 %v340_v59, %v336_v58  ;;  %v613_v10 = vld [vmem:[%s13334_s1 + $0xe40] sm:$0xff]  ;;  %v359_v46 = vld [vmem:[%s13334_s1 + $0x650] sm:$0xff] }
 0x188   :  { %6645 = vmatpush1.bf16.msra.mxu1 %v6644_v26  ;;  %2305 = vmatprep.mubr.f32.mxu1 %v7685_v25  ;;  %v6662_v54 = vpack.c.bf16 %v332_v50, %v328_v49  ;;  %v327_v26 = vld [vmem:[%s13334_s1 + $0x550] sm:$0xff]  ;;  %v601_v25 = vld [vmem:[%s13334_s1 + $0xde0] sm:$0xff]  ;;  %v368_v50 = vld [vmem:[%s13334_s1 + $0x698] sm:$0xff] }
 0x189   :  { %2146 = vmatmul.mubr.f32.vlgmr.msra.gmra.mrb[0].mxu0 %v145_v40  ;;  %6647 = vmatprep.subr.bf16.mxu1 %v6646_v56  ;;  %v581_v40 = vld [vmem:[%s13334_s1 + $0xd40] sm:$0xff]  ;;  %v6534_v56 = vpack.c.bf16 %v586_v52, %v582_v51  ;;  %v6544_v17 = vpack.c.bf16 %v601_v25, %v597_v15  ;;  %v372_v51 = vld [vmem:[%s13334_s1 + $0x6b8] sm:$0xff]  ;;  %v622_v52 = vld [vmem:[%s13334_s1 + $0xe88] sm:$0xff] }
 0x18a   :  { %6517 = vmatpush1.bf16.msra.mxu0 %v6516_v55  ;;  %2151 = vmatprep.mubr.f32.mxu0 %v154_v57  ;;  %v331_v55 = vld [vmem:[%s13334_s1 + $0x570] sm:$0xff]  ;;  %v6536_v1 = vpack.c.bf16 %v585_v42, %v581_v40  ;;  %v617_v49 = vld [vmem:[%s13334_s1 + $0xe60] sm:$0xff]  ;;  %v6682_v40 = vpack.c.bf16 %v372_v51, %v368_v50  ;;  %v376_v59 = vld [vmem:[%s13334_s1 + $0x6d8] sm:$0xff] }
 0x18b   :  { %6519 = vmatprep.subr.bf16.mxu0 %v6518_v60  ;;  %2306 = vmatmul.mubr.f32.gmra.mrb[6].mxu1 %v7686_v35  ;;  %v590_v60 = vld [vmem:[%s13334_s1 + $0xd88] sm:$0xff]  ;;  %v6664_v0 = vpack.c.bf16 %v331_v55, %v327_v26  ;;  %v339_v57 = vld [vmem:[%s13334_s1 + $0x5b0] sm:$0xff]  ;;  %v609_v35 = vld [vmem:[%s13334_s1 + $0xe20] sm:$0xff] }
 0x18c   :  { %6649 = vmatpush1.bf16.msra.mxu1 %v6648_v4  ;;  %2376 = vmatprep.mubr.f32.mxu1 %v7687_v41  ;;  %v6538_v4 = vpack.c.bf16 %v594_v62, %v590_v60  ;;  %v614_v41 = vld [vmem:[%s13334_s1 + $0xe48] sm:$0xff]  ;;  %v621_v26 = vld [vmem:[%s13334_s1 + $0xe80] sm:$0xff]  ;;  %v367_v55 = vld [vmem:[%s13334_s1 + $0x690] sm:$0xff] }
 0x18d   :  { %2152 = vmatmul.mubr.f32.gmra.mrb[2].mxu0 %v153_v12  ;;  %6651 = vmatprep.subr.bf16.mxu1 %v6650_v16  ;;  %v348_v16 = vld [vmem:[%s13334_s1 + $0x5f8] sm:$0xff]  ;;  %v6668_v12 = vpack.c.bf16 %v339_v57, %v335_v7  ;;  %v625_v58 = vld [vmem:[%s13334_s1 + $0xea0] sm:$0xff]  ;;  %v630_v62 = vld [vmem:[%s13334_s1 + $0xec8] sm:$0xff] }
 0x18e   :  { %6521 = vmatpush1.bf16.msra.mxu0 %v6520_v6  ;;  %2222 = vmatprep.mubr.f32.mxu0 %v148_v28  ;;  %v344_v6 = vld [vmem:[%s13334_s1 + $0x5d8] sm:$0xff]  ;;  %v629_v7 = vld [vmem:[%s13334_s1 + $0xec0] sm:$0xff]  ;;  %v375_v57 = vld [vmem:[%s13334_s1 + $0x6d0] sm:$0xff] }
 0x18f   :  { %6523 = vmatprep.subr.bf16.mxu0 %v6522_v13  ;;  %v6540_v13 = vpack.c.bf16 %v593_v63, %v589_v2  ;;  %v6670_v9 = vpack.c.bf16 %v348_v16, %v344_v6  ;;  %v356_v28 = vld [vmem:[%s13334_s1 + $0x638] sm:$0xff]  ;;  %v633_v6 = vld [vmem:[%s13334_s1 + $0xee0] sm:$0xff] }
 0x190   :  { %6653 = vmatpush1.bf16.msra.mxu1 %v6652_v27  ;;  %v352_v27 = vld [vmem:[%s13334_s1 + $0x618] sm:$0xff]  ;;  %v657_v50 = vld [vmem:[%s13334_s1 + $0xfa0] sm:$0xff] }
 0x191   :  { %6655 = vmatprep.subr.bf16.mxu1 %v6654_v38  ;;  %v610_v38 = vld [vmem:[%s13334_s1 + $0xe28] sm:$0xff]  ;;  %v6674_v31 = vpack.c.bf16 %v356_v28, %v352_v27  ;;  %v380_v60 = vld [vmem:[%s13334_s1 + $0x6f8] sm:$0xff]  ;;  %v641_v27 = vld [vmem:[%s13334_s1 + $0xf20] sm:$0xff] }
 0x192   :  { %6525 = vmatpush1.bf16.msra.mxu0 %v6524_v29  ;;  %v606_v29 = vld [vmem:[%s13334_s1 + $0xe08] sm:$0xff]  ;;  %v6686_v2 = vpack.c.bf16 %v380_v60, %v376_v59  ;;  %v384_v16 = vld [vmem:[%s13334_s1 + $0x718] sm:$0xff]  ;;  %v665_v59 = vld [vmem:[%s13334_s1 + $0xfe0] sm:$0xff] }
 0x193   :  { %6527 = vmatprep.subr.bf16.mxu0 %v6526_v32  ;;  %v605_v32 = vld [vmem:[%s13334_s1 + $0xe00] sm:$0xff]  ;;  %v6546_v5 = vpack.c.bf16 %v610_v38, %v606_v29  ;;  %v6690_v15 = vpack.c.bf16 %v388_v8, %v384_v16  ;;  %v392_v28 = vld [vmem:[%s13334_s1 + $0x758] sm:$0xff]  ;;  %v646_v38 = vld [vmem:[%s13334_s1 + $0xf48] sm:$0xff] }
 0x194   :  { %6657 = vmatpush1.bf16.msra.mxu1 %v6656_v43  ;;  %v618_v43 = vld [vmem:[%s13334_s1 + $0xe68] sm:$0xff]  ;;  %v396_v29 = vld [vmem:[%s13334_s1 + $0x778] sm:$0xff]  ;;  %v5129_v16 = vld [vmem:[%s13334_s1 + $0x2020] sm:$0xff] }
 0x195   :  { %6659 = vmatprep.subr.bf16.mxu1 %v6658_v3  ;;  %v6548_v3 = vpack.c.bf16 %v609_v35, %v605_v32  ;;  %v6550_v48 = vpack.c.bf16 %v618_v43, %v614_v41  ;;  %v6694_v32 = vpack.c.bf16 %v396_v29, %v392_v28  ;;  %v404_v41 = vld [vmem:[%s13334_s1 + $0x7b8] sm:$0xff]  ;;  %v654_v43 = vld [vmem:[%s13334_s1 + $0xf88] sm:$0xff] }
 0x196   :  { %6529 = vmatpush1.bf16.msra.mxu0 %v6528_v44  ;;  %v6676_v44 = vpack.c.bf16 %v355_v34, %v351_v33  ;;  %v645_v33 = vld [vmem:[%s13334_s1 + $0xf40] sm:$0xff]  ;;  %v391_v34 = vld [vmem:[%s13334_s1 + $0x750] sm:$0xff]  ;;  %v408_v51 = vld [vmem:[%s13334_s1 + $0x7d8] sm:$0xff] }
 0x197   :  { %6531 = vmatprep.subr.bf16.mxu0 %v6530_v47  ;;  %v363_v47 = vld [vmem:[%s13334_s1 + $0x670] sm:$0xff]  ;;  %v416_v60 = vld [vmem:[%s13334_s1 + $0x818] sm:$0xff]  ;;  %v2544_v28 = vld [vmem:[#allocation2 + $0x8] sm:$0xfc] }
 0x198   :  { %6661 = vmatpush1.bf16.msra.mxu1 %v6660_v37  ;;  %v626_v37 = vld [vmem:[%s13334_s1 + $0xea8] sm:$0xff]  ;;  %v424_v8 = vld [vmem:[%s13334_s1 + $0x858] sm:$0xff] }
 0x199   :  { %6663 = vmatprep.subr.bf16.mxu1 %v6662_v54  ;;  %v6552_v54 = vpack.c.bf16 %v617_v49, %v613_v10  ;;  %v6554_v42 = vpack.c.bf16 %v626_v37, %v622_v52  ;;  %v6698_v10 = vpack.c.bf16 %v404_v41, %v400_v39  ;;  %v412_v52 = vld [vmem:[%s13334_s1 + $0x7f8] sm:$0xff]  ;;  %v662_v37 = vld [vmem:[%s13334_s1 + $0xfc8] sm:$0xff]  ;;  %v2611_v39 = vrot.slane %v2544_v28, 2 }
 0x19a   :  { %6533 = vmatpush1.bf16.msra.mxu0 %v6532_v53  ;;  %v6680_v53 = vpack.c.bf16 %v363_v47, %v359_v46  ;;  %v653_v46 = vld [vmem:[%s13334_s1 + $0xf80] sm:$0xff]  ;;  %v399_v47 = vld [vmem:[%s13334_s1 + $0x790] sm:$0xff]  ;;  %v2552_v29 = vld [vmem:[#allocation2 + $0x48] sm:$0x3] }
 0x19b   :  { %6535 = vmatprep.subr.bf16.mxu0 %v6534_v56  ;;  %v371_v56 = vld [vmem:[%s13334_s1 + $0x6b0] sm:$0xff]  ;;  %v2612_v41 = vrot.slane %v2552_v29, 2  ;;  %v5169_v29 = vld [vmem:[%s13334_s1 + $0x2160] sm:$0xff] }
 0x19c   :  { %6665 = vmatpush1.bf16.msra.mxu1 %v6664_v0  ;;  %v634_v0 = vld [vmem:[%s13334_s1 + $0xee8] sm:$0xff] }
 0x19d   :  { %6667 = vmatprep.subr.bf16.mxu1 %v6666_v61  ;;  %v6556_v61 = vpack.c.bf16 %v625_v58, %v621_v26  ;;  %v6558_v63 = vpack.c.bf16 %v634_v0, %v630_v62  ;;  %v6702_v26 = vpack.c.bf16 %v412_v52, %v408_v51  ;;  %v420_v62 = vld [vmem:[%s13334_s1 + $0x838] sm:$0xff]  ;;  %v5126_v0 = vld [vmem:[%s13334_s1 + $0x2008] sm:$0xff] }
 0x19e   :  { %6537 = vmatpush1.bf16.msra.mxu0 %v6536_v1  ;;  %v6684_v1 = vpack.c.bf16 %v371_v56, %v367_v55  ;;  %v661_v55 = vld [vmem:[%s13334_s1 + $0xfc0] sm:$0xff]  ;;  %v407_v56 = vld [vmem:[%s13334_s1 + $0x7d0] sm:$0xff]  ;;  %v5154_v51 = vld [vmem:[%s13334_s1 + $0x20e8] sm:$0xff] }
 0x19f   :  { %6539 = vmatprep.subr.bf16.mxu0 %v6538_v4  ;;  %v379_v4 = vld [vmem:[%s13334_s1 + $0x6f0] sm:$0xff]  ;;  %v7689_v52 = vld [vmem:[#allocation2 + $0x98] sm:$0xff] }
 0x1a0   :  { %6669 = vmatpush1.bf16.msra.mxu1 %v6668_v12  ;;  %v642_v12 = vld [vmem:[%s13334_s1 + $0xf28] sm:$0xff] }
 0x1a1   :  { %6671 = vmatprep.subr.bf16.mxu1 %v6670_v9  ;;  %v6560_v9 = vpack.c.bf16 %v633_v6, %v629_v7  ;;  %v6562_v25 = vpack.c.bf16 %v642_v12, %v638_v11  ;;  %v6706_v7 = vpack.c.bf16 %v420_v62, %v416_v60  ;;  %v428_v11 = vld [vmem:[%s13334_s1 + $0x878] sm:$0xff]  ;;  %v5134_v12 = vld [vmem:[%s13334_s1 + $0x2048] sm:$0xff]  ;;  %v7690_v62 = vld [vmem:[#allocation2 + $0x90] sm:$0xff] }
 0x1a2   :  { %6541 = vmatpush1.bf16.msra.mxu0 %v6540_v13  ;;  %v6688_v13 = vpack.c.bf16 %v379_v4, %v375_v57  ;;  %v415_v57 = vld [vmem:[%s13334_s1 + $0x810] sm:$0xff]  ;;  %v452_v60 = vld [vmem:[%s13334_s1 + $0x938] sm:$0xff] }
 0x1a3   :  { %6543 = vmatprep.subr.bf16.mxu0 %v6542_v23  ;;  %v387_v23 = vld [vmem:[%s13334_s1 + $0x730] sm:$0xff] }
 0x1a4   :  { %6673 = vmatpush1.bf16.msra.mxu1 %v6672_v30  ;;  %v650_v30 = vld [vmem:[%s13334_s1 + $0xf68] sm:$0xff]  ;;  %v419_v4 = vld [vmem:[%s13334_s1 + $0x830] sm:$0xff] }
 0x1a5   :  { %6675 = vmatprep.subr.bf16.mxu1 %v6674_v31  ;;  %v6564_v31 = vpack.c.bf16 %v641_v27, %v637_v19  ;;  %v6566_v35 = vpack.c.bf16 %v650_v30, %v646_v38  ;;  %v423_v19 = vld [vmem:[%s13334_s1 + $0x850] sm:$0xff]  ;;  %v5133_v27 = vld [vmem:[%s13334_s1 + $0x2040] sm:$0xff] }
 0x1a6   :  { %6545 = vmatpush1.bf16.msra.mxu0 %v6544_v17  ;;  %v6692_v17 = vpack.c.bf16 %v387_v23, %v383_v20  ;;  %v427_v20 = vld [vmem:[%s13334_s1 + $0x870] sm:$0xff]  ;;  %v5137_v30 = vld [vmem:[%s13334_s1 + $0x2060] sm:$0xff] }
 0x1a7   :  { %6547 = vmatprep.subr.bf16.mxu0 %v6546_v5  ;;  %v395_v5 = vld [vmem:[%s13334_s1 + $0x770] sm:$0xff] }
 0x1a8   :  { %6677 = vmatpush1.bf16.msra.mxu1 %v6676_v44  ;;  %v658_v44 = vld [vmem:[%s13334_s1 + $0xfa8] sm:$0xff] }
 0x1a9   :  { %6679 = vmatprep.subr.bf16.mxu1 %v6678_v45  ;;  %v6568_v45 = vpack.c.bf16 %v649_v36, %v645_v33  ;;  %v6570_v49 = vpack.c.bf16 %v658_v44, %v654_v43  ;;  %v5142_v33 = vld [vmem:[%s13334_s1 + $0x2088] sm:$0xff]  ;;  %v431_v36 = vld [vmem:[%s13334_s1 + $0x890] sm:$0xff]  ;;  %v6840_v43 = vpack.c.bf16 %v5137_v30, %v5133_v27  ;;  %v5165_v27 = vld [vmem:[%s13334_s1 + $0x2140] sm:$0xff] }
 0x1aa   :  { %6549 = vmatpush1.bf16.msra.mxu0 %v6548_v3  ;;  %v6696_v3 = vpack.c.bf16 %v395_v5, %v391_v34  ;;  %v5146_v34 = vld [vmem:[%s13334_s1 + $0x20a8] sm:$0xff]  ;;  %v156_v5 = vld [vmem:[#allocation2 + $0xb8] sm:$0xff] }
 0x1ab   :  { %6551 = vmatprep.subr.bf16.mxu0 %v6550_v48  ;;  %v403_v48 = vld [vmem:[%s13334_s1 + $0x7b0] sm:$0xff]  ;;  %v468_v30 = vld [vmem:[%s13334_s1 + $0x9b8] sm:$0xff] }
 0x1ac   :  { %6681 = vmatpush1.bf16.msra.mxu1 %v6680_v53  ;;  %v666_v53 = vld [vmem:[%s13334_s1 + $0xfe8] sm:$0xff] }
 0x1ad   :  { %6683 = vmatprep.subr.bf16.mxu1 %v6682_v40  ;;  %v6572_v40 = vpack.c.bf16 %v657_v50, %v653_v46  ;;  %v6574_v58 = vpack.c.bf16 %v666_v53, %v662_v37  ;;  %v6842_v46 = vpack.c.bf16 %v5146_v34, %v5142_v33  ;;  %v5150_v50 = vld [vmem:[%s13334_s1 + $0x20c8] sm:$0xff]  ;;  %v10675_v53 = vsel %vm2607_vm1, %v2611_v39, %v2612_v41  ;;  %v5177_v41 = vld [vmem:[%s13334_s1 + $0x21a0] sm:$0xff] }
 0x1ae   :  { %6553 = vmatpush1.bf16.msra.mxu0 %v6552_v54  ;;  %v6700_v54 = vpack.c.bf16 %v403_v48, %v399_v47  ;;  %v5145_v47 = vld [vmem:[%s13334_s1 + $0x20a0] sm:$0xff]  ;;  %v440_v48 = vld [vmem:[%s13334_s1 + $0x8d8] sm:$0xff]  ;;  %v6856_v33 = vpack.c.bf16 %v5169_v29, %v5165_v27  ;;  %v495_v27 = vld [vmem:[%s13334_s1 + $0xa90] sm:$0xff] }
 0x1af   :  { %6555 = vmatprep.subr.bf16.mxu0 %v6554_v42  ;;  %v411_v42 = vld [vmem:[%s13334_s1 + $0x7f0] sm:$0xff]  ;;  %v5205_v29 = vld [vmem:[%s13334_s1 + $0x2280] sm:$0xff] }
 0x1b0   :  { %6685 = vmatpush1.bf16.msra.mxu1 %v6684_v1  ;;  %v5130_v1 = vld [vmem:[%s13334_s1 + $0x2028] sm:$0xff] }
 0x1b1   :  { %6687 = vmatprep.subr.bf16.mxu1 %v6686_v2  ;;  %v6576_v2 = vpack.c.bf16 %v665_v59, %v661_v55  ;;  %v6834_v6 = vpack.c.bf16 %v5130_v1, %v5126_v0  ;;  %v443_v55 = vld [vmem:[%s13334_s1 + $0x8f0] sm:$0xff]  ;;  %v448_v59 = vld [vmem:[%s13334_s1 + $0x918] sm:$0xff]  ;;  %v5158_v0 = vld [vmem:[%s13334_s1 + $0x2108] sm:$0xff] }
 0x1b2   :  { %6557 = vmatpush1.bf16.msra.mxu0 %v6556_v61  ;;  %v6704_v61 = vpack.c.bf16 %v411_v42, %v407_v56  ;;  %v5149_v56 = vld [vmem:[%s13334_s1 + $0x20c0] sm:$0xff]  ;;  %v6846_v42 = vpack.c.bf16 %v5154_v51, %v5150_v50  ;;  %v5162_v1 = vld [vmem:[%s13334_s1 + $0x2128] sm:$0xff] }
 0x1b3   :  { %6559 = vmatprep.subr.bf16.mxu0 %v6558_v63  ;;  %v5125_v63 = vld [vmem:[%s13334_s1 + $0x2000] sm:$0xff] }
 0x1b4   :  { %6689 = vmatpush1.bf16.msra.mxu1 %v6688_v13  ;;  %v5138_v13 = vld [vmem:[%s13334_s1 + $0x2068] sm:$0xff]  ;;  %v6836_v23 = vpack.c.bf16 %v5129_v16, %v5125_v63  ;;  %v451_v63 = vld [vmem:[%s13334_s1 + $0x930] sm:$0xff]  ;;  %v6850_v16 = vpack.c.bf16 %v5162_v1, %v5158_v0  ;;  %v5181_v50 = vld [vmem:[%s13334_s1 + $0x21c0] sm:$0xff] }
 0x1b5   :  { %6691 = vmatprep.subr.bf16.mxu1 %v6690_v15  ;;  %v6708_v15 = vpack.c.bf16 %v419_v4, %v415_v57  ;;  %v6838_v38 = vpack.c.bf16 %v5138_v13, %v5134_v12  ;;  %v6722_v57 = vpack.c.bf16 %v452_v60, %v448_v59  ;;  %v447_v4 = vld [vmem:[%s13334_s1 + $0x910] sm:$0xff]  ;;  %v460_v12 = vld [vmem:[%s13334_s1 + $0x978] sm:$0xff]  ;;  %v5166_v13 = vld [vmem:[%s13334_s1 + $0x2148] sm:$0xff] }
 0x1b6   :  { %6561 = vmatpush1.bf16.msra.mxu0 %v6560_v9  ;;  %v147_v9 = vld [vmem:[#allocation2 + $0x30] sm:$0xff]  ;;  %v5189_v60 = vld [vmem:[%s13334_s1 + $0x2200] sm:$0xff]  ;;  %v488_v1 = vld [vmem:[%s13334_s1 + $0xa58] sm:$0xff] }
 0x1b7   :  { %6563 = vmatprep.subr.bf16.mxu0 %v6562_v25  ;;  %v6710_v25 = vpack.c.bf16 %v428_v11, %v424_v8  ;;  %v5161_v8 = vld [vmem:[%s13334_s1 + $0x2120] sm:$0xff]  ;;  %v456_v11 = vld [vmem:[%s13334_s1 + $0x958] sm:$0xff]  ;;  %v483_v59 = vld [vmem:[%s13334_s1 + $0xa30] sm:$0xff] }
 0x1b8   :  { %6693 = vmatpush1.bf16.msra.mxu1 %v6692_v17  ;;  %v432_v17 = vld [vmem:[%s13334_s1 + $0x898] sm:$0xff]  ;;  %v5193_v0 = vld [vmem:[%s13334_s1 + $0x2220] sm:$0xff] }
 0x1b9   :  { %6695 = vmatprep.subr.bf16.mxu1 %v6694_v32  ;;  %v7688_v32 = vld [vmem:[#allocation2 + $0x10] sm:$0xff] }
 0x1ba   :  { %6565 = vmatpush1.bf16.msra.mxu0 %v6564_v31  ;;  %v436_v31 = vld [vmem:[%s13334_s1 + $0x8b8] sm:$0xff] }
 0x1bb   :  { %6567 = vmatprep.subr.bf16.mxu0 %v6566_v35  ;;  %v6712_v35 = vpack.c.bf16 %v427_v20, %v423_v19  ;;  %v6714_v44 = vpack.c.bf16 %v436_v31, %v432_v17  ;;  %v6726_v20 = vpack.c.bf16 %v460_v12, %v456_v11  ;;  %v5174_v17 = vld [vmem:[%s13334_s1 + $0x2188] sm:$0xff]  ;;  %v5201_v12 = vld [vmem:[%s13334_s1 + $0x2260] sm:$0xff] }
 0x1bc   :  { %6697 = vmatpush1.bf16.msra.mxu1 %v6696_v3  ;;  %v435_v3 = vld [vmem:[%s13334_s1 + $0x8b0] sm:$0xff]  ;;  %v5178_v31 = vld [vmem:[%s13334_s1 + $0x21a8] sm:$0xff] }
 0x1bd   :  { %6699 = vmatprep.subr.bf16.mxu1 %v6698_v10  ;;  %v155_v10 = vld [vmem:[#allocation2 + $0xb0] sm:$0xff]  ;;  %v6716_v37 = vpack.c.bf16 %v435_v3, %v431_v36  ;;  %v5173_v36 = vld [vmem:[%s13334_s1 + $0x2180] sm:$0xff]  ;;  %v6858_v39 = vpack.c.bf16 %v5178_v31, %v5174_v17  ;;  %v5182_v3 = vld [vmem:[%s13334_s1 + $0x21c8] sm:$0xff] }
 0x1be   :  { %6569 = vmatpush1.bf16.msra.mxu0 %v6568_v45  ;;  %v5141_v45 = vld [vmem:[%s13334_s1 + $0x2080] sm:$0xff]  ;;  %v504_v17 = vld [vmem:[%s13334_s1 + $0xad8] sm:$0xff] }
 0x1bf   :  { %6571 = vmatprep.subr.bf16.mxu0 %v6570_v49  ;;  %v444_v49 = vld [vmem:[%s13334_s1 + $0x8f8] sm:$0xff] }
 0x1c0   :  { %6701 = vmatpush1.bf16.msra.mxu1 %v6700_v54  ;;  %v6844_v54 = vpack.c.bf16 %v5145_v47, %v5141_v45  ;;  %v5186_v45 = vld [vmem:[%s13334_s1 + $0x21e8] sm:$0xff]  ;;  %v508_v31 = vld [vmem:[%s13334_s1 + $0xaf8] sm:$0xff] }
 0x1c1   :  { %6703 = vmatprep.subr.bf16.mxu1 %v6702_v26  ;;  %v439_v26 = vld [vmem:[%s13334_s1 + $0x8d0] sm:$0xff]  ;;  %v6862_v51 = vpack.c.bf16 %v5186_v45, %v5182_v3  ;;  %v512_v3 = vld [vmem:[%s13334_s1 + $0xb18] sm:$0xff] }
 0x1c2   :  { %6573 = vmatpush1.bf16.msra.mxu0 %v6572_v40  ;;  %v6718_v40 = vpack.c.bf16 %v444_v49, %v440_v48  ;;  %v471_v48 = vld [vmem:[%s13334_s1 + $0x9d0] sm:$0xff]  ;;  %v516_v45 = vld [vmem:[%s13334_s1 + $0xb38] sm:$0xff] }
 0x1c3   :  { %6575 = vmatprep.subr.bf16.mxu0 %v6574_v58  ;;  %v5153_v58 = vld [vmem:[%s13334_s1 + $0x20e0] sm:$0xff]  ;;  %v475_v49 = vld [vmem:[%s13334_s1 + $0x9f0] sm:$0xff] }
 0x1c4   :  { %6705 = vmatpush1.bf16.msra.mxu1 %v6704_v61  ;;  %v7691_v61 = vld [vmem:[#allocation2 + $0x28] sm:$0xff] }
 0x1c5   :  { %6707 = vmatprep.subr.bf16.mxu1 %v6706_v7  ;;  %v6848_v7 = vpack.c.bf16 %v5153_v58, %v5149_v56  ;;  %v479_v58 = vld [vmem:[%s13334_s1 + $0xa10] sm:$0xff] }
 0x1c6   :  { %6577 = vmatpush1.bf16.msra.mxu0 %v6576_v2  ;;  %v6720_v2 = vpack.c.bf16 %v443_v55, %v439_v26  ;;  %v5194_v26 = vld [vmem:[%s13334_s1 + $0x2228] sm:$0xff]  ;;  %v6736_v55 = vpack.c.bf16 %v475_v49, %v471_v48  ;;  %v6754_v49 = vpack.c.bf16 %v516_v45, %v512_v3  ;;  %v5253_v3 = vld [vmem:[%s13334_s1 + $0x2400] sm:$0xff] }
 0x1c7   :  { %6835 = vmatprep.subr.bf16.mxu0 %v6834_v6  ;;  %2377 = vmatmul.mubr.f32.vlgmr.msra.gmra.mrb[4].mxu1 %v7688_v32  ;;  %v5157_v6 = vld [vmem:[%s13334_s1 + $0x2100] sm:$0xff] }
 0x1c8   :  { %6709 = vmatpush1.bf16.msra.mxu1 %v6708_v15  ;;  %2382 = vmatprep.mubr.f32.mxu1 %v7689_v52  ;;  %v6724_v15 = vpack.c.bf16 %v451_v63, %v447_v4  ;;  %v6852_v19 = vpack.c.bf16 %v5161_v8, %v5157_v6  ;;  %v5185_v52 = vld [vmem:[%s13334_s1 + $0x21e0] sm:$0xff]  ;;  %v6868_v4 = vpack.c.bf16 %v5193_v0, %v5189_v60  ;;  %v487_v6 = vld [vmem:[%s13334_s1 + $0xa50] sm:$0xff] }
 0x1c9   :  { %2223 = vmatmul.mubr.f32.vlgmr.msra.gmra.mrb[0].mxu0 %v147_v9  ;;  %6711 = vmatprep.subr.bf16.mxu1 %v6710_v25  ;;  %v5170_v9 = vld [vmem:[%s13334_s1 + $0x2168] sm:$0xff]  ;;  %v459_v25 = vld [vmem:[%s13334_s1 + $0x970] sm:$0xff]  ;;  %v6864_v56 = vpack.c.bf16 %v5185_v52, %v5181_v50  ;;  %v5197_v8 = vld [vmem:[%s13334_s1 + $0x2240] sm:$0xff] }
 0x1ca   :  { %6837 = vmatpush1.bf16.msra.mxu0 %v6836_v23  ;;  %2228 = vmatprep.mubr.f32.mxu0 %v156_v5  ;;  %v455_v23 = vld [vmem:[%s13334_s1 + $0x950] sm:$0xff]  ;;  %v6854_v28 = vpack.c.bf16 %v5170_v9, %v5166_v13  ;;  %v496_v13 = vld [vmem:[%s13334_s1 + $0xa98] sm:$0xff]  ;;  %v5221_v52 = vld [vmem:[%s13334_s1 + $0x2300] sm:$0xff] }
 0x1cb   :  { %6839 = vmatprep.subr.bf16.mxu0 %v6838_v38  ;;  %2383 = vmatmul.mubr.f32.gmra.mrb[6].mxu1 %v7690_v62  ;;  %v464_v38 = vld [vmem:[%s13334_s1 + $0x998] sm:$0xff]  ;;  %v6728_v32 = vpack.c.bf16 %v459_v25, %v455_v23  ;;  %v463_v5 = vld [vmem:[%s13334_s1 + $0x990] sm:$0xff]  ;;  %v6872_v23 = vpack.c.bf16 %v5201_v12, %v5197_v8  ;;  %v5229_v0 = vld [vmem:[%s13334_s1 + $0x2340] sm:$0xff] }
 0x1cc   :  { %6713 = vmatpush1.bf16.msra.mxu1 %v6712_v35  ;;  %2453 = vmatprep.mubr.f32.mxu1 %v7691_v61  ;;  %v6730_v34 = vpack.c.bf16 %v468_v30, %v464_v38  ;;  %v467_v35 = vld [vmem:[%s13334_s1 + $0x9b0] sm:$0xff]  ;;  %v492_v61 = vld [vmem:[%s13334_s1 + $0xa78] sm:$0xff]  ;;  %v5209_v30 = vld [vmem:[%s13334_s1 + $0x22a0] sm:$0xff] }
 0x1cd   :  { %2229 = vmatmul.mubr.f32.gmra.mrb[2].mxu0 %v155_v10  ;;  %6715 = vmatprep.subr.bf16.mxu1 %v6714_v44  ;;  %v476_v44 = vld [vmem:[%s13334_s1 + $0x9f8] sm:$0xff]  ;;  %v6732_v10 = vpack.c.bf16 %v467_v35, %v463_v5  ;;  %v6742_v63 = vpack.c.bf16 %v492_v61, %v488_v1  ;;  %v6876_v5 = vpack.c.bf16 %v5209_v30, %v5205_v29  ;;  %v511_v50 = vld [vmem:[%s13334_s1 + $0xb10] sm:$0xff]  ;;  %v5233_v61 = vld [vmem:[%s13334_s1 + $0x2360] sm:$0xff] }
 0x1ce   :  { %6841 = vmatpush1.bf16.msra.mxu0 %v6840_v43  ;;  %3249 = vmatprep.mubr.f32.mxu0 %v10675_v53  ;;  %v472_v43 = vld [vmem:[%s13334_s1 + $0x9d8] sm:$0xff]  ;;  %v6750_v35 = vpack.c.bf16 %v508_v31, %v504_v17  ;;  %v519_v60 = vld [vmem:[%s13334_s1 + $0xb50] sm:$0xff]  ;;  %v5237_v12 = vld [vmem:[%s13334_s1 + $0x2380] sm:$0xff] }
 0x1cf   :  { %6843 = vmatprep.subr.bf16.mxu0 %v6842_v46  ;;  %v6860_v46 = vpack.c.bf16 %v5177_v41, %v5173_v36  ;;  %v6734_v47 = vpack.c.bf16 %v476_v44, %v472_v43  ;;  %v500_v9 = vld [vmem:[%s13334_s1 + $0xab8] sm:$0xff]  ;;  %v503_v36 = vld [vmem:[%s13334_s1 + $0xad0] sm:$0xff]  ;;  %v5213_v41 = vld [vmem:[%s13334_s1 + $0x22c0] sm:$0xff] }
 0x1d0   :  { %6717 = vmatpush1.bf16.msra.mxu1 %v6716_v37  ;;  %v480_v37 = vld [vmem:[%s13334_s1 + $0xa18] sm:$0xff]  ;;  %v6746_v25 = vpack.c.bf16 %v500_v9, %v496_v13  ;;  %v5217_v44 = vld [vmem:[%s13334_s1 + $0x22e0] sm:$0xff]  ;;  %v527_v8 = vld [vmem:[%s13334_s1 + $0xb90] sm:$0xff] }
 0x1d1   :  { %6719 = vmatprep.subr.bf16.mxu1 %v6718_v40  ;;  %v5190_v40 = vld [vmem:[%s13334_s1 + $0x2208] sm:$0xff]  ;;  %v6880_v48 = vpack.c.bf16 %v5217_v44, %v5213_v41  ;;  %v5241_v9 = vld [vmem:[%s13334_s1 + $0x23a0] sm:$0xff] }
 0x1d2   :  { %6845 = vmatpush1.bf16.msra.mxu0 %v6844_v54  ;;  %v484_v54 = vld [vmem:[%s13334_s1 + $0xa38] sm:$0xff]  ;;  %v6866_v62 = vpack.c.bf16 %v5194_v26, %v5190_v40  ;;  %v6892_v29 = vpack.c.bf16 %v5241_v9, %v5237_v12  ;;  %v5245_v30 = vld [vmem:[%s13334_s1 + $0x23c0] sm:$0xff]  ;;  %v5274_v12 = vld [vmem:[%s13334_s1 + $0x24a8] sm:$0xff] }
 0x1d3   :  { %6847 = vmatprep.subr.bf16.mxu0 %v6846_v42  ;;  %v6738_v42 = vpack.c.bf16 %v484_v54, %v480_v37  ;;  %v5225_v54 = vld [vmem:[%s13334_s1 + $0x2320] sm:$0xff]  ;;  %v520_v40 = vld [vmem:[%s13334_s1 + $0xb58] sm:$0xff] }
 0x1d4   :  { %6721 = vmatpush1.bf16.msra.mxu1 %v6720_v2  ;;  %v5198_v2 = vld [vmem:[%s13334_s1 + $0x2248] sm:$0xff]  ;;  %v524_v26 = vld [vmem:[%s13334_s1 + $0xb78] sm:$0xff]  ;;  %v5249_v17 = vld [vmem:[%s13334_s1 + $0x23e0] sm:$0xff] }
 0x1d5   :  { %6723 = vmatprep.subr.bf16.mxu1 %v6722_v57  ;;  %v6740_v57 = vpack.c.bf16 %v483_v59, %v479_v58  ;;  %v6884_v58 = vpack.c.bf16 %v5225_v54, %v5221_v52  ;;  %v6758_v59 = vpack.c.bf16 %v524_v26, %v520_v40  ;;  %v2543_v31 = vld [vmem:[#allocation2] sm:$0xfc]  ;;  %v556_v52 = vld [vmem:[%s13334_s1 + $0xc78] sm:$0xff]  ;;  %v2567_v54 = vld [vmem:[#allocation2 + $0xc0] sm:$0x3] }
 0x1d6   :  { %6849 = vmatpush1.bf16.msra.mxu0 %v6848_v7  ;;  %v5202_v7 = vld [vmem:[%s13334_s1 + $0x2268] sm:$0xff]  ;;  %v2608_v44 = vrot.slane %v2543_v31, 2  ;;  %v5257_v45 = vld [vmem:[%s13334_s1 + $0x2420] sm:$0xff]  ;;  %v572_v31 = vld [vmem:[%s13334_s1 + $0xcf8] sm:$0xff] }
 0x1d7   :  { %6851 = vmatprep.subr.bf16.mxu0 %v6850_v16  ;;  %v491_v16 = vld [vmem:[%s13334_s1 + $0xa70] sm:$0xff]  ;;  %v6870_v11 = vpack.c.bf16 %v5202_v7, %v5198_v2  ;;  %v528_v2 = vld [vmem:[%s13334_s1 + $0xb98] sm:$0xff]  ;;  %v5262_v40 = vld [vmem:[%s13334_s1 + $0x2448] sm:$0xff] }
 0x1d8   :  { %6725 = vmatpush1.bf16.msra.mxu1 %v6724_v15  ;;  %v5206_v15 = vld [vmem:[%s13334_s1 + $0x2288] sm:$0xff]  ;;  %v532_v7 = vld [vmem:[%s13334_s1 + $0xbb8] sm:$0xff] }
 0x1d9   :  { %6727 = vmatprep.subr.bf16.mxu1 %v6726_v20  ;;  %v6744_v20 = vpack.c.bf16 %v491_v16, %v487_v6  ;;  %v6888_v6 = vpack.c.bf16 %v5233_v61, %v5229_v0  ;;  %v6762_v16 = vpack.c.bf16 %v532_v7, %v528_v2  ;;  %v5266_v26 = vld [vmem:[%s13334_s1 + $0x2468] sm:$0xff]  ;;  %v2633_v2 = vrot.slane %v2567_v54, 2  ;;  %v2546_v7 = vld [vmem:[#allocation2 + $0x18] sm:$0xfc]  ;;  %v575_v54 = vld [vmem:[%s13334_s1 + $0xd10] sm:$0xff] }
 0x1da   :  { %6853 = vmatpush1.bf16.msra.mxu0 %v6852_v19  ;;  %v5210_v19 = vld [vmem:[%s13334_s1 + $0x22a8] sm:$0xff] }
 0x1db   :  { %6855 = vmatprep.subr.bf16.mxu0 %v6854_v28  ;;  %v499_v28 = vld [vmem:[%s13334_s1 + $0xab0] sm:$0xff]  ;;  %v6874_v38 = vpack.c.bf16 %v5210_v19, %v5206_v15  ;;  %v536_v15 = vld [vmem:[%s13334_s1 + $0xbd8] sm:$0xff] }
 0x1dc   :  { %6729 = vmatpush1.bf16.msra.mxu1 %v6728_v32  ;;  %v5214_v32 = vld [vmem:[%s13334_s1 + $0x22c8] sm:$0xff]  ;;  %v540_v19 = vld [vmem:[%s13334_s1 + $0xbf8] sm:$0xff] }
 0x1dd   :  { %6731 = vmatprep.subr.bf16.mxu1 %v6730_v34  ;;  %v6748_v34 = vpack.c.bf16 %v499_v28, %v495_v27  ;;  %v535_v27 = vld [vmem:[%s13334_s1 + $0xbd0] sm:$0xff] }
 0x1de   :  { %6857 = vmatpush1.bf16.msra.mxu0 %v6856_v33  ;;  %v5218_v33 = vld [vmem:[%s13334_s1 + $0x22e8] sm:$0xff]  ;;  %v539_v28 = vld [vmem:[%s13334_s1 + $0xbf0] sm:$0xff] }
 0x1df   :  { %6859 = vmatprep.subr.bf16.mxu0 %v6858_v39  ;;  %v507_v39 = vld [vmem:[%s13334_s1 + $0xaf0] sm:$0xff]  ;;  %v6878_v43 = vpack.c.bf16 %v5218_v33, %v5214_v32  ;;  %v544_v33 = vld [vmem:[%s13334_s1 + $0xc18] sm:$0xff]  ;;  %v6768_v41 = vpack.c.bf16 %v539_v28, %v535_v27  ;;  %v5269_v28 = vld [vmem:[%s13334_s1 + $0x2480] sm:$0xff] }
 0x1e0   :  { %6733 = vmatpush1.bf16.msra.mxu1 %v6732_v10  ;;  %v5222_v10 = vld [vmem:[%s13334_s1 + $0x2308] sm:$0xff]  ;;  %v563_v27 = vld [vmem:[%s13334_s1 + $0xcb0] sm:$0xff] }
 0x1e1   :  { %6735 = vmatprep.subr.bf16.mxu1 %v6734_v47  ;;  %v6752_v47 = vpack.c.bf16 %v507_v39, %v503_v36  ;;  %v5258_v36 = vld [vmem:[%s13334_s1 + $0x2428] sm:$0xff]  ;;  %v543_v39 = vld [vmem:[%s13334_s1 + $0xc10] sm:$0xff] }
 0x1e2   :  { %6861 = vmatpush1.bf16.msra.mxu0 %v6860_v46  ;;  %v5226_v46 = vld [vmem:[%s13334_s1 + $0x2328] sm:$0xff] }
 0x1e3   :  { %6863 = vmatprep.subr.bf16.mxu0 %v6862_v51  ;;  %v515_v51 = vld [vmem:[%s13334_s1 + $0xb30] sm:$0xff]  ;;  %v6882_v37 = vpack.c.bf16 %v5226_v46, %v5222_v10  ;;  %v6896_v10 = vpack.c.bf16 %v5249_v17, %v5245_v30  ;;  %v5273_v30 = vld [vmem:[%s13334_s1 + $0x24a0] sm:$0xff]  ;;  %v568_v17 = vld [vmem:[%s13334_s1 + $0xcd8] sm:$0xff] }
 0x1e4   :  { %6737 = vmatpush1.bf16.msra.mxu1 %v6736_v55  ;;  %v5230_v55 = vld [vmem:[%s13334_s1 + $0x2348] sm:$0xff] }
 0x1e5   :  { %6739 = vmatprep.subr.bf16.mxu1 %v6738_v42  ;;  %v6756_v42 = vpack.c.bf16 %v515_v51, %v511_v50  ;;  %v2568_v50 = vld [vmem:[#allocation2 + $0xc8] sm:$0x3] }
 0x1e6   :  { %6865 = vmatpush1.bf16.msra.mxu0 %v6864_v56  ;;  %v5234_v56 = vld [vmem:[%s13334_s1 + $0x2368] sm:$0xff] }
 0x1e7   :  { %6867 = vmatprep.subr.bf16.mxu0 %v6866_v62  ;;  %v523_v62 = vld [vmem:[%s13334_s1 + $0xb70] sm:$0xff]  ;;  %v6886_v1 = vpack.c.bf16 %v5234_v56, %v5230_v55  ;;  %v6900_v56 = vpack.c.bf16 %v5257_v45, %v5253_v3  ;;  %v5277_v3 = vld [vmem:[%s13334_s1 + $0x24c0] sm:$0xff] }
 0x1e8   :  { %6741 = vmatpush1.bf16.msra.mxu1 %v6740_v57  ;;  %v5238_v57 = vld [vmem:[%s13334_s1 + $0x2388] sm:$0xff] }
 0x1e9   :  { %6743 = vmatprep.subr.bf16.mxu1 %v6742_v63  ;;  %v6760_v63 = vpack.c.bf16 %v523_v62, %v519_v60  ;;  %v2636_v62 = vrot.slane %v2568_v50, 2  ;;  %v5290_v50 = vld [vmem:[%s13334_s1 + $0x2528] sm:$0xff] }
 0x1ea   :  { %6869 = vmatpush1.bf16.msra.mxu0 %v6868_v4  ;;  %v5242_v4 = vld [vmem:[%s13334_s1 + $0x23a8] sm:$0xff] }
 0x1eb   :  { %6871 = vmatprep.subr.bf16.mxu0 %v6870_v11  ;;  %v531_v11 = vld [vmem:[%s13334_s1 + $0xbb0] sm:$0xff]  ;;  %v6890_v13 = vpack.c.bf16 %v5242_v4, %v5238_v57  ;;  %v2554_v57 = vld [vmem:[#allocation2 + $0x58] sm:$0x3]  ;;  %v6902_v4 = vpack.c.bf16 %v5266_v26, %v5262_v40  ;;  %v5285_v26 = vld [vmem:[%s13334_s1 + $0x2500] sm:$0xff] }
 0x1ec   :  { %6745 = vmatpush1.bf16.msra.mxu1 %v6744_v20  ;;  %v5246_v20 = vld [vmem:[%s13334_s1 + $0x23c8] sm:$0xff]  ;;  %v579_v40 = vld [vmem:[%s13334_s1 + $0xd30] sm:$0xff] }
 0x1ed   :  { %6747 = vmatprep.subr.bf16.mxu1 %v6746_v25  ;;  %v6764_v25 = vpack.c.bf16 %v531_v11, %v527_v8  ;;  %v7692_v8 = vld [vmem:[#allocation2 + $0x20] sm:$0xff]  ;;  %v5270_v11 = vld [vmem:[%s13334_s1 + $0x2488] sm:$0xff] }
 0x1ee   :  { %6873 = vmatpush1.bf16.msra.mxu0 %v6872_v23  ;;  %v5250_v23 = vld [vmem:[%s13334_s1 + $0x23e8] sm:$0xff] }
 0x1ef   :  { %6875 = vmatprep.subr.bf16.mxu0 %v6874_v38  ;;  %v6766_v38 = vpack.c.bf16 %v540_v19, %v536_v15  ;;  %v6894_v32 = vpack.c.bf16 %v5250_v23, %v5246_v20  ;;  %v2617_v15 = vrot.slane %v2546_v7, 2  ;;  %v2618_v19 = vrot.slane %v2554_v57, 2  ;;  %v587_v7 = vld [vmem:[%s13334_s1 + $0xd70] sm:$0xff]  ;;  %v5293_v57 = vld [vmem:[%s13334_s1 + $0x2540] sm:$0xff] }
 0x1f0   :  { %6749 = vmatpush1.bf16.msra.mxu1 %v6748_v34  ;;  %v548_v34 = vld [vmem:[%s13334_s1 + $0xc38] sm:$0xff] }
 0x1f1   :  { %6751 = vmatprep.subr.bf16.mxu1 %v6750_v35  ;;  %v5254_v35 = vld [vmem:[%s13334_s1 + $0x2408] sm:$0xff]  ;;  %v6770_v46 = vpack.c.bf16 %v548_v34, %v544_v33 }
 0x1f2   :  { %6877 = vmatpush1.bf16.msra.mxu0 %v6876_v5  ;;  %v2551_v5 = vld [vmem:[#allocation2 + $0x40] sm:$0x3]  ;;  %v6898_v51 = vpack.c.bf16 %v5258_v36, %v5254_v35  ;;  %v5278_v33 = vld [vmem:[%s13334_s1 + $0x24c8] sm:$0xff]  ;;  %v11075_v36 = vsel %vm2607_vm1, %v2617_v15, %v2618_v19  ;;  %v591_v19 = vld [vmem:[%s13334_s1 + $0xd90] sm:$0xff] }
 0x1f3   :  { %6879 = vmatprep.subr.bf16.mxu0 %v6878_v43  ;;  %v547_v43 = vld [vmem:[%s13334_s1 + $0xc30] sm:$0xff]  ;;  %v5282_v34 = vld [vmem:[%s13334_s1 + $0x24e8] sm:$0xff] }
 0x1f4   :  { %6753 = vmatpush1.bf16.msra.mxu1 %v6752_v47  ;;  %v2609_v47 = vrot.slane %v2551_v5, 2  ;;  %v6772_v55 = vpack.c.bf16 %v547_v43, %v543_v39  ;;  %v7694_v5 = vld [vmem:[#allocation2 + $0xa0] sm:$0xff]  ;;  %v6908_v39 = vpack.c.bf16 %v5273_v30, %v5269_v28  ;;  %v567_v43 = vld [vmem:[%s13334_s1 + $0xcd0] sm:$0xff]  ;;  %v6910_v45 = vpack.c.bf16 %v5282_v34, %v5278_v33  ;;  %v600_v28 = vld [vmem:[%s13334_s1 + $0xdd8] sm:$0xff] }
 0x1f5   :  { %6755 = vmatprep.subr.bf16.mxu1 %v6754_v49  ;;  %v2560_v49 = vld [vmem:[#allocation2 + $0x88] sm:$0xfc]  ;;  %v599_v34 = vld [vmem:[%s13334_s1 + $0xdd0] sm:$0xff] }
 0x1f6   :  { %6881 = vmatpush1.bf16.msra.mxu0 %v6880_v48  ;;  %v552_v48 = vld [vmem:[%s13334_s1 + $0xc58] sm:$0xff]  ;;  %v2635_v60 = vrot.slane %v2560_v49, 2  ;;  %v11024_v0 = vsel %vm2607_vm1, %v2608_v44, %v2609_v47  ;;  %v571_v44 = vld [vmem:[%s13334_s1 + $0xcf0] sm:$0xff]  ;;  %v5286_v49 = vld [vmem:[%s13334_s1 + $0x2508] sm:$0xff] }
 0x1f7   :  { %6883 = vmatprep.subr.bf16.mxu0 %v6882_v37  ;;  %v2559_v37 = vld [vmem:[#allocation2 + $0x80] sm:$0xfc]  ;;  %v580_v47 = vld [vmem:[%s13334_s1 + $0xd38] sm:$0xff]  ;;  %v5310_v30 = vld [vmem:[%s13334_s1 + $0x25c8] sm:$0xff] }
 0x1f8   :  { %6757 = vmatpush1.bf16.msra.mxu1 %v6756_v42  ;;  %v551_v42 = vld [vmem:[%s13334_s1 + $0xc50] sm:$0xff]  ;;  %v2632_v61 = vrot.slane %v2559_v37, 2  ;;  %v11043_v9 = vsel %vm2607_vm1, %v2635_v60, %v2636_v62  ;;  %v5298_v60 = vld [vmem:[%s13334_s1 + $0x2568] sm:$0xff]  ;;  %v6788_v62 = vpack.c.bf16 %v579_v40, %v575_v54  ;;  %v620_v54 = vld [vmem:[%s13334_s1 + $0xe78] sm:$0xff] }
 0x1f9   :  { %6759 = vmatprep.subr.bf16.mxu1 %v6758_v59  ;;  %v5261_v59 = vld [vmem:[%s13334_s1 + $0x2440] sm:$0xff]  ;;  %v5326_v40 = vld [vmem:[%s13334_s1 + $0x2648] sm:$0xff] }
 0x1fa   :  { %6885 = vmatpush1.bf16.msra.mxu0 %v6884_v58  ;;  %v555_v58 = vld [vmem:[%s13334_s1 + $0xc70] sm:$0xff] }
 0x1fb   :  { %6887 = vmatprep.subr.bf16.mxu0 %v6886_v1  ;;  %v6774_v1 = vpack.c.bf16 %v556_v52, %v552_v48  ;;  %v7695_v48 = vld [vmem:[#allocation2 + $0x38] sm:$0xff] }
 0x1fc   :  { %6761 = vmatpush1.bf16.msra.mxu1 %v6760_v63  ;;  %v5265_v63 = vld [vmem:[%s13334_s1 + $0x2460] sm:$0xff] }
 0x1fd   :  { %6763 = vmatprep.subr.bf16.mxu1 %v6762_v16  ;;  %v564_v16 = vld [vmem:[%s13334_s1 + $0xcb8] sm:$0xff]  ;;  %v6904_v20 = vpack.c.bf16 %v5265_v63, %v5261_v59  ;;  %v5294_v59 = vld [vmem:[%s13334_s1 + $0x2548] sm:$0xff]  ;;  %v5297_v63 = vld [vmem:[%s13334_s1 + $0x2560] sm:$0xff] }
 0x1fe   :  { %6889 = vmatpush1.bf16.msra.mxu0 %v6888_v6  ;;  %v560_v6 = vld [vmem:[%s13334_s1 + $0xc98] sm:$0xff] }
 0x1ff   :  { %6891 = vmatprep.subr.bf16.mxu0 %v6890_v13  ;;  %v6776_v13 = vpack.c.bf16 %v555_v58, %v551_v42  ;;  %v6778_v23 = vpack.c.bf16 %v564_v16, %v560_v6  ;;  %v584_v42 = vld [vmem:[%s13334_s1 + $0xd58] sm:$0xff] }
 0x200   :  { %6765 = vmatpush1.bf16.msra.mxu1 %v6764_v25  ;;  %v559_v25 = vld [vmem:[%s13334_s1 + $0xc90] sm:$0xff]  ;;  %v588_v58 = vld [vmem:[%s13334_s1 + $0xd78] sm:$0xff] }
 0x201   :  { %6767 = vmatprep.subr.bf16.mxu1 %v6766_v38  ;;  %v6906_v38 = vpack.c.bf16 %v5274_v12, %v5270_v11  ;;  %v6780_v35 = vpack.c.bf16 %v563_v27, %v559_v25  ;;  %v592_v6 = vld [vmem:[%s13334_s1 + $0xd98] sm:$0xff]  ;;  %v5306_v11 = vld [vmem:[%s13334_s1 + $0x25a8] sm:$0xff]  ;;  %v5305_v27 = vld [vmem:[%s13334_s1 + $0x25a0] sm:$0xff] }
 0x202   :  { %6893 = vmatpush1.bf16.msra.mxu0 %v6892_v29  ;;  %v11055_v29 = vsel %vm2607_vm1, %v2632_v61, %v2633_v2  ;;  %v6790_v61 = vpack.c.bf16 %v588_v58, %v584_v42  ;;  %v583_v2 = vld [vmem:[%s13334_s1 + $0xd50] sm:$0xff]  ;;  %v596_v16 = vld [vmem:[%s13334_s1 + $0xdb8] sm:$0xff] }
 0x203   :  { %6895 = vmatprep.subr.bf16.mxu0 %v6894_v32  ;;  %v7693_v32 = vld [vmem:[#allocation2 + $0xa8] sm:$0xff]  ;;  %v6792_v12 = vpack.c.bf16 %v587_v7, %v583_v2  ;;  %v6794_v15 = vpack.c.bf16 %v596_v16, %v592_v6  ;;  %v615_v58 = vld [vmem:[%s13334_s1 + $0xe50] sm:$0xff]  ;;  %v628_v2 = vld [vmem:[%s13334_s1 + $0xeb8] sm:$0xff] }
 0x204   :  { %6769 = vmatpush1.bf16.msra.mxu1 %v6768_v41  ;;  %v6782_v41 = vpack.c.bf16 %v572_v31, %v568_v17  ;;  %v5314_v17 = vld [vmem:[%s13334_s1 + $0x25e8] sm:$0xff]  ;;  %v623_v16 = vld [vmem:[%s13334_s1 + $0xe90] sm:$0xff] }
 0x205   :  { %6771 = vmatprep.subr.bf16.mxu1 %v6770_v46  ;;  %v576_v46 = vld [vmem:[%s13334_s1 + $0xd18] sm:$0xff]  ;;  %v5334_v7 = vld [vmem:[%s13334_s1 + $0x2688] sm:$0xff] }
 0x206   :  { %6897 = vmatpush1.bf16.msra.mxu0 %v6896_v10  ;;  %v5281_v10 = vld [vmem:[%s13334_s1 + $0x24e0] sm:$0xff]  ;;  %v6786_v37 = vpack.c.bf16 %v580_v47, %v576_v46 }
 0x207   :  { %6899 = vmatprep.subr.bf16.mxu0 %v6898_v51  ;;  %2454 = vmatmul.mubr.f32.vlgmr.msra.gmra.mrb[4].mxu1 %v7692_v8  ;;  %v6784_v51 = vpack.c.bf16 %v571_v44, %v567_v43  ;;  %v6912_v52 = vpack.c.bf16 %v5281_v10, %v5277_v3  ;;  %v5302_v8 = vld [vmem:[%s13334_s1 + $0x2588] sm:$0xff]  ;;  %v608_v43 = vld [vmem:[%s13334_s1 + $0xe18] sm:$0xff] }
 0x208   :  { %6773 = vmatpush1.bf16.msra.mxu1 %v6772_v55  ;;  %2459 = vmatprep.mubr.f32.mxu1 %v7693_v32  ;;  %v6914_v55 = vpack.c.bf16 %v5290_v50, %v5286_v49  ;;  %v6922_v25 = vpack.c.bf16 %v5306_v11, %v5302_v8  ;;  %v612_v44 = vld [vmem:[%s13334_s1 + $0xe38] sm:$0xff]  ;;  %v5318_v3 = vld [vmem:[%s13334_s1 + $0x2608] sm:$0xff]  ;;  %v611_v49 = vld [vmem:[%s13334_s1 + $0xe30] sm:$0xff] }
 0x209   :  { %3250 = vmatmul.mubr.f32.vlgmr.msra.gmra.mrb[0].mxu0 %v11024_v0  ;;  %6775 = vmatprep.subr.bf16.mxu1 %v6774_v1  ;;  %v6802_v47 = vpack.c.bf16 %v612_v44, %v608_v43  ;;  %v5317_v50 = vld [vmem:[%s13334_s1 + $0x2600] sm:$0xff]  ;;  %v627_v8 = vld [vmem:[%s13334_s1 + $0xeb0] sm:$0xff] }
 0x20a   :  { %6901 = vmatpush1.bf16.msra.mxu0 %v6900_v56  ;;  %3255 = vmatprep.mubr.f32.mxu0 %v11043_v9  ;;  %v5289_v56 = vld [vmem:[%s13334_s1 + $0x2520] sm:$0xff]  ;;  %v639_v44 = vld [vmem:[%s13334_s1 + $0xf10] sm:$0xff] }
 0x20b   :  { %6903 = vmatprep.subr.bf16.mxu0 %v6902_v4  ;;  %2460 = vmatmul.mubr.f32.gmra.mrb[6].mxu1 %v7694_v5  ;;  %v6916_v1 = vpack.c.bf16 %v5289_v56, %v5285_v26  ;;  %v6918_v4 = vpack.c.bf16 %v5298_v60, %v5294_v59  ;;  %v603_v5 = vld [vmem:[%s13334_s1 + $0xdf0] sm:$0xff]  ;;  %v5330_v26 = vld [vmem:[%s13334_s1 + $0x2668] sm:$0xff]  ;;  %v5325_v60 = vld [vmem:[%s13334_s1 + $0x2640] sm:$0xff] }
 0x20c   :  { %6777 = vmatpush1.bf16.msra.mxu1 %v6776_v13  ;;  %2530 = vmatprep.mubr.f32.mxu1 %v7695_v48  ;;  %v6920_v13 = vpack.c.bf16 %v5297_v63, %v5293_v57  ;;  %v6800_v10 = vpack.c.bf16 %v603_v5, %v599_v34  ;;  %v607_v48 = vld [vmem:[%s13334_s1 + $0xe10] sm:$0xff]  ;;  %v5338_v57 = vld [vmem:[%s13334_s1 + $0x26a8] sm:$0xff]  ;;  %v5333_v11 = vld [vmem:[%s13334_s1 + $0x2680] sm:$0xff] }
 0x20d   :  { %3256 = vmatmul.mubr.f32.gmra.mrb[2].mxu0 %v11055_v29  ;;  %6779 = vmatprep.subr.bf16.mxu1 %v6778_v23  ;;  %v5301_v23 = vld [vmem:[%s13334_s1 + $0x2580] sm:$0xff]  ;;  %v619_v59 = vld [vmem:[%s13334_s1 + $0xe70] sm:$0xff]  ;;  %v644_v34 = vld [vmem:[%s13334_s1 + $0xf38] sm:$0xff] }
 0x20e   :  { %6905 = vmatpush1.bf16.msra.mxu0 %v6904_v20  ;;  %3326 = vmatprep.mubr.f32.mxu0 %v11075_v36  ;;  %v595_v20 = vld [vmem:[%s13334_s1 + $0xdb0] sm:$0xff]  ;;  %v6924_v32 = vpack.c.bf16 %v5305_v27, %v5301_v23  ;;  %v5346_v23 = vld [vmem:[%s13334_s1 + $0x26e8] sm:$0xff] }
 0x20f   :  { %6907 = vmatprep.subr.bf16.mxu0 %v6906_v38  ;;  %v604_v38 = vld [vmem:[%s13334_s1 + $0xdf8] sm:$0xff]  ;;  %v6796_v31 = vpack.c.bf16 %v595_v20, %v591_v19  ;;  %v5342_v20 = vld [vmem:[%s13334_s1 + $0x26c8] sm:$0xff] }
 0x210   :  { %6781 = vmatpush1.bf16.msra.mxu1 %v6780_v35  ;;  %v6798_v33 = vpack.c.bf16 %v604_v38, %v600_v28  ;;  %v5309_v35 = vld [vmem:[%s13334_s1 + $0x25c0] sm:$0xff]  ;;  %v636_v19 = vld [vmem:[%s13334_s1 + $0xef8] sm:$0xff]  ;;  %v631_v38 = vld [vmem:[%s13334_s1 + $0xed0] sm:$0xff] }
 0x211   :  { %6783 = vmatprep.subr.bf16.mxu1 %v6782_v41  ;;  %v5313_v41 = vld [vmem:[%s13334_s1 + $0x25e0] sm:$0xff]  ;;  %v5350_v5 = vld [vmem:[%s13334_s1 + $0x2708] sm:$0xff] }
 0x212   :  { %6909 = vmatpush1.bf16.msra.mxu0 %v6908_v39  ;;  %v6926_v39 = vpack.c.bf16 %v5314_v17, %v5310_v30  ;;  %v6928_v46 = vpack.c.bf16 %v5313_v41, %v5309_v35  ;;  %v635_v30 = vld [vmem:[%s13334_s1 + $0xef0] sm:$0xff]  ;;  %v5341_v17 = vld [vmem:[%s13334_s1 + $0x26c0] sm:$0xff]  ;;  %v5354_v35 = vld [vmem:[%s13334_s1 + $0x2728] sm:$0xff] }
 0x213   :  { %6911 = vmatprep.subr.bf16.mxu0 %v6910_v45  ;;  %v5322_v45 = vld [vmem:[%s13334_s1 + $0x2628] sm:$0xff] }
 0x214   :  { %6785 = vmatpush1.bf16.msra.mxu1 %v6784_v51  ;;  %v6930_v51 = vpack.c.bf16 %v5322_v45, %v5318_v3  ;;  %v643_v3 = vld [vmem:[%s13334_s1 + $0xf30] sm:$0xff]  ;;  %v5349_v45 = vld [vmem:[%s13334_s1 + $0x2700] sm:$0xff] }
 0x215   :  { %6787 = vmatprep.subr.bf16.mxu1 %v6786_v37  ;;  %v616_v37 = vld [vmem:[%s13334_s1 + $0xe58] sm:$0xff] }
 0x216   :  { %6913 = vmatpush1.bf16.msra.mxu0 %v6912_v52  ;;  %v5321_v52 = vld [vmem:[%s13334_s1 + $0x2620] sm:$0xff]  ;;  %v6806_v42 = vpack.c.bf16 %v620_v54, %v616_v37  ;;  %v647_v54 = vld [vmem:[%s13334_s1 + $0xf50] sm:$0xff] }
 0x217   :  { %6915 = vmatprep.subr.bf16.mxu0 %v6914_v55  ;;  %v6804_v55 = vpack.c.bf16 %v611_v49, %v607_v48  ;;  %v6932_v56 = vpack.c.bf16 %v5321_v52, %v5317_v50  ;;  %v652_v48 = vld [vmem:[%s13334_s1 + $0xf78] sm:$0xff]  ;;  %v5358_v49 = vld [vmem:[%s13334_s1 + $0x2748] sm:$0xff] }
 0x218   :  { %6789 = vmatpush1.bf16.msra.mxu1 %v6788_v62  ;;  %v6934_v62 = vpack.c.bf16 %v5330_v26, %v5326_v40  ;;  %v5362_v50 = vld [vmem:[%s13334_s1 + $0x2768] sm:$0xff]  ;;  %v651_v40 = vld [vmem:[%s13334_s1 + $0xf70] sm:$0xff]  ;;  %v5357_v26 = vld [vmem:[%s13334_s1 + $0x2740] sm:$0xff] }
 0x219   :  { %6791 = vmatprep.subr.bf16.mxu1 %v6790_v61  ;;  %v624_v61 = vld [vmem:[%s13334_s1 + $0xe98] sm:$0xff] }
 0x21a   :  { %6917 = vmatpush1.bf16.msra.mxu0 %v6916_v1  ;;  %v5329_v1 = vld [vmem:[%s13334_s1 + $0x2660] sm:$0xff]  ;;  %v6810_v6 = vpack.c.bf16 %v628_v2, %v624_v61  ;;  %v655_v2 = vld [vmem:[%s13334_s1 + $0xf90] sm:$0xff] }
 0x21b   :  { %6919 = vmatprep.subr.bf16.mxu0 %v6918_v4  ;;  %v6808_v4 = vpack.c.bf16 %v619_v59, %v615_v58  ;;  %v6936_v63 = vpack.c.bf16 %v5329_v1, %v5325_v60  ;;  %v660_v58 = vld [vmem:[%s13334_s1 + $0xfb8] sm:$0xff]  ;;  %v5366_v59 = vld [vmem:[%s13334_s1 + $0x2788] sm:$0xff] }
 0x21c   :  { %6793 = vmatpush1.bf16.msra.mxu1 %v6792_v12  ;;  %v6938_v12 = vpack.c.bf16 %v5338_v57, %v5334_v7  ;;  %v5370_v60 = vld [vmem:[%s13334_s1 + $0x27a8] sm:$0xff]  ;;  %v659_v7 = vld [vmem:[%s13334_s1 + $0xfb0] sm:$0xff]  ;;  %v5365_v57 = vld [vmem:[%s13334_s1 + $0x2780] sm:$0xff] }
 0x21d   :  { %6795 = vmatprep.subr.bf16.mxu1 %v6794_v15  ;;  %v632_v15 = vld [vmem:[%s13334_s1 + $0xed8] sm:$0xff] }
 0x21e   :  { %6921 = vmatpush1.bf16.msra.mxu0 %v6920_v13  ;;  %v5337_v13 = vld [vmem:[%s13334_s1 + $0x26a0] sm:$0xff]  ;;  %v6814_v28 = vpack.c.bf16 %v636_v19, %v632_v15  ;;  %v667_v15 = vld [vmem:[%s13334_s1 + $0xff0] sm:$0xff] }
 0x21f   :  { %6923 = vmatprep.subr.bf16.mxu0 %v6922_v25  ;;  %v6812_v25 = vpack.c.bf16 %v627_v8, %v623_v16  ;;  %v6940_v27 = vpack.c.bf16 %v5337_v13, %v5333_v11  ;;  %v668_v16 = vld [vmem:[%s13334_s1 + $0xff8] sm:$0xff]  ;;  %v5374_v8 = vld [vmem:[%s13334_s1 + $0x27c8] sm:$0xff]  ;;  %v663_v13 = vld [vmem:[%s13334_s1 + $0xfd0] sm:$0xff] }
 0x220   :  { %6797 = vmatpush1.bf16.msra.mxu1 %v6796_v31  ;;  %v6942_v31 = vpack.c.bf16 %v5346_v23, %v5342_v20  ;;  %v5378_v11 = vld [vmem:[%s13334_s1 + $0x27e8] sm:$0xff]  ;;  %v5373_v23 = vld [vmem:[%s13334_s1 + $0x27c0] sm:$0xff] }
 0x221   :  { %6799 = vmatprep.subr.bf16.mxu1 %v6798_v33  ;;  %v640_v33 = vld [vmem:[%s13334_s1 + $0xf18] sm:$0xff] }
 0x222   :  { %6925 = vmatpush1.bf16.msra.mxu0 %v6924_v32  ;;  %v5345_v32 = vld [vmem:[%s13334_s1 + $0x26e0] sm:$0xff]  ;;  %v6818_v43 = vpack.c.bf16 %v644_v34, %v640_v33  ;;  %v6832_v34 = vpack.c.bf16 %v667_v15, %v663_v13 }
 0x223   :  { %6927 = vmatprep.subr.bf16.mxu0 %v6926_v39  ;;  %v6816_v39 = vpack.c.bf16 %v635_v30, %v631_v38  ;;  %v6944_v41 = vpack.c.bf16 %v5345_v32, %v5341_v17  ;;  %v5128_v38 = vld [vmem:[%s13334_s1 + $0x2018] sm:$0xff]  ;;  %v2553_v17 = vld [vmem:[#allocation2 + $0x50] sm:$0x3]  ;;  %v5386_v32 = vld [vmem:[%s13334_s1 + $0x2828] sm:$0xff] }
 0x224   :  { %6801 = vmatpush1.bf16.msra.mxu1 %v6800_v10  ;;  %v6946_v10 = vpack.c.bf16 %v5354_v35, %v5350_v5  ;;  %v5132_v30 = vld [vmem:[%s13334_s1 + $0x2038] sm:$0xff]  ;;  %v5381_v33 = vld [vmem:[%s13334_s1 + $0x2800] sm:$0xff] }
 0x225   :  { %6803 = vmatprep.subr.bf16.mxu1 %v6802_v47  ;;  %v648_v47 = vld [vmem:[%s13334_s1 + $0xf58] sm:$0xff]  ;;  %v5385_v35 = vld [vmem:[%s13334_s1 + $0x2820] sm:$0xff] }
 0x226   :  { %6929 = vmatpush1.bf16.msra.mxu0 %v6928_v46  ;;  %v5353_v46 = vld [vmem:[%s13334_s1 + $0x2720] sm:$0xff]  ;;  %v6822_v37 = vpack.c.bf16 %v652_v48, %v648_v47  ;;  %v5140_v48 = vld [vmem:[%s13334_s1 + $0x2078] sm:$0xff] }
 0x227   :  { %6931 = vmatprep.subr.bf16.mxu0 %v6930_v51  ;;  %v6820_v51 = vpack.c.bf16 %v643_v3, %v639_v44  ;;  %v6948_v52 = vpack.c.bf16 %v5353_v46, %v5349_v45  ;;  %v7090_v44 = vpack.c.bf16 %v5132_v30, %v5128_v38  ;;  %v2615_v3 = vrot.slane %v2553_v17, 2  ;;  %v5136_v45 = vld [vmem:[%s13334_s1 + $0x2058] sm:$0xff]  ;;  %v5401_v38 = vld [vmem:[%s13334_s1 + $0x28a0] sm:$0xff] }
 0x228   :  { %6805 = vmatpush1.bf16.msra.mxu1 %v6804_v55  ;;  %v6950_v55 = vpack.c.bf16 %v5362_v50, %v5358_v49  ;;  %v2570_v46 = vld [vmem:[#allocation2 + $0xd8] sm:$0x3]  ;;  %v2561_v49 = vld [vmem:[#allocation2 + $0x90] sm:$0xfc]  ;;  %v2569_v50 = vld [vmem:[#allocation2 + $0xd0] sm:$0x3] }
 0x229   :  { %6807 = vmatprep.subr.bf16.mxu1 %v6806_v42  ;;  %v656_v42 = vld [vmem:[%s13334_s1 + $0xf98] sm:$0xff] }
 0x22a   :  { %6933 = vmatpush1.bf16.msra.mxu0 %v6932_v56  ;;  %v5361_v56 = vld [vmem:[%s13334_s1 + $0x2760] sm:$0xff]  ;;  %v6826_v61 = vpack.c.bf16 %v660_v58, %v656_v42  ;;  %v7094_v58 = vpack.c.bf16 %v5140_v48, %v5136_v45  ;;  %v5152_v30 = vld [vmem:[%s13334_s1 + $0x20d8] sm:$0xff]  ;;  %v5414_v48 = vld [vmem:[%s13334_s1 + $0x2908] sm:$0xff] }
 0x22b   :  { %6935 = vmatprep.subr.bf16.mxu0 %v6934_v62  ;;  %v6824_v62 = vpack.c.bf16 %v651_v40, %v647_v54  ;;  %v6952_v1 = vpack.c.bf16 %v5361_v56, %v5357_v26  ;;  %v2642_v26 = vrot.slane %v2570_v46, 2  ;;  %v2556_v56 = vld [vmem:[#allocation2 + $0x68] sm:$0x3]  ;;  %v5156_v17 = vld [vmem:[%s13334_s1 + $0x20f8] sm:$0xff] }
 0x22c   :  { %6809 = vmatpush1.bf16.msra.mxu1 %v6808_v4  ;;  %v6954_v4 = vpack.c.bf16 %v5370_v60, %v5366_v59  ;;  %v5389_v59 = vld [vmem:[%s13334_s1 + $0x2840] sm:$0xff]  ;;  %v5135_v60 = vld [vmem:[%s13334_s1 + $0x2050] sm:$0xff]  ;;  %v5160_v46 = vld [vmem:[%s13334_s1 + $0x2118] sm:$0xff] }
 0x22d   :  { %6811 = vmatprep.subr.bf16.mxu1 %v6810_v6  ;;  %v664_v6 = vld [vmem:[%s13334_s1 + $0xfd8] sm:$0xff] }
 0x22e   :  { %6937 = vmatpush1.bf16.msra.mxu0 %v6936_v63  ;;  %v5369_v63 = vld [vmem:[%s13334_s1 + $0x27a0] sm:$0xff]  ;;  %v6830_v20 = vpack.c.bf16 %v668_v16, %v664_v6  ;;  %v5398_v6 = vld [vmem:[%s13334_s1 + $0x2888] sm:$0xff] }
 0x22f   :  { %6939 = vmatprep.subr.bf16.mxu0 %v6938_v12  ;;  %v6828_v12 = vpack.c.bf16 %v659_v7, %v655_v2  ;;  %v6956_v19 = vpack.c.bf16 %v5369_v63, %v5365_v57  ;;  %v5393_v7 = vld [vmem:[%s13334_s1 + $0x2860] sm:$0xff]  ;;  %v5144_v57 = vld [vmem:[%s13334_s1 + $0x2098] sm:$0xff]  ;;  %v7696_v63 = vld [vmem:[#allocation2 + $0x30] sm:$0xff] }
 0x230   :  { %6813 = vmatpush1.bf16.msra.mxu1 %v6812_v25  ;;  %v5377_v25 = vld [vmem:[%s13334_s1 + $0x27e0] sm:$0xff]  ;;  %v5402_v16 = vld [vmem:[%s13334_s1 + $0x28a8] sm:$0xff]  ;;  %v6968_v15 = vpack.c.bf16 %v5393_v7, %v5389_v59  ;;  %v5171_v7 = vld [vmem:[%s13334_s1 + $0x2170] sm:$0xff] }
 0x231   :  { %6815 = vmatprep.subr.bf16.mxu1 %v6814_v28  ;;  %v6958_v28 = vpack.c.bf16 %v5378_v11, %v5374_v8  ;;  %v2624_v11 = vrot.slane %v2556_v56, 2  ;;  %v5172_v56 = vld [vmem:[%s13334_s1 + $0x2178] sm:$0xff]  ;;  %v5426_v59 = vld [vmem:[%s13334_s1 + $0x2968] sm:$0xff] }
 0x232   :  { %6941 = vmatpush1.bf16.msra.mxu0 %v6940_v27  ;;  %v2545_v27 = vld [vmem:[#allocation2 + $0x10] sm:$0xfc] }
 0x233   :  { %6943 = vmatprep.subr.bf16.mxu0 %v6942_v31  ;;  %v5382_v31 = vld [vmem:[%s13334_s1 + $0x2808] sm:$0xff]  ;;  %v2614_v5 = vrot.slane %v2545_v27, 2 }
 0x234   :  { %6817 = vmatpush1.bf16.msra.mxu1 %v6816_v39  ;;  %v5127_v39 = vld [vmem:[%s13334_s1 + $0x2010] sm:$0xff]  ;;  %v6962_v47 = vpack.c.bf16 %v5386_v32, %v5382_v31  ;;  %v7697_v31 = vld [vmem:[#allocation2 + $0xb8] sm:$0xff]  ;;  %v5406_v32 = vld [vmem:[%s13334_s1 + $0x28c8] sm:$0xff] }
 0x235   :  { %6819 = vmatprep.subr.bf16.mxu1 %v6818_v43  ;;  %v6960_v43 = vpack.c.bf16 %v5377_v25, %v5373_v23  ;;  %v11415_v42 = vsel %vm2607_vm1, %v2614_v5, %v2615_v3  ;;  %v5143_v23 = vld [vmem:[%s13334_s1 + $0x2090] sm:$0xff] }
 0x236   :  { %6945 = vmatpush1.bf16.msra.mxu0 %v6944_v41  ;;  %v5131_v41 = vld [vmem:[%s13334_s1 + $0x2030] sm:$0xff] }
 0x237   :  { %6947 = vmatprep.subr.bf16.mxu0 %v6946_v10  ;;  %v2562_v10 = vld [vmem:[#allocation2 + $0x98] sm:$0xfc]  ;;  %v7092_v54 = vpack.c.bf16 %v5131_v41, %v5127_v39  ;;  %v5147_v25 = vld [vmem:[%s13334_s1 + $0x20b0] sm:$0xff]  ;;  %v7102_v41 = vpack.c.bf16 %v5156_v17, %v5152_v30  ;;  %v5438_v17 = vld [vmem:[%s13334_s1 + $0x29c8] sm:$0xff] }
 0x238   :  { %6821 = vmatpush1.bf16.msra.mxu1 %v6820_v51  ;;  %v5390_v51 = vld [vmem:[%s13334_s1 + $0x2848] sm:$0xff]  ;;  %v2641_v40 = vrot.slane %v2562_v10, 2  ;;  %v5155_v3 = vld [vmem:[%s13334_s1 + $0x20f0] sm:$0xff]  ;;  %v5409_v10 = vld [vmem:[%s13334_s1 + $0x28e0] sm:$0xff] }
 0x239   :  { %6823 = vmatprep.subr.bf16.mxu1 %v6822_v37  ;;  %v6964_v37 = vpack.c.bf16 %v5385_v35, %v5381_v33  ;;  %v5410_v33 = vld [vmem:[%s13334_s1 + $0x28e8] sm:$0xff]  ;;  %v7100_v35 = vpack.c.bf16 %v5147_v25, %v5143_v23  ;;  %v5179_v23 = vld [vmem:[%s13334_s1 + $0x21b0] sm:$0xff]  ;;  %v5188_v30 = vld [vmem:[%s13334_s1 + $0x21f8] sm:$0xff] }
 0x23a   :  { %6949 = vmatpush1.bf16.msra.mxu0 %v6948_v52  ;;  %v5394_v52 = vld [vmem:[%s13334_s1 + $0x2868] sm:$0xff]  ;;  %v11443_v13 = vsel %vm2607_vm1, %v2641_v40, %v2642_v26  ;;  %v6974_v45 = vpack.c.bf16 %v5410_v33, %v5406_v32  ;;  %v5163_v40 = vld [vmem:[%s13334_s1 + $0x2130] sm:$0xff]  ;;  %v5417_v26 = vld [vmem:[%s13334_s1 + $0x2920] sm:$0xff] }
 0x23b   :  { %6951 = vmatprep.subr.bf16.mxu0 %v6950_v55  ;;  %v2548_v55 = vld [vmem:[#allocation2 + $0x28] sm:$0xfc]  ;;  %v6966_v2 = vpack.c.bf16 %v5394_v52, %v5390_v51 }
 0x23c   :  { %6825 = vmatpush1.bf16.msra.mxu1 %v6824_v62  ;;  %v5139_v62 = vld [vmem:[%s13334_s1 + $0x2070] sm:$0xff]  ;;  %v2623_v8 = vrot.slane %v2548_v55, 2  ;;  %v5168_v55 = vld [vmem:[%s13334_s1 + $0x2158] sm:$0xff] }
 0x23d   :  { %6827 = vmatprep.subr.bf16.mxu1 %v6826_v61  ;;  %v2639_v61 = vrot.slane %v2569_v50, 2 }
 0x23e   :  { %6953 = vmatpush1.bf16.msra.mxu0 %v6952_v1  ;;  %v2638_v1 = vrot.slane %v2561_v49, 2  ;;  %v11474_v5 = vsel %vm2607_vm1, %v2623_v8, %v2624_v11  ;;  %v5418_v49 = vld [vmem:[%s13334_s1 + $0x2928] sm:$0xff] }
 0x23f   :  { %6955 = vmatprep.subr.bf16.mxu0 %v6954_v4  ;;  %v5148_v4 = vld [vmem:[%s13334_s1 + $0x20b8] sm:$0xff]  ;;  %v5434_v8 = vld [vmem:[%s13334_s1 + $0x29a8] sm:$0xff] }
 0x240   :  { %6829 = vmatpush1.bf16.msra.mxu1 %v6828_v12  ;;  %v7096_v12 = vpack.c.bf16 %v5139_v62, %v5135_v60  ;;  %v11455_v27 = vsel %vm2607_vm1, %v2638_v1, %v2639_v61  ;;  %v7110_v1 = vpack.c.bf16 %v5172_v56, %v5168_v55  ;;  %v5421_v61 = vld [vmem:[%s13334_s1 + $0x2940] sm:$0xff]  ;;  %v5458_v55 = vld [vmem:[%s13334_s1 + $0x2a68] sm:$0xff] }
 0x241   :  { %6831 = vmatprep.subr.bf16.mxu1 %v6830_v20  ;;  %v5397_v20 = vld [vmem:[%s13334_s1 + $0x2880] sm:$0xff] }
 0x242   :  { %6957 = vmatpush1.bf16.msra.mxu0 %v6956_v19  ;;  %v7098_v19 = vpack.c.bf16 %v5148_v4, %v5144_v57  ;;  %v6972_v39 = vpack.c.bf16 %v5401_v38, %v5397_v20  ;;  %v5425_v4 = vld [vmem:[%s13334_s1 + $0x2960] sm:$0xff]  ;;  %v5175_v20 = vld [vmem:[%s13334_s1 + $0x2190] sm:$0xff]  ;;  %v5184_v38 = vld [vmem:[%s13334_s1 + $0x21d8] sm:$0xff] }
 0x243   :  { %6959 = vmatprep.subr.bf16.mxu0 %v6958_v28  ;;  %v6970_v28 = vpack.c.bf16 %v5402_v16, %v5398_v6  ;;  %v5180_v6 = vld [vmem:[%s13334_s1 + $0x21b8] sm:$0xff]  ;;  %v5430_v16 = vld [vmem:[%s13334_s1 + $0x2988] sm:$0xff]  ;;  %v7116_v32 = vpack.c.bf16 %v5179_v23, %v5175_v20  ;;  %v5465_v20 = vld [vmem:[%s13334_s1 + $0x2aa0] sm:$0xff] }
 0x244   :  { %6833 = vmatpush1.bf16.msra.mxu1 %v6832_v34  ;;  %v7698_v34 = vld [vmem:[#allocation2 + $0xb0] sm:$0xff]  ;;  %v6986_v25 = vpack.c.bf16 %v5434_v8, %v5430_v16  ;;  %v5216_v23 = vld [vmem:[%s13334_s1 + $0x22d8] sm:$0xff] }
 0x245   :  { %7091 = vmatprep.subr.bf16.mxu1 %v7090_v44  ;;  %v5151_v44 = vld [vmem:[%s13334_s1 + $0x20d0] sm:$0xff] }
 0x246   :  { %6961 = vmatpush1.bf16.msra.mxu0 %v6960_v43  ;;  %v5405_v43 = vld [vmem:[%s13334_s1 + $0x28c0] sm:$0xff]  ;;  %v7104_v50 = vpack.c.bf16 %v5155_v3, %v5151_v44  ;;  %v5192_v3 = vld [vmem:[%s13334_s1 + $0x2218] sm:$0xff] }
 0x247   :  { %6963 = vmatprep.subr.bf16.mxu0 %v6962_v47  ;;  %2531 = vmatmul.mubr.f32.vlgmr.msra.gmra.mrb[4].mxu1 %v7696_v63  ;;  %v5164_v47 = vld [vmem:[%s13334_s1 + $0x2138] sm:$0xff]  ;;  %v6976_v51 = vpack.c.bf16 %v5409_v10, %v5405_v43  ;;  %v5441_v44 = vld [vmem:[%s13334_s1 + $0x29e0] sm:$0xff]  ;;  %v5446_v10 = vld [vmem:[%s13334_s1 + $0x2a08] sm:$0xff] }
 0x248   :  { %7093 = vmatpush1.bf16.msra.mxu1 %v7092_v54  ;;  %2536 = vmatprep.mubr.f32.mxu1 %v7697_v31  ;;  %v7106_v52 = vpack.c.bf16 %v5164_v47, %v5160_v46  ;;  %v5159_v54 = vld [vmem:[%s13334_s1 + $0x2110] sm:$0xff]  ;;  %v5176_v63 = vld [vmem:[%s13334_s1 + $0x2198] sm:$0xff]  ;;  %v5442_v31 = vld [vmem:[%s13334_s1 + $0x29e8] sm:$0xff] }
 0x249   :  { %3327 = vmatmul.mubr.f32.vlgmr.msra.gmra.mrb[0].mxu0 %v11415_v42  ;;  %7095 = vmatprep.subr.bf16.mxu1 %v7094_v58  ;;  %v5422_v58 = vld [vmem:[%s13334_s1 + $0x2948] sm:$0xff]  ;;  %v7108_v60 = vpack.c.bf16 %v5163_v40, %v5159_v54  ;;  %v6990_v43 = vpack.c.bf16 %v5442_v31, %v5438_v17  ;;  %v5449_v54 = vld [vmem:[%s13334_s1 + $0x2a20] sm:$0xff]  ;;  %v5200_v40 = vld [vmem:[%s13334_s1 + $0x2258] sm:$0xff] }
 0x24a   :  { %6965 = vmatpush1.bf16.msra.mxu0 %v6964_v37  ;;  %3332 = vmatprep.mubr.f32.mxu0 %v11443_v13  ;;  %v5413_v37 = vld [vmem:[%s13334_s1 + $0x2900] sm:$0xff]  ;;  %v6982_v57 = vpack.c.bf16 %v5426_v59, %v5422_v58  ;;  %v5450_v46 = vld [vmem:[%s13334_s1 + $0x2a28] sm:$0xff] }
 0x24b   :  { %6967 = vmatprep.subr.bf16.mxu0 %v6966_v2  ;;  %2537 = vmatmul.mubr.f32.gmra.mrb[6].mxu1 %v7698_v34  ;;  %v6980_v62 = vpack.c.bf16 %v5417_v26, %v5413_v37  ;;  %v5167_v2 = vld [vmem:[%s13334_s1 + $0x2150] sm:$0xff]  ;;  %v7118_v34 = vpack.c.bf16 %v5188_v30, %v5184_v38  ;;  %v6994_v37 = vpack.c.bf16 %v5450_v46, %v5446_v10  ;;  %v5454_v26 = vld [vmem:[%s13334_s1 + $0x2a48] sm:$0xff] }
 0x24c   :  { %7097 = vmatpush1.bf16.msra.mxu1 %v7096_v12  ;;  %3557 = vmatprep.mubr.f32.mxu1 %v10675_v53  ;;  %v6978_v53 = vpack.c.bf16 %v5418_v49, %v5414_v48  ;;  %v7112_v11 = vpack.c.bf16 %v5171_v7, %v5167_v2  ;;  %v6984_v12 = vpack.c.bf16 %v5425_v4, %v5421_v61  ;;  %v5457_v2 = vld [vmem:[%s13334_s1 + $0x2a60] sm:$0xff]  ;;  %v5208_v7 = vld [vmem:[%s13334_s1 + $0x2298] sm:$0xff]  ;;  %v5462_v4 = vld [vmem:[%s13334_s1 + $0x2a88] sm:$0xff] }
 0x24d   :  { %3333 = vmatmul.mubr.f32.gmra.mrb[2].mxu0 %v11455_v27  ;;  %7099 = vmatprep.subr.bf16.mxu1 %v7098_v19  ;;  %v5429_v19 = vld [vmem:[%s13334_s1 + $0x2980] sm:$0xff]  ;;  %v6998_v61 = vpack.c.bf16 %v5458_v55, %v5454_v26  ;;  %v5474_v38 = vld [vmem:[%s13334_s1 + $0x2ae8] sm:$0xff] }
 0x24e   :  { %6969 = vmatpush1.bf16.msra.mxu0 %v6968_v15  ;;  %3403 = vmatprep.mubr.f32.mxu0 %v11474_v5  ;;  %v7114_v15 = vpack.c.bf16 %v5180_v6, %v5176_v63  ;;  %v5466_v63 = vld [vmem:[%s13334_s1 + $0x2aa8] sm:$0xff] }
 0x24f   :  { %6971 = vmatprep.subr.bf16.mxu0 %v6970_v28  ;;  %v5433_v28 = vld [vmem:[%s13334_s1 + $0x29a0] sm:$0xff] }
 0x250   :  { %7101 = vmatpush1.bf16.msra.mxu1 %v7100_v35  ;;  %v6988_v33 = vpack.c.bf16 %v5433_v28, %v5429_v19  ;;  %v5437_v35 = vld [vmem:[%s13334_s1 + $0x29c0] sm:$0xff]  ;;  %v7002_v19 = vpack.c.bf16 %v5466_v63, %v5462_v4  ;;  %v5470_v28 = vld [vmem:[%s13334_s1 + $0x2ac8] sm:$0xff] }
 0x251   :  { %7103 = vmatprep.subr.bf16.mxu1 %v7102_v41  ;;  %v5187_v41 = vld [vmem:[%s13334_s1 + $0x21f0] sm:$0xff]  ;;  %v6992_v48 = vpack.c.bf16 %v5441_v44, %v5437_v35  ;;  %v7006_v35 = vpack.c.bf16 %v5474_v38, %v5470_v28  ;;  %v5478_v44 = vld [vmem:[%s13334_s1 + $0x2b08] sm:$0xff]  ;;  %v5501_v28 = vld [vmem:[%s13334_s1 + $0x2bc0] sm:$0xff] }
 0x252   :  { %6973 = vmatpush1.bf16.msra.mxu0 %v6972_v39  ;;  %v5183_v39 = vld [vmem:[%s13334_s1 + $0x21d0] sm:$0xff]  ;;  %v5505_v38 = vld [vmem:[%s13334_s1 + $0x2be0] sm:$0xff] }
 0x253   :  { %6975 = vmatprep.subr.bf16.mxu0 %v6974_v45  ;;  %v5196_v45 = vld [vmem:[%s13334_s1 + $0x2238] sm:$0xff]  ;;  %v7120_v47 = vpack.c.bf16 %v5187_v41, %v5183_v39  ;;  %v5473_v39 = vld [vmem:[%s13334_s1 + $0x2ae0] sm:$0xff] }
 0x254   :  { %7105 = vmatpush1.bf16.msra.mxu1 %v7104_v50  ;;  %v7122_v49 = vpack.c.bf16 %v5196_v45, %v5192_v3  ;;  %v5445_v50 = vld [vmem:[%s13334_s1 + $0x2a00] sm:$0xff]  ;;  %v5224_v41 = vld [vmem:[%s13334_s1 + $0x2318] sm:$0xff]  ;;  %v5482_v3 = vld [vmem:[%s13334_s1 + $0x2b28] sm:$0xff] }
 0x255   :  { %7107 = vmatprep.subr.bf16.mxu1 %v7106_v52  ;;  %v5195_v52 = vld [vmem:[%s13334_s1 + $0x2230] sm:$0xff]  ;;  %v6996_v58 = vpack.c.bf16 %v5449_v54, %v5445_v50  ;;  %v7010_v50 = vpack.c.bf16 %v5482_v3, %v5478_v44  ;;  %v5486_v54 = vld [vmem:[%s13334_s1 + $0x2b48] sm:$0xff]  ;;  %v5509_v3 = vld [vmem:[%s13334_s1 + $0x2c00] sm:$0xff] }
 0x256   :  { %6977 = vmatpush1.bf16.msra.mxu0 %v6976_v51  ;;  %v5191_v51 = vld [vmem:[%s13334_s1 + $0x2210] sm:$0xff]  ;;  %v5514_v44 = vld [vmem:[%s13334_s1 + $0x2c28] sm:$0xff] }
 0x257   :  { %6979 = vmatprep.subr.bf16.mxu0 %v6978_v53  ;;  %v5204_v53 = vld [vmem:[%s13334_s1 + $0x2278] sm:$0xff]  ;;  %v7124_v56 = vpack.c.bf16 %v5195_v52, %v5191_v51  ;;  %v5481_v51 = vld [vmem:[%s13334_s1 + $0x2b20] sm:$0xff] }
 0x258   :  { %7109 = vmatpush1.bf16.msra.mxu1 %v7108_v60  ;;  %v7126_v59 = vpack.c.bf16 %v5204_v53, %v5200_v40  ;;  %v5453_v60 = vld [vmem:[%s13334_s1 + $0x2a40] sm:$0xff]  ;;  %v5232_v52 = vld [vmem:[%s13334_s1 + $0x2358] sm:$0xff]  ;;  %v5490_v40 = vld [vmem:[%s13334_s1 + $0x2b68] sm:$0xff] }
 0x259   :  { %7111 = vmatprep.subr.bf16.mxu1 %v7110_v1  ;;  %v5203_v1 = vld [vmem:[%s13334_s1 + $0x2270] sm:$0xff]  ;;  %v7000_v16 = vpack.c.bf16 %v5457_v2, %v5453_v60  ;;  %v7014_v60 = vpack.c.bf16 %v5490_v40, %v5486_v54  ;;  %v5494_v2 = vld [vmem:[%s13334_s1 + $0x2b88] sm:$0xff]  ;;  %v5264_v54 = vld [vmem:[%s13334_s1 + $0x2458] sm:$0xff] }
 0x25a   :  { %6981 = vmatpush1.bf16.msra.mxu0 %v6980_v62  ;;  %v5199_v62 = vld [vmem:[%s13334_s1 + $0x2250] sm:$0xff] }
 0x25b   :  { %6983 = vmatprep.subr.bf16.mxu0 %v6982_v57  ;;  %v5212_v57 = vld [vmem:[%s13334_s1 + $0x22b8] sm:$0xff]  ;;  %v7128_v6 = vpack.c.bf16 %v5203_v1, %v5199_v62  ;;  %v5489_v62 = vld [vmem:[%s13334_s1 + $0x2b60] sm:$0xff] }
 0x25c   :  { %7113 = vmatpush1.bf16.msra.mxu1 %v7112_v11  ;;  %v7130_v8 = vpack.c.bf16 %v5212_v57, %v5208_v7  ;;  %v5461_v11 = vld [vmem:[%s13334_s1 + $0x2a80] sm:$0xff]  ;;  %v5240_v1 = vld [vmem:[%s13334_s1 + $0x2398] sm:$0xff]  ;;  %v5498_v7 = vld [vmem:[%s13334_s1 + $0x2ba8] sm:$0xff] }
 0x25d   :  { %7115 = vmatprep.subr.bf16.mxu1 %v7114_v15  ;;  %v5211_v15 = vld [vmem:[%s13334_s1 + $0x22b0] sm:$0xff]  ;;  %v7004_v17 = vpack.c.bf16 %v5465_v20, %v5461_v11  ;;  %v7018_v11 = vpack.c.bf16 %v5498_v7, %v5494_v2  ;;  %v5502_v20 = vld [vmem:[%s13334_s1 + $0x2bc8] sm:$0xff] }
 0x25e   :  { %6985 = vmatpush1.bf16.msra.mxu0 %v6984_v12  ;;  %v5207_v12 = vld [vmem:[%s13334_s1 + $0x2290] sm:$0xff] }
 0x25f   :  { %6987 = vmatprep.subr.bf16.mxu0 %v6986_v25  ;;  %v5220_v25 = vld [vmem:[%s13334_s1 + $0x22f8] sm:$0xff]  ;;  %v7132_v30 = vpack.c.bf16 %v5211_v15, %v5207_v12  ;;  %v5497_v12 = vld [vmem:[%s13334_s1 + $0x2ba0] sm:$0xff]  ;;  %v5263_v2 = vld [vmem:[%s13334_s1 + $0x2450] sm:$0xff] }
 0x260   :  { %7117 = vmatpush1.bf16.msra.mxu1 %v7116_v32  ;;  %v7134_v31 = vpack.c.bf16 %v5220_v25, %v5216_v23  ;;  %v5469_v32 = vld [vmem:[%s13334_s1 + $0x2ac0] sm:$0xff]  ;;  %v5248_v15 = vld [vmem:[%s13334_s1 + $0x23d8] sm:$0xff]  ;;  %v5506_v23 = vld [vmem:[%s13334_s1 + $0x2be8] sm:$0xff] }
 0x261   :  { %7119 = vmatprep.subr.bf16.mxu1 %v7118_v34  ;;  %v5219_v34 = vld [vmem:[%s13334_s1 + $0x22f0] sm:$0xff]  ;;  %v7008_v10 = vpack.c.bf16 %v5473_v39, %v5469_v32  ;;  %v2547_v39 = vld [vmem:[#allocation2 + $0x20] sm:$0xfc] }
 0x262   :  { %6989 = vmatpush1.bf16.msra.mxu0 %v6988_v33  ;;  %v5215_v33 = vld [vmem:[%s13334_s1 + $0x22d0] sm:$0xff] }
 0x263   :  { %6991 = vmatprep.subr.bf16.mxu0 %v6990_v43  ;;  %v5228_v43 = vld [vmem:[%s13334_s1 + $0x2338] sm:$0xff]  ;;  %v7136_v45 = vpack.c.bf16 %v5219_v34, %v5215_v33  ;;  %v5251_v32 = vld [vmem:[%s13334_s1 + $0x23f0] sm:$0xff]  ;;  %v7022_v34 = vpack.c.bf16 %v5506_v23, %v5502_v20  ;;  %v5526_v20 = vld [vmem:[%s13334_s1 + $0x2c88] sm:$0xff] }
 0x264   :  { %7121 = vmatpush1.bf16.msra.mxu1 %v7120_v47  ;;  %v7138_v46 = vpack.c.bf16 %v5228_v43, %v5224_v41  ;;  %v5477_v47 = vld [vmem:[%s13334_s1 + $0x2b00] sm:$0xff]  ;;  %v5256_v33 = vld [vmem:[%s13334_s1 + $0x2418] sm:$0xff]  ;;  %v5510_v43 = vld [vmem:[%s13334_s1 + $0x2c08] sm:$0xff] }
 0x265   :  { %7123 = vmatprep.subr.bf16.mxu1 %v7122_v49  ;;  %v5227_v49 = vld [vmem:[%s13334_s1 + $0x2330] sm:$0xff]  ;;  %v7012_v26 = vpack.c.bf16 %v5481_v51, %v5477_v47  ;;  %v2555_v41 = vld [vmem:[#allocation2 + $0x60] sm:$0x3]  ;;  %v2572_v47 = vld [vmem:[#allocation2 + $0xe8] sm:$0x3]  ;;  %v7026_v40 = vpack.c.bf16 %v5514_v44, %v5510_v43 }
 0x266   :  { %6993 = vmatpush1.bf16.msra.mxu0 %v6992_v48  ;;  %v5223_v48 = vld [vmem:[%s13334_s1 + $0x2310] sm:$0xff]  ;;  %v2621_v51 = vrot.slane %v2555_v41, 2  ;;  %v5530_v23 = vld [vmem:[%s13334_s1 + $0x2ca8] sm:$0xff]  ;;  %v5280_v41 = vld [vmem:[%s13334_s1 + $0x24d8] sm:$0xff] }
 0x267   :  { %6995 = vmatprep.subr.bf16.mxu0 %v6994_v37  ;;  %v5236_v37 = vld [vmem:[%s13334_s1 + $0x2378] sm:$0xff]  ;;  %v7140_v53 = vpack.c.bf16 %v5227_v49, %v5223_v48  ;;  %v7024_v48 = vpack.c.bf16 %v5505_v38, %v5501_v28  ;;  %v5267_v7 = vld [vmem:[%s13334_s1 + $0x2470] sm:$0xff]  ;;  %v5534_v44 = vld [vmem:[%s13334_s1 + $0x2cc8] sm:$0xff] }
 0x268   :  { %7125 = vmatpush1.bf16.msra.mxu1 %v7124_v56  ;;  %v7142_v55 = vpack.c.bf16 %v5236_v37, %v5232_v52  ;;  %v5485_v56 = vld [vmem:[%s13334_s1 + $0x2b40] sm:$0xff]  ;;  %v5255_v52 = vld [vmem:[%s13334_s1 + $0x2410] sm:$0xff]  ;;  %v7160_v28 = vpack.c.bf16 %v5267_v7, %v5263_v2  ;;  %v5284_v43 = vld [vmem:[%s13334_s1 + $0x24f8] sm:$0xff] }
 0x269   :  { %7127 = vmatprep.subr.bf16.mxu1 %v7126_v59  ;;  %v5235_v59 = vld [vmem:[%s13334_s1 + $0x2370] sm:$0xff]  ;;  %v7016_v4 = vpack.c.bf16 %v5489_v62, %v5485_v56  ;;  %v5518_v56 = vld [vmem:[%s13334_s1 + $0x2c48] sm:$0xff] }
 0x26a   :  { %6997 = vmatpush1.bf16.msra.mxu0 %v6996_v58  ;;  %v5231_v58 = vld [vmem:[%s13334_s1 + $0x2350] sm:$0xff] }
 0x26b   :  { %6999 = vmatprep.subr.bf16.mxu0 %v6998_v61  ;;  %v5244_v61 = vld [vmem:[%s13334_s1 + $0x23b8] sm:$0xff]  ;;  %v7144_v57 = vpack.c.bf16 %v5235_v59, %v5231_v58  ;;  %v5259_v37 = vld [vmem:[%s13334_s1 + $0x2430] sm:$0xff]  ;;  %v5522_v58 = vld [vmem:[%s13334_s1 + $0x2c68] sm:$0xff] }
 0x26c   :  { %7129 = vmatpush1.bf16.msra.mxu1 %v7128_v6  ;;  %v7146_v63 = vpack.c.bf16 %v5244_v61, %v5240_v1  ;;  %v5493_v6 = vld [vmem:[%s13334_s1 + $0x2b80] sm:$0xff]  ;;  %v7156_v1 = vpack.c.bf16 %v5259_v37, %v5255_v52  ;;  %v5288_v52 = vld [vmem:[%s13334_s1 + $0x2518] sm:$0xff] }
 0x26d   :  { %7131 = vmatprep.subr.bf16.mxu1 %v7130_v8  ;;  %v5243_v8 = vld [vmem:[%s13334_s1 + $0x23b0] sm:$0xff]  ;;  %v5517_v61 = vld [vmem:[%s13334_s1 + $0x2c40] sm:$0xff]  ;;  %v5292_v37 = vld [vmem:[%s13334_s1 + $0x2538] sm:$0xff] }
 0x26e   :  { %7001 = vmatpush1.bf16.msra.mxu0 %v7000_v16  ;;  %v5239_v16 = vld [vmem:[%s13334_s1 + $0x2390] sm:$0xff] }
 0x26f   :  { %7003 = vmatprep.subr.bf16.mxu0 %v7002_v19  ;;  %v5252_v19 = vld [vmem:[%s13334_s1 + $0x23f8] sm:$0xff]  ;;  %v7148_v25 = vpack.c.bf16 %v5243_v8, %v5239_v16 }
 0x270   :  { %7133 = vmatpush1.bf16.msra.mxu1 %v7132_v30  ;;  %v7020_v30 = vpack.c.bf16 %v5497_v12, %v5493_v6  ;;  %v2550_v16 = vld [vmem:[#allocation2 + $0x38] sm:$0xfc]  ;;  %v2558_v8 = vld [vmem:[#allocation2 + $0x78] sm:$0x3]  ;;  %v5521_v12 = vld [vmem:[%s13334_s1 + $0x2c60] sm:$0xff] }
 0x271   :  { %7135 = vmatprep.subr.bf16.mxu1 %v7134_v31  ;;  %v5247_v31 = vld [vmem:[%s13334_s1 + $0x23d0] sm:$0xff]  ;;  %v2629_v38 = vrot.slane %v2550_v16, 2 }
 0x272   :  { %7005 = vmatpush1.bf16.msra.mxu0 %v7004_v17  ;;  %v7150_v17 = vpack.c.bf16 %v5252_v19, %v5248_v15  ;;  %v5272_v15 = vld [vmem:[%s13334_s1 + $0x2498] sm:$0xff]  ;;  %v5299_v16 = vld [vmem:[%s13334_s1 + $0x2570] sm:$0xff] }
 0x273   :  { %7007 = vmatprep.subr.bf16.mxu0 %v7006_v35  ;;  %v5260_v35 = vld [vmem:[%s13334_s1 + $0x2438] sm:$0xff] }
 0x274   :  { %7137 = vmatpush1.bf16.msra.mxu1 %v7136_v45  ;;  %v7152_v45 = vpack.c.bf16 %v5251_v32, %v5247_v31  ;;  %v7154_v49 = vpack.c.bf16 %v5260_v35, %v5256_v33  ;;  %v5276_v19 = vld [vmem:[%s13334_s1 + $0x24b8] sm:$0xff]  ;;  %v5525_v31 = vld [vmem:[%s13334_s1 + $0x2c80] sm:$0xff]  ;;  %v5271_v32 = vld [vmem:[%s13334_s1 + $0x2490] sm:$0xff]  ;;  %v7034_v35 = vpack.c.bf16 %v5530_v23, %v5526_v20 }
 0x275   :  { %7139 = vmatprep.subr.bf16.mxu1 %v7138_v46  ;;  %v2564_v46 = vld [vmem:[#allocation2 + $0xa8] sm:$0xfc]  ;;  %v5275_v33 = vld [vmem:[%s13334_s1 + $0x24b0] sm:$0xff] }
 0x276   :  { %7009 = vmatpush1.bf16.msra.mxu0 %v7008_v10  ;;  %v5513_v10 = vld [vmem:[%s13334_s1 + $0x2c20] sm:$0xff]  ;;  %v2647_v59 = vrot.slane %v2564_v46, 2  ;;  %v5562_v20 = vld [vmem:[%s13334_s1 + $0x2da8] sm:$0xff] }
 0x277   :  { %7011 = vmatprep.subr.bf16.mxu0 %v7010_v50  ;;  %v2620_v50 = vrot.slane %v2547_v39, 2  ;;  %v7028_v62 = vpack.c.bf16 %v5513_v10, %v5509_v3  ;;  %v5529_v39 = vld [vmem:[%s13334_s1 + $0x2ca0] sm:$0xff]  ;;  %v5538_v3 = vld [vmem:[%s13334_s1 + $0x2ce8] sm:$0xff] }
 0x278   :  { %7141 = vmatpush1.bf16.msra.mxu1 %v7140_v53  ;;  %v5268_v53 = vld [vmem:[%s13334_s1 + $0x2478] sm:$0xff]  ;;  %v7036_v46 = vpack.c.bf16 %v5529_v39, %v5525_v31  ;;  %v5566_v39 = vld [vmem:[%s13334_s1 + $0x2dc8] sm:$0xff] }
 0x279   :  { %7143 = vmatprep.subr.bf16.mxu1 %v7142_v55  ;;  %v2571_v55 = vld [vmem:[#allocation2 + $0xe0] sm:$0x3] }
 0x27a   :  { %7013 = vmatpush1.bf16.msra.mxu0 %v7012_v26  ;;  %v2563_v26 = vld [vmem:[#allocation2 + $0xa0] sm:$0xfc]  ;;  %v2645_v6 = vrot.slane %v2571_v55, 2  ;;  %v7170_v55 = vpack.c.bf16 %v5292_v37, %v5288_v52  ;;  %v5578_v52 = vld [vmem:[%s13334_s1 + $0x2e28] sm:$0xff] }
 0x27b   :  { %7015 = vmatprep.subr.bf16.mxu0 %v7014_v60  ;;  %v2648_v60 = vrot.slane %v2572_v47, 2  ;;  %v7166_v47 = vpack.c.bf16 %v5284_v43, %v5280_v41  ;;  %v5570_v41 = vld [vmem:[%s13334_s1 + $0x2de8] sm:$0xff] }
 0x27c   :  { %7145 = vmatpush1.bf16.msra.mxu1 %v7144_v57  ;;  %v11825_v57 = vsel %vm2607_vm1, %v2620_v50, %v2621_v51  ;;  %v7038_v50 = vpack.c.bf16 %v5538_v3, %v5534_v44  ;;  %v5537_v51 = vld [vmem:[%s13334_s1 + $0x2ce0] sm:$0xff] }
 0x27d   :  { %7147 = vmatprep.subr.bf16.mxu1 %v7146_v63  ;;  %v2644_v63 = vrot.slane %v2563_v26, 2 }
 0x27e   :  { %7017 = vmatpush1.bf16.msra.mxu0 %v7016_v4  ;;  %v7158_v4 = vpack.c.bf16 %v5268_v53, %v5264_v54  ;;  %v5542_v54 = vld [vmem:[%s13334_s1 + $0x2d08] sm:$0xff] }
 0x27f   :  { %7019 = vmatprep.subr.bf16.mxu0 %v7018_v11  ;;  %v7030_v11 = vpack.c.bf16 %v5522_v58, %v5518_v56  ;;  %v5287_v56 = vld [vmem:[%s13334_s1 + $0x2510] sm:$0xff] }
 0x280   :  { %7149 = vmatpush1.bf16.msra.mxu1 %v7148_v25  ;;  %v11844_v25 = vsel %vm2607_vm1, %v2647_v59, %v2648_v60  ;;  %v5291_v58 = vld [vmem:[%s13334_s1 + $0x2530] sm:$0xff]  ;;  %v5545_v59 = vld [vmem:[%s13334_s1 + $0x2d20] sm:$0xff]  ;;  %v5296_v60 = vld [vmem:[%s13334_s1 + $0x2558] sm:$0xff] }
 0x281   :  { %7151 = vmatprep.subr.bf16.mxu1 %v7150_v17  ;;  %v7162_v17 = vpack.c.bf16 %v5276_v19, %v5272_v15  ;;  %v7172_v2 = vpack.c.bf16 %v5291_v58, %v5287_v56  ;;  %v5308_v15 = vld [vmem:[%s13334_s1 + $0x25b8] sm:$0xff]  ;;  %v5558_v19 = vld [vmem:[%s13334_s1 + $0x2d88] sm:$0xff]  ;;  %v5577_v56 = vld [vmem:[%s13334_s1 + $0x2e20] sm:$0xff] }
 0x282   :  { %7021 = vmatpush1.bf16.msra.mxu0 %v7020_v30  ;;  %v2630_v30 = vrot.slane %v2558_v8, 2  ;;  %v7050_v31 = vpack.c.bf16 %v5562_v20, %v5558_v19  ;;  %v5328_v58 = vld [vmem:[%s13334_s1 + $0x2658] sm:$0xff] }
 0x283   :  { %7023 = vmatprep.subr.bf16.mxu0 %v7022_v34  ;;  %v11857_v34 = vsel %vm2607_vm1, %v2644_v63, %v2645_v6  ;;  %v5549_v63 = vld [vmem:[%s13334_s1 + $0x2d40] sm:$0xff]  ;;  %v5295_v6 = vld [vmem:[%s13334_s1 + $0x2550] sm:$0xff] }
 0x284   :  { %7153 = vmatpush1.bf16.msra.mxu1 %v7152_v45  ;;  %v7164_v45 = vpack.c.bf16 %v5275_v33, %v5271_v32  ;;  %v11878_v10 = vsel %vm2607_vm1, %v2629_v38, %v2630_v30  ;;  %v7176_v23 = vpack.c.bf16 %v5299_v16, %v5295_v6  ;;  %v5557_v30 = vld [vmem:[%s13334_s1 + $0x2d80] sm:$0xff]  ;;  %v5312_v33 = vld [vmem:[%s13334_s1 + $0x25d8] sm:$0xff] }
 0x285   :  { %7155 = vmatprep.subr.bf16.mxu1 %v7154_v49  ;;  %v5279_v49 = vld [vmem:[%s13334_s1 + $0x24d0] sm:$0xff]  ;;  %v5561_v32 = vld [vmem:[%s13334_s1 + $0x2da0] sm:$0xff]  ;;  %v5336_v16 = vld [vmem:[%s13334_s1 + $0x2698] sm:$0xff] }
 0x286   :  { %7025 = vmatpush1.bf16.msra.mxu0 %v7024_v48  ;;  %v5533_v48 = vld [vmem:[%s13334_s1 + $0x2cc0] sm:$0xff]  ;;  %v7052_v44 = vpack.c.bf16 %v5561_v32, %v5557_v30  ;;  %v5598_v32 = vld [vmem:[%s13334_s1 + $0x2ec8] sm:$0xff] }
 0x287   :  { %7027 = vmatprep.subr.bf16.mxu0 %v7026_v40  ;;  %3558 = vmatmul.mubr.f32.vlgmr.msra.gmra.mrb[4].mxu1 %v11024_v0  ;;  %v7032_v0 = vpack.c.bf16 %v5521_v12, %v5517_v61  ;;  %v5546_v40 = vld [vmem:[%s13334_s1 + $0x2d28] sm:$0xff]  ;;  %v7040_v26 = vpack.c.bf16 %v5537_v51, %v5533_v48  ;;  %v5304_v12 = vld [vmem:[%s13334_s1 + $0x2598] sm:$0xff]  ;;  %v7054_v48 = vpack.c.bf16 %v5570_v41, %v5566_v39  ;;  %v5585_v6 = vld [vmem:[%s13334_s1 + $0x2e60] sm:$0xff] }
 0x288   :  { %7157 = vmatpush1.bf16.msra.mxu1 %v7156_v1  ;;  %3563 = vmatprep.mubr.f32.mxu1 %v11043_v9  ;;  %v5283_v9 = vld [vmem:[%s13334_s1 + $0x24f0] sm:$0xff]  ;;  %v5550_v1 = vld [vmem:[%s13334_s1 + $0x2d48] sm:$0xff]  ;;  %v7178_v38 = vpack.c.bf16 %v5308_v15, %v5304_v12 }
 0x289   :  { %3404 = vmatmul.mubr.f32.vlgmr.msra.gmra.mrb[0].mxu0 %v11825_v57  ;;  %7159 = vmatprep.subr.bf16.mxu1 %v7158_v4  ;;  %v7168_v53 = vpack.c.bf16 %v5283_v9, %v5279_v49  ;;  %v5554_v61 = vld [vmem:[%s13334_s1 + $0x2d68] sm:$0xff]  ;;  %v5569_v49 = vld [vmem:[%s13334_s1 + $0x2de0] sm:$0xff]  ;;  %v5320_v9 = vld [vmem:[%s13334_s1 + $0x2618] sm:$0xff] }
 0x28a   :  { %7029 = vmatpush1.bf16.msra.mxu0 %v7028_v62  ;;  %3409 = vmatprep.mubr.f32.mxu0 %v11844_v25  ;;  %v5300_v62 = vld [vmem:[%s13334_s1 + $0x2578] sm:$0xff]  ;;  %v7046_v8 = vpack.c.bf16 %v5554_v61, %v5550_v1  ;;  %v5574_v51 = vld [vmem:[%s13334_s1 + $0x2e08] sm:$0xff] }
 0x28b   :  { %7031 = vmatprep.subr.bf16.mxu0 %v7030_v11  ;;  %3564 = vmatmul.mubr.f32.gmra.mrb[6].mxu1 %v11055_v29  ;;  %v5541_v29 = vld [vmem:[%s13334_s1 + $0x2d00] sm:$0xff]  ;;  %v7174_v4 = vpack.c.bf16 %v5300_v62, %v5296_v60  ;;  %v5586_v60 = vld [vmem:[%s13334_s1 + $0x2e68] sm:$0xff] }
 0x28c   :  { %7161 = vmatpush1.bf16.msra.mxu1 %v7160_v28  ;;  %3634 = vmatprep.mubr.f32.mxu1 %v11075_v36  ;;  %v7042_v36 = vpack.c.bf16 %v5546_v40, %v5542_v54  ;;  %v7044_v7 = vpack.c.bf16 %v5545_v59, %v5541_v29  ;;  %v5553_v11 = vld [vmem:[%s13334_s1 + $0x2d60] sm:$0xff]  ;;  %v7058_v29 = vpack.c.bf16 %v5578_v52, %v5574_v51  ;;  %v5582_v59 = vld [vmem:[%s13334_s1 + $0x2e48] sm:$0xff] }
 0x28d   :  { %3410 = vmatmul.mubr.f32.gmra.mrb[2].mxu0 %v11857_v34  ;;  %7163 = vmatprep.subr.bf16.mxu1 %v7162_v17  ;;  %v7048_v28 = vpack.c.bf16 %v5553_v11, %v5549_v63  ;;  %v5307_v17 = vld [vmem:[%s13334_s1 + $0x25b0] sm:$0xff]  ;;  %v7062_v63 = vpack.c.bf16 %v5586_v60, %v5582_v59  ;;  %v5590_v11 = vld [vmem:[%s13334_s1 + $0x2e88] sm:$0xff] }
 0x28e   :  { %7033 = vmatpush1.bf16.msra.mxu0 %v7032_v0  ;;  %3480 = vmatprep.mubr.f32.mxu0 %v11878_v10  ;;  %v5303_v0 = vld [vmem:[%s13334_s1 + $0x2590] sm:$0xff]  ;;  %v5594_v12 = vld [vmem:[%s13334_s1 + $0x2ea8] sm:$0xff] }
 0x28f   :  { %7035 = vmatprep.subr.bf16.mxu0 %v7034_v35  ;;  %v5316_v35 = vld [vmem:[%s13334_s1 + $0x25f8] sm:$0xff]  ;;  %v7180_v43 = vpack.c.bf16 %v5307_v17, %v5303_v0  ;;  %v7066_v30 = vpack.c.bf16 %v5594_v12, %v5590_v11  ;;  %v5593_v0 = vld [vmem:[%s13334_s1 + $0x2ea0] sm:$0xff] }
 0x290   :  { %7165 = vmatpush1.bf16.msra.mxu1 %v7164_v45  ;;  %v7182_v3 = vpack.c.bf16 %v5316_v35, %v5312_v33  ;;  %v5565_v45 = vld [vmem:[%s13334_s1 + $0x2dc0] sm:$0xff]  ;;  %v5344_v17 = vld [vmem:[%s13334_s1 + $0x26d8] sm:$0xff]  ;;  %v5602_v33 = vld [vmem:[%s13334_s1 + $0x2ee8] sm:$0xff] }
 0x291   :  { %7167 = vmatprep.subr.bf16.mxu1 %v7166_v47  ;;  %v5315_v47 = vld [vmem:[%s13334_s1 + $0x25f0] sm:$0xff]  ;;  %v7056_v54 = vpack.c.bf16 %v5569_v49, %v5565_v45  ;;  %v7070_v45 = vpack.c.bf16 %v5602_v33, %v5598_v32  ;;  %v5606_v49 = vld [vmem:[%s13334_s1 + $0x2f08] sm:$0xff]  ;;  %v5629_v32 = vld [vmem:[%s13334_s1 + $0x2fc0] sm:$0xff] }
 0x292   :  { %7037 = vmatpush1.bf16.msra.mxu0 %v7036_v46  ;;  %v5311_v46 = vld [vmem:[%s13334_s1 + $0x25d0] sm:$0xff]  ;;  %v5633_v33 = vld [vmem:[%s13334_s1 + $0x2fe0] sm:$0xff] }
 0x293   :  { %7039 = vmatprep.subr.bf16.mxu0 %v7038_v50  ;;  %v5324_v50 = vld [vmem:[%s13334_s1 + $0x2638] sm:$0xff]  ;;  %v7184_v37 = vpack.c.bf16 %v5315_v47, %v5311_v46  ;;  %v5601_v46 = vld [vmem:[%s13334_s1 + $0x2ee0] sm:$0xff] }
 0x294   :  { %7169 = vmatpush1.bf16.msra.mxu1 %v7168_v53  ;;  %v7186_v40 = vpack.c.bf16 %v5324_v50, %v5320_v9  ;;  %v5573_v53 = vld [vmem:[%s13334_s1 + $0x2e00] sm:$0xff]  ;;  %v5352_v47 = vld [vmem:[%s13334_s1 + $0x2718] sm:$0xff]  ;;  %v5610_v9 = vld [vmem:[%s13334_s1 + $0x2f28] sm:$0xff] }
 0x295   :  { %7171 = vmatprep.subr.bf16.mxu1 %v7170_v55  ;;  %v5323_v55 = vld [vmem:[%s13334_s1 + $0x2630] sm:$0xff]  ;;  %v7060_v1 = vpack.c.bf16 %v5577_v56, %v5573_v53  ;;  %v7074_v53 = vpack.c.bf16 %v5610_v9, %v5606_v49  ;;  %v5614_v56 = vld [vmem:[%s13334_s1 + $0x2f48] sm:$0xff]  ;;  %v2574_v49 = vld [vmem:[#allocation2 + $0xf8] sm:$0x3] }
 0x296   :  { %7041 = vmatpush1.bf16.msra.mxu0 %v7040_v26  ;;  %v5319_v26 = vld [vmem:[%s13334_s1 + $0x2610] sm:$0xff] }
 0x297   :  { %7043 = vmatprep.subr.bf16.mxu0 %v7042_v36  ;;  %v5332_v36 = vld [vmem:[%s13334_s1 + $0x2678] sm:$0xff]  ;;  %v7188_v62 = vpack.c.bf16 %v5323_v55, %v5319_v26  ;;  %v5609_v26 = vld [vmem:[%s13334_s1 + $0x2f20] sm:$0xff] }
 0x298   :  { %7173 = vmatpush1.bf16.msra.mxu1 %v7172_v2  ;;  %v7190_v61 = vpack.c.bf16 %v5332_v36, %v5328_v58  ;;  %v5581_v2 = vld [vmem:[%s13334_s1 + $0x2e40] sm:$0xff]  ;;  %v5360_v55 = vld [vmem:[%s13334_s1 + $0x2758] sm:$0xff]  ;;  %v5618_v58 = vld [vmem:[%s13334_s1 + $0x2f68] sm:$0xff] }
 0x299   :  { %7175 = vmatprep.subr.bf16.mxu1 %v7174_v4  ;;  %v5331_v4 = vld [vmem:[%s13334_s1 + $0x2670] sm:$0xff]  ;;  %v7064_v19 = vpack.c.bf16 %v5585_v6, %v5581_v2  ;;  %v7078_v2 = vpack.c.bf16 %v5618_v58, %v5614_v56  ;;  %v5622_v6 = vld [vmem:[%s13334_s1 + $0x2f88] sm:$0xff]  ;;  %v5392_v56 = vld [vmem:[%s13334_s1 + $0x2858] sm:$0xff] }
 0x29a   :  { %7045 = vmatpush1.bf16.msra.mxu0 %v7044_v7  ;;  %v5327_v7 = vld [vmem:[%s13334_s1 + $0x2650] sm:$0xff]  ;;  %v5396_v58 = vld [vmem:[%s13334_s1 + $0x2878] sm:$0xff] }
 0x29b   :  { %7047 = vmatprep.subr.bf16.mxu0 %v7046_v8  ;;  %v5340_v8 = vld [vmem:[%s13334_s1 + $0x26b8] sm:$0xff]  ;;  %v7192_v15 = vpack.c.bf16 %v5331_v4, %v5327_v7  ;;  %v5617_v7 = vld [vmem:[%s13334_s1 + $0x2f60] sm:$0xff] }
 0x29c   :  { %7177 = vmatpush1.bf16.msra.mxu1 %v7176_v23  ;;  %v7194_v20 = vpack.c.bf16 %v5340_v8, %v5336_v16  ;;  %v5589_v23 = vld [vmem:[%s13334_s1 + $0x2e80] sm:$0xff]  ;;  %v5368_v4 = vld [vmem:[%s13334_s1 + $0x2798] sm:$0xff]  ;;  %v5626_v16 = vld [vmem:[%s13334_s1 + $0x2fa8] sm:$0xff] }
 0x29d   :  { %7179 = vmatprep.subr.bf16.mxu1 %v7178_v38  ;;  %v5339_v38 = vld [vmem:[%s13334_s1 + $0x26b0] sm:$0xff]  ;;  %v7068_v39 = vpack.c.bf16 %v5593_v0, %v5589_v23  ;;  %v7082_v23 = vpack.c.bf16 %v5626_v16, %v5622_v6  ;;  %v5630_v0 = vld [vmem:[%s13334_s1 + $0x2fc8] sm:$0xff] }
 0x29e   :  { %7049 = vmatpush1.bf16.msra.mxu0 %v7048_v28  ;;  %v5335_v28 = vld [vmem:[%s13334_s1 + $0x2690] sm:$0xff] }
 0x29f   :  { %7051 = vmatprep.subr.bf16.mxu0 %v7050_v31  ;;  %v5348_v31 = vld [vmem:[%s13334_s1 + $0x26f8] sm:$0xff]  ;;  %v7196_v35 = vpack.c.bf16 %v5339_v38, %v5335_v28  ;;  %v5625_v28 = vld [vmem:[%s13334_s1 + $0x2fa0] sm:$0xff] }
 0x2a0   :  { %7181 = vmatpush1.bf16.msra.mxu1 %v7180_v43  ;;  %v7198_v41 = vpack.c.bf16 %v5348_v31, %v5344_v17  ;;  %v5597_v43 = vld [vmem:[%s13334_s1 + $0x2ec0] sm:$0xff]  ;;  %v5376_v38 = vld [vmem:[%s13334_s1 + $0x27d8] sm:$0xff]  ;;  %v5634_v17 = vld [vmem:[%s13334_s1 + $0x2fe8] sm:$0xff] }
 0x2a1   :  { %7183 = vmatprep.subr.bf16.mxu1 %v7182_v3  ;;  %v5347_v3 = vld [vmem:[%s13334_s1 + $0x26f0] sm:$0xff]  ;;  %v7072_v51 = vpack.c.bf16 %v5601_v46, %v5597_v43  ;;  %v5384_v46 = vld [vmem:[%s13334_s1 + $0x2818] sm:$0xff] }
 0x2a2   :  { %7053 = vmatpush1.bf16.msra.mxu0 %v7052_v44  ;;  %v5343_v44 = vld [vmem:[%s13334_s1 + $0x26d0] sm:$0xff] }
 0x2a3   :  { %7055 = vmatprep.subr.bf16.mxu0 %v7054_v48  ;;  %v5356_v48 = vld [vmem:[%s13334_s1 + $0x2738] sm:$0xff]  ;;  %v7200_v50 = vpack.c.bf16 %v5347_v3, %v5343_v44  ;;  %v5379_v43 = vld [vmem:[%s13334_s1 + $0x27f0] sm:$0xff]  ;;  %v7086_v3 = vpack.c.bf16 %v5634_v17, %v5630_v0 }
 0x2a4   :  { %7185 = vmatpush1.bf16.msra.mxu1 %v7184_v37  ;;  %v7202_v52 = vpack.c.bf16 %v5356_v48, %v5352_v47  ;;  %v5605_v37 = vld [vmem:[%s13334_s1 + $0x2f00] sm:$0xff]  ;;  %v2549_v44 = vld [vmem:[#allocation2 + $0x30] sm:$0xfc]  ;;  %v5388_v47 = vld [vmem:[%s13334_s1 + $0x2838] sm:$0xff] }
 0x2a5   :  { %7187 = vmatprep.subr.bf16.mxu1 %v7186_v40  ;;  %v5355_v40 = vld [vmem:[%s13334_s1 + $0x2730] sm:$0xff]  ;;  %v7076_v59 = vpack.c.bf16 %v5609_v26, %v5605_v37  ;;  %v2566_v48 = vld [vmem:[#allocation2 + $0xb8] sm:$0xfc]  ;;  %v7218_v37 = vpack.c.bf16 %v5388_v47, %v5384_v46 }
 0x2a6   :  { %7057 = vmatpush1.bf16.msra.mxu0 %v7056_v54  ;;  %v5351_v54 = vld [vmem:[%s13334_s1 + $0x2710] sm:$0xff]  ;;  %v2653_v26 = vrot.slane %v2566_v48, 2  ;;  %v5424_v17 = vld [vmem:[%s13334_s1 + $0x2958] sm:$0xff] }
 0x2a7   :  { %7059 = vmatprep.subr.bf16.mxu0 %v7058_v29  ;;  %v5364_v29 = vld [vmem:[%s13334_s1 + $0x2778] sm:$0xff]  ;;  %v7204_v36 = vpack.c.bf16 %v5355_v40, %v5351_v54  ;;  %v5383_v54 = vld [vmem:[%s13334_s1 + $0x2810] sm:$0xff] }
 0x2a8   :  { %7189 = vmatpush1.bf16.msra.mxu1 %v7188_v62  ;;  %v7206_v60 = vpack.c.bf16 %v5364_v29, %v5360_v55  ;;  %v5613_v62 = vld [vmem:[%s13334_s1 + $0x2f40] sm:$0xff]  ;;  %v5387_v40 = vld [vmem:[%s13334_s1 + $0x2830] sm:$0xff]  ;;  %v2654_v55 = vrot.slane %v2574_v49, 2  ;;  %v5440_v47 = vld [vmem:[%s13334_s1 + $0x29d8] sm:$0xff] }
 0x2a9   :  { %7191 = vmatprep.subr.bf16.mxu1 %v7190_v61  ;;  %v5363_v61 = vld [vmem:[%s13334_s1 + $0x2770] sm:$0xff]  ;;  %v7080_v11 = vpack.c.bf16 %v5617_v7, %v5613_v62  ;;  %v5444_v48 = vld [vmem:[%s13334_s1 + $0x29f8] sm:$0xff] }
 0x2aa   :  { %7061 = vmatpush1.bf16.msra.mxu0 %v7060_v1  ;;  %v5359_v1 = vld [vmem:[%s13334_s1 + $0x2750] sm:$0xff]  ;;  %v12211_v7 = vsel %vm2607_vm1, %v2653_v26, %v2654_v55  ;;  %v5456_v55 = vld [vmem:[%s13334_s1 + $0x2a58] sm:$0xff] }
 0x2ab   :  { %7063 = vmatprep.subr.bf16.mxu0 %v7062_v63  ;;  %v5372_v63 = vld [vmem:[%s13334_s1 + $0x27b8] sm:$0xff]  ;;  %v7208_v8 = vpack.c.bf16 %v5363_v61, %v5359_v1  ;;  %v2573_v29 = vld [vmem:[#allocation2 + $0xf0] sm:$0x3]  ;;  %v7222_v1 = vpack.c.bf16 %v5396_v58, %v5392_v56 }
 0x2ac   :  { %7193 = vmatpush1.bf16.msra.mxu1 %v7192_v15  ;;  %v7210_v12 = vpack.c.bf16 %v5372_v63, %v5368_v4  ;;  %v5621_v15 = vld [vmem:[%s13334_s1 + $0x2f80] sm:$0xff]  ;;  %v2651_v62 = vrot.slane %v2573_v29, 2  ;;  %v5391_v61 = vld [vmem:[%s13334_s1 + $0x2850] sm:$0xff]  ;;  %v5400_v4 = vld [vmem:[%s13334_s1 + $0x2898] sm:$0xff] }
 0x2ad   :  { %7195 = vmatprep.subr.bf16.mxu1 %v7194_v20  ;;  %v5371_v20 = vld [vmem:[%s13334_s1 + $0x27b0] sm:$0xff]  ;;  %v5404_v63 = vld [vmem:[%s13334_s1 + $0x28b8] sm:$0xff] }
 0x2ae   :  { %7065 = vmatpush1.bf16.msra.mxu0 %v7064_v19  ;;  %v5367_v19 = vld [vmem:[%s13334_s1 + $0x2790] sm:$0xff]  ;;  %v5460_v29 = vld [vmem:[%s13334_s1 + $0x2a78] sm:$0xff] }
 0x2af   :  { %7067 = vmatprep.subr.bf16.mxu0 %v7066_v30  ;;  %v5380_v30 = vld [vmem:[%s13334_s1 + $0x27f8] sm:$0xff]  ;;  %v7212_v31 = vpack.c.bf16 %v5371_v20, %v5367_v19  ;;  %v5415_v0 = vld [vmem:[%s13334_s1 + $0x2910] sm:$0xff]  ;;  %v7254_v58 = vpack.c.bf16 %v5460_v29, %v5456_v55 }
 0x2b0   :  { %7197 = vmatpush1.bf16.msra.mxu1 %v7196_v35  ;;  %v7084_v35 = vpack.c.bf16 %v5625_v28, %v5621_v15  ;;  %v5412_v15 = vld [vmem:[%s13334_s1 + $0x28f8] sm:$0xff]  ;;  %v5411_v28 = vld [vmem:[%s13334_s1 + $0x28f0] sm:$0xff] }
 0x2b1   :  { %7199 = vmatprep.subr.bf16.mxu1 %v7198_v41  ;;  %v5375_v41 = vld [vmem:[%s13334_s1 + $0x27d0] sm:$0xff] }
 0x2b2   :  { %7069 = vmatpush1.bf16.msra.mxu0 %v7068_v39  ;;  %v7214_v39 = vpack.c.bf16 %v5380_v30, %v5376_v38  ;;  %v7216_v9 = vpack.c.bf16 %v5379_v43, %v5375_v41  ;;  %v5432_v41 = vld [vmem:[%s13334_s1 + $0x2998] sm:$0xff]  ;;  %v5435_v46 = vld [vmem:[%s13334_s1 + $0x29b0] sm:$0xff] }
 0x2b3   :  { %7071 = vmatprep.subr.bf16.mxu0 %v7070_v45  ;;  %v2557_v45 = vld [vmem:[#allocation2 + $0x70] sm:$0x3]  ;;  %v5436_v43 = vld [vmem:[%s13334_s1 + $0x29b8] sm:$0xff] }
 0x2b4   :  { %7201 = vmatpush1.bf16.msra.mxu1 %v7200_v50  ;;  %v7088_v50 = vpack.c.bf16 %v5633_v33, %v5629_v32  ;;  %v5451_v26 = vld [vmem:[%s13334_s1 + $0x2a30] sm:$0xff] }
 0x2b5   :  { %7203 = vmatprep.subr.bf16.mxu1 %v7202_v52  ;;  %v2627_v52 = vrot.slane %v2557_v45, 2  ;;  %v5431_v45 = vld [vmem:[%s13334_s1 + $0x2990] sm:$0xff] }
 0x2b6   :  { %7073 = vmatpush1.bf16.msra.mxu0 %v7072_v51  ;;  %v2626_v51 = vrot.slane %v2549_v44, 2  ;;  %v7244_v49 = vpack.c.bf16 %v5435_v46, %v5431_v45  ;;  %v5519_v55 = vld [vmem:[%s13334_s1 + $0x2c50] sm:$0xff] }
 0x2b7   :  { %7075 = vmatprep.subr.bf16.mxu0 %v7074_v53  ;;  %v2565_v53 = vld [vmem:[#allocation2 + $0xb0] sm:$0xfc] }
 0x2b8   :  { %7205 = vmatpush1.bf16.msra.mxu1 %v7204_v36  ;;  %v7220_v36 = vpack.c.bf16 %v5387_v40, %v5383_v54  ;;  %v5523_v29 = vld [vmem:[%s13334_s1 + $0x2c70] sm:$0xff] }
 0x2b9   :  { %7207 = vmatprep.subr.bf16.mxu1 %v7206_v60  ;;  %v2650_v60 = vrot.slane %v2565_v53, 2  ;;  %v5447_v53 = vld [vmem:[%s13334_s1 + $0x2a10] sm:$0xff] }
 0x2ba   :  { %7077 = vmatpush1.bf16.msra.mxu0 %v7076_v59  ;;  %v12202_v59 = vsel %vm2607_vm1, %v2626_v51, %v2627_v52  ;;  %v5443_v51 = vld [vmem:[%s13334_s1 + $0x29f0] sm:$0xff]  ;;  %v5448_v52 = vld [vmem:[%s13334_s1 + $0x2a18] sm:$0xff]  ;;  %v7252_v56 = vpack.c.bf16 %v5451_v26, %v5447_v53 }
 0x2bb   :  { %7079 = vmatprep.subr.bf16.mxu0 %v7078_v2  ;;  %v5395_v2 = vld [vmem:[%s13334_s1 + $0x2870] sm:$0xff]  ;;  %v12223_v16 = vsel %vm2607_vm1, %v2650_v60, %v2651_v62  ;;  %v5464_v62 = vld [vmem:[%s13334_s1 + $0x2a98] sm:$0xff] }
 0x2bc   :  { %7209 = vmatpush1.bf16.msra.mxu1 %v7208_v8  ;;  %v7224_v6 = vpack.c.bf16 %v5395_v2, %v5391_v61  ;;  %v7226_v8 = vpack.c.bf16 %v5404_v63, %v5400_v4  ;;  %v5459_v60 = vld [vmem:[%s13334_s1 + $0x2a70] sm:$0xff] }
 0x2bd   :  { %7211 = vmatprep.subr.bf16.mxu1 %v7210_v12  ;;  %v5403_v12 = vld [vmem:[%s13334_s1 + $0x28b0] sm:$0xff] }
 0x2be   :  { %7081 = vmatpush1.bf16.msra.mxu0 %v7080_v11  ;;  %v5399_v11 = vld [vmem:[%s13334_s1 + $0x2890] sm:$0xff] }
 0x2bf   :  { %7083 = vmatprep.subr.bf16.mxu0 %v7082_v23  ;;  %v7228_v19 = vpack.c.bf16 %v5403_v12, %v5399_v11  ;;  %v5407_v23 = vld [vmem:[%s13334_s1 + $0x28d0] sm:$0xff] }
 0x2c0   :  { %7213 = vmatpush1.bf16.msra.mxu1 %v7212_v31  ;;  %v7232_v38 = vpack.c.bf16 %v5411_v28, %v5407_v23  ;;  %v5428_v31 = vld [vmem:[%s13334_s1 + $0x2978] sm:$0xff]  ;;  %v5463_v4 = vld [vmem:[%s13334_s1 + $0x2a90] sm:$0xff] }
 0x2c1   :  { %7215 = vmatprep.subr.bf16.mxu1 %v7214_v39  ;;  %v7238_v33 = vpack.c.bf16 %v5428_v31, %v5424_v17  ;;  %v5427_v39 = vld [vmem:[%s13334_s1 + $0x2970] sm:$0xff] }
 0x2c2   :  { %7085 = vmatpush1.bf16.msra.mxu0 %v7084_v35  ;;  %v5423_v35 = vld [vmem:[%s13334_s1 + $0x2950] sm:$0xff] }
 0x2c3   :  { %7087 = vmatprep.subr.bf16.mxu0 %v7086_v3  ;;  %v7240_v44 = vpack.c.bf16 %v5427_v39, %v5423_v35  ;;  %v7242_v3 = vpack.c.bf16 %v5436_v43, %v5432_v41  ;;  %v5467_v63 = vld [vmem:[%s13334_s1 + $0x2ab0] sm:$0xff] }
 0x2c4   :  { %7217 = vmatpush1.bf16.msra.mxu1 %v7216_v9  ;;  %v7246_v9 = vpack.c.bf16 %v5444_v48, %v5440_v47  ;;  %v7260_v11 = vpack.c.bf16 %v5467_v63, %v5463_v4  ;;  %v5487_v17 = vld [vmem:[%s13334_s1 + $0x2b50] sm:$0xff] }
 0x2c5   :  { %7219 = vmatprep.subr.bf16.mxu1 %v7218_v37  ;;  %v5452_v37 = vld [vmem:[%s13334_s1 + $0x2a38] sm:$0xff]  ;;  %v5491_v31 = vld [vmem:[%s13334_s1 + $0x2b70] sm:$0xff] }
 0x2c6   :  { %7089 = vmatpush1.bf16.msra.mxu0 %v7088_v50  ;;  %v5439_v50 = vld [vmem:[%s13334_s1 + $0x29d0] sm:$0xff]  ;;  %v7250_v40 = vpack.c.bf16 %v5452_v37, %v5448_v52  ;;  %v7272_v35 = vpack.c.bf16 %v5491_v31, %v5487_v17  ;;  %v5568_v17 = vld [vmem:[%s13334_s1 + $0x2dd8] sm:$0xff] }
 0x2c7   :  { %3635 = vmatmul.mubr.f32.vlgmr.msra.gmra.mrb[4].mxu1 %v11415_v42  ;;  %v5408_v42 = vld [vmem:[%s13334_s1 + $0x28d8] sm:$0xff]  ;;  %v7248_v54 = vpack.c.bf16 %v5443_v51, %v5439_v50  ;;  %v5495_v41 = vld [vmem:[%s13334_s1 + $0x2b90] sm:$0xff] }
 0x2c8   :  { %7221 = vmatpush1.bf16.msra.mxu1 %v7220_v36  ;;  %3640 = vmatprep.mubr.f32.mxu1 %v11443_v13  ;;  %v7230_v20 = vpack.c.bf16 %v5412_v15, %v5408_v42  ;;  %v5416_v13 = vld [vmem:[%s13334_s1 + $0x2918] sm:$0xff]  ;;  %v5455_v36 = vld [vmem:[%s13334_s1 + $0x2a50] sm:$0xff] }
 0x2c9   :  { %3481 = vmatmul.mubr.f32.vlgmr.msra.gmra.mrb[0].mxu0 %v12202_v59  ;;  %7223 = vmatprep.subr.bf16.mxu1 %v7222_v1  ;;  %v5468_v1 = vld [vmem:[%s13334_s1 + $0x2ab8] sm:$0xff]  ;;  %v7256_v61 = vpack.c.bf16 %v5459_v60, %v5455_v36  ;;  %v5471_v42 = vld [vmem:[%s13334_s1 + $0x2ad0] sm:$0xff]  ;;  %v7288_v36 = vpack.c.bf16 %v5523_v29, %v5519_v55  ;;  %v5644_v29 = vld [vmem:[%s13336_s3 + $0x228] sm:$0xff] }
 0x2ca   :  { %3486 = vmatprep.mubr.f32.mxu0 %v12211_v7  ;;  %v7258_v2 = vpack.c.bf16 %v5468_v1, %v5464_v62  ;;  %v5475_v15 = vld [vmem:[%s13334_s1 + $0x2af0] sm:$0xff]  ;;  %v5572_v31 = vld [vmem:[%s13334_s1 + $0x2df8] sm:$0xff] }
 0x2cb   :  { %3641 = vmatmul.mubr.f32.gmra.mrb[6].mxu1 %v11455_v27  ;;  %v5420_v27 = vld [vmem:[%s13334_s1 + $0x2938] sm:$0xff]  ;;  %v7264_v23 = vpack.c.bf16 %v5475_v15, %v5471_v42  ;;  %v5499_v43 = vld [vmem:[%s13334_s1 + $0x2bb0] sm:$0xff] }
 0x2cc   :  { %7225 = vmatpush1.bf16.msra.mxu1 %v7224_v6  ;;  %3711 = vmatprep.mubr.f32.mxu1 %v11474_v5  ;;  %v7234_v30 = vpack.c.bf16 %v5420_v27, %v5416_v13  ;;  %v5419_v5 = vld [vmem:[%s13334_s1 + $0x2930] sm:$0xff]  ;;  %v5472_v6 = vld [vmem:[%s13334_s1 + $0x2ad8] sm:$0xff]  ;;  %v7276_v45 = vpack.c.bf16 %v5499_v43, %v5495_v41 }
 0x2cd   :  { %3487 = vmatmul.mubr.f32.gmra.mrb[2].mxu0 %v12223_v16  ;;  %7227 = vmatprep.subr.bf16.mxu1 %v7226_v8  ;;  %v7236_v32 = vpack.c.bf16 %v5419_v5, %v5415_v0  ;;  %v5476_v8 = vld [vmem:[%s13334_s1 + $0x2af8] sm:$0xff]  ;;  %v5479_v13 = vld [vmem:[%s13334_s1 + $0x2b10] sm:$0xff] }
 0x2ce   :  { %v7262_v12 = vpack.c.bf16 %v5476_v8, %v5472_v6  ;;  %v5483_v27 = vld [vmem:[%s13334_s1 + $0x2b30] sm:$0xff]  ;;  %v5544_v6 = vld [vmem:[%s13334_s1 + $0x2d18] sm:$0xff] }
 0x2cf   :  { %v7268_v0 = vpack.c.bf16 %v5483_v27, %v5479_v13  ;;  %v5503_v47 = vld [vmem:[%s13334_s1 + $0x2bd0] sm:$0xff]  ;;  %v5552_v42 = vld [vmem:[%s13334_s1 + $0x2d58] sm:$0xff] }
 0x2d0   :  { %7229 = vmatpush1.bf16.msra.mxu1 %v7228_v19  ;;  %v5480_v19 = vld [vmem:[%s13334_s1 + $0x2b18] sm:$0xff]  ;;  %v5507_v48 = vld [vmem:[%s13334_s1 + $0x2bf0] sm:$0xff] }
 0x2d1   :  { %7231 = vmatprep.subr.bf16.mxu1 %v7230_v20  ;;  %v5484_v20 = vld [vmem:[%s13334_s1 + $0x2b38] sm:$0xff]  ;;  %v7280_v50 = vpack.c.bf16 %v5507_v48, %v5503_v47  ;;  %v5511_v52 = vld [vmem:[%s13334_s1 + $0x2c10] sm:$0xff] }
 0x2d2   :  { %v7266_v28 = vpack.c.bf16 %v5484_v20, %v5480_v19  ;;  %v5515_v37 = vld [vmem:[%s13334_s1 + $0x2c30] sm:$0xff]  ;;  %v5556_v15 = vld [vmem:[%s13334_s1 + $0x2d78] sm:$0xff] }
 0x2d3   :  { %v7284_v53 = vpack.c.bf16 %v5515_v37, %v5511_v52  ;;  %v5527_v62 = vld [vmem:[%s13334_s1 + $0x2c90] sm:$0xff]  ;;  %v7302_v20 = vpack.c.bf16 %v5556_v15, %v5552_v42  ;;  %v5560_v13 = vld [vmem:[%s13334_s1 + $0x2d98] sm:$0xff]  ;;  %v5652_v42 = vld [vmem:[%s13336_s3 + $0x268] sm:$0xff] }
 0x2d4   :  { %7233 = vmatpush1.bf16.msra.mxu1 %v7232_v38  ;;  %v5488_v38 = vld [vmem:[%s13334_s1 + $0x2b58] sm:$0xff]  ;;  %v5531_v1 = vld [vmem:[%s13334_s1 + $0x2cb0] sm:$0xff] }
 0x2d5   :  { %7235 = vmatprep.subr.bf16.mxu1 %v7234_v30  ;;  %v5492_v30 = vld [vmem:[%s13334_s1 + $0x2b78] sm:$0xff]  ;;  %v5535_v4 = vld [vmem:[%s13334_s1 + $0x2cd0] sm:$0xff] }
 0x2d6   :  { %v7270_v5 = vpack.c.bf16 %v5492_v30, %v5488_v38  ;;  %v5539_v63 = vld [vmem:[%s13334_s1 + $0x2cf0] sm:$0xff]  ;;  %v5564_v27 = vld [vmem:[%s13334_s1 + $0x2db8] sm:$0xff] }
 0x2d7   :  { %v7306_v30 = vpack.c.bf16 %v5564_v27, %v5560_v13  ;;  %v5576_v41 = vld [vmem:[%s13334_s1 + $0x2e18] sm:$0xff]  ;;  %v5579_v47 = vld [vmem:[%s13334_s1 + $0x2e30] sm:$0xff] }
 0x2d8   :  { %7237 = vmatpush1.bf16.msra.mxu1 %v7236_v32  ;;  %v5496_v32 = vld [vmem:[%s13334_s1 + $0x2b98] sm:$0xff]  ;;  %v5641_v55 = vld [vmem:[%s13336_s3 + $0x210] sm:$0xff] }
 0x2d9   :  { %7239 = vmatprep.subr.bf16.mxu1 %v7238_v33  ;;  %v5500_v33 = vld [vmem:[%s13334_s1 + $0x2bb8] sm:$0xff] }
 0x2da   :  { %v7274_v39 = vpack.c.bf16 %v5500_v33, %v5496_v32  ;;  %v7310_v33 = vpack.c.bf16 %v5572_v31, %v5568_v17  ;;  %v5580_v43 = vld [vmem:[%s13334_s1 + $0x2e38] sm:$0xff]  ;;  %v5656_v17 = vld [vmem:[%s13336_s3 + $0x288] sm:$0xff] }
 0x2db   :  { %v5584_v48 = vld [vmem:[%s13334_s1 + $0x2e58] sm:$0xff] }
 0x2dc   :  { %7241 = vmatpush1.bf16.msra.mxu1 %v7240_v44  ;;  %v5504_v44 = vld [vmem:[%s13334_s1 + $0x2bd8] sm:$0xff] }
 0x2dd   :  { %7243 = vmatprep.subr.bf16.mxu1 %v7242_v3  ;;  %v5508_v3 = vld [vmem:[%s13334_s1 + $0x2bf8] sm:$0xff] }
 0x2de   :  { %v7278_v46 = vpack.c.bf16 %v5508_v3, %v5504_v44  ;;  %v3811_v44 = vlaneseq  ;;  %v5592_v52 = vld [vmem:[%s13334_s1 + $0x2e98] sm:$0xff] }
 0x2df   :  { %v5596_v37 = vld [vmem:[%s13334_s1 + $0x2eb8] sm:$0xff] }
 0x2e0   :  { %7245 = vmatpush1.bf16.msra.mxu1 %v7244_v49  ;;  %v5512_v49 = vld [vmem:[%s13334_s1 + $0x2c18] sm:$0xff]  ;;  %vm3909_vm2 = vcmp.lt.s32.totalorder %v3811_v44, 256 }
 0x2e1   :  { %7247 = vmatprep.subr.bf16.mxu1 %v7246_v9  ;;  %v5516_v9 = vld [vmem:[%s13334_s1 + $0x2c38] sm:$0xff]  ;;  %3911 = vst.msk [vmem:[#allocation3] ss:$8 sm:$0x3] %vm3909_vm2, %v7699_v24 }
 0x2e2   :  { %v7282_v51 = vpack.c.bf16 %v5516_v9, %v5512_v49  ;;  %3914 = vst.msk [vmem:[#allocation3 + $0x10] ss:$8 sm:$0x3] %vm3909_vm2, %v7699_v24  ;;  %3917 = vst.msk [vmem:[#allocation3 + $0x5] ss:$8 sm:$0x3] %vm3909_vm2, %v7699_v24 }
 0x2e3   :  { %3920 = vst.msk [vmem:[#allocation3 + $0x15] ss:$8 sm:$0x3] %vm3909_vm2, %v7699_v24  ;;  %v5588_v49 = vld [vmem:[%s13334_s1 + $0x2e78] sm:$0xff]  ;;  %v5587_v24 = vld [vmem:[%s13334_s1 + $0x2e70] sm:$0xff] }
 0x2e4   :  { %7249 = vmatpush1.bf16.msra.mxu1 %v7248_v54  ;;  %v5520_v54 = vld [vmem:[%s13334_s1 + $0x2c58] sm:$0xff] }
 0x2e5   :  { %7251 = vmatprep.subr.bf16.mxu1 %v7250_v40  ;;  %v5524_v40 = vld [vmem:[%s13334_s1 + $0x2c78] sm:$0xff] }
 0x2e6   :  { %v7286_v26 = vpack.c.bf16 %v5524_v40, %v5520_v54  ;;  %v5640_v54 = vld [vmem:[%s13336_s3 + $0x208] sm:$0xff]  ;;  %v5642_v40 = vld [vmem:[%s13336_s3 + $0x218] sm:$0xff] }
 0x2e7   :  { %v5654_v15 = vld [vmem:[%s13336_s3 + $0x278] sm:$0xff] }
 0x2e8   :  { %7253 = vmatpush1.bf16.msra.mxu1 %v7252_v56  ;;  %v5528_v56 = vld [vmem:[%s13334_s1 + $0x2c98] sm:$0xff] }
 0x2e9   :  { %7255 = vmatprep.subr.bf16.mxu1 %v7254_v58  ;;  %v5532_v58 = vld [vmem:[%s13334_s1 + $0x2cb8] sm:$0xff] }
 0x2ea   :  { %v7290_v60 = vpack.c.bf16 %v5532_v58, %v5528_v56  ;;  %v5646_v56 = vld [vmem:[%s13336_s3 + $0x238] sm:$0xff] }
 0x2eb   :  { %v5612_v13 = vld [vmem:[%s13334_s1 + $0x2f38] sm:$0xff] }
 0x2ec   :  { %7257 = vmatpush1.bf16.msra.mxu1 %v7256_v61  ;;  %v5536_v61 = vld [vmem:[%s13334_s1 + $0x2cd8] sm:$0xff] }
 0x2ed   :  { %7259 = vmatprep.subr.bf16.mxu1 %v7258_v2  ;;  %v5658_v31 = vld [vmem:[%s13336_s3 + $0x298] sm:$0xff] }
 0x2f0   :  { %7261 = vmatpush1.bf16.msra.mxu1 %v7260_v11  ;;  %v5543_v11 = vld [vmem:[%s13334_s1 + $0x2d10] sm:$0xff] }
 0x2f1   :  { %7263 = vmatprep.subr.bf16.mxu1 %v7262_v12  ;;  %v5547_v12 = vld [vmem:[%s13334_s1 + $0x2d30] sm:$0xff] }
 0x2f2   :  { %v7300_v19 = vpack.c.bf16 %v5547_v12, %v5543_v11  ;;  %v5649_v11 = vld [vmem:[%s13336_s3 + $0x250] sm:$0xff] }
 0x2f4   :  { %7265 = vmatpush1.bf16.msra.mxu1 %v7264_v23  ;;  %v5551_v23 = vld [vmem:[%s13334_s1 + $0x2d50] sm:$0xff] }
 0x2f5   :  { %7267 = vmatprep.subr.bf16.mxu1 %v7266_v28  ;;  %v5555_v28 = vld [vmem:[%s13334_s1 + $0x2d70] sm:$0xff] }
 0x2f6   :  { %v7304_v38 = vpack.c.bf16 %v5555_v28, %v5551_v23  ;;  %v5603_v23 = vld [vmem:[%s13334_s1 + $0x2ef0] sm:$0xff]  ;;  %v5608_v28 = vld [vmem:[%s13334_s1 + $0x2f18] sm:$0xff] }
 0x2f8   :  { %7269 = vmatpush1.bf16.msra.mxu1 %v7268_v0  ;;  %v5559_v0 = vld [vmem:[%s13334_s1 + $0x2d90] sm:$0xff] }
 0x2f9   :  { %7271 = vmatprep.subr.bf16.mxu1 %v7270_v5  ;;  %v5563_v5 = vld [vmem:[%s13334_s1 + $0x2db0] sm:$0xff] }
 0x2fa   :  { %v7308_v32 = vpack.c.bf16 %v5563_v5, %v5559_v0  ;;  %v5653_v0 = vld [vmem:[%s13336_s3 + $0x270] sm:$0xff] }
 0x2fc   :  { %7273 = vmatpush1.bf16.msra.mxu1 %v7272_v35  ;;  %v5567_v35 = vld [vmem:[%s13334_s1 + $0x2dd0] sm:$0xff] }
 0x2fd   :  { %7275 = vmatprep.subr.bf16.mxu1 %v7274_v39  ;;  %v5571_v39 = vld [vmem:[%s13334_s1 + $0x2df0] sm:$0xff] }
 0x2fe   :  { %v7312_v3 = vpack.c.bf16 %v5571_v39, %v5567_v35  ;;  %v5611_v35 = vld [vmem:[%s13334_s1 + $0x2f30] sm:$0xff]  ;;  %v5616_v39 = vld [vmem:[%s13334_s1 + $0x2f58] sm:$0xff] }
 0x300   :  { %7277 = vmatpush1.bf16.msra.mxu1 %v7276_v45  ;;  %v7314_v45 = vpack.c.bf16 %v5580_v43, %v5576_v41  ;;  %v5620_v41 = vld [vmem:[%s13334_s1 + $0x2f78] sm:$0xff] }
 0x301   :  { %7279 = vmatprep.subr.bf16.mxu1 %v7278_v46  ;;  %v5575_v46 = vld [vmem:[%s13334_s1 + $0x2e10] sm:$0xff] }
 0x302   :  { %v7316_v9 = vpack.c.bf16 %v5579_v47, %v5575_v46  ;;  %v5657_v46 = vld [vmem:[%s13336_s3 + $0x290] sm:$0xff] }
 0x304   :  { %7281 = vmatpush1.bf16.msra.mxu1 %v7280_v50  ;;  %v5583_v50 = vld [vmem:[%s13334_s1 + $0x2e50] sm:$0xff] }
 0x305   :  { %7283 = vmatprep.subr.bf16.mxu1 %v7282_v51  ;;  %v7318_v51 = vpack.c.bf16 %v5588_v49, %v5584_v48  ;;  %v7320_v58 = vpack.c.bf16 %v5587_v24, %v5583_v50  ;;  %v5660_v48 = vld [vmem:[%s13336_s3 + $0x2a8] sm:$0xff]  ;;  %v5662_v49 = vld [vmem:[%s13336_s3 + $0x2b8] sm:$0xff]  ;;  %v5615_v50 = vld [vmem:[%s13334_s1 + $0x2f50] sm:$0xff] }
 0x306   :  { %v5624_v24 = vld [vmem:[%s13334_s1 + $0x2f98] sm:$0xff] }
 0x307   :  { %3712 = vmatmul.mubr.f32.vlgmr.msra.gmra.mrb[4].mxu1 %v11825_v57  ;;  %v5540_v57 = vld [vmem:[%s13334_s1 + $0x2cf8] sm:$0xff] }
 0x308   :  { %7285 = vmatpush1.bf16.msra.mxu1 %v7284_v53  ;;  %3717 = vmatprep.mubr.f32.mxu1 %v11844_v25  ;;  %v7292_v25 = vpack.c.bf16 %v5531_v1, %v5527_v62  ;;  %v7294_v2 = vpack.c.bf16 %v5540_v57, %v5536_v61  ;;  %v5639_v53 = vld [vmem:[%s13336_s3 + $0x200] sm:$0xff]  ;;  %v5645_v1 = vld [vmem:[%s13336_s3 + $0x230] sm:$0xff]  ;;  %v5648_v61 = vld [vmem:[%s13336_s3 + $0x248] sm:$0xff]  ;;  %v7322_v57 = vpack.c.bf16 %v5596_v37, %v5592_v52 }
 0x309   :  { %7287 = vmatprep.subr.bf16.mxu1 %v7286_v26  ;;  %v7346_v26 = vpack.c.bf16 %v5642_v40, %v5640_v54  ;;  %v5643_v62 = vld [vmem:[%s13336_s3 + $0x220] sm:$0xff]  ;;  %v5628_v52 = vld [vmem:[%s13334_s1 + $0x2fb8] sm:$0xff]  ;;  %v7366_v54 = vpack.c.bf16 %v5662_v49, %v5660_v48 }
 0x30a   :  { %v5683_v49 = vld [vmem:[%s13336_s3 + $0x360] sm:$0xff] }
 0x30b   :  { %3718 = vmatmul.mubr.f32.gmra.mrb[6].mxu1 %v11857_v34  ;;  %v5548_v34 = vld [vmem:[%s13334_s1 + $0x2d38] sm:$0xff]  ;;  %7347 = vmatprep.subr.bf16.mxu0 %v7346_v26  ;;  %v5623_v26 = vld [vmem:[%s13334_s1 + $0x2f90] sm:$0xff] }
 0x30c   :  { %7289 = vmatpush1.bf16.msra.mxu1 %v7288_v36  ;;  %3788 = vmatprep.mubr.f32.mxu1 %v11878_v10  ;;  %v7296_v10 = vpack.c.bf16 %v5539_v63, %v5535_v4  ;;  %v7298_v8 = vpack.c.bf16 %v5548_v34, %v5544_v6  ;;  %v7348_v36 = vpack.c.bf16 %v5641_v55, %v5639_v53  ;;  %v5650_v4 = vld [vmem:[%s13336_s3 + $0x258] sm:$0xff]  ;;  %v5627_v55 = vld [vmem:[%s13334_s1 + $0x2fb0] sm:$0xff] }
 0x30d   :  { %7291 = vmatprep.subr.bf16.mxu1 %v7290_v60  ;;  %v7350_v60 = vpack.c.bf16 %v5646_v56, %v5644_v29  ;;  %v5600_v63 = vld [vmem:[%s13334_s1 + $0x2ed8] sm:$0xff]  ;;  %v7352_v34 = vpack.c.bf16 %v5645_v1, %v5643_v62  ;;  %v7338_v53 = vpack.c.bf16 %v5628_v52, %v5624_v24  ;;  %v5635_v62 = vld [vmem:[%s13334_s1 + $0x2ff0] sm:$0xff] }
 0x30e   :  { %v5604_v6 = vld [vmem:[%s13334_s1 + $0x2ef8] sm:$0xff]  ;;  %7349 = vmatpush1.bf16.msra.mxu0 %v7348_v36 }
 0x30f   :  { %7351 = vmatprep.subr.bf16.mxu0 %v7350_v60  ;;  %v5632_v29 = vld [vmem:[%s13334_s1 + $0x2fd8] sm:$0xff]  ;;  %v5631_v60 = vld [vmem:[%s13334_s1 + $0x2fd0] sm:$0xff] }
 0x310   :  { %7293 = vmatpush1.bf16.msra.mxu1 %v7292_v25  ;;  %v5591_v25 = vld [vmem:[%s13334_s1 + $0x2e90] sm:$0xff]  ;;  %v5636_v56 = vld [vmem:[%s13334_s1 + $0x2ff8] sm:$0xff]  ;;  %v7344_v1 = vpack.c.bf16 %v5635_v62, %v5631_v60 }
 0x311   :  { %7295 = vmatprep.subr.bf16.mxu1 %v7294_v2  ;;  %v5595_v2 = vld [vmem:[%s13334_s1 + $0x2eb0] sm:$0xff]  ;;  %v7342_v36 = vpack.c.bf16 %v5636_v56, %v5632_v29  ;;  %v5690_v24 = vld [vmem:[%s13336_s3 + $0x398] sm:$0xff] }
 0x312   :  { %v7324_v12 = vpack.c.bf16 %v5595_v2, %v5591_v25  ;;  %7353 = vmatpush1.bf16.msra.mxu0 %v7352_v34  ;;  %v5664_v2 = vld [vmem:[%s13336_s3 + $0x2c8] sm:$0xff]  ;;  %v5693_v56 = vld [vmem:[%s13336_s3 + $0x3b0] sm:$0xff] }
 0x314   :  { %7297 = vmatpush1.bf16.msra.mxu1 %v7296_v10  ;;  %v7354_v10 = vpack.c.bf16 %v5650_v4, %v5648_v61  ;;  %v5659_v61 = vld [vmem:[%s13336_s3 + $0x2a0] sm:$0xff] }
 0x315   :  { %7299 = vmatprep.subr.bf16.mxu1 %v7298_v8  ;;  %v5647_v8 = vld [vmem:[%s13336_s3 + $0x240] sm:$0xff] }
 0x316   :  { %v7356_v27 = vpack.c.bf16 %v5649_v11, %v5647_v8  ;;  %7355 = vmatprep.subr.bf16.mxu0 %v7354_v10  ;;  %v5663_v4 = vld [vmem:[%s13336_s3 + $0x2c0] sm:$0xff]  ;;  %v5668_v11 = vld [vmem:[%s13336_s3 + $0x2e8] sm:$0xff] }
 0x318   :  { %7301 = vmatpush1.bf16.msra.mxu1 %v7300_v19  ;;  %v7326_v19 = vpack.c.bf16 %v5604_v6, %v5600_v63  ;;  %7357 = vmatpush1.bf16.msra.mxu0 %v7356_v27  ;;  %v5665_v63 = vld [vmem:[%s13336_s3 + $0x2d0] sm:$0xff]  ;;  %v5674_v27 = vld [vmem:[%s13336_s3 + $0x318] sm:$0xff] }
 0x319   :  { %7303 = vmatprep.subr.bf16.mxu1 %v7302_v20  ;;  %v5599_v20 = vld [vmem:[%s13334_s1 + $0x2ed0] sm:$0xff]  ;;  %v7372_v10 = vpack.c.bf16 %v5665_v63, %v5663_v4  ;;  %v3967_v63 = vld [vmem:[%s13336_s3 + $0x8] sm:$0xff] }
 0x31a   :  { %v7328_v5 = vpack.c.bf16 %v5603_v23, %v5599_v20 }
 0x31c   :  { %7305 = vmatpush1.bf16.msra.mxu1 %v7304_v38  ;;  %v7358_v38 = vpack.c.bf16 %v5654_v15, %v5652_v42 }
 0x31d   :  { %7307 = vmatprep.subr.bf16.mxu1 %v7306_v30  ;;  %v5651_v30 = vld [vmem:[%s13336_s3 + $0x260] sm:$0xff] }
 0x31e   :  { %v7360_v43 = vpack.c.bf16 %v5653_v0, %v5651_v30  ;;  %7359 = vmatprep.subr.bf16.mxu0 %v7358_v38  ;;  %v5676_v0 = vld [vmem:[%s13336_s3 + $0x328] sm:$0xff] }
 0x320   :  { %7309 = vmatpush1.bf16.msra.mxu1 %v7308_v32  ;;  %v7330_v32 = vpack.c.bf16 %v5612_v13, %v5608_v28  ;;  %7361 = vmatpush1.bf16.msra.mxu0 %v7360_v43  ;;  %v5672_v13 = vld [vmem:[%s13336_s3 + $0x308] sm:$0xff]  ;;  %v5679_v43 = vld [vmem:[%s13336_s3 + $0x340] sm:$0xff] }
 0x321   :  { %7311 = vmatprep.subr.bf16.mxu1 %v7310_v33  ;;  %v5607_v33 = vld [vmem:[%s13334_s1 + $0x2f10] sm:$0xff]  ;;  %v7378_v38 = vpack.c.bf16 %v5674_v27, %v5672_v13  ;;  %v7700_v27 = vmov 1966171168  }
 0x322   :  { %v7332_v47 = vpack.c.bf16 %v5611_v35, %v5607_v33  ;;  %v5680_v35 = vld [vmem:[%s13336_s3 + $0x348] sm:$0xff] }
 0x324   :  { %7313 = vmatpush1.bf16.msra.mxu1 %v7312_v3  ;;  %v7362_v3 = vpack.c.bf16 %v5658_v31, %v5656_v17  ;;  %v5675_v31 = vld [vmem:[%s13336_s3 + $0x320] sm:$0xff] }
 0x325   :  { %7315 = vmatprep.subr.bf16.mxu1 %v7314_v45  ;;  %v5655_v45 = vld [vmem:[%s13336_s3 + $0x280] sm:$0xff] }
 0x326   :  { %v7364_v37 = vpack.c.bf16 %v5657_v46, %v5655_v45  ;;  %7363 = vmatprep.subr.bf16.mxu0 %v7362_v3  ;;  %v5681_v3 = vld [vmem:[%s13336_s3 + $0x350] sm:$0xff]  ;;  %v5684_v46 = vld [vmem:[%s13336_s3 + $0x368] sm:$0xff] }
 0x327   :  { %v7388_v45 = vpack.c.bf16 %v5681_v3, %v5679_v43 }
 0x328   :  { %7317 = vmatpush1.bf16.msra.mxu1 %v7316_v9  ;;  %v7334_v9 = vpack.c.bf16 %v5620_v41, %v5616_v39  ;;  %7365 = vmatpush1.bf16.msra.mxu0 %v7364_v37  ;;  %v5682_v39 = vld [vmem:[%s13336_s3 + $0x358] sm:$0xff]  ;;  %v5687_v37 = vld [vmem:[%s13336_s3 + $0x380] sm:$0xff] }
 0x329   :  { %7319 = vmatprep.subr.bf16.mxu1 %v7318_v51  ;;  %v5619_v51 = vld [vmem:[%s13334_s1 + $0x2f70] sm:$0xff]  ;;  %7367 = vmatprep.subr.bf16.mxu0 %v7366_v54  ;;  %v7386_v41 = vpack.c.bf16 %v5682_v39, %v5680_v35 }
 0x32a   :  { %v7336_v40 = vpack.c.bf16 %v5619_v51, %v5615_v50  ;;  %v5688_v51 = vld [vmem:[%s13336_s3 + $0x388] sm:$0xff]  ;;  %v5689_v54 = vld [vmem:[%s13336_s3 + $0x390] sm:$0xff] }
 0x32b   :  { %v7394_v52 = vpack.c.bf16 %v5690_v24, %v5688_v51 }
 0x32c   :  { %7321 = vmatpush1.bf16.msra.mxu1 %v7320_v58  ;;  %v7340_v58 = vpack.c.bf16 %v5627_v55, %v5623_v26  ;;  %v5694_v26 = vld [vmem:[%s13336_s3 + $0x3b8] sm:$0xff]  ;;  %v5691_v55 = vld [vmem:[%s13336_s3 + $0x3a0] sm:$0xff] }
 0x32d   :  { %7323 = vmatprep.subr.bf16.mxu1 %v7322_v57  ;;  %v5661_v57 = vld [vmem:[%s13336_s3 + $0x2b0] sm:$0xff]  ;;  %v7400_v60 = vpack.c.bf16 %v5693_v56, %v5691_v55 }
 0x32e   :  { %v7368_v25 = vpack.c.bf16 %v5661_v57, %v5659_v61  ;;  %v5697_v61 = vld [vmem:[%s13336_s3 + $0x3d0] sm:$0xff]  ;;  %v5700_v57 = vld [vmem:[%s13336_s3 + $0x3e8] sm:$0xff] }
 0x330   :  { %7325 = vmatpush1.bf16.msra.mxu1 %v7324_v12  ;;  %7369 = vmatpush1.bf16.msra.mxu0 %v7368_v25  ;;  %v5670_v12 = vld [vmem:[%s13336_s3 + $0x2f8] sm:$0xff] }
 0x331   :  { %7327 = vmatprep.subr.bf16.mxu1 %v7326_v19  ;;  %v7374_v15 = vpack.c.bf16 %v5670_v12, %v5668_v11  ;;  %v5702_v25 = vld [vmem:[%s13336_s3 + $0x3f8] sm:$0xff]  ;;  %v12806_v11 = vshrl.u32 %v3811_v44, 7 }
 0x333   :  { %v3813_v12 = vsub.s32 0, %v12806_v11 }
 0x334   :  { %7329 = vmatpush1.bf16.msra.mxu1 %v7328_v5  ;;  %v5678_v5 = vld [vmem:[%s13336_s3 + $0x338] sm:$0xff] }
 0x335   :  { %7331 = vmatprep.subr.bf16.mxu1 %v7330_v32  ;;  %v7382_v17 = vpack.c.bf16 %v5678_v5, %v5676_v0  ;;  %v5677_v32 = vld [vmem:[%s13336_s3 + $0x330] sm:$0xff] }
 0x336   :  { %v7384_v33 = vpack.c.bf16 %v5677_v32, %v5675_v31 }
 0x338   :  { %7333 = vmatpush1.bf16.msra.mxu1 %v7332_v47  ;;  %v5686_v47 = vld [vmem:[%s13336_s3 + $0x378] sm:$0xff] }
 0x339   :  { %7335 = vmatprep.subr.bf16.mxu1 %v7334_v9  ;;  %v7390_v48 = vpack.c.bf16 %v5686_v47, %v5684_v46  ;;  %v5685_v9 = vld [vmem:[%s13336_s3 + $0x370] sm:$0xff]  ;;  %v7701_v46 = vmov 1983009808  }
 0x33a   :  { %v7392_v50 = vpack.c.bf16 %v5685_v9, %v5683_v49  ;;  %v3928_v47 = vunpack.c.l.s4 %v7701_v46 }
 0x33c   :  { %7337 = vmatpush1.bf16.msra.mxu1 %v7336_v40  ;;  %v7396_v40 = vpack.c.bf16 %v5689_v54, %v5687_v37  ;;  %v3929_v54 = vunpack.c.0.s8 %v3928_v47  ;;  %v3975_v47 = vld [vmem:[%s13336_s3 + $0x48] sm:$0xff] }
 0x33d   :  { %7339 = vmatprep.subr.bf16.mxu1 %v7338_v53  ;;  %v5692_v53 = vld [vmem:[%s13336_s3 + $0x3a8] sm:$0xff] }
 0x33e   :  { %v7398_v29 = vpack.c.bf16 %v5694_v26, %v5692_v53 }
 0x340   :  { %7341 = vmatpush1.bf16.msra.mxu1 %v7340_v58  ;;  %v5696_v58 = vld [vmem:[%s13336_s3 + $0x3c8] sm:$0xff] }
 0x341   :  { %7343 = vmatprep.subr.bf16.mxu1 %v7342_v36  ;;  %v5698_v36 = vld [vmem:[%s13336_s3 + $0x3d8] sm:$0xff] }
 0x342   :  { %v7402_v62 = vpack.c.bf16 %v5698_v36, %v5696_v58  ;;  %v3932_v36 = vsub.s32 %v3929_v54, %v12806_v11 }
 0x344   :  { %7345 = vmatpush1.bf16.msra.mxu1 %v7344_v1  ;;  %v5695_v1 = vld [vmem:[%s13336_s3 + $0x3c0] sm:$0xff] }
 0x347   :  { %3789 = vmatmul.mubr.f32.vlgmr.msra.gmra.mrb[4].mxu1 %v12202_v59  ;;  %v5666_v59 = vld [vmem:[%s13336_s3 + $0x2d8] sm:$0xff] }
 0x348   :  { %3794 = vmatprep.mubr.f32.mxu1 %v12211_v7 }
 0x34b   :  { %3795 = vmatmul.mubr.f32.gmra.mrb[6].mxu1 %v12223_v16  ;;  %v7370_v16 = vpack.c.bf16 %v5666_v59, %v5664_v2  ;;  %v7404_v2 = vpack.c.bf16 %v5697_v61, %v5695_v1  ;;  %v7406_v59 = vpack.c.bf16 %v5702_v25, %v5700_v57 }
 0x34d   :  { %7371 = vmatprep.subr.bf16.mxu0 %v7370_v16  ;;  %v5701_v16 = vld [vmem:[%s13336_s3 + $0x3f0] sm:$0xff] }
 0x34e   :  { %7373 = vmatpush1.bf16.msra.mxu0 %v7372_v10 }
 0x34f   :  { %7375 = vmatprep.subr.bf16.mxu0 %v7374_v15  ;;  %v3817_v15 = vsub.s32 1, %v12806_v11 }
 0x39c   :  { %v3482_v7 = vpop.f32.mrb[0].mxu0 }
 0x39d   :  { %v12680_v6 = vadd.f32 %v3482_v7, %v9592_v22  ;;  %v3484_v34 = vpop.f32.mrb[1].mxu0  ;;  %v5667_v22 = vld [vmem:[%s13336_s3 + $0x2e0] sm:$0xff] }
 0x39e   :  { %v12683_v8 = vadd.f32 %v3484_v34, %v9603_v14  ;;  %v5669_v14 = vld [vmem:[%s13336_s3 + $0x2f0] sm:$0xff]  ;;  %v5699_v7 = vld [vmem:[%s13336_s3 + $0x3e0] sm:$0xff]  ;;  %v3969_v34 = vld [vmem:[%s13336_s3 + $0x18] sm:$0xff] }
 0x39f   :  { %v7376_v23 = vpack.c.bf16 %v5669_v14, %v5667_v22  ;;  %v7408_v4 = vpack.c.bf16 %v5701_v16, %v5699_v7  ;;  %v7410_v10 = vpack.c.bf16 %v3969_v34, %v3967_v63  ;;  %v3821_v22 = vsub.s32 2, %v12806_v11 }
 0x3a0   :  { %v3488_v42 = vpop.f32.mrb[2].mxu0  ;;  %v3825_v14 = vsub.s32 3, %v12806_v11 }
 0x3a1   :  { %v12698_v19 = vadd.f32 %v3488_v42, %v9821_v18  ;;  %v3490_v20 = vpop.f32.mrb[3].mxu0  ;;  %7377 = vmatpush1.bf16.msra.mxu0 %v7376_v23  ;;  %v5671_v18 = vld [vmem:[%s13336_s3 + $0x300] sm:$0xff] }
 0x3a2   :  { %v12701_v28 = vadd.f32 %v3490_v20, %v9829_v21  ;;  %v5673_v21 = vld [vmem:[%s13336_s3 + $0x310] sm:$0xff]  ;;  %7379 = vmatprep.subr.bf16.mxu0 %v7378_v38  ;;  %v3809_v42 = vld [vmem:[%s13337_s2] sm:$0xf]  ;;  %v3864_v38 = vunpack.c.l.s4 %v7700_v27 }
 0x3a3   :  { %v7380_v30 = vpack.c.bf16 %v5673_v21, %v5671_v18  ;;  %v3814_v20 = vrot.slane %v3809_v42, %v3813_v12  ;;  %v3818_v23 = vrot.slane %v3809_v42, %v3817_v15  ;;  %v3822_v44 = vrot.slane %v3809_v42, %v3821_v22 }
 0x3a4   :  { %v3826_v13 = vrot.slane %v3809_v42, %v3825_v14  ;;  %v3865_v31 = vunpack.c.0.s8 %v3864_v38 }
 0x3a5   :  { %7381 = vmatpush1.bf16.msra.mxu0 %v7380_v30  ;;  %v3831_v18 = vadd.f32 %v12680_v6, %v3814_v20  ;;  %v3832_v21 = vadd.f32 %v12683_v8, %v3818_v23 }
 0x3a6   :  { %7383 = vmatprep.subr.bf16.mxu0 %v7382_v17  ;;  %v12824_v49 = vsub.s32 %v3865_v31, %v12806_v11  ;;  %v3973_v31 = vld [vmem:[%s13336_s3 + $0x38] sm:$0xff]  ;;  %v14_v11 = vstv %s13340_s8 }
 0x3a7   :  { %v3839_v32 = vmax.f32 %v3831_v18, 0.0  ;;  %v3840_v39 = vmax.f32 %v3832_v21, 0.0  ;;  %15 = vst [vmem:[#allocation4] sm:$0x1] %v14_v11 }
 0x3a9   :  { %7385 = vmatpush1.bf16.msra.mxu0 %v7384_v33  ;;  %v3835_v33 = vadd.f32 %v12698_v19, %v3814_v20 }
 0x3aa   :  { %7387 = vmatprep.subr.bf16.mxu0 %v7386_v41  ;;  %v3836_v41 = vadd.f32 %v12701_v28, %v3818_v23 }
 0x3ac   :  { %v3844_v24 = vmax.f32 %v3836_v41, 0.0 }
 0x3ad   :  { %7389 = vmatpush1.bf16.msra.mxu0 %v7388_v45 }
 0x3ae   :  { %7391 = vmatprep.subr.bf16.mxu0 %v7390_v48 }
 0x3b1   :  { %7393 = vmatpush1.bf16.msra.mxu0 %v7392_v50  ;;  %v3843_v50 = vmax.f32 %v3835_v33, 0.0 }
 0x3b2   :  { %7395 = vmatprep.subr.bf16.mxu0 %v7394_v52 }
 0x3b5   :  { %7397 = vmatpush1.bf16.msra.mxu0 %v7396_v40 }
 0x3b6   :  { %7399 = vmatprep.subr.bf16.mxu0 %v7398_v29 }
 0x3b9   :  { %7401 = vmatpush1.bf16.msra.mxu0 %v7400_v60 }
 0x3ba   :  { %7403 = vmatprep.subr.bf16.mxu0 %v7402_v62 }
 0x3bd   :  { %7405 = vmatpush1.bf16.msra.mxu0 %v7404_v2 }
 0x3be   :  { %7407 = vmatprep.subr.bf16.mxu0 %v7406_v59 }
 0x3c1   :  { %7409 = vmatpush1.bf16.msra.mxu0 %v7408_v4 }
 0x3c2   :  { %7411 = vmatprep.subr.bf16.mxu0 %v7410_v10 }
 0x41a   :  { %v3790_v30 = vpop.f32.mrb[4].mxu1 }
 0x41b   :  { %v3833_v0 = vadd.f32 %v3822_v44, %v3790_v30  ;;  %v3792_v5 = vpop.f32.mrb[5].mxu1 }
 0x41c   :  { %v3834_v17 = vadd.f32 %v3826_v13, %v3792_v5  ;;  %v3968_v5 = vld [vmem:[%s13336_s3 + $0x10] sm:$0xff] }
 0x41d   :  { %v3841_v35 = vmax.f32 %v3833_v0, 0.0  ;;  %v3966_v0 = vld [vmem:[%s13336_s3] sm:$0xff] }
 0x41e   :  { %v3842_v43 = vmax.f32 %v3834_v17, 0.0  ;;  %v3796_v3 = vpop.f32.mrb[6].mxu1  ;;  %v3971_v17 = vld [vmem:[%s13336_s3 + $0x28] sm:$0xff]  ;;  %v7412_v41 = vpack.c.bf16 %v3968_v5, %v3966_v0 }
 0x41f   :  { %v3847_v45 = vmax.f32 %v3839_v32, %v3841_v35  ;;  %v3837_v6 = vadd.f32 %v3822_v44, %v3796_v3  ;;  %v3798_v48 = vpop.f32.mrb[7].mxu1  ;;  %v3970_v3 = vld [vmem:[%s13336_s3 + $0x20] sm:$0xff] }
 0x420   :  { %v3848_v8 = vmax.f32 %v3840_v39, %v3842_v43  ;;  %v3838_v9 = vadd.f32 %v3826_v13, %v3798_v48  ;;  %v7414_v43 = vpack.c.bf16 %v3973_v31, %v3971_v17  ;;  %v3974_v48 = vld [vmem:[%s13336_s3 + $0x40] sm:$0xff]  ;;  %v3992_v31 = vld [vmem:[%s13336_s3 + $0xd0] sm:$0xff] }
 0x421   :  { %v3845_v51 = vmax.f32 %v3837_v6, 0.0  ;;  %v3977_v6 = vld [vmem:[%s13336_s3 + $0x58] sm:$0xff]  ;;  %v3990_v17 = vld [vmem:[%s13336_s3 + $0xc0] sm:$0xff] }
 0x422   :  { %v3855_v19 = vcombine.low %v3847_v45, %v3848_v8  ;;  %v3856_v52 = vcombine.high %v3847_v45, %v3848_v8  ;;  %v3846_v37 = vmax.f32 %v3838_v9, 0.0  ;;  %v3972_v45 = vld [vmem:[%s13336_s3 + $0x30] sm:$0xff] }
 0x423   :  { %v3849_v28 = vmax.f32 %v3843_v50, %v3845_v51  ;;  %v3976_v8 = vld [vmem:[%s13336_s3 + $0x50] sm:$0xff]  ;;  %v7416_v9 = vpack.c.bf16 %v3972_v45, %v3970_v3  ;;  %v3979_v50 = vld [vmem:[%s13336_s3 + $0x68] sm:$0xff]  ;;  %v3981_v51 = vld [vmem:[%s13336_s3 + $0x78] sm:$0xff] }
 0x424   :  { %v3869_v40 = vrot.slane %v3855_v19, %v12824_v49  ;;  %v3876_v53 = vrot.slane %v3856_v52, %v12824_v49  ;;  %v3850_v26 = vmax.f32 %v3844_v24, %v3846_v37  ;;  %v4484_v24 = vld [vmem:[%s13338_s5 + $0x80] sm:$0xff]  ;;  %v4485_v19 = vld [vmem:[%s13338_s5 + $0x88] sm:$0xff]  ;;  %v7418_v37 = vpack.c.bf16 %v3977_v6, %v3975_v47  ;;  %v4001_v45 = vld [vmem:[%s13336_s3 + $0x118] sm:$0xff] }
 0x425   :  { %v4468_v52 = vld [vmem:[%s13338_s5] sm:$0xff]  ;;  %v7538_v54 = vpack.c.bf16 %v4485_v19, %v4484_v24  ;;  %v3999_v3 = vld [vmem:[%s13336_s3 + $0x108] sm:$0xff]  ;;  %v4004_v19 = vld [vmem:[%s13336_s3 + $0x130] sm:$0xff] }
 0x426   :  { %v3895_v55 = vrot.slane %v3869_v40, 4  ;;  %v3896_v29 = vrot.slane %v3876_v53, 4  ;;  %v3857_v56 = vcombine.low %v3849_v28, %v3850_v26  ;;  %v3858_v58 = vcombine.high %v3849_v28, %v3850_v26  ;;  %v4469_v28 = vld [vmem:[%s13338_s5 + $0x8] sm:$0xff]  ;;  %v3998_v6 = vld [vmem:[%s13336_s3 + $0x100] sm:$0xff] }
 0x427   :  { %v7540_v26 = vpack.c.bf16 %v4469_v28, %v4468_v52  ;;  %7539 = vmatprep.subr.bf16.mxu1 %v7538_v54  ;;  %v7442_v47 = vpack.c.bf16 %v4001_v45, %v3999_v3  ;;  %v4002_v24 = vld [vmem:[%s13336_s3 + $0x120] sm:$0xff]  ;;  %v4007_v52 = vld [vmem:[%s13336_s3 + $0x148] sm:$0xff] }
 0x428   :  { %v3903_v60 = vmax.f32 %v3869_v40, %v3895_v55  ;;  %v3904_v62 = vmax.f32 %v3876_v53, %v3896_v29  ;;  %v3883_v1 = vrot.slane %v3857_v56, %v12824_v49  ;;  %v3890_v61 = vrot.slane %v3858_v58, %v12824_v49  ;;  %v4486_v40 = vld [vmem:[%s13338_s5 + $0x90] sm:$0xff]  ;;  %v4487_v53 = vld [vmem:[%s13338_s5 + $0x98] sm:$0xff]  ;;  %v4488_v58 = vld [vmem:[%s13338_s5 + $0xa0] sm:$0xff] }
 0x429   :  { %v7542_v55 = vpack.c.bf16 %v4487_v53, %v4486_v40  ;;  %v4470_v29 = vld [vmem:[%s13338_s5 + $0x10] sm:$0xff]  ;;  %v4471_v56 = vld [vmem:[%s13338_s5 + $0x18] sm:$0xff]  ;;  %7541 = vmatpush3.bf16.msra.mxu1 %v7540_v26  ;;  %v7448_v54 = vpack.c.bf16 %v4004_v19, %v4002_v24  ;;  %v4006_v40 = vld [vmem:[%s13336_s3 + $0x140] sm:$0xff] }
 0x42a   :  { %v3926_v57 = vcombine.low %v3903_v60, %v3904_v62  ;;  %v3897_v25 = vrot.slane %v3883_v1, 4  ;;  %v3898_v2 = vrot.slane %v3890_v61, 4  ;;  %v7420_v60 = vpack.c.bf16 %v3976_v8, %v3974_v48  ;;  %v3978_v62 = vld [vmem:[%s13336_s3 + $0x60] sm:$0xff]  ;;  %v4000_v48 = vld [vmem:[%s13336_s3 + $0x110] sm:$0xff]  ;;  %v4003_v8 = vld [vmem:[%s13336_s3 + $0x128] sm:$0xff] }
 0x42b   :  { %7543 = vmatprep.subr.bf16.mxu1 %v7542_v55  ;;  %v4008_v53 = vld [vmem:[%s13336_s3 + $0x150] sm:$0xff]  ;;  %v4011_v26 = vld [vmem:[%s13336_s3 + $0x168] sm:$0xff]  ;;  %v4013_v55 = vld [vmem:[%s13336_s3 + $0x178] sm:$0xff] }
 0x42c   :  { %v3933_v59 = vrot.slane %v3926_v57, %v3932_v36  ;;  %v3905_v7 = vmax.f32 %v3883_v1, %v3897_v25  ;;  %v3906_v16 = vmax.f32 %v3890_v61, %v3898_v2  ;;  %v3980_v1 = vld [vmem:[%s13336_s3 + $0x70] sm:$0xff]  ;;  %v7544_v61 = vpack.c.bf16 %v4471_v56, %v4470_v29  ;;  %v3983_v25 = vld [vmem:[%s13336_s3 + $0x88] sm:$0xff] }
 0x42d   :  { %v7422_v57 = vpack.c.bf16 %v3981_v51, %v3979_v50  ;;  %v7444_v50 = vpack.c.bf16 %v4000_v48, %v3998_v6  ;;  %v7452_v29 = vpack.c.bf16 %v4008_v53, %v4006_v40  ;;  %v7454_v56 = vpack.c.bf16 %v4013_v55, %v4011_v26  ;;  %v5713_v24 = vld [vmem:[%s13336_s3 + $0x430] sm:$0xff]  ;;  %v5715_v40 = vld [vmem:[%s13336_s3 + $0x440] sm:$0xff]  ;;  %v5720_v26 = vld [vmem:[%s13336_s3 + $0x468] sm:$0xff] }
 0x42e   :  { %v3934_v4 = vcombine.high %v3933_v59, %v3933_v59  ;;  %v3944_v63 = vrot.slane %v3933_v59, 7  ;;  %v3935_v34 = vcombine.low %v3905_v7, %v3906_v16  ;;  %v4472_v59 = vld [vmem:[%s13338_s5 + $0x20] sm:$0xff]  ;;  %v4473_v7 = vld [vmem:[%s13338_s5 + $0x28] sm:$0xff]  ;;  %v3985_v16 = vld [vmem:[%s13336_s3 + $0x98] sm:$0xff]  ;;  %7545 = vmatpush3.bf16.msra.mxu1 %v7544_v61 }
 0x42f   :  { %v5717_v53 = vld [vmem:[%s13336_s3 + $0x450] sm:$0xff]  ;;  %v5722_v55 = vld [vmem:[%s13336_s3 + $0x478] sm:$0xff] }
 0x430   :  { %v3945_v10 = vrot.slane %v3934_v4, 7  ;;  %3952 = vst [vmem:[#allocation3] sm:$0x1e] %v3944_v63  ;;  %v3942_v42 = vrot.slane %v3935_v34, %v3932_v36  ;;  %v4489_v36 = vld [vmem:[%s13338_s5 + $0xa8] sm:$0xff]  ;;  %v4490_v4 = vld [vmem:[%s13338_s5 + $0xb0] sm:$0xff]  ;;  %v4491_v63 = vld [vmem:[%s13338_s5 + $0xb8] sm:$0xff]  ;;  %v7424_v34 = vpack.c.bf16 %v3980_v1, %v3978_v62 }
 0x431   :  { %v7546_v2 = vpack.c.bf16 %v4489_v36, %v4488_v58  ;;  %v4010_v58 = vld [vmem:[%s13336_s3 + $0x160] sm:$0xff]  ;;  %v4012_v36 = vld [vmem:[%s13336_s3 + $0x170] sm:$0xff]  ;;  %v4017_v62 = vld [vmem:[%s13336_s3 + $0x198] sm:$0xff] }
 0x432   :  { %3953 = vst [vmem:[#allocation3 + $0x8] sm:$0x1e] %v3945_v10  ;;  %v3943_v22 = vcombine.high %v3942_v42, %v3942_v42  ;;  %v3946_v14 = vrot.slane %v3942_v42, 7  ;;  %v7548_v10 = vpack.c.bf16 %v4473_v7, %v4472_v59  ;;  %v7426_v42 = vpack.c.bf16 %v3985_v16, %v3983_v25  ;;  %v4016_v25 = vld [vmem:[%s13336_s3 + $0x190] sm:$0xff]  ;;  %v4021_v59 = vld [vmem:[%s13336_s3 + $0x1b8] sm:$0xff] }
 0x433   :  { %7547 = vmatprep.subr.bf16.mxu1 %v7546_v2  ;;  %v7456_v1 = vpack.c.bf16 %v4012_v36, %v4010_v58  ;;  %v4019_v2 = vld [vmem:[%s13336_s3 + $0x1a8] sm:$0xff]  ;;  %v5719_v58 = vld [vmem:[%s13336_s3 + $0x460] sm:$0xff]  ;;  %v5721_v36 = vld [vmem:[%s13336_s3 + $0x470] sm:$0xff] }
 0x434   :  { %v3947_v20 = vrot.slane %v3943_v22, 7  ;;  %3954 = vst [vmem:[#allocation3 + $0x10] sm:$0x1e] %v3946_v14  ;;  %v3982_v22 = vld [vmem:[%s13336_s3 + $0x80] sm:$0xff]  ;;  %v3984_v14 = vld [vmem:[%s13336_s3 + $0x90] sm:$0xff]  ;;  %7549 = vmatpush3.bf16.msra.mxu1 %v7548_v10  ;;  %v7462_v16 = vpack.c.bf16 %v4021_v59, %v4019_v2  ;;  %v4025_v10 = vld [vmem:[%s13336_s3 + $0x1d8] sm:$0xff] }
 0x435   :  { %v5728_v2 = vld [vmem:[%s13336_s3 + $0x4a8] sm:$0xff]  ;;  %v5730_v59 = vld [vmem:[%s13336_s3 + $0x4b8] sm:$0xff] }
 0x436   :  { %3955 = vst [vmem:[#allocation3 + $0x18] sm:$0x1e] %v3947_v20  ;;  %v7550_v20 = vpack.c.bf16 %v4491_v63, %v4490_v4  ;;  %v4018_v4 = vld [vmem:[%s13336_s3 + $0x1a0] sm:$0xff]  ;;  %v4020_v63 = vld [vmem:[%s13336_s3 + $0x1b0] sm:$0xff] }
 0x438   :  { %7551 = vmatprep.subr.bf16.mxu1 %v7550_v20  ;;  %v4024_v20 = vld [vmem:[%s13336_s3 + $0x1d0] sm:$0xff] }
 0x439   :  { %v7665_v23 = vld [vmem:[#allocation3] ss:$8 sps:$4 sm:$0xee]   ;;  %v7667_v44 = vld [vmem:[#allocation3 + $0x4] ss:$8 sps:$4 sm:$0x11]  }
 0x43a   :  { %v5637_v27 = vrot.slane %v7665_v23, 9  ;;  %v4047_v18 = vrot.slane %v7667_v44, 5  ;;  %v3987_v23 = vld [vmem:[%s13336_s3 + $0xa8] sm:$0xff]  ;;  %v3989_v44 = vld [vmem:[%s13336_s3 + $0xb8] sm:$0xff] }
 0x43c   :  { %v4048_v32 = vsel %vm4044_vm5, %v5637_v27, %v4047_v18  ;;  %v7430_v27 = vpack.c.bf16 %v3989_v44, %v3987_v23  ;;  %v3988_v18 = vld [vmem:[%s13336_s3 + $0xb0] sm:$0xff]  ;;  %v4027_v23 = vld [vmem:[%s13336_s3 + $0x1e8] sm:$0xff]  ;;  %v4029_v44 = vld [vmem:[%s13336_s3 + $0x1f8] sm:$0xff] }
 0x43d   :  { %v7668_v13 = vld [vmem:[#allocation3 + $0x10] ss:$8 sps:$4 sm:$0xee]   ;;  %v7670_v38 = vld [vmem:[#allocation3 + $0x14] ss:$8 sps:$4 sm:$0x11]  }
 0x43e   :  { %v5638_v21 = vrot.slane %v7668_v13, 9  ;;  %v4051_v30 = vrot.slane %v7670_v38, 5  ;;  %v7671_v46 = vld [vmem:[#allocation3 + $0x8] ss:$16 sps:$4 sm:$0xff]   ;;  %v7428_v13 = vpack.c.bf16 %v3984_v14, %v3982_v22  ;;  %v3986_v38 = vld [vmem:[%s13336_s3 + $0xa0] sm:$0xff] }
 0x43f   :  { %v7432_v0 = vpack.c.bf16 %v3988_v18, %v3986_v38  ;;  %v4022_v14 = vld [vmem:[%s13336_s3 + $0x1c0] sm:$0xff] }
 0x440   :  { %v4052_v33 = vsel %vm4044_vm5, %v5638_v21, %v4051_v30  ;;  %v3991_v21 = vld [vmem:[%s13336_s3 + $0xc8] sm:$0xff]  ;;  %v3993_v30 = vld [vmem:[%s13336_s3 + $0xd8] sm:$0xff]  ;;  %v7468_v38 = vpack.c.bf16 %v4024_v20, %v4022_v14  ;;  %v4026_v18 = vld [vmem:[%s13336_s3 + $0x1e0] sm:$0xff] }
 0x441   :  { %v4118_v35 = vcombine.low %v4048_v32, %v4052_v33  ;;  %v4119_v39 = vcombine.high %v4048_v32, %v4052_v33  ;;  %v7434_v5 = vpack.c.bf16 %v3993_v30, %v3991_v21  ;;  %v3995_v32 = vld [vmem:[%s13336_s3 + $0xe8] sm:$0xff]  ;;  %v3997_v33 = vld [vmem:[%s13336_s3 + $0xf8] sm:$0xff]  ;;  %v4028_v21 = vld [vmem:[%s13336_s3 + $0x1f0] sm:$0xff]  ;;  %v7470_v30 = vpack.c.bf16 %v4029_v44, %v4027_v23 }
 0x442   :  { %v5731_v14 = vld [vmem:[%s13336_s3 + $0x4c0] sm:$0xff]  ;;  %v5733_v20 = vld [vmem:[%s13336_s3 + $0x4d0] sm:$0xff]  ;;  %v5736_v23 = vld [vmem:[%s13336_s3 + $0x4e8] sm:$0xff] }
 0x443   :  { %4186 = vmatprep.mubr.f32.mxu0 %v4119_v39  ;;  %v7438_v39 = vpack.c.bf16 %v3997_v33, %v3995_v32  ;;  %v5738_v44 = vld [vmem:[%s13336_s3 + $0x4f8] sm:$0xff] }
 0x444   :  { %4187 = vmatmul.mubr.f32.vlgmr.msra.gmra.mrb[4].mxu0 %v4118_v35  ;;  %v7436_v35 = vpack.c.bf16 %v3992_v31, %v3990_v17  ;;  %v5708_v17 = vld [vmem:[%s13336_s3 + $0x408] sm:$0xff]  ;;  %v5710_v31 = vld [vmem:[%s13336_s3 + $0x418] sm:$0xff] }
 0x445   :  { %7413 = vmatpush1.bf16.msra.mxu0 %v7412_v41  ;;  %4261 = vmatprep.mubr.f32.mxu0 %v7671_v46  ;;  %v3994_v41 = vld [vmem:[%s13336_s3 + $0xe0] sm:$0xff] }
 0x446   :  { %7415 = vmatprep.subr.bf16.mxu0 %v7414_v43  ;;  %v3996_v43 = vld [vmem:[%s13336_s3 + $0xf0] sm:$0xff] }
 0x447   :  { %v7440_v46 = vpack.c.bf16 %v3996_v43, %v3994_v41  ;;  %v5707_v41 = vld [vmem:[%s13336_s3 + $0x400] sm:$0xff]  ;;  %v5709_v43 = vld [vmem:[%s13336_s3 + $0x410] sm:$0xff] }
 0x448   :  { %v7476_v48 = vpack.c.bf16 %v5709_v43, %v5707_v41  ;;  %v5743_v41 = vld [vmem:[%s13336_s3 + $0x520] sm:$0xff]  ;;  %v5745_v43 = vld [vmem:[%s13336_s3 + $0x530] sm:$0xff] }
 0x449   :  { %7417 = vmatpush1.bf16.msra.mxu0 %v7416_v9  ;;  %v4005_v9 = vld [vmem:[%s13336_s3 + $0x138] sm:$0xff] }
 0x44a   :  { %7419 = vmatprep.subr.bf16.mxu0 %v7418_v37  ;;  %v7446_v51 = vpack.c.bf16 %v4005_v9, %v4003_v8  ;;  %v4009_v37 = vld [vmem:[%s13336_s3 + $0x158] sm:$0xff]  ;;  %v7672_v8 = vld [vmem:[#allocation3] ss:$16 sps:$4 sm:$0xff]  }
 0x44b   :  { %v7450_v28 = vpack.c.bf16 %v4009_v37, %v4007_v52  ;;  %v5716_v52 = vld [vmem:[%s13336_s3 + $0x448] sm:$0xff]  ;;  %v5718_v37 = vld [vmem:[%s13336_s3 + $0x458] sm:$0xff] }
 0x44d   :  { %7421 = vmatpush1.bf16.msra.mxu0 %v7420_v60  ;;  %v4015_v60 = vld [vmem:[%s13336_s3 + $0x188] sm:$0xff] }
 0x44e   :  { %7423 = vmatprep.subr.bf16.mxu0 %v7422_v57  ;;  %v7458_v61 = vpack.c.bf16 %v4017_v62, %v4015_v60  ;;  %v4014_v57 = vld [vmem:[%s13336_s3 + $0x180] sm:$0xff]  ;;  %v5724_v60 = vld [vmem:[%s13336_s3 + $0x488] sm:$0xff]  ;;  %v5726_v62 = vld [vmem:[%s13336_s3 + $0x498] sm:$0xff] }
 0x44f   :  { %v7460_v7 = vpack.c.bf16 %v4016_v25, %v4014_v57  ;;  %v5723_v57 = vld [vmem:[%s13336_s3 + $0x480] sm:$0xff]  ;;  %v5725_v25 = vld [vmem:[%s13336_s3 + $0x490] sm:$0xff] }
 0x451   :  { %7425 = vmatpush1.bf16.msra.mxu0 %v7424_v34  ;;  %v4023_v34 = vld [vmem:[%s13336_s3 + $0x1c8] sm:$0xff] }
 0x452   :  { %7427 = vmatprep.subr.bf16.mxu0 %v7426_v42  ;;  %v7464_v42 = vpack.c.bf16 %v4020_v63, %v4018_v4  ;;  %v7466_v22 = vpack.c.bf16 %v4025_v10, %v4023_v34  ;;  %v5727_v4 = vld [vmem:[%s13336_s3 + $0x4a0] sm:$0xff]  ;;  %v5729_v63 = vld [vmem:[%s13336_s3 + $0x4b0] sm:$0xff]  ;;  %v5732_v34 = vld [vmem:[%s13336_s3 + $0x4c8] sm:$0xff] }
 0x453   :  { %v5734_v10 = vld [vmem:[%s13336_s3 + $0x4d8] sm:$0xff] }
 0x455   :  { %7429 = vmatpush1.bf16.msra.mxu0 %v7428_v13  ;;  %v7676_v13 = vld [vmem:[#allocation3 + $0x10] ss:$8 sps:$4 sm:$0xcc]  }
 0x456   :  { %7431 = vmatprep.subr.bf16.mxu0 %v7430_v27  ;;  %v7678_v27 = vld [vmem:[#allocation3 + $0x14] ss:$8 sps:$4 sm:$0x33]   ;;  %v5706_v32 = vrot.slane %v7676_v13, 10  ;;  %v7500_v13 = vpack.c.bf16 %v5733_v20, %v5731_v14 }
 0x457   :  { %v4289_v33 = vrot.slane %v7678_v27, 6  ;;  %v7502_v27 = vpack.c.bf16 %v5738_v44, %v5736_v23  ;;  %v4474_v14 = vld [vmem:[%s13338_s5 + $0x30] sm:$0xff]  ;;  %v4475_v20 = vld [vmem:[%s13338_s5 + $0x38] sm:$0xff]  ;;  %v4492_v44 = vld [vmem:[%s13338_s5 + $0xc0] sm:$0xff] }
 0x458   :  { %v7552_v23 = vpack.c.bf16 %v4475_v20, %v4474_v14 }
 0x459   :  { %7433 = vmatpush1.bf16.msra.mxu0 %v7432_v0  ;;  %v7673_v0 = vld [vmem:[#allocation3] ss:$8 sps:$4 sm:$0xcc]   ;;  %v13077_v6 = vsel %vm4282_vm8, %v5706_v32, %v4289_v33  ;;  %v5746_v33 = vld [vmem:[%s13336_s3 + $0x538] sm:$0xff] }
 0x45a   :  { %7435 = vmatprep.subr.bf16.mxu0 %v7434_v5  ;;  %v7675_v5 = vld [vmem:[#allocation3 + $0x4] ss:$8 sps:$4 sm:$0x33]   ;;  %v5705_v3 = vrot.slane %v7673_v0, 10  ;;  %7553 = vmatpush3.bf16.msra.mxu1 %v7552_v23 }
 0x45b   :  { %v4285_v45 = vrot.slane %v7675_v5, 6  ;;  %v5744_v32 = vld [vmem:[%s13336_s3 + $0x528] sm:$0xff] }
 0x45d   :  { %7437 = vmatpush1.bf16.msra.mxu0 %v7436_v35  ;;  %v7472_v35 = vpack.c.bf16 %v4028_v21, %v4026_v18  ;;  %v13079_v9 = vsel %vm4282_vm8, %v5705_v3, %v4285_v45  ;;  %v5737_v18 = vld [vmem:[%s13336_s3 + $0x4f0] sm:$0xff]  ;;  %v5740_v21 = vld [vmem:[%s13336_s3 + $0x508] sm:$0xff]  ;;  %v5750_v45 = vld [vmem:[%s13336_s3 + $0x558] sm:$0xff] }
 0x45e   :  { %7439 = vmatprep.subr.bf16.mxu0 %v7438_v39  ;;  %v7474_v39 = vpack.c.bf16 %v5710_v31, %v5708_v17  ;;  %v4357_v19 = vcombine.high %v13079_v9, %v13077_v6  ;;  %v5739_v17 = vld [vmem:[%s13336_s3 + $0x500] sm:$0xff]  ;;  %v5741_v31 = vld [vmem:[%s13336_s3 + $0x510] sm:$0xff]  ;;  %v5748_v3 = vld [vmem:[%s13336_s3 + $0x548] sm:$0xff] }
 0x461   :  { %7441 = vmatpush1.bf16.msra.mxu0 %v7440_v46  ;;  %v5712_v46 = vld [vmem:[%s13336_s3 + $0x428] sm:$0xff] }
 0x462   :  { %7443 = vmatprep.subr.bf16.mxu0 %v7442_v47  ;;  %v5714_v47 = vld [vmem:[%s13336_s3 + $0x438] sm:$0xff] }
 0x465   :  { %7445 = vmatpush1.bf16.msra.mxu0 %v7444_v50  ;;  %v7478_v50 = vpack.c.bf16 %v5714_v47, %v5712_v46  ;;  %v7512_v46 = vpack.c.bf16 %v5745_v43, %v5743_v41  ;;  %v7514_v47 = vpack.c.bf16 %v5750_v45, %v5748_v3  ;;  %v4498_v41 = vld [vmem:[%s13338_s5 + $0xf0] sm:$0xff]  ;;  %v4499_v43 = vld [vmem:[%s13338_s5 + $0xf8] sm:$0xff] }
 0x466   :  { %7447 = vmatprep.subr.bf16.mxu0 %v7446_v51  ;;  %v5711_v51 = vld [vmem:[%s13336_s3 + $0x420] sm:$0xff]  ;;  %v7566_v45 = vpack.c.bf16 %v4499_v43, %v4498_v41 }
 0x469   :  { %7449 = vmatpush1.bf16.msra.mxu0 %v7448_v54  ;;  %v7480_v54 = vpack.c.bf16 %v5713_v24, %v5711_v51  ;;  %v5754_v51 = vld [vmem:[%s13336_s3 + $0x578] sm:$0xff] }
 0x46a   :  { %7451 = vmatprep.subr.bf16.mxu0 %v7450_v28  ;;  %v7482_v28 = vpack.c.bf16 %v5718_v37, %v5716_v52  ;;  %v5751_v52 = vld [vmem:[%s13336_s3 + $0x560] sm:$0xff]  ;;  %v5753_v37 = vld [vmem:[%s13336_s3 + $0x570] sm:$0xff] }
 0x46d   :  { %7453 = vmatpush1.bf16.msra.mxu0 %v7452_v29  ;;  %v7484_v29 = vpack.c.bf16 %v5717_v53, %v5715_v40  ;;  %v7520_v40 = vpack.c.bf16 %v5753_v37, %v5751_v52 }
 0x46e   :  { %7455 = vmatprep.subr.bf16.mxu0 %v7454_v56  ;;  %v7486_v56 = vpack.c.bf16 %v5722_v55, %v5720_v26  ;;  %v5755_v26 = vld [vmem:[%s13336_s3 + $0x580] sm:$0xff]  ;;  %v5757_v55 = vld [vmem:[%s13336_s3 + $0x590] sm:$0xff] }
 0x471   :  { %7457 = vmatpush1.bf16.msra.mxu0 %v7456_v1  ;;  %v7488_v1 = vpack.c.bf16 %v5721_v36, %v5719_v58  ;;  %v7524_v58 = vpack.c.bf16 %v5757_v55, %v5755_v26 }
 0x472   :  { %7459 = vmatprep.subr.bf16.mxu0 %v7458_v61  ;;  %v7490_v61 = vpack.c.bf16 %v5726_v62, %v5724_v60  ;;  %v5759_v60 = vld [vmem:[%s13336_s3 + $0x5a0] sm:$0xff]  ;;  %v5761_v62 = vld [vmem:[%s13336_s3 + $0x5b0] sm:$0xff] }
 0x475   :  { %7461 = vmatpush1.bf16.msra.mxu0 %v7460_v7  ;;  %v7492_v7 = vpack.c.bf16 %v5725_v25, %v5723_v57  ;;  %v7528_v57 = vpack.c.bf16 %v5761_v62, %v5759_v60 }
 0x476   :  { %7463 = vmatprep.subr.bf16.mxu0 %v7462_v16  ;;  %v7494_v16 = vpack.c.bf16 %v5730_v59, %v5728_v2  ;;  %v5763_v2 = vld [vmem:[%s13336_s3 + $0x5c0] sm:$0xff]  ;;  %v5765_v59 = vld [vmem:[%s13336_s3 + $0x5d0] sm:$0xff] }
 0x479   :  { %7465 = vmatpush1.bf16.msra.mxu0 %v7464_v42  ;;  %v7496_v42 = vpack.c.bf16 %v5729_v63, %v5727_v4  ;;  %v7532_v4 = vpack.c.bf16 %v5765_v59, %v5763_v2 }
 0x47a   :  { %7467 = vmatprep.subr.bf16.mxu0 %v7466_v22  ;;  %v7498_v22 = vpack.c.bf16 %v5734_v10, %v5732_v34  ;;  %v5767_v34 = vld [vmem:[%s13336_s3 + $0x5e0] sm:$0xff]  ;;  %v5769_v10 = vld [vmem:[%s13336_s3 + $0x5f0] sm:$0xff] }
 0x47d   :  { %7469 = vmatpush1.bf16.msra.mxu0 %v7468_v38  ;;  %v5735_v38 = vld [vmem:[%s13336_s3 + $0x4e0] sm:$0xff] }
 0x47e   :  { %7471 = vmatprep.subr.bf16.mxu0 %v7470_v30  ;;  %v5742_v30 = vld [vmem:[%s13336_s3 + $0x518] sm:$0xff]  ;;  %v7504_v0 = vpack.c.bf16 %v5737_v18, %v5735_v38  ;;  %v4494_v18 = vld [vmem:[%s13338_s5 + $0xd0] sm:$0xff] }
 0x47f   :  { %v7506_v5 = vpack.c.bf16 %v5742_v30, %v5740_v21  ;;  %v4495_v21 = vld [vmem:[%s13338_s5 + $0xd8] sm:$0xff] }
 0x480   :  { %v7558_v30 = vpack.c.bf16 %v4495_v21, %v4494_v18 }
 0x481   :  { %7473 = vmatpush1.bf16.msra.mxu0 %v7472_v35  ;;  %v7508_v35 = vpack.c.bf16 %v5741_v31, %v5739_v17  ;;  %v4496_v31 = vld [vmem:[%s13338_s5 + $0xe0] sm:$0xff] }
 0x482   :  { %7475 = vmatprep.subr.bf16.mxu0 %v7474_v39  ;;  %v7510_v39 = vpack.c.bf16 %v5746_v33, %v5744_v32  ;;  %v4497_v32 = vld [vmem:[%s13338_s5 + $0xe8] sm:$0xff]  ;;  %v4480_v33 = vld [vmem:[%s13338_s5 + $0x60] sm:$0xff] }
 0x484   :  { %4262 = vmatmul.mubr.f32.vlgmr.msra.gmra.mrb[4].mxu0 %v7672_v8  ;;  %v5749_v8 = vld [vmem:[%s13336_s3 + $0x550] sm:$0xff] }
 0x485   :  { %7477 = vmatpush1.bf16.msra.mxu0 %v7476_v48  ;;  %4424 = vmatprep.mubr.f32.mxu0 %v4357_v19  ;;  %v5747_v48 = vld [vmem:[%s13336_s3 + $0x540] sm:$0xff] }
 0x486   :  { %7479 = vmatprep.subr.bf16.mxu0 %v7478_v50  ;;  %v5752_v50 = vld [vmem:[%s13336_s3 + $0x568] sm:$0xff]  ;;  %v7516_v24 = vpack.c.bf16 %v5749_v8, %v5747_v48  ;;  %v4433_v8 = vld [vmem:[%s13339_s4] sm:$0x3] }
 0x487   :  { %v7518_v19 = vpack.c.bf16 %v5754_v51, %v5752_v50  ;;  %v4438_v50 = vrot.slane %v4433_v8, %v3813_v12  ;;  %v4442_v51 = vrot.slane %v4433_v8, %v3817_v15  ;;  %v5771_v15 = vld [vmem:[%s13341_s6] ss:$0 sm:$0xff] }
 0x489   :  { %7481 = vmatpush1.bf16.msra.mxu0 %v7480_v54  ;;  %v5756_v54 = vld [vmem:[%s13336_s3 + $0x588] sm:$0xff] }
 0x48a   :  { %7483 = vmatprep.subr.bf16.mxu0 %v7482_v28  ;;  %v5758_v28 = vld [vmem:[%s13336_s3 + $0x598] sm:$0xff] }
 0x48b   :  { %v7522_v53 = vpack.c.bf16 %v5758_v28, %v5756_v54 }
 0x48d   :  { %7485 = vmatpush1.bf16.msra.mxu0 %v7484_v29  ;;  %v5760_v29 = vld [vmem:[%s13336_s3 + $0x5a8] sm:$0xff] }
 0x48e   :  { %7487 = vmatprep.subr.bf16.mxu0 %v7486_v56  ;;  %v5762_v56 = vld [vmem:[%s13336_s3 + $0x5b8] sm:$0xff] }
 0x48f   :  { %v7526_v36 = vpack.c.bf16 %v5762_v56, %v5760_v29 }
 0x491   :  { %7489 = vmatpush1.bf16.msra.mxu0 %v7488_v1  ;;  %v5764_v1 = vld [vmem:[%s13336_s3 + $0x5c8] sm:$0xff] }
 0x492   :  { %7491 = vmatprep.subr.bf16.mxu0 %v7490_v61  ;;  %v5766_v61 = vld [vmem:[%s13336_s3 + $0x5d8] sm:$0xff] }
 0x493   :  { %v7530_v25 = vpack.c.bf16 %v5766_v61, %v5764_v1 }
 0x495   :  { %7493 = vmatpush1.bf16.msra.mxu0 %v7492_v7  ;;  %v5768_v7 = vld [vmem:[%s13336_s3 + $0x5e8] sm:$0xff] }
 0x496   :  { %7495 = vmatprep.subr.bf16.mxu0 %v7494_v16  ;;  %v5770_v16 = vld [vmem:[%s13336_s3 + $0x5f8] sm:$0xff] }
 0x497   :  { %v7534_v63 = vpack.c.bf16 %v5770_v16, %v5768_v7 }
 0x499   :  { %7497 = vmatpush1.bf16.msra.mxu0 %v7496_v42  ;;  %v7536_v42 = vpack.c.bf16 %v5769_v10, %v5767_v34 }
 0x49a   :  { %7499 = vmatprep.subr.bf16.mxu0 %v7498_v22  ;;  %v4356_v22 = vcombine.low %v13079_v9, %v13077_v6  ;;  %v4476_v9 = vld [vmem:[%s13338_s5 + $0x40] sm:$0xff] }
 0x49d   :  { %7501 = vmatpush1.bf16.msra.mxu0 %v7500_v13  ;;  %v4493_v13 = vld [vmem:[%s13338_s5 + $0xc8] sm:$0xff] }
 0x49e   :  { %7503 = vmatprep.subr.bf16.mxu0 %v7502_v27  ;;  %v7554_v6 = vpack.c.bf16 %v4493_v13, %v4492_v44  ;;  %v4477_v27 = vld [vmem:[%s13338_s5 + $0x48] sm:$0xff] }
 0x49f   :  { %v7556_v38 = vpack.c.bf16 %v4477_v27, %v4476_v9 }
 0x4a0   :  { %7555 = vmatprep.subr.bf16.mxu1 %v7554_v6 }
 0x4a1   :  { %7505 = vmatpush1.bf16.msra.mxu0 %v7504_v0  ;;  %7557 = vmatpush3.bf16.msra.mxu1 %v7556_v38  ;;  %v4478_v0 = vld [vmem:[%s13338_s5 + $0x50] sm:$0xff] }
 0x4a2   :  { %7507 = vmatprep.subr.bf16.mxu0 %v7506_v5  ;;  %v4479_v5 = vld [vmem:[%s13338_s5 + $0x58] sm:$0xff]  ;;  %7559 = vmatprep.subr.bf16.mxu1 %v7558_v30 }
 0x4a3   :  { %v7560_v17 = vpack.c.bf16 %v4479_v5, %v4478_v0 }
 0x4a5   :  { %7509 = vmatpush1.bf16.msra.mxu0 %v7508_v35  ;;  %v7562_v35 = vpack.c.bf16 %v4497_v32, %v4496_v31  ;;  %7561 = vmatpush3.bf16.msra.mxu1 %v7560_v17 }
 0x4a6   :  { %7511 = vmatprep.subr.bf16.mxu0 %v7510_v39  ;;  %v4481_v39 = vld [vmem:[%s13338_s5 + $0x68] sm:$0xff] }
 0x4a7   :  { %v7564_v3 = vpack.c.bf16 %v4481_v39, %v4480_v33  ;;  %7563 = vmatprep.subr.bf16.mxu1 %v7562_v35 }
 0x4a9   :  { %7513 = vmatpush1.bf16.msra.mxu0 %v7512_v46  ;;  %v4482_v46 = vld [vmem:[%s13338_s5 + $0x70] sm:$0xff]  ;;  %7565 = vmatpush3.bf16.msra.mxu1 %v7564_v3 }
 0x4aa   :  { %7515 = vmatprep.subr.bf16.mxu0 %v7514_v47  ;;  %v4483_v47 = vld [vmem:[%s13338_s5 + $0x78] sm:$0xff]  ;;  %7567 = vmatprep.subr.bf16.mxu1 %v7566_v45 }
 0x4ab   :  { %v7568_v48 = vpack.c.bf16 %v4483_v47, %v4482_v46 }
 0x4ad   :  { %7517 = vmatpush1.bf16.msra.mxu0 %v7516_v24  ;;  %7569 = vmatpush3.bf16.msra.mxu1 %v7568_v48 }
 0x4ae   :  { %7519 = vmatprep.subr.bf16.mxu0 %v7518_v19 }
 0x4b1   :  { %7521 = vmatpush1.bf16.msra.mxu0 %v7520_v40 }
 0x4b2   :  { %7523 = vmatprep.subr.bf16.mxu0 %v7522_v53 }
 0x4b5   :  { %7525 = vmatpush1.bf16.msra.mxu0 %v7524_v58 }
 0x4b6   :  { %7527 = vmatprep.subr.bf16.mxu0 %v7526_v36 }
 0x4b9   :  { %7529 = vmatpush1.bf16.msra.mxu0 %v7528_v57  ;;  %v5773_v57 = vld [vmem:[#allocation4] ss:$0 sm:$0xff] }
 0x4ba   :  { %7531 = vmatprep.subr.bf16.mxu0 %v7530_v25 }
 0x4bd   :  { %7533 = vmatpush1.bf16.msra.mxu0 %v7532_v4 }
 0x4be   :  { %7535 = vmatprep.subr.bf16.mxu0 %v7534_v63 }
 0x4c1   :  { %7537 = vmatpush1.bf16.msra.mxu0 %v7536_v42 }
 0x4c4   :  { %4425 = vmatmul.mubr.f32.vlgmr.msra.gmra.mrb[4].mxu0 %v4356_v22 }
 0x597   :  { %v4426_v24 = vpop.f32.mrb[4].mxu0 }
 0x598   :  { %v4445_v19 = vadd.f32 %v4438_v50, %v4426_v24  ;;  %v4428_v52 = vpop.f32.mrb[5].mxu0 }
 0x599   :  { %v4446_v37 = vadd.f32 %v4442_v51, %v4428_v52 }
 0x59a   :  { %v4447_v54 = vmax.f32 %v4445_v19, 0.0 }
 0x59b   :  { %v4448_v28 = vmax.f32 %v4446_v37, 0.0 }
 0x59d   :  { %v4449_v40 = vmax.f32 %v4447_v54, %v4448_v28 }
 0x59f   :  { %v4456_v53 = vrot.slane %v4449_v40, %v12824_v49 }
 0x5a1   :  { %v4458_v26 = vrot.slane %v4456_v53, 4 }
 0x5a3   :  { %v4460_v55 = vmax.f32 %v4456_v53, %v4458_v26 }
 0x5a5   :  { %v4467_v29 = vrot.slane %v4460_v55, %v12824_v49  ;;  %v5772_v49 = vld [vmem:[%s13342_s7] ss:$0 sm:$0xff] }
 0x5a7   :  { %v4508_v56 = vcombine.high %v4467_v29, %v4467_v29 }
 0x5a9   :  { %4574 = vmatprep.mubr.f32.mxu1 %v4508_v56 }
 0x5aa   :  { %4575 = vmatmul.mubr.f32.vlgmr.msra.gmra.mrb[8].mxu1 %v4467_v29 }
 0x67d   :  { %v5807_v12 = vpop.f32.mrb[8].mxu1 }
 0x67e   :  { %v5808_v58 = vpop.f32.mrb[9].mxu1 }
 0x67f   :  { %v5809_v36 = vadd.f32 %v5808_v58, %v5807_v12 }
 0x681   :  { %v4577_v60 = vadd.f32 %v5809_v36, %v5771_v15 }
 0x683   :  { %v4580_v62 = vmax.f32 %v4577_v60, 0.0 }
 0x685   :  { %v4588_v1 = vmul.f32 %v5772_v49, %v4580_v62 }
 0x687   :  { %v4590_v61 = vsel %vm4589_vm9, %v4588_v1, 0.0 }
 0x688   :  { %4591 = vadd.xlane.f32.xlu0 %v4590_v61 }
 0x715   :  { %v4592_v25 = vpop.xlane.xlu0 %4591 }
 0x716   :  { %v4600_v2 = vadd.f32 %v5773_v57, %v4592_v25 }
 0x718   :  { %v5774_v59 = vmul.f32 -1.442695, %v4600_v2 }
 0x71a   :  { %7679 = vpow2.f32 %v5774_v59 }
 0x724   :  { %v7680_v7 = vpop.eup %7679 }
 0x725   :  { %v4604_v16 = vadd.f32 1.0, %v7680_v7 }
 0x727   :  { %7681 = vrcp.f32 %v4604_v16 }
 0x731   :  { %v7682_v4 = vpop.eup %7681 }
 0x732   :  { %4608 = vst.msk [vmem:[%s13343_s9] sm:$0x3] %vm4607_vm10, %v7682_v4 }

</bundles_post_ra>
